<compile_context>
chip_gen: v6e
topology: v6e:2x2x1
jax: 0.10.0
libtpu: 0.0.40
codegen_flags: <defaults>
</compile_context>

<pallas_src>
import math
import functools

import jax
import jax.numpy as jnp
from jax.experimental import pallas as pl
from jax.experimental.pallas import tpu as pltpu

PAD_token = 0
NEG_INF = -1e9          # stands in for torch's -inf boolean-mask fill
LN_EPS = 1e-5           # torch.nn.LayerNorm default


def _vmem_limit_bytes():
    """Scoped-VMEM budget derived from the chip (v7x 64MiB -> 48, v5e/v6e 128MiB -> 96)."""
    cap = 64 * 1024 * 1024
    try:
        info = pltpu.get_tpu_info()
        cap = int(getattr(info, "vmem_capacity_bytes", cap))
    except Exception:
        pass
    return int(min(max(cap * 3 // 4, 16 * 1024 * 1024), 96 * 1024 * 1024))


VMEM_LIMIT = _vmem_limit_bytes()

# Robust across jax versions.
_CompilerParams = getattr(pltpu, "CompilerParams", None) or getattr(pltpu, "TPUCompilerParams")
_HAS_APPROX_RECIP = hasattr(pl, "reciprocal")


def _compiler_params():
    return _CompilerParams(dimension_semantics=("parallel",),
                           vmem_limit_bytes=VMEM_LIMIT)


def _recip(x):
    if _HAS_APPROX_RECIP:
        return pl.reciprocal(x, approx=True)     # EUP slot, ~free
    return 1.0 / x


def _layernorm(z, g, b):
    mean = jnp.mean(z, axis=-1, keepdims=True)
    zc = z - mean
    var = jnp.mean(zc * zc, axis=-1, keepdims=True)
    return zc * jax.lax.rsqrt(var + LN_EPS) * g + b


def _mha_project(q, k, v, wo, num_heads, key_bias=None, causal=False):
    """Multi-head attention + output projection (bias added by the caller).

    q: (Lq, D) bf16 (already scaled by 1/sqrt(head_dim)), k/v: (Lk, D) bf16,
    wo: (D, D) bf16, key_bias: optional (1, Lk) f32 additive bias.
    Returns (Lq, D) f32 = concat_h(softmax(q_h k_h^T + mask) v_h) @ wo.
    The per-head out-projection is accumulated so no lane concat is needed.
    """
    Lq, D = q.shape
    Lk = k.shape[0]
    dh = D // num_heads
    if causal:
        row = jax.lax.broadcasted_iota(jnp.int32, (Lq, Lk), 0)
        col = jax.lax.broadcasted_iota(jnp.int32, (Lq, Lk), 1)
        future = col > row
    acc = jnp.zeros((Lq, D), jnp.float32)
    for h in range(num_heads):                       # static unrolled head loop
        sl = slice(h * dh, (h + 1) * dh)
        s = jax.lax.dot_general(q[:, sl], k[:, sl], (((1,), (1,)), ((), ())),
                                preferred_element_type=jnp.float32)
        if key_bias is not None:
            s = s + key_bias
        if causal:
            s = jnp.where(future, NEG_INF, s)
        s = s - jnp.max(s, axis=-1, keepdims=True)
        p = jnp.exp(s)
        p = p * _recip(jnp.sum(p, axis=-1, keepdims=True))
        oh = jnp.dot(p.astype(jnp.bfloat16), v[:, sl],
                     preferred_element_type=jnp.float32)
        acc = acc + jnp.dot(oh.astype(jnp.bfloat16), wo[sl, :],
                            preferred_element_type=jnp.float32)
    return acc


# --------------------------- fused layer kernels ---------------------------

def _encoder_layer_kernel(*refs, num_heads, scale, final_norm):
    if final_norm:
        (x_ref, bias_ref,
         w_qkv_ref, b_qkv_ref, wo_ref, bo_ref, ln1_g_ref, ln1_b_ref,
         w1_ref, b1_ref, w2_ref, b2_ref, ln2_g_ref, ln2_b_ref,
         fg_ref, fb_ref, o_ref) = refs
    else:
        (x_ref, bias_ref,
         w_qkv_ref, b_qkv_ref, wo_ref, bo_ref, ln1_g_ref, ln1_b_ref,
         w1_ref, b1_ref, w2_ref, b2_ref, ln2_g_ref, ln2_b_ref, o_ref) = refs
        fg_ref = fb_ref = None

    x = x_ref[...]                                               # (L, D) bf16
    D = x.shape[-1]
    # fused QKV projection (kept in VMEM/vregs, never written to HBM)
    qkv = (jnp.dot(x, w_qkv_ref[...], preferred_element_type=jnp.float32)
           + b_qkv_ref[...])                                     # (L, 3D) f32
    q = (qkv[:, :D] * scale).astype(jnp.bfloat16)
    k = qkv[:, D:2 * D].astype(jnp.bfloat16)
    v = qkv[:, 2 * D:].astype(jnp.bfloat16)
    attn = _mha_project(q, k, v, wo_ref[...], num_heads,
                        key_bias=bias_ref[...], causal=False)
    x1 = _layernorm(x.astype(jnp.float32) + attn + bo_ref[...],
                    ln1_g_ref[...], ln1_b_ref[...])
    # FFN (hidden kept in VMEM), residual, LN
    h = jnp.dot(x1.astype(jnp.bfloat16), w1_ref[...],
                preferred_element_type=jnp.float32) + b1_ref[...]
    h = jnp.maximum(h, 0.0)
    y = jnp.dot(h.astype(jnp.bfloat16), w2_ref[...],
                preferred_element_type=jnp.float32) + b2_ref[...]
    out = _layernorm(x1 + y, ln2_g_ref[...], ln2_b_ref[...])
    if final_norm:                               # encoder-stack final LayerNorm fused in
        out = _layernorm(out, fg_ref[...], fb_ref[...])
    o_ref[...] = out.astype(o_ref.dtype)


def pallas_encoder_layer(x, src_bias, p, num_heads, final_norm_params=None):
    """x: (B, L, D) bf16, src_bias: (B, 1, L) f32 additive. Returns (B, L, D) bf16."""
    B, L, D = x.shape
    scale = 1.0 / math.sqrt(D // num_heads)
    final_norm = final_norm_params is not None
    vec = lambda a: a.reshape(1, -1)

    args = [x, src_bias,
            p["w_qkv"], vec(p["b_qkv"]), p["wo"], vec(p["bo"]),
            vec(p["ln1_g"]), vec(p["ln1_b"]),
            p["w1"], vec(p["b1"]), p["w2"], vec(p["b2"]),
            vec(p["ln2_g"]), vec(p["ln2_b"])]
    if final_norm:
        g, b = final_norm_params
        args += [vec(g), vec(b)]

    in_specs = ([pl.BlockSpec((None, L, D), lambda i: (i, 0, 0)),
                 pl.BlockSpec((None, 1, L), lambda i: (i, 0, 0))]
                + [pl.BlockSpec(a.shape, lambda i: (0, 0)) for a in args[2:]])

    kern = functools.partial(_encoder_layer_kernel, num_heads=num_heads,
                             scale=scale, final_norm=final_norm)
    return pl.pallas_call(
        kern,
        grid=(B,),
        in_specs=in_specs,
        out_specs=pl.BlockSpec((None, L, D), lambda i: (i, 0, 0)),
        out_shape=jax.ShapeDtypeStruct((B, L, D), jnp.bfloat16),
        compiler_params=_compiler_params(),
    )(*args)


def _decoder_layer_kernel(y_ref, mem_ref, tbias_ref,
                          sa_w_qkv_ref, sa_b_qkv_ref, sa_wo_ref, sa_bo_ref,
                          ln1_g_ref, ln1_b_ref,
                          ca_wq_ref, ca_bq_ref, ca_w_kv_ref, ca_b_kv_ref,
                          ca_wo_ref, ca_bo_ref, ln2_g_ref, ln2_b_ref,
                          w1_ref, b1_ref, w2_ref, b2_ref, ln3_g_ref, ln3_b_ref,
                          o_ref, *, num_heads, scale):
    y = y_ref[...]                                               # (Lt, D) bf16
    D = y.shape[-1]
    # --- masked self-attention block ---
    qkv = (jnp.dot(y, sa_w_qkv_ref[...], preferred_element_type=jnp.float32)
           + sa_b_qkv_ref[...])
    q = (qkv[:, :D] * scale).astype(jnp.bfloat16)
    k = qkv[:, D:2 * D].astype(jnp.bfloat16)
    v = qkv[:, 2 * D:].astype(jnp.bfloat16)
    sa = _mha_project(q, k, v, sa_wo_ref[...], num_heads,
                      key_bias=tbias_ref[...], causal=True)
    y1 = _layernorm(y.astype(jnp.float32) + sa + sa_bo_ref[...],
                    ln1_g_ref[...], ln1_b_ref[...])
    # --- cross-attention block (memory_key_padding_mask is None in reference) ---
    mem = mem_ref[...]                                           # (Ls, D) bf16
    qc = ((jnp.dot(y1.astype(jnp.bfloat16), ca_wq_ref[...],
                   preferred_element_type=jnp.float32) + ca_bq_ref[...])
          * scale).astype(jnp.bfloat16)
    kv = (jnp.dot(mem, ca_w_kv_ref[...], preferred_element_type=jnp.float32)
          + ca_b_kv_ref[...])
    kc = kv[:, :D].astype(jnp.bfloat16)
    vc = kv[:, D:].astype(jnp.bfloat16)
    ca = _mha_project(qc, kc, vc, ca_wo_ref[...], num_heads,
                      key_bias=None, causal=False)
    y2 = _layernorm(y1 + ca + ca_bo_ref[...], ln2_g_ref[...], ln2_b_ref[...])
    # --- feed-forward block ---
    h = jnp.dot(y2.astype(jnp.bfloat16), w1_ref[...],
                preferred_element_type=jnp.float32) + b1_ref[...]
    h = jnp.maximum(h, 0.0)
    z = jnp.dot(h.astype(jnp.bfloat16), w2_ref[...],
                preferred_element_type=jnp.float32) + b2_ref[...]
    o_ref[...] = _layernorm(y2 + z, ln3_g_ref[...], ln3_b_ref[...]).astype(o_ref.dtype)


def pallas_decoder_layer(y, memory, tgt_bias, p, num_heads):
    """y: (B, Lt, D) bf16, memory: (B, Ls, D) bf16, tgt_bias: (B, 1, Lt) f32."""
    B, Lt, D = y.shape
    Ls = memory.shape[1]
    scale = 1.0 / math.sqrt(D // num_heads)
    vec = lambda a: a.reshape(1, -1)

    args = [y, memory, tgt_bias,
            p["sa_w_qkv"], vec(p["sa_b_qkv"]), p["sa_wo"], vec(p["sa_bo"]),
            vec(p["ln1_g"]), vec(p["ln1_b"]),
            p["ca_wq"], vec(p["ca_bq"]), p["ca_w_kv"], vec(p["ca_b_kv"]),
            p["ca_wo"], vec(p["ca_bo"]), vec(p["ln2_g"]), vec(p["ln2_b"]),
            p["w1"], vec(p["b1"]), p["w2"], vec(p["b2"]),
            vec(p["ln3_g"]), vec(p["ln3_b"])]

    in_specs = ([pl.BlockSpec((None, Lt, D), lambda i: (i, 0, 0)),
                 pl.BlockSpec((None, Ls, D), lambda i: (i, 0, 0)),
                 pl.BlockSpec((None, 1, Lt), lambda i: (i, 0, 0))]
                + [pl.BlockSpec(a.shape, lambda i: (0, 0)) for a in args[3:]])

    kern = functools.partial(_decoder_layer_kernel, num_heads=num_heads, scale=scale)
    return pl.pallas_call(
        kern,
        grid=(B,),
        in_specs=in_specs,
        out_specs=pl.BlockSpec((None, Lt, D), lambda i: (i, 0, 0)),
        out_shape=jax.ShapeDtypeStruct((B, Lt, D), jnp.bfloat16),
        compiler_params=_compiler_params(),
    )(*args)


def _final_ln_linear_kernel(y_ref, g_ref, b_ref, w_ref, bo_ref, o_ref):
    """o = LayerNorm(y) @ W + b, lane-dense (vocab padded to 128) f32 output."""
    z = _layernorm(y_ref[...].astype(jnp.float32), g_ref[...], b_ref[...])
    o_ref[...] = (jnp.dot(z.astype(jnp.bfloat16), w_ref[...],
                          preferred_element_type=jnp.float32) + bo_ref[...])


def pallas_final_ln_linear(y, gamma, beta, w_pad, b_pad):
    B, Lt, D = y.shape
    Vp = w_pad.shape[1]
    vec = lambda a: a.reshape(1, -1)
    args = [y, vec(gamma), vec(beta), w_pad, vec(b_pad)]
    in_specs = ([pl.BlockSpec((None, Lt, D), lambda i: (i, 0, 0))]
                + [pl.BlockSpec(a.shape, lambda i: (0, 0)) for a in args[1:]])
    return pl.pallas_call(
        _final_ln_linear_kernel,
        grid=(B,),
        in_specs=in_specs,
        out_specs=pl.BlockSpec((None, Lt, Vp), lambda i: (i, 0, 0)),
        out_shape=jax.ShapeDtypeStruct((B, Lt, Vp), jnp.float32),
        compiler_params=_compiler_params(),
    )(*args)


# ------------------------- model glue (plain JAX) --------------------------

def make_positional_embedding(max_len, d):
    pos = jnp.arange(max_len, dtype=jnp.float32)[:, None]
    two_j = (jnp.arange(d, dtype=jnp.float32) // 2) * 2.0
    angles = pos / jnp.power(10000.0, two_j / d)
    pe = jnp.zeros((max_len, d), jnp.float32)
    pe = pe.at[:, 0::2].set(jnp.sin(angles[:, 0::2]))
    pe = pe.at[:, 1::2].set(jnp.cos(angles[:, 1::2]))
    return pe[None]                                              # (1, L, D)


def transformer_forward(params, src, tgt, *, num_heads, out_dim):
    """src/tgt: (batch, seq) int32 -> logits (batch, tgt_seq, out_dim)."""
    B, Ls = src.shape
    _, Lt = tgt.shape
    D = params["enc_emb"].shape[1]

    # key-padding additive biases (causal mask is generated in-kernel)
    src_bias = jnp.where(src == PAD_token, NEG_INF, 0.0).astype(jnp.float32).reshape(B, 1, Ls)
    tgt_bias = jnp.where(tgt == PAD_token, NEG_INF, 0.0).astype(jnp.float32).reshape(B, 1, Lt)

    # embedding * sqrt(d_model) + positional encoding (dropout = identity)
    s = (params["enc_emb"][src] * math.sqrt(D) + params["pos"][:, :Ls, :]).astype(jnp.bfloat16)
    t = (params["dec_emb"][tgt] * math.sqrt(D) + params["pos"][:, :Lt, :]).astype(jnp.bfloat16)

    # batch-first layout throughout (math identical to torch's seq-first)
    x = s
    n_enc = len(params["enc_layers"])
    for li, p in enumerate(params["enc_layers"]):
        fin = (params["enc_norm_g"], params["enc_norm_b"]) if li == n_enc - 1 else None
        x = pallas_encoder_layer(x, src_bias, p, num_heads, final_norm_params=fin)
    memory = x                                                   # (B, Ls, D) bf16, normed

    y = t
    for p in params["dec_layers"]:
        y = pallas_decoder_layer(y, memory, tgt_bias, p, num_heads)

    logits = pallas_final_ln_linear(y, params["dec_norm_g"], params["dec_norm_b"],
                                    params["out_w_pad"], params["out_b_pad"])
    return logits[:, :, :out_dim]


# --------------------------- parameter creation ----------------------------

def init_params(key, input_token_size, output_token_size, dim_model, num_heads,
                num_encoder_layers, num_decoder_layers, dim_feedforward, max_len):
    keys = iter(jax.random.split(key, 4096))

    def xavier(shape, dtype=jnp.float32):
        a = math.sqrt(6.0 / (shape[0] + shape[1]))
        return jax.random.uniform(next(keys), shape, jnp.float32, -a, a).astype(dtype)

    W = functools.partial(xavier, dtype=jnp.bfloat16)            # MXU weights in bf16
    zeros = lambda s: jnp.zeros(s, jnp.float32)
    ones = lambda s: jnp.ones(s, jnp.float32)
    d, ff = dim_model, dim_feedforward

    def enc_layer():
        return dict(w_qkv=W((d, 3 * d)), b_qkv=zeros((3 * d,)),
                    wo=W((d, d)), bo=zeros((d,)),
                    w1=W((d, ff)), b1=zeros((ff,)),
                    w2=W((ff, d)), b2=zeros((d,)),
                    ln1_g=ones((d,)), ln1_b=zeros((d,)),
                    ln2_g=ones((d,)), ln2_b=zeros((d,)))

    def dec_layer():
        return dict(sa_w_qkv=W((d, 3 * d)), sa_b_qkv=zeros((3 * d,)),
                    sa_wo=W((d, d)), sa_bo=zeros((d,)),
                    ca_wq=W((d, d)), ca_bq=zeros((d,)),
                    ca_w_kv=W((d, 2 * d)), ca_b_kv=zeros((2 * d,)),
                    ca_wo=W((d, d)), ca_bo=zeros((d,)),
                    w1=W((d, ff)), b1=zeros((ff,)),
                    w2=W((ff, d)), b2=zeros((d,)),
                    ln1_g=ones((d,)), ln1_b=zeros((d,)),
                    ln2_g=ones((d,)), ln2_b=zeros((d,)),
                    ln3_g=ones((d,)), ln3_b=zeros((d,)))

    # pad the vocab projection to 128 lanes for lane-dense stores
    v_pad = ((output_token_size + 127) // 128) * 128
    out_w = xavier((d, output_token_size))
    out_w_pad = jnp.zeros((d, v_pad), jnp.float32)
    out_w_pad = out_w_pad.at[:, :output_token_size].set(out_w).astype(jnp.bfloat16)

    return dict(
        enc_emb=xavier((input_token_size, d)),
        dec_emb=xavier((output_token_size, d)),
        pos=make_positional_embedding(max_len, d),
        enc_layers=[enc_layer() for _ in range(num_encoder_layers)],
        dec_layers=[dec_layer() for _ in range(num_decoder_layers)],
        enc_norm_g=ones((d,)), enc_norm_b=zeros((d,)),
        dec_norm_g=ones((d,)), dec_norm_b=zeros((d,)),
        out_w_pad=out_w_pad, out_b_pad=zeros((v_pad,)),
    )


# ---------------------------------- main -----------------------------------

if __name__ == "__main__":
    # small shapes consistent with the module
    input_token_size = 50
    output_token_size = 64
    dim_model = 32
    num_heads = 4
    num_encoder_layers = 2
    num_decoder_layers = 2
    dim_feedforward = 2048          # nn.Transformer default
    MAX_SENTENCE_LENGTH = 16
    batch = 2
    src_len = 8
    tgt_len = 8

    key = jax.random.PRNGKey(0)
    k_param, k_src, k_tgt = jax.random.split(key, 3)

    params = init_params(k_param, input_token_size, output_token_size, dim_model,
                         num_heads, num_encoder_layers, num_decoder_layers,
                         dim_feedforward, MAX_SENTENCE_LENGTH)

    src = jax.random.randint(k_src, (batch, src_len), 1, input_token_size, dtype=jnp.int32)
    tgt = jax.random.randint(k_tgt, (batch, tgt_len), 1, output_token_size, dtype=jnp.int32)
    # introduce some padding tokens to exercise the padding masks
    src = src.at[:, -2:].set(PAD_token)
    tgt = tgt.at[:, -1:].set(PAD_token)

    fwd = jax.jit(functools.partial(transformer_forward, num_heads=num_heads,
                                    out_dim=output_token_size))
    logits = jax.block_until_ready(fwd(params, src, tgt))

    assert logits.shape == (batch, tgt_len, output_token_size), logits.shape
    if bool(jnp.isnan(logits).any()):
        print("NaN found in logits")
    # TODO(synk): dropout layers are identity (eval semantics); torch's -inf
    # boolean masks are approximated with a -1e9 additive bias, and the tiny
    # per-head (head_dim=8) matmuls remain a statically unrolled loop because a
    # head-batched dot_general needs 3-D relayouts that are riskier to lower at
    # these shapes than the unrolled form.
    print("KERNEL_OK")
</pallas_src>

<mosaic_0001>
module attributes {stable_mosaic.version = 11 : i64} {
  func.func @_encoder_layer_kernel(%arg0: i32, %arg1: memref<1x8x32xbf16, #tpu.memory_space<vmem>>, %arg2: memref<1x1x8xf32, #tpu.memory_space<vmem>>, %arg3: memref<32x96xbf16, #tpu.memory_space<vmem>>, %arg4: memref<1x96xf32, #tpu.memory_space<vmem>>, %arg5: memref<32x32xbf16, #tpu.memory_space<vmem>>, %arg6: memref<1x32xf32, #tpu.memory_space<vmem>>, %arg7: memref<1x32xf32, #tpu.memory_space<vmem>>, %arg8: memref<1x32xf32, #tpu.memory_space<vmem>>, %arg9: memref<32x2048xbf16, #tpu.memory_space<vmem>>, %arg10: memref<1x2048xf32, #tpu.memory_space<vmem>>, %arg11: memref<2048x32xbf16, #tpu.memory_space<vmem>>, %arg12: memref<1x32xf32, #tpu.memory_space<vmem>>, %arg13: memref<1x32xf32, #tpu.memory_space<vmem>>, %arg14: memref<1x32xf32, #tpu.memory_space<vmem>>, %arg15: memref<1x32xf32, #tpu.memory_space<vmem>>, %arg16: memref<1x32xf32, #tpu.memory_space<vmem>>, %arg17: memref<1x8x32xbf16, #tpu.memory_space<vmem>>) attributes {dimension_semantics = [#tpu.dimension_semantics<parallel>], iteration_bounds = array<i64: 2>, scalar_prefetch = 0 : i64, scratch_operands = 0 : i64, tpu.core_type = #tpu.core_type<tc>, window_params = [{transform_indices = @transform_0, window_bounds = array<i64: 1, 8, 32>}, {transform_indices = @transform_1, window_bounds = array<i64: 1, 1, 8>}, {pipeline_mode = #tpu.pipeline_mode<synchronous>, transform_indices = @transform_2, window_bounds = array<i64: 32, 96>}, {pipeline_mode = #tpu.pipeline_mode<synchronous>, transform_indices = @transform_3, window_bounds = array<i64: 1, 96>}, {pipeline_mode = #tpu.pipeline_mode<synchronous>, transform_indices = @transform_4, window_bounds = array<i64: 32, 32>}, {pipeline_mode = #tpu.pipeline_mode<synchronous>, transform_indices = @transform_5, window_bounds = array<i64: 1, 32>}, {pipeline_mode = #tpu.pipeline_mode<synchronous>, transform_indices = @transform_6, window_bounds = array<i64: 1, 32>}, {pipeline_mode = #tpu.pipeline_mode<synchronous>, transform_indices = @transform_7, window_bounds = array<i64: 1, 32>}, {pipeline_mode = #tpu.pipeline_mode<synchronous>, transform_indices = @transform_8, window_bounds = array<i64: 32, 2048>}, {pipeline_mode = #tpu.pipeline_mode<synchronous>, transform_indices = @transform_9, window_bounds = array<i64: 1, 2048>}, {pipeline_mode = #tpu.pipeline_mode<synchronous>, transform_indices = @transform_10, window_bounds = array<i64: 2048, 32>}, {pipeline_mode = #tpu.pipeline_mode<synchronous>, transform_indices = @transform_11, window_bounds = array<i64: 1, 32>}, {pipeline_mode = #tpu.pipeline_mode<synchronous>, transform_indices = @transform_12, window_bounds = array<i64: 1, 32>}, {pipeline_mode = #tpu.pipeline_mode<synchronous>, transform_indices = @transform_13, window_bounds = array<i64: 1, 32>}, {pipeline_mode = #tpu.pipeline_mode<synchronous>, transform_indices = @transform_14, window_bounds = array<i64: 1, 32>}, {pipeline_mode = #tpu.pipeline_mode<synchronous>, transform_indices = @transform_15, window_bounds = array<i64: 1, 32>}, {transform_indices = @transform_16, window_bounds = array<i64: 1, 8, 32>}]} {
    %c0 = arith.constant 0 : index
    %c0_0 = arith.constant 0 : index
    %c0_1 = arith.constant 0 : index
    %0 = vector.load %arg1[%c0, %c0_0, %c0_1] : memref<1x8x32xbf16, #tpu.memory_space<vmem>>, vector<1x8x32xbf16>
    %1 = vector.shape_cast %0 : vector<1x8x32xbf16> to vector<8x32xbf16>
    %c0_2 = arith.constant 0 : index
    %c0_3 = arith.constant 0 : index
    %2 = vector.load %arg3[%c0_2, %c0_3] : memref<32x96xbf16, #tpu.memory_space<vmem>>, vector<32x96xbf16>
    %cst = arith.constant dense<0.000000e+00> : vector<8x96xf32>
    %3 = tpu.matmul %1, %2, %cst {dimension_numbers = #tpu.dot_dimension_numbers<[1], [0], [0], [1], [0, 0, 1, 1], [], []>} : vector<8x32xbf16>, vector<32x96xbf16>, vector<8x96xf32> -> vector<8x96xf32>
    %c0_4 = arith.constant 0 : index
    %c0_5 = arith.constant 0 : index
    %4 = vector.load %arg4[%c0_4, %c0_5] : memref<1x96xf32, #tpu.memory_space<vmem>>, vector<1x96xf32>
    %5 = vector.broadcast %4 : vector<1x96xf32> to vector<8x96xf32>
    %6 = arith.addf %3, %5 : vector<8x96xf32>
    %7 = vector.extract_strided_slice %6 {offsets = [0, 0], sizes = [8, 32], strides = [1, 1]} : vector<8x96xf32> to vector<8x32xf32>
    %cst_6 = arith.constant 0.353553385 : f32
    %8 = vector.broadcast %cst_6 : f32 to vector<8x32xf32>
    %9 = arith.mulf %7, %8 : vector<8x32xf32>
    %10 = arith.truncf %9 : vector<8x32xf32> to vector<8x32xbf16>
    %11 = vector.extract_strided_slice %6 {offsets = [0, 32], sizes = [8, 32], strides = [1, 1]} : vector<8x96xf32> to vector<8x32xf32>
    %12 = arith.truncf %11 : vector<8x32xf32> to vector<8x32xbf16>
    %13 = vector.extract_strided_slice %6 {offsets = [0, 64], sizes = [8, 32], strides = [1, 1]} : vector<8x96xf32> to vector<8x32xf32>
    %14 = arith.truncf %13 : vector<8x32xf32> to vector<8x32xbf16>
    %c0_7 = arith.constant 0 : index
    %c0_8 = arith.constant 0 : index
    %15 = vector.load %arg5[%c0_7, %c0_8] : memref<32x32xbf16, #tpu.memory_space<vmem>>, vector<32x32xbf16>
    %c0_9 = arith.constant 0 : index
    %c0_10 = arith.constant 0 : index
    %c0_11 = arith.constant 0 : index
    %16 = vector.load %arg2[%c0_9, %c0_10, %c0_11] : memref<1x1x8xf32, #tpu.memory_space<vmem>>, vector<1x1x8xf32>
    %17 = vector.shape_cast %16 : vector<1x1x8xf32> to vector<1x8xf32>
    %cst_12 = arith.constant 0.000000e+00 : f32
    %18 = vector.broadcast %cst_12 : f32 to vector<8x32xf32>
    %19 = vector.extract_strided_slice %10 {offsets = [0, 0], sizes = [8, 8], strides = [1, 1]} : vector<8x32xbf16> to vector<8x8xbf16>
    %20 = vector.extract_strided_slice %12 {offsets = [0, 0], sizes = [8, 8], strides = [1, 1]} : vector<8x32xbf16> to vector<8x8xbf16>
    %cst_13 = arith.constant dense<0.000000e+00> : vector<8x8xf32>
    %21 = tpu.matmul %19, %20, %cst_13 {dimension_numbers = #tpu.dot_dimension_numbers<[1], [1], [0], [0], [0, 0, 1, 0], [], []>} : vector<8x8xbf16>, vector<8x8xbf16>, vector<8x8xf32> -> vector<8x8xf32>
    %22 = vector.broadcast %17 : vector<1x8xf32> to vector<8x8xf32>
    %23 = arith.addf %21, %22 : vector<8x8xf32>
    %cst_14 = arith.constant dense<0xFF800000> : vector<8xf32>
    %24 = vector.multi_reduction <maximumf>, %23, %cst_14 [1] : vector<8x8xf32> to vector<8xf32>
    %25 = vector.shape_cast %24 : vector<8xf32> to vector<8x1xf32>
    %26 = vector.broadcast %25 : vector<8x1xf32> to vector<8x8xf32>
    %27 = arith.subf %23, %26 : vector<8x8xf32>
    %28 = math.exp %27 : vector<8x8xf32>
    %cst_15 = arith.constant dense<0.000000e+00> : vector<8xf32>
    %29 = vector.multi_reduction <add>, %28, %cst_15 [1] : vector<8x8xf32> to vector<8xf32>
    %30 = vector.shape_cast %29 : vector<8xf32> to vector<8x1xf32>
    %31 = tpu.reciprocal %30 {approx = true} : vector<8x1xf32> -> vector<8x1xf32>
    %32 = vector.broadcast %31 : vector<8x1xf32> to vector<8x8xf32>
    %33 = arith.mulf %28, %32 : vector<8x8xf32>
    %34 = arith.truncf %33 : vector<8x8xf32> to vector<8x8xbf16>
    %35 = vector.extract_strided_slice %14 {offsets = [0, 0], sizes = [8, 8], strides = [1, 1]} : vector<8x32xbf16> to vector<8x8xbf16>
    %cst_16 = arith.constant dense<0.000000e+00> : vector<8x8xf32>
    %36 = tpu.matmul %34, %35, %cst_16 {dimension_numbers = #tpu.dot_dimension_numbers<[1], [0], [0], [1], [0, 0, 1, 1], [], []>} : vector<8x8xbf16>, vector<8x8xbf16>, vector<8x8xf32> -> vector<8x8xf32>
    %37 = arith.truncf %36 : vector<8x8xf32> to vector<8x8xbf16>
    %38 = vector.extract_strided_slice %15 {offsets = [0, 0], sizes = [8, 32], strides = [1, 1]} : vector<32x32xbf16> to vector<8x32xbf16>
    %cst_17 = arith.constant dense<0.000000e+00> : vector<8x32xf32>
    %39 = tpu.matmul %37, %38, %cst_17 {dimension_numbers = #tpu.dot_dimension_numbers<[1], [0], [0], [1], [0, 0, 1, 1], [], []>} : vector<8x8xbf16>, vector<8x32xbf16>, vector<8x32xf32> -> vector<8x32xf32>
    %40 = arith.addf %18, %39 : vector<8x32xf32>
    %41 = vector.extract_strided_slice %10 {offsets = [0, 8], sizes = [8, 8], strides = [1, 1]} : vector<8x32xbf16> to vector<8x8xbf16>
    %42 = vector.extract_strided_slice %12 {offsets = [0, 8], sizes = [8, 8], strides = [1, 1]} : vector<8x32xbf16> to vector<8x8xbf16>
    %cst_18 = arith.constant dense<0.000000e+00> : vector<8x8xf32>
    %43 = tpu.matmul %41, %42, %cst_18 {dimension_numbers = #tpu.dot_dimension_numbers<[1], [1], [0], [0], [0, 0, 1, 0], [], []>} : vector<8x8xbf16>, vector<8x8xbf16>, vector<8x8xf32> -> vector<8x8xf32>
    %44 = vector.broadcast %17 : vector<1x8xf32> to vector<8x8xf32>
    %45 = arith.addf %43, %44 : vector<8x8xf32>
    %cst_19 = arith.constant dense<0xFF800000> : vector<8xf32>
    %46 = vector.multi_reduction <maximumf>, %45, %cst_19 [1] : vector<8x8xf32> to vector<8xf32>
    %47 = vector.shape_cast %46 : vector<8xf32> to vector<8x1xf32>
    %48 = vector.broadcast %47 : vector<8x1xf32> to vector<8x8xf32>
    %49 = arith.subf %45, %48 : vector<8x8xf32>
    %50 = math.exp %49 : vector<8x8xf32>
    %cst_20 = arith.constant dense<0.000000e+00> : vector<8xf32>
    %51 = vector.multi_reduction <add>, %50, %cst_20 [1] : vector<8x8xf32> to vector<8xf32>
    %52 = vector.shape_cast %51 : vector<8xf32> to vector<8x1xf32>
    %53 = tpu.reciprocal %52 {approx = true} : vector<8x1xf32> -> vector<8x1xf32>
    %54 = vector.broadcast %53 : vector<8x1xf32> to vector<8x8xf32>
    %55 = arith.mulf %50, %54 : vector<8x8xf32>
    %56 = arith.truncf %55 : vector<8x8xf32> to vector<8x8xbf16>
    %57 = vector.extract_strided_slice %14 {offsets = [0, 8], sizes = [8, 8], strides = [1, 1]} : vector<8x32xbf16> to vector<8x8xbf16>
    %cst_21 = arith.constant dense<0.000000e+00> : vector<8x8xf32>
    %58 = tpu.matmul %56, %57, %cst_21 {dimension_numbers = #tpu.dot_dimension_numbers<[1], [0], [0], [1], [0, 0, 1, 1], [], []>} : vector<8x8xbf16>, vector<8x8xbf16>, vector<8x8xf32> -> vector<8x8xf32>
    %59 = arith.truncf %58 : vector<8x8xf32> to vector<8x8xbf16>
    %60 = vector.extract_strided_slice %15 {offsets = [8, 0], sizes = [8, 32], strides = [1, 1]} : vector<32x32xbf16> to vector<8x32xbf16>
    %cst_22 = arith.constant dense<0.000000e+00> : vector<8x32xf32>
    %61 = tpu.matmul %59, %60, %cst_22 {dimension_numbers = #tpu.dot_dimension_numbers<[1], [0], [0], [1], [0, 0, 1, 1], [], []>} : vector<8x8xbf16>, vector<8x32xbf16>, vector<8x32xf32> -> vector<8x32xf32>
    %62 = arith.addf %40, %61 : vector<8x32xf32>
    %63 = vector.extract_strided_slice %10 {offsets = [0, 16], sizes = [8, 8], strides = [1, 1]} : vector<8x32xbf16> to vector<8x8xbf16>
    %64 = vector.extract_strided_slice %12 {offsets = [0, 16], sizes = [8, 8], strides = [1, 1]} : vector<8x32xbf16> to vector<8x8xbf16>
    %cst_23 = arith.constant dense<0.000000e+00> : vector<8x8xf32>
    %65 = tpu.matmul %63, %64, %cst_23 {dimension_numbers = #tpu.dot_dimension_numbers<[1], [1], [0], [0], [0, 0, 1, 0], [], []>} : vector<8x8xbf16>, vector<8x8xbf16>, vector<8x8xf32> -> vector<8x8xf32>
    %66 = vector.broadcast %17 : vector<1x8xf32> to vector<8x8xf32>
    %67 = arith.addf %65, %66 : vector<8x8xf32>
    %cst_24 = arith.constant dense<0xFF800000> : vector<8xf32>
    %68 = vector.multi_reduction <maximumf>, %67, %cst_24 [1] : vector<8x8xf32> to vector<8xf32>
    %69 = vector.shape_cast %68 : vector<8xf32> to vector<8x1xf32>
    %70 = vector.broadcast %69 : vector<8x1xf32> to vector<8x8xf32>
    %71 = arith.subf %67, %70 : vector<8x8xf32>
    %72 = math.exp %71 : vector<8x8xf32>
    %cst_25 = arith.constant dense<0.000000e+00> : vector<8xf32>
    %73 = vector.multi_reduction <add>, %72, %cst_25 [1] : vector<8x8xf32> to vector<8xf32>
    %74 = vector.shape_cast %73 : vector<8xf32> to vector<8x1xf32>
    %75 = tpu.reciprocal %74 {approx = true} : vector<8x1xf32> -> vector<8x1xf32>
    %76 = vector.broadcast %75 : vector<8x1xf32> to vector<8x8xf32>
    %77 = arith.mulf %72, %76 : vector<8x8xf32>
    %78 = arith.truncf %77 : vector<8x8xf32> to vector<8x8xbf16>
    %79 = vector.extract_strided_slice %14 {offsets = [0, 16], sizes = [8, 8], strides = [1, 1]} : vector<8x32xbf16> to vector<8x8xbf16>
    %cst_26 = arith.constant dense<0.000000e+00> : vector<8x8xf32>
    %80 = tpu.matmul %78, %79, %cst_26 {dimension_numbers = #tpu.dot_dimension_numbers<[1], [0], [0], [1], [0, 0, 1, 1], [], []>} : vector<8x8xbf16>, vector<8x8xbf16>, vector<8x8xf32> -> vector<8x8xf32>
    %81 = arith.truncf %80 : vector<8x8xf32> to vector<8x8xbf16>
    %82 = vector.extract_strided_slice %15 {offsets = [16, 0], sizes = [8, 32], strides = [1, 1]} : vector<32x32xbf16> to vector<8x32xbf16>
    %cst_27 = arith.constant dense<0.000000e+00> : vector<8x32xf32>
    %83 = tpu.matmul %81, %82, %cst_27 {dimension_numbers = #tpu.dot_dimension_numbers<[1], [0], [0], [1], [0, 0, 1, 1], [], []>} : vector<8x8xbf16>, vector<8x32xbf16>, vector<8x32xf32> -> vector<8x32xf32>
    %84 = arith.addf %62, %83 : vector<8x32xf32>
    %85 = vector.extract_strided_slice %10 {offsets = [0, 24], sizes = [8, 8], strides = [1, 1]} : vector<8x32xbf16> to vector<8x8xbf16>
    %86 = vector.extract_strided_slice %12 {offsets = [0, 24], sizes = [8, 8], strides = [1, 1]} : vector<8x32xbf16> to vector<8x8xbf16>
    %cst_28 = arith.constant dense<0.000000e+00> : vector<8x8xf32>
    %87 = tpu.matmul %85, %86, %cst_28 {dimension_numbers = #tpu.dot_dimension_numbers<[1], [1], [0], [0], [0, 0, 1, 0], [], []>} : vector<8x8xbf16>, vector<8x8xbf16>, vector<8x8xf32> -> vector<8x8xf32>
    %88 = vector.broadcast %17 : vector<1x8xf32> to vector<8x8xf32>
    %89 = arith.addf %87, %88 : vector<8x8xf32>
    %cst_29 = arith.constant dense<0xFF800000> : vector<8xf32>
    %90 = vector.multi_reduction <maximumf>, %89, %cst_29 [1] : vector<8x8xf32> to vector<8xf32>
    %91 = vector.shape_cast %90 : vector<8xf32> to vector<8x1xf32>
    %92 = vector.broadcast %91 : vector<8x1xf32> to vector<8x8xf32>
    %93 = arith.subf %89, %92 : vector<8x8xf32>
    %94 = math.exp %93 : vector<8x8xf32>
    %cst_30 = arith.constant dense<0.000000e+00> : vector<8xf32>
    %95 = vector.multi_reduction <add>, %94, %cst_30 [1] : vector<8x8xf32> to vector<8xf32>
    %96 = vector.shape_cast %95 : vector<8xf32> to vector<8x1xf32>
    %97 = tpu.reciprocal %96 {approx = true} : vector<8x1xf32> -> vector<8x1xf32>
    %98 = vector.broadcast %97 : vector<8x1xf32> to vector<8x8xf32>
    %99 = arith.mulf %94, %98 : vector<8x8xf32>
    %100 = arith.truncf %99 : vector<8x8xf32> to vector<8x8xbf16>
    %101 = vector.extract_strided_slice %14 {offsets = [0, 24], sizes = [8, 8], strides = [1, 1]} : vector<8x32xbf16> to vector<8x8xbf16>
    %cst_31 = arith.constant dense<0.000000e+00> : vector<8x8xf32>
    %102 = tpu.matmul %100, %101, %cst_31 {dimension_numbers = #tpu.dot_dimension_numbers<[1], [0], [0], [1], [0, 0, 1, 1], [], []>} : vector<8x8xbf16>, vector<8x8xbf16>, vector<8x8xf32> -> vector<8x8xf32>
    %103 = arith.truncf %102 : vector<8x8xf32> to vector<8x8xbf16>
    %104 = vector.extract_strided_slice %15 {offsets = [24, 0], sizes = [8, 32], strides = [1, 1]} : vector<32x32xbf16> to vector<8x32xbf16>
    %cst_32 = arith.constant dense<0.000000e+00> : vector<8x32xf32>
    %105 = tpu.matmul %103, %104, %cst_32 {dimension_numbers = #tpu.dot_dimension_numbers<[1], [0], [0], [1], [0, 0, 1, 1], [], []>} : vector<8x8xbf16>, vector<8x32xbf16>, vector<8x32xf32> -> vector<8x32xf32>
    %106 = arith.addf %84, %105 : vector<8x32xf32>
    %107 = arith.extf %1 : vector<8x32xbf16> to vector<8x32xf32>
    %108 = arith.addf %107, %106 : vector<8x32xf32>
    %c0_33 = arith.constant 0 : index
    %c0_34 = arith.constant 0 : index
    %109 = vector.load %arg6[%c0_33, %c0_34] : memref<1x32xf32, #tpu.memory_space<vmem>>, vector<1x32xf32>
    %110 = vector.broadcast %109 : vector<1x32xf32> to vector<8x32xf32>
    %111 = arith.addf %108, %110 : vector<8x32xf32>
    %c0_35 = arith.constant 0 : index
    %c0_36 = arith.constant 0 : index
    %112 = vector.load %arg7[%c0_35, %c0_36] : memref<1x32xf32, #tpu.memory_space<vmem>>, vector<1x32xf32>
    %c0_37 = arith.constant 0 : index
    %c0_38 = arith.constant 0 : index
    %113 = vector.load %arg8[%c0_37, %c0_38] : memref<1x32xf32, #tpu.memory_space<vmem>>, vector<1x32xf32>
    %cst_39 = arith.constant dense<0.000000e+00> : vector<8xf32>
    %114 = vector.multi_reduction <add>, %111, %cst_39 [1] : vector<8x32xf32> to vector<8xf32>
    %115 = vector.shape_cast %114 : vector<8xf32> to vector<8x1xf32>
    %cst_40 = arith.constant 3.200000e+01 : f32
    %116 = vector.broadcast %cst_40 : f32 to vector<8x1xf32>
    %117 = arith.divf %115, %116 : vector<8x1xf32>
    %118 = vector.broadcast %117 : vector<8x1xf32> to vector<8x32xf32>
    %119 = arith.subf %111, %118 : vector<8x32xf32>
    %120 = arith.mulf %119, %119 : vector<8x32xf32>
    %cst_41 = arith.constant dense<0.000000e+00> : vector<8xf32>
    %121 = vector.multi_reduction <add>, %120, %cst_41 [1] : vector<8x32xf32> to vector<8xf32>
    %122 = vector.shape_cast %121 : vector<8xf32> to vector<8x1xf32>
    %cst_42 = arith.constant 3.200000e+01 : f32
    %123 = vector.broadcast %cst_42 : f32 to vector<8x1xf32>
    %124 = arith.divf %122, %123 : vector<8x1xf32>
    %cst_43 = arith.constant 9.99999974E-6 : f32
    %125 = vector.broadcast %cst_43 : f32 to vector<8x1xf32>
    %126 = arith.addf %124, %125 : vector<8x1xf32>
    %127 = math.rsqrt %126 : vector<8x1xf32>
    %128 = vector.broadcast %127 : vector<8x1xf32> to vector<8x32xf32>
    %129 = arith.mulf %119, %128 : vector<8x32xf32>
    %130 = vector.broadcast %112 : vector<1x32xf32> to vector<8x32xf32>
    %131 = arith.mulf %129, %130 : vector<8x32xf32>
    %132 = vector.broadcast %113 : vector<1x32xf32> to vector<8x32xf32>
    %133 = arith.addf %131, %132 : vector<8x32xf32>
    %134 = arith.truncf %133 : vector<8x32xf32> to vector<8x32xbf16>
    %c0_44 = arith.constant 0 : index
    %c0_45 = arith.constant 0 : index
    %135 = vector.load %arg9[%c0_44, %c0_45] : memref<32x2048xbf16, #tpu.memory_space<vmem>>, vector<32x2048xbf16>
    %cst_46 = arith.constant dense<0.000000e+00> : vector<8x2048xf32>
    %136 = tpu.matmul %134, %135, %cst_46 {dimension_numbers = #tpu.dot_dimension_numbers<[1], [0], [0], [1], [0, 0, 1, 1], [], []>} : vector<8x32xbf16>, vector<32x2048xbf16>, vector<8x2048xf32> -> vector<8x2048xf32>
    %c0_47 = arith.constant 0 : index
    %c0_48 = arith.constant 0 : index
    %137 = vector.load %arg10[%c0_47, %c0_48] : memref<1x2048xf32, #tpu.memory_space<vmem>>, vector<1x2048xf32>
    %138 = vector.broadcast %137 : vector<1x2048xf32> to vector<8x2048xf32>
    %139 = arith.addf %136, %138 : vector<8x2048xf32>
    %cst_49 = arith.constant 0.000000e+00 : f32
    %140 = vector.broadcast %cst_49 : f32 to vector<8x2048xf32>
    %141 = arith.maximumf %139, %140 : vector<8x2048xf32>
    %142 = arith.truncf %141 : vector<8x2048xf32> to vector<8x2048xbf16>
    %c0_50 = arith.constant 0 : index
    %c0_51 = arith.constant 0 : index
    %143 = vector.load %arg11[%c0_50, %c0_51] : memref<2048x32xbf16, #tpu.memory_space<vmem>>, vector<2048x32xbf16>
    %cst_52 = arith.constant dense<0.000000e+00> : vector<8x32xf32>
    %144 = tpu.matmul %142, %143, %cst_52 {dimension_numbers = #tpu.dot_dimension_numbers<[1], [0], [0], [1], [0, 0, 1, 1], [], []>} : vector<8x2048xbf16>, vector<2048x32xbf16>, vector<8x32xf32> -> vector<8x32xf32>
    %c0_53 = arith.constant 0 : index
    %c0_54 = arith.constant 0 : index
    %145 = vector.load %arg12[%c0_53, %c0_54] : memref<1x32xf32, #tpu.memory_space<vmem>>, vector<1x32xf32>
    %146 = vector.broadcast %145 : vector<1x32xf32> to vector<8x32xf32>
    %147 = arith.addf %144, %146 : vector<8x32xf32>
    %148 = arith.addf %133, %147 : vector<8x32xf32>
    %c0_55 = arith.constant 0 : index
    %c0_56 = arith.constant 0 : index
    %149 = vector.load %arg13[%c0_55, %c0_56] : memref<1x32xf32, #tpu.memory_space<vmem>>, vector<1x32xf32>
    %c0_57 = arith.constant 0 : index
    %c0_58 = arith.constant 0 : index
    %150 = vector.load %arg14[%c0_57, %c0_58] : memref<1x32xf32, #tpu.memory_space<vmem>>, vector<1x32xf32>
    %cst_59 = arith.constant dense<0.000000e+00> : vector<8xf32>
    %151 = vector.multi_reduction <add>, %148, %cst_59 [1] : vector<8x32xf32> to vector<8xf32>
    %152 = vector.shape_cast %151 : vector<8xf32> to vector<8x1xf32>
    %cst_60 = arith.constant 3.200000e+01 : f32
    %153 = vector.broadcast %cst_60 : f32 to vector<8x1xf32>
    %154 = arith.divf %152, %153 : vector<8x1xf32>
    %155 = vector.broadcast %154 : vector<8x1xf32> to vector<8x32xf32>
    %156 = arith.subf %148, %155 : vector<8x32xf32>
    %157 = arith.mulf %156, %156 : vector<8x32xf32>
    %cst_61 = arith.constant dense<0.000000e+00> : vector<8xf32>
    %158 = vector.multi_reduction <add>, %157, %cst_61 [1] : vector<8x32xf32> to vector<8xf32>
    %159 = vector.shape_cast %158 : vector<8xf32> to vector<8x1xf32>
    %cst_62 = arith.constant 3.200000e+01 : f32
    %160 = vector.broadcast %cst_62 : f32 to vector<8x1xf32>
    %161 = arith.divf %159, %160 : vector<8x1xf32>
    %cst_63 = arith.constant 9.99999974E-6 : f32
    %162 = vector.broadcast %cst_63 : f32 to vector<8x1xf32>
    %163 = arith.addf %161, %162 : vector<8x1xf32>
    %164 = math.rsqrt %163 : vector<8x1xf32>
    %165 = vector.broadcast %164 : vector<8x1xf32> to vector<8x32xf32>
    %166 = arith.mulf %156, %165 : vector<8x32xf32>
    %167 = vector.broadcast %149 : vector<1x32xf32> to vector<8x32xf32>
    %168 = arith.mulf %166, %167 : vector<8x32xf32>
    %169 = vector.broadcast %150 : vector<1x32xf32> to vector<8x32xf32>
    %170 = arith.addf %168, %169 : vector<8x32xf32>
    %c0_64 = arith.constant 0 : index
    %c0_65 = arith.constant 0 : index
    %171 = vector.load %arg15[%c0_64, %c0_65] : memref<1x32xf32, #tpu.memory_space<vmem>>, vector<1x32xf32>
    %c0_66 = arith.constant 0 : index
    %c0_67 = arith.constant 0 : index
    %172 = vector.load %arg16[%c0_66, %c0_67] : memref<1x32xf32, #tpu.memory_space<vmem>>, vector<1x32xf32>
    %cst_68 = arith.constant dense<0.000000e+00> : vector<8xf32>
    %173 = vector.multi_reduction <add>, %170, %cst_68 [1] : vector<8x32xf32> to vector<8xf32>
    %174 = vector.shape_cast %173 : vector<8xf32> to vector<8x1xf32>
    %cst_69 = arith.constant 3.200000e+01 : f32
    %175 = vector.broadcast %cst_69 : f32 to vector<8x1xf32>
    %176 = arith.divf %174, %175 : vector<8x1xf32>
    %177 = vector.broadcast %176 : vector<8x1xf32> to vector<8x32xf32>
    %178 = arith.subf %170, %177 : vector<8x32xf32>
    %179 = arith.mulf %178, %178 : vector<8x32xf32>
    %cst_70 = arith.constant dense<0.000000e+00> : vector<8xf32>
    %180 = vector.multi_reduction <add>, %179, %cst_70 [1] : vector<8x32xf32> to vector<8xf32>
    %181 = vector.shape_cast %180 : vector<8xf32> to vector<8x1xf32>
    %cst_71 = arith.constant 3.200000e+01 : f32
    %182 = vector.broadcast %cst_71 : f32 to vector<8x1xf32>
    %183 = arith.divf %181, %182 : vector<8x1xf32>
    %cst_72 = arith.constant 9.99999974E-6 : f32
    %184 = vector.broadcast %cst_72 : f32 to vector<8x1xf32>
    %185 = arith.addf %183, %184 : vector<8x1xf32>
    %186 = math.rsqrt %185 : vector<8x1xf32>
    %187 = vector.broadcast %186 : vector<8x1xf32> to vector<8x32xf32>
    %188 = arith.mulf %178, %187 : vector<8x32xf32>
    %189 = vector.broadcast %171 : vector<1x32xf32> to vector<8x32xf32>
    %190 = arith.mulf %188, %189 : vector<8x32xf32>
    %191 = vector.broadcast %172 : vector<1x32xf32> to vector<8x32xf32>
    %192 = arith.addf %190, %191 : vector<8x32xf32>
    %193 = arith.truncf %192 : vector<8x32xf32> to vector<8x32xbf16>
    %c0_73 = arith.constant 0 : index
    %c0_74 = arith.constant 0 : index
    %c0_75 = arith.constant 0 : index
    %194 = vector.load %arg17[%c0_73, %c0_74, %c0_75] : memref<1x8x32xbf16, #tpu.memory_space<vmem>>, vector<1x8x32xbf16>
    %195 = vector.shape_cast %194 : vector<1x8x32xbf16> to vector<8x32xbf16>
    %196 = vector.shape_cast %193 : vector<8x32xbf16> to vector<1x8x32xbf16>
    tpu.vector_store %arg17[%c0_73, %c0_74, %c0_75], %196 {strides = array<i32>} : memref<1x8x32xbf16, #tpu.memory_space<vmem>>, vector<1x8x32xbf16>,
    return
  }
  func.func @transform_0(%arg0: i32) -> (i32, i32, i32) {
    %c0_i32 = arith.constant 0 : i32
    %c0_i32_0 = arith.constant 0 : i32
    %c0_i32_1 = arith.constant 0 : i32
    return %arg0, %c0_i32, %c0_i32_0 : i32, i32, i32
  }
  func.func @transform_1(%arg0: i32) -> (i32, i32, i32) {
    %c0_i32 = arith.constant 0 : i32
    %c0_i32_0 = arith.constant 0 : i32
    %c0_i32_1 = arith.constant 0 : i32
    return %arg0, %c0_i32, %c0_i32_0 : i32, i32, i32
  }
  func.func @transform_2(%arg0: i32) -> (i32, i32) {
    %c0_i32 = arith.constant 0 : i32
    %c0_i32_0 = arith.constant 0 : i32
    %c0_i32_1 = arith.constant 0 : i32
    return %c0_i32, %c0_i32_0 : i32, i32
  }
  func.func @transform_3(%arg0: i32) -> (i32, i32) {
    %c0_i32 = arith.constant 0 : i32
    %c0_i32_0 = arith.constant 0 : i32
    %c0_i32_1 = arith.constant 0 : i32
    return %c0_i32, %c0_i32_0 : i32, i32
  }
  func.func @transform_4(%arg0: i32) -> (i32, i32) {
    %c0_i32 = arith.constant 0 : i32
    %c0_i32_0 = arith.constant 0 : i32
    %c0_i32_1 = arith.constant 0 : i32
    return %c0_i32, %c0_i32_0 : i32, i32
  }
  func.func @transform_5(%arg0: i32) -> (i32, i32) {
    %c0_i32 = arith.constant 0 : i32
    %c0_i32_0 = arith.constant 0 : i32
    %c0_i32_1 = arith.constant 0 : i32
    return %c0_i32, %c0_i32_0 : i32, i32
  }
  func.func @transform_6(%arg0: i32) -> (i32, i32) {
    %c0_i32 = arith.constant 0 : i32
    %c0_i32_0 = arith.constant 0 : i32
    %c0_i32_1 = arith.constant 0 : i32
    return %c0_i32, %c0_i32_0 : i32, i32
  }
  func.func @transform_7(%arg0: i32) -> (i32, i32) {
    %c0_i32 = arith.constant 0 : i32
    %c0_i32_0 = arith.constant 0 : i32
    %c0_i32_1 = arith.constant 0 : i32
    return %c0_i32, %c0_i32_0 : i32, i32
  }
  func.func @transform_8(%arg0: i32) -> (i32, i32) {
    %c0_i32 = arith.constant 0 : i32
    %c0_i32_0 = arith.constant 0 : i32
    %c0_i32_1 = arith.constant 0 : i32
    return %c0_i32, %c0_i32_0 : i32, i32
  }
  func.func @transform_9(%arg0: i32) -> (i32, i32) {
    %c0_i32 = arith.constant 0 : i32
    %c0_i32_0 = arith.constant 0 : i32
    %c0_i32_1 = arith.constant 0 : i32
    return %c0_i32, %c0_i32_0 : i32, i32
  }
  func.func @transform_10(%arg0: i32) -> (i32, i32) {
    %c0_i32 = arith.constant 0 : i32
    %c0_i32_0 = arith.constant 0 : i32
    %c0_i32_1 = arith.constant 0 : i32
    return %c0_i32, %c0_i32_0 : i32, i32
  }
  func.func @transform_11(%arg0: i32) -> (i32, i32) {
    %c0_i32 = arith.constant 0 : i32
    %c0_i32_0 = arith.constant 0 : i32
    %c0_i32_1 = arith.constant 0 : i32
    return %c0_i32, %c0_i32_0 : i32, i32
  }
  func.func @transform_12(%arg0: i32) -> (i32, i32) {
    %c0_i32 = arith.constant 0 : i32
    %c0_i32_0 = arith.constant 0 : i32
    %c0_i32_1 = arith.constant 0 : i32
    return %c0_i32, %c0_i32_0 : i32, i32
  }
  func.func @transform_13(%arg0: i32) -> (i32, i32) {
    %c0_i32 = arith.constant 0 : i32
    %c0_i32_0 = arith.constant 0 : i32
    %c0_i32_1 = arith.constant 0 : i32
    return %c0_i32, %c0_i32_0 : i32, i32
  }
  func.func @transform_14(%arg0: i32) -> (i32, i32) {
    %c0_i32 = arith.constant 0 : i32
    %c0_i32_0 = arith.constant 0 : i32
    %c0_i32_1 = arith.constant 0 : i32
    return %c0_i32, %c0_i32_0 : i32, i32
  }
  func.func @transform_15(%arg0: i32) -> (i32, i32) {
    %c0_i32 = arith.constant 0 : i32
    %c0_i32_0 = arith.constant 0 : i32
    %c0_i32_1 = arith.constant 0 : i32
    return %c0_i32, %c0_i32_0 : i32, i32
  }
  func.func @transform_16(%arg0: i32) -> (i32, i32, i32) {
    %c0_i32 = arith.constant 0 : i32
    %c0_i32_0 = arith.constant 0 : i32
    %c0_i32_1 = arith.constant 0 : i32
    return %arg0, %c0_i32, %c0_i32_0 : i32, i32, i32
  }
}

module attributes {stable_mosaic.version = 11 : i64} {
  func.func @_encoder_layer_kernel(%arg0: i32, %arg1: memref<1x8x32xbf16, #tpu.memory_space<vmem>>, %arg2: memref<1x1x8xf32, #tpu.memory_space<vmem>>, %arg3: memref<32x96xbf16, #tpu.memory_space<vmem>>, %arg4: memref<1x96xf32, #tpu.memory_space<vmem>>, %arg5: memref<32x32xbf16, #tpu.memory_space<vmem>>, %arg6: memref<1x32xf32, #tpu.memory_space<vmem>>, %arg7: memref<1x32xf32, #tpu.memory_space<vmem>>, %arg8: memref<1x32xf32, #tpu.memory_space<vmem>>, %arg9: memref<32x2048xbf16, #tpu.memory_space<vmem>>, %arg10: memref<1x2048xf32, #tpu.memory_space<vmem>>, %arg11: memref<2048x32xbf16, #tpu.memory_space<vmem>>, %arg12: memref<1x32xf32, #tpu.memory_space<vmem>>, %arg13: memref<1x32xf32, #tpu.memory_space<vmem>>, %arg14: memref<1x32xf32, #tpu.memory_space<vmem>>, %arg15: memref<1x8x32xbf16, #tpu.memory_space<vmem>>) attributes {dimension_semantics = [#tpu.dimension_semantics<parallel>], iteration_bounds = array<i64: 2>, scalar_prefetch = 0 : i64, scratch_operands = 0 : i64, tpu.core_type = #tpu.core_type<tc>, window_params = [{transform_indices = @transform_0, window_bounds = array<i64: 1, 8, 32>}, {transform_indices = @transform_1, window_bounds = array<i64: 1, 1, 8>}, {pipeline_mode = #tpu.pipeline_mode<synchronous>, transform_indices = @transform_2, window_bounds = array<i64: 32, 96>}, {pipeline_mode = #tpu.pipeline_mode<synchronous>, transform_indices = @transform_3, window_bounds = array<i64: 1, 96>}, {pipeline_mode = #tpu.pipeline_mode<synchronous>, transform_indices = @transform_4, window_bounds = array<i64: 32, 32>}, {pipeline_mode = #tpu.pipeline_mode<synchronous>, transform_indices = @transform_5, window_bounds = array<i64: 1, 32>}, {pipeline_mode = #tpu.pipeline_mode<synchronous>, transform_indices = @transform_6, window_bounds = array<i64: 1, 32>}, {pipeline_mode = #tpu.pipeline_mode<synchronous>, transform_indices = @transform_7, window_bounds = array<i64: 1, 32>}, {pipeline_mode = #tpu.pipeline_mode<synchronous>, transform_indices = @transform_8, window_bounds = array<i64: 32, 2048>}, {pipeline_mode = #tpu.pipeline_mode<synchronous>, transform_indices = @transform_9, window_bounds = array<i64: 1, 2048>}, {pipeline_mode = #tpu.pipeline_mode<synchronous>, transform_indices = @transform_10, window_bounds = array<i64: 2048, 32>}, {pipeline_mode = #tpu.pipeline_mode<synchronous>, transform_indices = @transform_11, window_bounds = array<i64: 1, 32>}, {pipeline_mode = #tpu.pipeline_mode<synchronous>, transform_indices = @transform_12, window_bounds = array<i64: 1, 32>}, {pipeline_mode = #tpu.pipeline_mode<synchronous>, transform_indices = @transform_13, window_bounds = array<i64: 1, 32>}, {transform_indices = @transform_14, window_bounds = array<i64: 1, 8, 32>}]} {
    %c0 = arith.constant 0 : index
    %c0_0 = arith.constant 0 : index
    %c0_1 = arith.constant 0 : index
    %0 = vector.load %arg1[%c0, %c0_0, %c0_1] : memref<1x8x32xbf16, #tpu.memory_space<vmem>>, vector<1x8x32xbf16>
    %1 = vector.shape_cast %0 : vector<1x8x32xbf16> to vector<8x32xbf16>
    %c0_2 = arith.constant 0 : index
    %c0_3 = arith.constant 0 : index
    %2 = vector.load %arg3[%c0_2, %c0_3] : memref<32x96xbf16, #tpu.memory_space<vmem>>, vector<32x96xbf16>
    %cst = arith.constant dense<0.000000e+00> : vector<8x96xf32>
    %3 = tpu.matmul %1, %2, %cst {dimension_numbers = #tpu.dot_dimension_numbers<[1], [0], [0], [1], [0, 0, 1, 1], [], []>} : vector<8x32xbf16>, vector<32x96xbf16>, vector<8x96xf32> -> vector<8x96xf32>
    %c0_4 = arith.constant 0 : index
    %c0_5 = arith.constant 0 : index
    %4 = vector.load %arg4[%c0_4, %c0_5] : memref<1x96xf32, #tpu.memory_space<vmem>>, vector<1x96xf32>
    %5 = vector.broadcast %4 : vector<1x96xf32> to vector<8x96xf32>
    %6 = arith.addf %3, %5 : vector<8x96xf32>
    %7 = vector.extract_strided_slice %6 {offsets = [0, 0], sizes = [8, 32], strides = [1, 1]} : vector<8x96xf32> to vector<8x32xf32>
    %cst_6 = arith.constant 0.353553385 : f32
    %8 = vector.broadcast %cst_6 : f32 to vector<8x32xf32>
    %9 = arith.mulf %7, %8 : vector<8x32xf32>
    %10 = arith.truncf %9 : vector<8x32xf32> to vector<8x32xbf16>
    %11 = vector.extract_strided_slice %6 {offsets = [0, 32], sizes = [8, 32], strides = [1, 1]} : vector<8x96xf32> to vector<8x32xf32>
    %12 = arith.truncf %11 : vector<8x32xf32> to vector<8x32xbf16>
    %13 = vector.extract_strided_slice %6 {offsets = [0, 64], sizes = [8, 32], strides = [1, 1]} : vector<8x96xf32> to vector<8x32xf32>
    %14 = arith.truncf %13 : vector<8x32xf32> to vector<8x32xbf16>
    %c0_7 = arith.constant 0 : index
    %c0_8 = arith.constant 0 : index
    %15 = vector.load %arg5[%c0_7, %c0_8] : memref<32x32xbf16, #tpu.memory_space<vmem>>, vector<32x32xbf16>
    %c0_9 = arith.constant 0 : index
    %c0_10 = arith.constant 0 : index
    %c0_11 = arith.constant 0 : index
    %16 = vector.load %arg2[%c0_9, %c0_10, %c0_11] : memref<1x1x8xf32, #tpu.memory_space<vmem>>, vector<1x1x8xf32>
    %17 = vector.shape_cast %16 : vector<1x1x8xf32> to vector<1x8xf32>
    %cst_12 = arith.constant 0.000000e+00 : f32
    %18 = vector.broadcast %cst_12 : f32 to vector<8x32xf32>
    %19 = vector.extract_strided_slice %10 {offsets = [0, 0], sizes = [8, 8], strides = [1, 1]} : vector<8x32xbf16> to vector<8x8xbf16>
    %20 = vector.extract_strided_slice %12 {offsets = [0, 0], sizes = [8, 8], strides = [1, 1]} : vector<8x32xbf16> to vector<8x8xbf16>
    %cst_13 = arith.constant dense<0.000000e+00> : vector<8x8xf32>
    %21 = tpu.matmul %19, %20, %cst_13 {dimension_numbers = #tpu.dot_dimension_numbers<[1], [1], [0], [0], [0, 0, 1, 0], [], []>} : vector<8x8xbf16>, vector<8x8xbf16>, vector<8x8xf32> -> vector<8x8xf32>
    %22 = vector.broadcast %17 : vector<1x8xf32> to vector<8x8xf32>
    %23 = arith.addf %21, %22 : vector<8x8xf32>
    %cst_14 = arith.constant dense<0xFF800000> : vector<8xf32>
    %24 = vector.multi_reduction <maximumf>, %23, %cst_14 [1] : vector<8x8xf32> to vector<8xf32>
    %25 = vector.shape_cast %24 : vector<8xf32> to vector<8x1xf32>
    %26 = vector.broadcast %25 : vector<8x1xf32> to vector<8x8xf32>
    %27 = arith.subf %23, %26 : vector<8x8xf32>
    %28 = math.exp %27 : vector<8x8xf32>
    %cst_15 = arith.constant dense<0.000000e+00> : vector<8xf32>
    %29 = vector.multi_reduction <add>, %28, %cst_15 [1] : vector<8x8xf32> to vector<8xf32>
    %30 = vector.shape_cast %29 : vector<8xf32> to vector<8x1xf32>
    %31 = tpu.reciprocal %30 {approx = true} : vector<8x1xf32> -> vector<8x1xf32>
    %32 = vector.broadcast %31 : vector<8x1xf32> to vector<8x8xf32>
    %33 = arith.mulf %28, %32 : vector<8x8xf32>
    %34 = arith.truncf %33 : vector<8x8xf32> to vector<8x8xbf16>
    %35 = vector.extract_strided_slice %14 {offsets = [0, 0], sizes = [8, 8], strides = [1, 1]} : vector<8x32xbf16> to vector<8x8xbf16>
    %cst_16 = arith.constant dense<0.000000e+00> : vector<8x8xf32>
    %36 = tpu.matmul %34, %35, %cst_16 {dimension_numbers = #tpu.dot_dimension_numbers<[1], [0], [0], [1], [0, 0, 1, 1], [], []>} : vector<8x8xbf16>, vector<8x8xbf16>, vector<8x8xf32> -> vector<8x8xf32>
    %37 = arith.truncf %36 : vector<8x8xf32> to vector<8x8xbf16>
    %38 = vector.extract_strided_slice %15 {offsets = [0, 0], sizes = [8, 32], strides = [1, 1]} : vector<32x32xbf16> to vector<8x32xbf16>
    %cst_17 = arith.constant dense<0.000000e+00> : vector<8x32xf32>
    %39 = tpu.matmul %37, %38, %cst_17 {dimension_numbers = #tpu.dot_dimension_numbers<[1], [0], [0], [1], [0, 0, 1, 1], [], []>} : vector<8x8xbf16>, vector<8x32xbf16>, vector<8x32xf32> -> vector<8x32xf32>
    %40 = arith.addf %18, %39 : vector<8x32xf32>
    %41 = vector.extract_strided_slice %10 {offsets = [0, 8], sizes = [8, 8], strides = [1, 1]} : vector<8x32xbf16> to vector<8x8xbf16>
    %42 = vector.extract_strided_slice %12 {offsets = [0, 8], sizes = [8, 8], strides = [1, 1]} : vector<8x32xbf16> to vector<8x8xbf16>
    %cst_18 = arith.constant dense<0.000000e+00> : vector<8x8xf32>
    %43 = tpu.matmul %41, %42, %cst_18 {dimension_numbers = #tpu.dot_dimension_numbers<[1], [1], [0], [0], [0, 0, 1, 0], [], []>} : vector<8x8xbf16>, vector<8x8xbf16>, vector<8x8xf32> -> vector<8x8xf32>
    %44 = vector.broadcast %17 : vector<1x8xf32> to vector<8x8xf32>
    %45 = arith.addf %43, %44 : vector<8x8xf32>
    %cst_19 = arith.constant dense<0xFF800000> : vector<8xf32>
    %46 = vector.multi_reduction <maximumf>, %45, %cst_19 [1] : vector<8x8xf32> to vector<8xf32>
    %47 = vector.shape_cast %46 : vector<8xf32> to vector<8x1xf32>
    %48 = vector.broadcast %47 : vector<8x1xf32> to vector<8x8xf32>
    %49 = arith.subf %45, %48 : vector<8x8xf32>
    %50 = math.exp %49 : vector<8x8xf32>
    %cst_20 = arith.constant dense<0.000000e+00> : vector<8xf32>
    %51 = vector.multi_reduction <add>, %50, %cst_20 [1] : vector<8x8xf32> to vector<8xf32>
    %52 = vector.shape_cast %51 : vector<8xf32> to vector<8x1xf32>
    %53 = tpu.reciprocal %52 {approx = true} : vector<8x1xf32> -> vector<8x1xf32>
    %54 = vector.broadcast %53 : vector<8x1xf32> to vector<8x8xf32>
    %55 = arith.mulf %50, %54 : vector<8x8xf32>
    %56 = arith.truncf %55 : vector<8x8xf32> to vector<8x8xbf16>
    %57 = vector.extract_strided_slice %14 {offsets = [0, 8], sizes = [8, 8], strides = [1, 1]} : vector<8x32xbf16> to vector<8x8xbf16>
    %cst_21 = arith.constant dense<0.000000e+00> : vector<8x8xf32>
    %58 = tpu.matmul %56, %57, %cst_21 {dimension_numbers = #tpu.dot_dimension_numbers<[1], [0], [0], [1], [0, 0, 1, 1], [], []>} : vector<8x8xbf16>, vector<8x8xbf16>, vector<8x8xf32> -> vector<8x8xf32>
    %59 = arith.truncf %58 : vector<8x8xf32> to vector<8x8xbf16>
    %60 = vector.extract_strided_slice %15 {offsets = [8, 0], sizes = [8, 32], strides = [1, 1]} : vector<32x32xbf16> to vector<8x32xbf16>
    %cst_22 = arith.constant dense<0.000000e+00> : vector<8x32xf32>
    %61 = tpu.matmul %59, %60, %cst_22 {dimension_numbers = #tpu.dot_dimension_numbers<[1], [0], [0], [1], [0, 0, 1, 1], [], []>} : vector<8x8xbf16>, vector<8x32xbf16>, vector<8x32xf32> -> vector<8x32xf32>
    %62 = arith.addf %40, %61 : vector<8x32xf32>
    %63 = vector.extract_strided_slice %10 {offsets = [0, 16], sizes = [8, 8], strides = [1, 1]} : vector<8x32xbf16> to vector<8x8xbf16>
    %64 = vector.extract_strided_slice %12 {offsets = [0, 16], sizes = [8, 8], strides = [1, 1]} : vector<8x32xbf16> to vector<8x8xbf16>
    %cst_23 = arith.constant dense<0.000000e+00> : vector<8x8xf32>
    %65 = tpu.matmul %63, %64, %cst_23 {dimension_numbers = #tpu.dot_dimension_numbers<[1], [1], [0], [0], [0, 0, 1, 0], [], []>} : vector<8x8xbf16>, vector<8x8xbf16>, vector<8x8xf32> -> vector<8x8xf32>
    %66 = vector.broadcast %17 : vector<1x8xf32> to vector<8x8xf32>
    %67 = arith.addf %65, %66 : vector<8x8xf32>
    %cst_24 = arith.constant dense<0xFF800000> : vector<8xf32>
    %68 = vector.multi_reduction <maximumf>, %67, %cst_24 [1] : vector<8x8xf32> to vector<8xf32>
    %69 = vector.shape_cast %68 : vector<8xf32> to vector<8x1xf32>
    %70 = vector.broadcast %69 : vector<8x1xf32> to vector<8x8xf32>
    %71 = arith.subf %67, %70 : vector<8x8xf32>
    %72 = math.exp %71 : vector<8x8xf32>
    %cst_25 = arith.constant dense<0.000000e+00> : vector<8xf32>
    %73 = vector.multi_reduction <add>, %72, %cst_25 [1] : vector<8x8xf32> to vector<8xf32>
    %74 = vector.shape_cast %73 : vector<8xf32> to vector<8x1xf32>
    %75 = tpu.reciprocal %74 {approx = true} : vector<8x1xf32> -> vector<8x1xf32>
    %76 = vector.broadcast %75 : vector<8x1xf32> to vector<8x8xf32>
    %77 = arith.mulf %72, %76 : vector<8x8xf32>
    %78 = arith.truncf %77 : vector<8x8xf32> to vector<8x8xbf16>
    %79 = vector.extract_strided_slice %14 {offsets = [0, 16], sizes = [8, 8], strides = [1, 1]} : vector<8x32xbf16> to vector<8x8xbf16>
    %cst_26 = arith.constant dense<0.000000e+00> : vector<8x8xf32>
    %80 = tpu.matmul %78, %79, %cst_26 {dimension_numbers = #tpu.dot_dimension_numbers<[1], [0], [0], [1], [0, 0, 1, 1], [], []>} : vector<8x8xbf16>, vector<8x8xbf16>, vector<8x8xf32> -> vector<8x8xf32>
    %81 = arith.truncf %80 : vector<8x8xf32> to vector<8x8xbf16>
    %82 = vector.extract_strided_slice %15 {offsets = [16, 0], sizes = [8, 32], strides = [1, 1]} : vector<32x32xbf16> to vector<8x32xbf16>
    %cst_27 = arith.constant dense<0.000000e+00> : vector<8x32xf32>
    %83 = tpu.matmul %81, %82, %cst_27 {dimension_numbers = #tpu.dot_dimension_numbers<[1], [0], [0], [1], [0, 0, 1, 1], [], []>} : vector<8x8xbf16>, vector<8x32xbf16>, vector<8x32xf32> -> vector<8x32xf32>
    %84 = arith.addf %62, %83 : vector<8x32xf32>
    %85 = vector.extract_strided_slice %10 {offsets = [0, 24], sizes = [8, 8], strides = [1, 1]} : vector<8x32xbf16> to vector<8x8xbf16>
    %86 = vector.extract_strided_slice %12 {offsets = [0, 24], sizes = [8, 8], strides = [1, 1]} : vector<8x32xbf16> to vector<8x8xbf16>
    %cst_28 = arith.constant dense<0.000000e+00> : vector<8x8xf32>
    %87 = tpu.matmul %85, %86, %cst_28 {dimension_numbers = #tpu.dot_dimension_numbers<[1], [1], [0], [0], [0, 0, 1, 0], [], []>} : vector<8x8xbf16>, vector<8x8xbf16>, vector<8x8xf32> -> vector<8x8xf32>
    %88 = vector.broadcast %17 : vector<1x8xf32> to vector<8x8xf32>
    %89 = arith.addf %87, %88 : vector<8x8xf32>
    %cst_29 = arith.constant dense<0xFF800000> : vector<8xf32>
    %90 = vector.multi_reduction <maximumf>, %89, %cst_29 [1] : vector<8x8xf32> to vector<8xf32>
    %91 = vector.shape_cast %90 : vector<8xf32> to vector<8x1xf32>
    %92 = vector.broadcast %91 : vector<8x1xf32> to vector<8x8xf32>
    %93 = arith.subf %89, %92 : vector<8x8xf32>
    %94 = math.exp %93 : vector<8x8xf32>
    %cst_30 = arith.constant dense<0.000000e+00> : vector<8xf32>
    %95 = vector.multi_reduction <add>, %94, %cst_30 [1] : vector<8x8xf32> to vector<8xf32>
    %96 = vector.shape_cast %95 : vector<8xf32> to vector<8x1xf32>
    %97 = tpu.reciprocal %96 {approx = true} : vector<8x1xf32> -> vector<8x1xf32>
    %98 = vector.broadcast %97 : vector<8x1xf32> to vector<8x8xf32>
    %99 = arith.mulf %94, %98 : vector<8x8xf32>
    %100 = arith.truncf %99 : vector<8x8xf32> to vector<8x8xbf16>
    %101 = vector.extract_strided_slice %14 {offsets = [0, 24], sizes = [8, 8], strides = [1, 1]} : vector<8x32xbf16> to vector<8x8xbf16>
    %cst_31 = arith.constant dense<0.000000e+00> : vector<8x8xf32>
    %102 = tpu.matmul %100, %101, %cst_31 {dimension_numbers = #tpu.dot_dimension_numbers<[1], [0], [0], [1], [0, 0, 1, 1], [], []>} : vector<8x8xbf16>, vector<8x8xbf16>, vector<8x8xf32> -> vector<8x8xf32>
    %103 = arith.truncf %102 : vector<8x8xf32> to vector<8x8xbf16>
    %104 = vector.extract_strided_slice %15 {offsets = [24, 0], sizes = [8, 32], strides = [1, 1]} : vector<32x32xbf16> to vector<8x32xbf16>
    %cst_32 = arith.constant dense<0.000000e+00> : vector<8x32xf32>
    %105 = tpu.matmul %103, %104, %cst_32 {dimension_numbers = #tpu.dot_dimension_numbers<[1], [0], [0], [1], [0, 0, 1, 1], [], []>} : vector<8x8xbf16>, vector<8x32xbf16>, vector<8x32xf32> -> vector<8x32xf32>
    %106 = arith.addf %84, %105 : vector<8x32xf32>
    %107 = arith.extf %1 : vector<8x32xbf16> to vector<8x32xf32>
    %108 = arith.addf %107, %106 : vector<8x32xf32>
    %c0_33 = arith.constant 0 : index
    %c0_34 = arith.constant 0 : index
    %109 = vector.load %arg6[%c0_33, %c0_34] : memref<1x32xf32, #tpu.memory_space<vmem>>, vector<1x32xf32>
    %110 = vector.broadcast %109 : vector<1x32xf32> to vector<8x32xf32>
    %111 = arith.addf %108, %110 : vector<8x32xf32>
    %c0_35 = arith.constant 0 : index
    %c0_36 = arith.constant 0 : index
    %112 = vector.load %arg7[%c0_35, %c0_36] : memref<1x32xf32, #tpu.memory_space<vmem>>, vector<1x32xf32>
    %c0_37 = arith.constant 0 : index
    %c0_38 = arith.constant 0 : index
    %113 = vector.load %arg8[%c0_37, %c0_38] : memref<1x32xf32, #tpu.memory_space<vmem>>, vector<1x32xf32>
    %cst_39 = arith.constant dense<0.000000e+00> : vector<8xf32>
    %114 = vector.multi_reduction <add>, %111, %cst_39 [1] : vector<8x32xf32> to vector<8xf32>
    %115 = vector.shape_cast %114 : vector<8xf32> to vector<8x1xf32>
    %cst_40 = arith.constant 3.200000e+01 : f32
    %116 = vector.broadcast %cst_40 : f32 to vector<8x1xf32>
    %117 = arith.divf %115, %116 : vector<8x1xf32>
    %118 = vector.broadcast %117 : vector<8x1xf32> to vector<8x32xf32>
    %119 = arith.subf %111, %118 : vector<8x32xf32>
    %120 = arith.mulf %119, %119 : vector<8x32xf32>
    %cst_41 = arith.constant dense<0.000000e+00> : vector<8xf32>
    %121 = vector.multi_reduction <add>, %120, %cst_41 [1] : vector<8x32xf32> to vector<8xf32>
    %122 = vector.shape_cast %121 : vector<8xf32> to vector<8x1xf32>
    %cst_42 = arith.constant 3.200000e+01 : f32
    %123 = vector.broadcast %cst_42 : f32 to vector<8x1xf32>
    %124 = arith.divf %122, %123 : vector<8x1xf32>
    %cst_43 = arith.constant 9.99999974E-6 : f32
    %125 = vector.broadcast %cst_43 : f32 to vector<8x1xf32>
    %126 = arith.addf %124, %125 : vector<8x1xf32>
    %127 = math.rsqrt %126 : vector<8x1xf32>
    %128 = vector.broadcast %127 : vector<8x1xf32> to vector<8x32xf32>
    %129 = arith.mulf %119, %128 : vector<8x32xf32>
    %130 = vector.broadcast %112 : vector<1x32xf32> to vector<8x32xf32>
    %131 = arith.mulf %129, %130 : vector<8x32xf32>
    %132 = vector.broadcast %113 : vector<1x32xf32> to vector<8x32xf32>
    %133 = arith.addf %131, %132 : vector<8x32xf32>
    %134 = arith.truncf %133 : vector<8x32xf32> to vector<8x32xbf16>
    %c0_44 = arith.constant 0 : index
    %c0_45 = arith.constant 0 : index
    %135 = vector.load %arg9[%c0_44, %c0_45] : memref<32x2048xbf16, #tpu.memory_space<vmem>>, vector<32x2048xbf16>
    %cst_46 = arith.constant dense<0.000000e+00> : vector<8x2048xf32>
    %136 = tpu.matmul %134, %135, %cst_46 {dimension_numbers = #tpu.dot_dimension_numbers<[1], [0], [0], [1], [0, 0, 1, 1], [], []>} : vector<8x32xbf16>, vector<32x2048xbf16>, vector<8x2048xf32> -> vector<8x2048xf32>
    %c0_47 = arith.constant 0 : index
    %c0_48 = arith.constant 0 : index
    %137 = vector.load %arg10[%c0_47, %c0_48] : memref<1x2048xf32, #tpu.memory_space<vmem>>, vector<1x2048xf32>
    %138 = vector.broadcast %137 : vector<1x2048xf32> to vector<8x2048xf32>
    %139 = arith.addf %136, %138 : vector<8x2048xf32>
    %cst_49 = arith.constant 0.000000e+00 : f32
    %140 = vector.broadcast %cst_49 : f32 to vector<8x2048xf32>
    %141 = arith.maximumf %139, %140 : vector<8x2048xf32>
    %142 = arith.truncf %141 : vector<8x2048xf32> to vector<8x2048xbf16>
    %c0_50 = arith.constant 0 : index
    %c0_51 = arith.constant 0 : index
    %143 = vector.load %arg11[%c0_50, %c0_51] : memref<2048x32xbf16, #tpu.memory_space<vmem>>, vector<2048x32xbf16>
    %cst_52 = arith.constant dense<0.000000e+00> : vector<8x32xf32>
    %144 = tpu.matmul %142, %143, %cst_52 {dimension_numbers = #tpu.dot_dimension_numbers<[1], [0], [0], [1], [0, 0, 1, 1], [], []>} : vector<8x2048xbf16>, vector<2048x32xbf16>, vector<8x32xf32> -> vector<8x32xf32>
    %c0_53 = arith.constant 0 : index
    %c0_54 = arith.constant 0 : index
    %145 = vector.load %arg12[%c0_53, %c0_54] : memref<1x32xf32, #tpu.memory_space<vmem>>, vector<1x32xf32>
    %146 = vector.broadcast %145 : vector<1x32xf32> to vector<8x32xf32>
    %147 = arith.addf %144, %146 : vector<8x32xf32>
    %148 = arith.addf %133, %147 : vector<8x32xf32>
    %c0_55 = arith.constant 0 : index
    %c0_56 = arith.constant 0 : index
    %149 = vector.load %arg13[%c0_55, %c0_56] : memref<1x32xf32, #tpu.memory_space<vmem>>, vector<1x32xf32>
    %c0_57 = arith.constant 0 : index
    %c0_58 = arith.constant 0 : index
    %150 = vector.load %arg14[%c0_57, %c0_58] : memref<1x32xf32, #tpu.memory_space<vmem>>, vector<1x32xf32>
    %cst_59 = arith.constant dense<0.000000e+00> : vector<8xf32>
    %151 = vector.multi_reduction <add>, %148, %cst_59 [1] : vector<8x32xf32> to vector<8xf32>
    %152 = vector.shape_cast %151 : vector<8xf32> to vector<8x1xf32>
    %cst_60 = arith.constant 3.200000e+01 : f32
    %153 = vector.broadcast %cst_60 : f32 to vector<8x1xf32>
    %154 = arith.divf %152, %153 : vector<8x1xf32>
    %155 = vector.broadcast %154 : vector<8x1xf32> to vector<8x32xf32>
    %156 = arith.subf %148, %155 : vector<8x32xf32>
    %157 = arith.mulf %156, %156 : vector<8x32xf32>
    %cst_61 = arith.constant dense<0.000000e+00> : vector<8xf32>
    %158 = vector.multi_reduction <add>, %157, %cst_61 [1] : vector<8x32xf32> to vector<8xf32>
    %159 = vector.shape_cast %158 : vector<8xf32> to vector<8x1xf32>
    %cst_62 = arith.constant 3.200000e+01 : f32
    %160 = vector.broadcast %cst_62 : f32 to vector<8x1xf32>
    %161 = arith.divf %159, %160 : vector<8x1xf32>
    %cst_63 = arith.constant 9.99999974E-6 : f32
    %162 = vector.broadcast %cst_63 : f32 to vector<8x1xf32>
    %163 = arith.addf %161, %162 : vector<8x1xf32>
    %164 = math.rsqrt %163 : vector<8x1xf32>
    %165 = vector.broadcast %164 : vector<8x1xf32> to vector<8x32xf32>
    %166 = arith.mulf %156, %165 : vector<8x32xf32>
    %167 = vector.broadcast %149 : vector<1x32xf32> to vector<8x32xf32>
    %168 = arith.mulf %166, %167 : vector<8x32xf32>
    %169 = vector.broadcast %150 : vector<1x32xf32> to vector<8x32xf32>
    %170 = arith.addf %168, %169 : vector<8x32xf32>
    %171 = arith.truncf %170 : vector<8x32xf32> to vector<8x32xbf16>
    %c0_64 = arith.constant 0 : index
    %c0_65 = arith.constant 0 : index
    %c0_66 = arith.constant 0 : index
    %172 = vector.load %arg15[%c0_64, %c0_65, %c0_66] : memref<1x8x32xbf16, #tpu.memory_space<vmem>>, vector<1x8x32xbf16>
    %173 = vector.shape_cast %172 : vector<1x8x32xbf16> to vector<8x32xbf16>
    %174 = vector.shape_cast %171 : vector<8x32xbf16> to vector<1x8x32xbf16>
    tpu.vector_store %arg15[%c0_64, %c0_65, %c0_66], %174 {strides = array<i32>} : memref<1x8x32xbf16, #tpu.memory_space<vmem>>, vector<1x8x32xbf16>,
    return
  }
  func.func @transform_0(%arg0: i32) -> (i32, i32, i32) {
    %c0_i32 = arith.constant 0 : i32
    %c0_i32_0 = arith.constant 0 : i32
    %c0_i32_1 = arith.constant 0 : i32
    return %arg0, %c0_i32, %c0_i32_0 : i32, i32, i32
  }
  func.func @transform_1(%arg0: i32) -> (i32, i32, i32) {
    %c0_i32 = arith.constant 0 : i32
    %c0_i32_0 = arith.constant 0 : i32
    %c0_i32_1 = arith.constant 0 : i32
    return %arg0, %c0_i32, %c0_i32_0 : i32, i32, i32
  }
  func.func @transform_2(%arg0: i32) -> (i32, i32) {
    %c0_i32 = arith.constant 0 : i32
    %c0_i32_0 = arith.constant 0 : i32
    %c0_i32_1 = arith.constant 0 : i32
    return %c0_i32, %c0_i32_0 : i32, i32
  }
  func.func @transform_3(%arg0: i32) -> (i32, i32) {
    %c0_i32 = arith.constant 0 : i32
    %c0_i32_0 = arith.constant 0 : i32
    %c0_i32_1 = arith.constant 0 : i32
    return %c0_i32, %c0_i32_0 : i32, i32
  }
  func.func @transform_4(%arg0: i32) -> (i32, i32) {
    %c0_i32 = arith.constant 0 : i32
    %c0_i32_0 = arith.constant 0 : i32
    %c0_i32_1 = arith.constant 0 : i32
    return %c0_i32, %c0_i32_0 : i32, i32
  }
  func.func @transform_5(%arg0: i32) -> (i32, i32) {
    %c0_i32 = arith.constant 0 : i32
    %c0_i32_0 = arith.constant 0 : i32
    %c0_i32_1 = arith.constant 0 : i32
    return %c0_i32, %c0_i32_0 : i32, i32
  }
  func.func @transform_6(%arg0: i32) -> (i32, i32) {
    %c0_i32 = arith.constant 0 : i32
    %c0_i32_0 = arith.constant 0 : i32
    %c0_i32_1 = arith.constant 0 : i32
    return %c0_i32, %c0_i32_0 : i32, i32
  }
  func.func @transform_7(%arg0: i32) -> (i32, i32) {
    %c0_i32 = arith.constant 0 : i32
    %c0_i32_0 = arith.constant 0 : i32
    %c0_i32_1 = arith.constant 0 : i32
    return %c0_i32, %c0_i32_0 : i32, i32
  }
  func.func @transform_8(%arg0: i32) -> (i32, i32) {
    %c0_i32 = arith.constant 0 : i32
    %c0_i32_0 = arith.constant 0 : i32
    %c0_i32_1 = arith.constant 0 : i32
    return %c0_i32, %c0_i32_0 : i32, i32
  }
  func.func @transform_9(%arg0: i32) -> (i32, i32) {
    %c0_i32 = arith.constant 0 : i32
    %c0_i32_0 = arith.constant 0 : i32
    %c0_i32_1 = arith.constant 0 : i32
    return %c0_i32, %c0_i32_0 : i32, i32
  }
  func.func @transform_10(%arg0: i32) -> (i32, i32) {
    %c0_i32 = arith.constant 0 : i32
    %c0_i32_0 = arith.constant 0 : i32
    %c0_i32_1 = arith.constant 0 : i32
    return %c0_i32, %c0_i32_0 : i32, i32
  }
  func.func @transform_11(%arg0: i32) -> (i32, i32) {
    %c0_i32 = arith.constant 0 : i32
    %c0_i32_0 = arith.constant 0 : i32
    %c0_i32_1 = arith.constant 0 : i32
    return %c0_i32, %c0_i32_0 : i32, i32
  }
  func.func @transform_12(%arg0: i32) -> (i32, i32) {
    %c0_i32 = arith.constant 0 : i32
    %c0_i32_0 = arith.constant 0 : i32
    %c0_i32_1 = arith.constant 0 : i32
    return %c0_i32, %c0_i32_0 : i32, i32
  }
  func.func @transform_13(%arg0: i32) -> (i32, i32) {
    %c0_i32 = arith.constant 0 : i32
    %c0_i32_0 = arith.constant 0 : i32
    %c0_i32_1 = arith.constant 0 : i32
    return %c0_i32, %c0_i32_0 : i32, i32
  }
  func.func @transform_14(%arg0: i32) -> (i32, i32, i32) {
    %c0_i32 = arith.constant 0 : i32
    %c0_i32_0 = arith.constant 0 : i32
    %c0_i32_1 = arith.constant 0 : i32
    return %arg0, %c0_i32, %c0_i32_0 : i32, i32, i32
  }
}

module attributes {stable_mosaic.version = 11 : i64} {
  func.func @_decoder_layer_kernel(%arg0: i32, %arg1: memref<1x8x32xbf16, #tpu.memory_space<vmem>>, %arg2: memref<1x8x32xbf16, #tpu.memory_space<vmem>>, %arg3: memref<1x1x8xf32, #tpu.memory_space<vmem>>, %arg4: memref<32x96xbf16, #tpu.memory_space<vmem>>, %arg5: memref<1x96xf32, #tpu.memory_space<vmem>>, %arg6: memref<32x32xbf16, #tpu.memory_space<vmem>>, %arg7: memref<1x32xf32, #tpu.memory_space<vmem>>, %arg8: memref<1x32xf32, #tpu.memory_space<vmem>>, %arg9: memref<1x32xf32, #tpu.memory_space<vmem>>, %arg10: memref<32x32xbf16, #tpu.memory_space<vmem>>, %arg11: memref<1x32xf32, #tpu.memory_space<vmem>>, %arg12: memref<32x64xbf16, #tpu.memory_space<vmem>>, %arg13: memref<1x64xf32, #tpu.memory_space<vmem>>, %arg14: memref<32x32xbf16, #tpu.memory_space<vmem>>, %arg15: memref<1x32xf32, #tpu.memory_space<vmem>>, %arg16: memref<1x32xf32, #tpu.memory_space<vmem>>, %arg17: memref<1x32xf32, #tpu.memory_space<vmem>>, %arg18: memref<32x2048xbf16, #tpu.memory_space<vmem>>, %arg19: memref<1x2048xf32, #tpu.memory_space<vmem>>, %arg20: memref<2048x32xbf16, #tpu.memory_space<vmem>>, %arg21: memref<1x32xf32, #tpu.memory_space<vmem>>, %arg22: memref<1x32xf32, #tpu.memory_space<vmem>>, %arg23: memref<1x32xf32, #tpu.memory_space<vmem>>, %arg24: memref<1x8x32xbf16, #tpu.memory_space<vmem>>) attributes {dimension_semantics = [#tpu.dimension_semantics<parallel>], iteration_bounds = array<i64: 2>, scalar_prefetch = 0 : i64, scratch_operands = 0 : i64, tpu.core_type = #tpu.core_type<tc>, window_params = [{transform_indices = @transform_0, window_bounds = array<i64: 1, 8, 32>}, {transform_indices = @transform_1, window_bounds = array<i64: 1, 8, 32>}, {transform_indices = @transform_2, window_bounds = array<i64: 1, 1, 8>}, {pipeline_mode = #tpu.pipeline_mode<synchronous>, transform_indices = @transform_3, window_bounds = array<i64: 32, 96>}, {pipeline_mode = #tpu.pipeline_mode<synchronous>, transform_indices = @transform_4, window_bounds = array<i64: 1, 96>}, {pipeline_mode = #tpu.pipeline_mode<synchronous>, transform_indices = @transform_5, window_bounds = array<i64: 32, 32>}, {pipeline_mode = #tpu.pipeline_mode<synchronous>, transform_indices = @transform_6, window_bounds = array<i64: 1, 32>}, {pipeline_mode = #tpu.pipeline_mode<synchronous>, transform_indices = @transform_7, window_bounds = array<i64: 1, 32>}, {pipeline_mode = #tpu.pipeline_mode<synchronous>, transform_indices = @transform_8, window_bounds = array<i64: 1, 32>}, {pipeline_mode = #tpu.pipeline_mode<synchronous>, transform_indices = @transform_9, window_bounds = array<i64: 32, 32>}, {pipeline_mode = #tpu.pipeline_mode<synchronous>, transform_indices = @transform_10, window_bounds = array<i64: 1, 32>}, {pipeline_mode = #tpu.pipeline_mode<synchronous>, transform_indices = @transform_11, window_bounds = array<i64: 32, 64>}, {pipeline_mode = #tpu.pipeline_mode<synchronous>, transform_indices = @transform_12, window_bounds = array<i64: 1, 64>}, {pipeline_mode = #tpu.pipeline_mode<synchronous>, transform_indices = @transform_13, window_bounds = array<i64: 32, 32>}, {pipeline_mode = #tpu.pipeline_mode<synchronous>, transform_indices = @transform_14, window_bounds = array<i64: 1, 32>}, {pipeline_mode = #tpu.pipeline_mode<synchronous>, transform_indices = @transform_15, window_bounds = array<i64: 1, 32>}, {pipeline_mode = #tpu.pipeline_mode<synchronous>, transform_indices = @transform_16, window_bounds = array<i64: 1, 32>}, {pipeline_mode = #tpu.pipeline_mode<synchronous>, transform_indices = @transform_17, window_bounds = array<i64: 32, 2048>}, {pipeline_mode = #tpu.pipeline_mode<synchronous>, transform_indices = @transform_18, window_bounds = array<i64: 1, 2048>}, {pipeline_mode = #tpu.pipeline_mode<synchronous>, transform_indices = @transform_19, window_bounds = array<i64: 2048, 32>}, {pipeline_mode = #tpu.pipeline_mode<synchronous>, transform_indices = @transform_20, window_bounds = array<i64: 1, 32>}, {pipeline_mode = #tpu.pipeline_mode<synchronous>, transform_indices = @transform_21, window_bounds = array<i64: 1, 32>}, {pipeline_mode = #tpu.pipeline_mode<synchronous>, transform_indices = @transform_22, window_bounds = array<i64: 1, 32>}, {transform_indices = @transform_23, window_bounds = array<i64: 1, 8, 32>}]} {
    %c0 = arith.constant 0 : index
    %c0_0 = arith.constant 0 : index
    %c0_1 = arith.constant 0 : index
    %0 = vector.load %arg1[%c0, %c0_0, %c0_1] : memref<1x8x32xbf16, #tpu.memory_space<vmem>>, vector<1x8x32xbf16>
    %1 = vector.shape_cast %0 : vector<1x8x32xbf16> to vector<8x32xbf16>
    %c0_2 = arith.constant 0 : index
    %c0_3 = arith.constant 0 : index
    %2 = vector.load %arg4[%c0_2, %c0_3] : memref<32x96xbf16, #tpu.memory_space<vmem>>, vector<32x96xbf16>
    %cst = arith.constant dense<0.000000e+00> : vector<8x96xf32>
    %3 = tpu.matmul %1, %2, %cst {dimension_numbers = #tpu.dot_dimension_numbers<[1], [0], [0], [1], [0, 0, 1, 1], [], []>} : vector<8x32xbf16>, vector<32x96xbf16>, vector<8x96xf32> -> vector<8x96xf32>
    %c0_4 = arith.constant 0 : index
    %c0_5 = arith.constant 0 : index
    %4 = vector.load %arg5[%c0_4, %c0_5] : memref<1x96xf32, #tpu.memory_space<vmem>>, vector<1x96xf32>
    %5 = vector.broadcast %4 : vector<1x96xf32> to vector<8x96xf32>
    %6 = arith.addf %3, %5 : vector<8x96xf32>
    %7 = vector.extract_strided_slice %6 {offsets = [0, 0], sizes = [8, 32], strides = [1, 1]} : vector<8x96xf32> to vector<8x32xf32>
    %cst_6 = arith.constant 0.353553385 : f32
    %8 = vector.broadcast %cst_6 : f32 to vector<8x32xf32>
    %9 = arith.mulf %7, %8 : vector<8x32xf32>
    %10 = arith.truncf %9 : vector<8x32xf32> to vector<8x32xbf16>
    %11 = vector.extract_strided_slice %6 {offsets = [0, 32], sizes = [8, 32], strides = [1, 1]} : vector<8x96xf32> to vector<8x32xf32>
    %12 = arith.truncf %11 : vector<8x32xf32> to vector<8x32xbf16>
    %13 = vector.extract_strided_slice %6 {offsets = [0, 64], sizes = [8, 32], strides = [1, 1]} : vector<8x96xf32> to vector<8x32xf32>
    %14 = arith.truncf %13 : vector<8x32xf32> to vector<8x32xbf16>
    %c0_7 = arith.constant 0 : index
    %c0_8 = arith.constant 0 : index
    %15 = vector.load %arg6[%c0_7, %c0_8] : memref<32x32xbf16, #tpu.memory_space<vmem>>, vector<32x32xbf16>
    %c0_9 = arith.constant 0 : index
    %c0_10 = arith.constant 0 : index
    %c0_11 = arith.constant 0 : index
    %16 = vector.load %arg3[%c0_9, %c0_10, %c0_11] : memref<1x1x8xf32, #tpu.memory_space<vmem>>, vector<1x1x8xf32>
    %17 = vector.shape_cast %16 : vector<1x1x8xf32> to vector<1x8xf32>
    %18 = tpu.iota {dimensions = array<i32: 0>} : vector<8x8xi32>
    %19 = tpu.iota {dimensions = array<i32: 1>} : vector<8x8xi32>
    %20 = arith.cmpi sgt, %19, %18 : vector<8x8xi32>
    %cst_12 = arith.constant 0.000000e+00 : f32
    %21 = vector.broadcast %cst_12 : f32 to vector<8x32xf32>
    %22 = vector.extract_strided_slice %10 {offsets = [0, 0], sizes = [8, 8], strides = [1, 1]} : vector<8x32xbf16> to vector<8x8xbf16>
    %23 = vector.extract_strided_slice %12 {offsets = [0, 0], sizes = [8, 8], strides = [1, 1]} : vector<8x32xbf16> to vector<8x8xbf16>
    %cst_13 = arith.constant dense<0.000000e+00> : vector<8x8xf32>
    %24 = tpu.matmul %22, %23, %cst_13 {dimension_numbers = #tpu.dot_dimension_numbers<[1], [1], [0], [0], [0, 0, 1, 0], [], []>} : vector<8x8xbf16>, vector<8x8xbf16>, vector<8x8xf32> -> vector<8x8xf32>
    %25 = vector.broadcast %17 : vector<1x8xf32> to vector<8x8xf32>
    %26 = arith.addf %24, %25 : vector<8x8xf32>
    %cst_14 = arith.constant -1.000000e+09 : f32
    %27 = vector.broadcast %cst_14 : f32 to vector<8x8xf32>
    %28 = arith.select %20, %27, %26 : vector<8x8xi1>, vector<8x8xf32>
    %cst_15 = arith.constant dense<0xFF800000> : vector<8xf32>
    %29 = vector.multi_reduction <maximumf>, %28, %cst_15 [1] : vector<8x8xf32> to vector<8xf32>
    %30 = vector.shape_cast %29 : vector<8xf32> to vector<8x1xf32>
    %31 = vector.broadcast %30 : vector<8x1xf32> to vector<8x8xf32>
    %32 = arith.subf %28, %31 : vector<8x8xf32>
    %33 = math.exp %32 : vector<8x8xf32>
    %cst_16 = arith.constant dense<0.000000e+00> : vector<8xf32>
    %34 = vector.multi_reduction <add>, %33, %cst_16 [1] : vector<8x8xf32> to vector<8xf32>
    %35 = vector.shape_cast %34 : vector<8xf32> to vector<8x1xf32>
    %36 = tpu.reciprocal %35 {approx = true} : vector<8x1xf32> -> vector<8x1xf32>
    %37 = vector.broadcast %36 : vector<8x1xf32> to vector<8x8xf32>
    %38 = arith.mulf %33, %37 : vector<8x8xf32>
    %39 = arith.truncf %38 : vector<8x8xf32> to vector<8x8xbf16>
    %40 = vector.extract_strided_slice %14 {offsets = [0, 0], sizes = [8, 8], strides = [1, 1]} : vector<8x32xbf16> to vector<8x8xbf16>
    %cst_17 = arith.constant dense<0.000000e+00> : vector<8x8xf32>
    %41 = tpu.matmul %39, %40, %cst_17 {dimension_numbers = #tpu.dot_dimension_numbers<[1], [0], [0], [1], [0, 0, 1, 1], [], []>} : vector<8x8xbf16>, vector<8x8xbf16>, vector<8x8xf32> -> vector<8x8xf32>
    %42 = arith.truncf %41 : vector<8x8xf32> to vector<8x8xbf16>
    %43 = vector.extract_strided_slice %15 {offsets = [0, 0], sizes = [8, 32], strides = [1, 1]} : vector<32x32xbf16> to vector<8x32xbf16>
    %cst_18 = arith.constant dense<0.000000e+00> : vector<8x32xf32>
    %44 = tpu.matmul %42, %43, %cst_18 {dimension_numbers = #tpu.dot_dimension_numbers<[1], [0], [0], [1], [0, 0, 1, 1], [], []>} : vector<8x8xbf16>, vector<8x32xbf16>, vector<8x32xf32> -> vector<8x32xf32>
    %45 = arith.addf %21, %44 : vector<8x32xf32>
    %46 = vector.extract_strided_slice %10 {offsets = [0, 8], sizes = [8, 8], strides = [1, 1]} : vector<8x32xbf16> to vector<8x8xbf16>
    %47 = vector.extract_strided_slice %12 {offsets = [0, 8], sizes = [8, 8], strides = [1, 1]} : vector<8x32xbf16> to vector<8x8xbf16>
    %cst_19 = arith.constant dense<0.000000e+00> : vector<8x8xf32>
    %48 = tpu.matmul %46, %47, %cst_19 {dimension_numbers = #tpu.dot_dimension_numbers<[1], [1], [0], [0], [0, 0, 1, 0], [], []>} : vector<8x8xbf16>, vector<8x8xbf16>, vector<8x8xf32> -> vector<8x8xf32>
    %49 = vector.broadcast %17 : vector<1x8xf32> to vector<8x8xf32>
    %50 = arith.addf %48, %49 : vector<8x8xf32>
    %cst_20 = arith.constant -1.000000e+09 : f32
    %51 = vector.broadcast %cst_20 : f32 to vector<8x8xf32>
    %52 = arith.select %20, %51, %50 : vector<8x8xi1>, vector<8x8xf32>
    %cst_21 = arith.constant dense<0xFF800000> : vector<8xf32>
    %53 = vector.multi_reduction <maximumf>, %52, %cst_21 [1] : vector<8x8xf32> to vector<8xf32>
    %54 = vector.shape_cast %53 : vector<8xf32> to vector<8x1xf32>
    %55 = vector.broadcast %54 : vector<8x1xf32> to vector<8x8xf32>
    %56 = arith.subf %52, %55 : vector<8x8xf32>
    %57 = math.exp %56 : vector<8x8xf32>
    %cst_22 = arith.constant dense<0.000000e+00> : vector<8xf32>
    %58 = vector.multi_reduction <add>, %57, %cst_22 [1] : vector<8x8xf32> to vector<8xf32>
    %59 = vector.shape_cast %58 : vector<8xf32> to vector<8x1xf32>
    %60 = tpu.reciprocal %59 {approx = true} : vector<8x1xf32> -> vector<8x1xf32>
    %61 = vector.broadcast %60 : vector<8x1xf32> to vector<8x8xf32>
    %62 = arith.mulf %57, %61 : vector<8x8xf32>
    %63 = arith.truncf %62 : vector<8x8xf32> to vector<8x8xbf16>
    %64 = vector.extract_strided_slice %14 {offsets = [0, 8], sizes = [8, 8], strides = [1, 1]} : vector<8x32xbf16> to vector<8x8xbf16>
    %cst_23 = arith.constant dense<0.000000e+00> : vector<8x8xf32>
    %65 = tpu.matmul %63, %64, %cst_23 {dimension_numbers = #tpu.dot_dimension_numbers<[1], [0], [0], [1], [0, 0, 1, 1], [], []>} : vector<8x8xbf16>, vector<8x8xbf16>, vector<8x8xf32> -> vector<8x8xf32>
    %66 = arith.truncf %65 : vector<8x8xf32> to vector<8x8xbf16>
    %67 = vector.extract_strided_slice %15 {offsets = [8, 0], sizes = [8, 32], strides = [1, 1]} : vector<32x32xbf16> to vector<8x32xbf16>
    %cst_24 = arith.constant dense<0.000000e+00> : vector<8x32xf32>
    %68 = tpu.matmul %66, %67, %cst_24 {dimension_numbers = #tpu.dot_dimension_numbers<[1], [0], [0], [1], [0, 0, 1, 1], [], []>} : vector<8x8xbf16>, vector<8x32xbf16>, vector<8x32xf32> -> vector<8x32xf32>
    %69 = arith.addf %45, %68 : vector<8x32xf32>
    %70 = vector.extract_strided_slice %10 {offsets = [0, 16], sizes = [8, 8], strides = [1, 1]} : vector<8x32xbf16> to vector<8x8xbf16>
    %71 = vector.extract_strided_slice %12 {offsets = [0, 16], sizes = [8, 8], strides = [1, 1]} : vector<8x32xbf16> to vector<8x8xbf16>
    %cst_25 = arith.constant dense<0.000000e+00> : vector<8x8xf32>
    %72 = tpu.matmul %70, %71, %cst_25 {dimension_numbers = #tpu.dot_dimension_numbers<[1], [1], [0], [0], [0, 0, 1, 0], [], []>} : vector<8x8xbf16>, vector<8x8xbf16>, vector<8x8xf32> -> vector<8x8xf32>
    %73 = vector.broadcast %17 : vector<1x8xf32> to vector<8x8xf32>
    %74 = arith.addf %72, %73 : vector<8x8xf32>
    %cst_26 = arith.constant -1.000000e+09 : f32
    %75 = vector.broadcast %cst_26 : f32 to vector<8x8xf32>
    %76 = arith.select %20, %75, %74 : vector<8x8xi1>, vector<8x8xf32>
    %cst_27 = arith.constant dense<0xFF800000> : vector<8xf32>
    %77 = vector.multi_reduction <maximumf>, %76, %cst_27 [1] : vector<8x8xf32> to vector<8xf32>
    %78 = vector.shape_cast %77 : vector<8xf32> to vector<8x1xf32>
    %79 = vector.broadcast %78 : vector<8x1xf32> to vector<8x8xf32>
    %80 = arith.subf %76, %79 : vector<8x8xf32>
    %81 = math.exp %80 : vector<8x8xf32>
    %cst_28 = arith.constant dense<0.000000e+00> : vector<8xf32>
    %82 = vector.multi_reduction <add>, %81, %cst_28 [1] : vector<8x8xf32> to vector<8xf32>
    %83 = vector.shape_cast %82 : vector<8xf32> to vector<8x1xf32>
    %84 = tpu.reciprocal %83 {approx = true} : vector<8x1xf32> -> vector<8x1xf32>
    %85 = vector.broadcast %84 : vector<8x1xf32> to vector<8x8xf32>
    %86 = arith.mulf %81, %85 : vector<8x8xf32>
    %87 = arith.truncf %86 : vector<8x8xf32> to vector<8x8xbf16>
    %88 = vector.extract_strided_slice %14 {offsets = [0, 16], sizes = [8, 8], strides = [1, 1]} : vector<8x32xbf16> to vector<8x8xbf16>
    %cst_29 = arith.constant dense<0.000000e+00> : vector<8x8xf32>
    %89 = tpu.matmul %87, %88, %cst_29 {dimension_numbers = #tpu.dot_dimension_numbers<[1], [0], [0], [1], [0, 0, 1, 1], [], []>} : vector<8x8xbf16>, vector<8x8xbf16>, vector<8x8xf32> -> vector<8x8xf32>
    %90 = arith.truncf %89 : vector<8x8xf32> to vector<8x8xbf16>
    %91 = vector.extract_strided_slice %15 {offsets = [16, 0], sizes = [8, 32], strides = [1, 1]} : vector<32x32xbf16> to vector<8x32xbf16>
    %cst_30 = arith.constant dense<0.000000e+00> : vector<8x32xf32>
    %92 = tpu.matmul %90, %91, %cst_30 {dimension_numbers = #tpu.dot_dimension_numbers<[1], [0], [0], [1], [0, 0, 1, 1], [], []>} : vector<8x8xbf16>, vector<8x32xbf16>, vector<8x32xf32> -> vector<8x32xf32>
    %93 = arith.addf %69, %92 : vector<8x32xf32>
    %94 = vector.extract_strided_slice %10 {offsets = [0, 24], sizes = [8, 8], strides = [1, 1]} : vector<8x32xbf16> to vector<8x8xbf16>
    %95 = vector.extract_strided_slice %12 {offsets = [0, 24], sizes = [8, 8], strides = [1, 1]} : vector<8x32xbf16> to vector<8x8xbf16>
    %cst_31 = arith.constant dense<0.000000e+00> : vector<8x8xf32>
    %96 = tpu.matmul %94, %95, %cst_31 {dimension_numbers = #tpu.dot_dimension_numbers<[1], [1], [0], [0], [0, 0, 1, 0], [], []>} : vector<8x8xbf16>, vector<8x8xbf16>, vector<8x8xf32> -> vector<8x8xf32>
    %97 = vector.broadcast %17 : vector<1x8xf32> to vector<8x8xf32>
    %98 = arith.addf %96, %97 : vector<8x8xf32>
    %cst_32 = arith.constant -1.000000e+09 : f32
    %99 = vector.broadcast %cst_32 : f32 to vector<8x8xf32>
    %100 = arith.select %20, %99, %98 : vector<8x8xi1>, vector<8x8xf32>
    %cst_33 = arith.constant dense<0xFF800000> : vector<8xf32>
    %101 = vector.multi_reduction <maximumf>, %100, %cst_33 [1] : vector<8x8xf32> to vector<8xf32>
    %102 = vector.shape_cast %101 : vector<8xf32> to vector<8x1xf32>
    %103 = vector.broadcast %102 : vector<8x1xf32> to vector<8x8xf32>
    %104 = arith.subf %100, %103 : vector<8x8xf32>
    %105 = math.exp %104 : vector<8x8xf32>
    %cst_34 = arith.constant dense<0.000000e+00> : vector<8xf32>
    %106 = vector.multi_reduction <add>, %105, %cst_34 [1] : vector<8x8xf32> to vector<8xf32>
    %107 = vector.shape_cast %106 : vector<8xf32> to vector<8x1xf32>
    %108 = tpu.reciprocal %107 {approx = true} : vector<8x1xf32> -> vector<8x1xf32>
    %109 = vector.broadcast %108 : vector<8x1xf32> to vector<8x8xf32>
    %110 = arith.mulf %105, %109 : vector<8x8xf32>
    %111 = arith.truncf %110 : vector<8x8xf32> to vector<8x8xbf16>
    %112 = vector.extract_strided_slice %14 {offsets = [0, 24], sizes = [8, 8], strides = [1, 1]} : vector<8x32xbf16> to vector<8x8xbf16>
    %cst_35 = arith.constant dense<0.000000e+00> : vector<8x8xf32>
    %113 = tpu.matmul %111, %112, %cst_35 {dimension_numbers = #tpu.dot_dimension_numbers<[1], [0], [0], [1], [0, 0, 1, 1], [], []>} : vector<8x8xbf16>, vector<8x8xbf16>, vector<8x8xf32> -> vector<8x8xf32>
    %114 = arith.truncf %113 : vector<8x8xf32> to vector<8x8xbf16>
    %115 = vector.extract_strided_slice %15 {offsets = [24, 0], sizes = [8, 32], strides = [1, 1]} : vector<32x32xbf16> to vector<8x32xbf16>
    %cst_36 = arith.constant dense<0.000000e+00> : vector<8x32xf32>
    %116 = tpu.matmul %114, %115, %cst_36 {dimension_numbers = #tpu.dot_dimension_numbers<[1], [0], [0], [1], [0, 0, 1, 1], [], []>} : vector<8x8xbf16>, vector<8x32xbf16>, vector<8x32xf32> -> vector<8x32xf32>
    %117 = arith.addf %93, %116 : vector<8x32xf32>
    %118 = arith.extf %1 : vector<8x32xbf16> to vector<8x32xf32>
    %119 = arith.addf %118, %117 : vector<8x32xf32>
    %c0_37 = arith.constant 0 : index
    %c0_38 = arith.constant 0 : index
    %120 = vector.load %arg7[%c0_37, %c0_38] : memref<1x32xf32, #tpu.memory_space<vmem>>, vector<1x32xf32>
    %121 = vector.broadcast %120 : vector<1x32xf32> to vector<8x32xf32>
    %122 = arith.addf %119, %121 : vector<8x32xf32>
    %c0_39 = arith.constant 0 : index
    %c0_40 = arith.constant 0 : index
    %123 = vector.load %arg8[%c0_39, %c0_40] : memref<1x32xf32, #tpu.memory_space<vmem>>, vector<1x32xf32>
    %c0_41 = arith.constant 0 : index
    %c0_42 = arith.constant 0 : index
    %124 = vector.load %arg9[%c0_41, %c0_42] : memref<1x32xf32, #tpu.memory_space<vmem>>, vector<1x32xf32>
    %cst_43 = arith.constant dense<0.000000e+00> : vector<8xf32>
    %125 = vector.multi_reduction <add>, %122, %cst_43 [1] : vector<8x32xf32> to vector<8xf32>
    %126 = vector.shape_cast %125 : vector<8xf32> to vector<8x1xf32>
    %cst_44 = arith.constant 3.200000e+01 : f32
    %127 = vector.broadcast %cst_44 : f32 to vector<8x1xf32>
    %128 = arith.divf %126, %127 : vector<8x1xf32>
    %129 = vector.broadcast %128 : vector<8x1xf32> to vector<8x32xf32>
    %130 = arith.subf %122, %129 : vector<8x32xf32>
    %131 = arith.mulf %130, %130 : vector<8x32xf32>
    %cst_45 = arith.constant dense<0.000000e+00> : vector<8xf32>
    %132 = vector.multi_reduction <add>, %131, %cst_45 [1] : vector<8x32xf32> to vector<8xf32>
    %133 = vector.shape_cast %132 : vector<8xf32> to vector<8x1xf32>
    %cst_46 = arith.constant 3.200000e+01 : f32
    %134 = vector.broadcast %cst_46 : f32 to vector<8x1xf32>
    %135 = arith.divf %133, %134 : vector<8x1xf32>
    %cst_47 = arith.constant 9.99999974E-6 : f32
    %136 = vector.broadcast %cst_47 : f32 to vector<8x1xf32>
    %137 = arith.addf %135, %136 : vector<8x1xf32>
    %138 = math.rsqrt %137 : vector<8x1xf32>
    %139 = vector.broadcast %138 : vector<8x1xf32> to vector<8x32xf32>
    %140 = arith.mulf %130, %139 : vector<8x32xf32>
    %141 = vector.broadcast %123 : vector<1x32xf32> to vector<8x32xf32>
    %142 = arith.mulf %140, %141 : vector<8x32xf32>
    %143 = vector.broadcast %124 : vector<1x32xf32> to vector<8x32xf32>
    %144 = arith.addf %142, %143 : vector<8x32xf32>
    %c0_48 = arith.constant 0 : index
    %c0_49 = arith.constant 0 : index
    %c0_50 = arith.constant 0 : index
    %145 = vector.load %arg2[%c0_48, %c0_49, %c0_50] : memref<1x8x32xbf16, #tpu.memory_space<vmem>>, vector<1x8x32xbf16>
    %146 = vector.shape_cast %145 : vector<1x8x32xbf16> to vector<8x32xbf16>
    %147 = arith.truncf %144 : vector<8x32xf32> to vector<8x32xbf16>
    %c0_51 = arith.constant 0 : index
    %c0_52 = arith.constant 0 : index
    %148 = vector.load %arg10[%c0_51, %c0_52] : memref<32x32xbf16, #tpu.memory_space<vmem>>, vector<32x32xbf16>
    %cst_53 = arith.constant dense<0.000000e+00> : vector<8x32xf32>
    %149 = tpu.matmul %147, %148, %cst_53 {dimension_numbers = #tpu.dot_dimension_numbers<[1], [0], [0], [1], [0, 0, 1, 1], [], []>} : vector<8x32xbf16>, vector<32x32xbf16>, vector<8x32xf32> -> vector<8x32xf32>
    %c0_54 = arith.constant 0 : index
    %c0_55 = arith.constant 0 : index
    %150 = vector.load %arg11[%c0_54, %c0_55] : memref<1x32xf32, #tpu.memory_space<vmem>>, vector<1x32xf32>
    %151 = vector.broadcast %150 : vector<1x32xf32> to vector<8x32xf32>
    %152 = arith.addf %149, %151 : vector<8x32xf32>
    %cst_56 = arith.constant 0.353553385 : f32
    %153 = vector.broadcast %cst_56 : f32 to vector<8x32xf32>
    %154 = arith.mulf %152, %153 : vector<8x32xf32>
    %155 = arith.truncf %154 : vector<8x32xf32> to vector<8x32xbf16>
    %c0_57 = arith.constant 0 : index
    %c0_58 = arith.constant 0 : index
    %156 = vector.load %arg12[%c0_57, %c0_58] : memref<32x64xbf16, #tpu.memory_space<vmem>>, vector<32x64xbf16>
    %cst_59 = arith.constant dense<0.000000e+00> : vector<8x64xf32>
    %157 = tpu.matmul %146, %156, %cst_59 {dimension_numbers = #tpu.dot_dimension_numbers<[1], [0], [0], [1], [0, 0, 1, 1], [], []>} : vector<8x32xbf16>, vector<32x64xbf16>, vector<8x64xf32> -> vector<8x64xf32>
    %c0_60 = arith.constant 0 : index
    %c0_61 = arith.constant 0 : index
    %158 = vector.load %arg13[%c0_60, %c0_61] : memref<1x64xf32, #tpu.memory_space<vmem>>, vector<1x64xf32>
    %159 = vector.broadcast %158 : vector<1x64xf32> to vector<8x64xf32>
    %160 = arith.addf %157, %159 : vector<8x64xf32>
    %161 = vector.extract_strided_slice %160 {offsets = [0, 0], sizes = [8, 32], strides = [1, 1]} : vector<8x64xf32> to vector<8x32xf32>
    %162 = arith.truncf %161 : vector<8x32xf32> to vector<8x32xbf16>
    %163 = vector.extract_strided_slice %160 {offsets = [0, 32], sizes = [8, 32], strides = [1, 1]} : vector<8x64xf32> to vector<8x32xf32>
    %164 = arith.truncf %163 : vector<8x32xf32> to vector<8x32xbf16>
    %c0_62 = arith.constant 0 : index
    %c0_63 = arith.constant 0 : index
    %165 = vector.load %arg14[%c0_62, %c0_63] : memref<32x32xbf16, #tpu.memory_space<vmem>>, vector<32x32xbf16>
    %cst_64 = arith.constant 0.000000e+00 : f32
    %166 = vector.broadcast %cst_64 : f32 to vector<8x32xf32>
    %167 = vector.extract_strided_slice %155 {offsets = [0, 0], sizes = [8, 8], strides = [1, 1]} : vector<8x32xbf16> to vector<8x8xbf16>
    %168 = vector.extract_strided_slice %162 {offsets = [0, 0], sizes = [8, 8], strides = [1, 1]} : vector<8x32xbf16> to vector<8x8xbf16>
    %cst_65 = arith.constant dense<0.000000e+00> : vector<8x8xf32>
    %169 = tpu.matmul %167, %168, %cst_65 {dimension_numbers = #tpu.dot_dimension_numbers<[1], [1], [0], [0], [0, 0, 1, 0], [], []>} : vector<8x8xbf16>, vector<8x8xbf16>, vector<8x8xf32> -> vector<8x8xf32>
    %cst_66 = arith.constant dense<0xFF800000> : vector<8xf32>
    %170 = vector.multi_reduction <maximumf>, %169, %cst_66 [1] : vector<8x8xf32> to vector<8xf32>
    %171 = vector.shape_cast %170 : vector<8xf32> to vector<8x1xf32>
    %172 = vector.broadcast %171 : vector<8x1xf32> to vector<8x8xf32>
    %173 = arith.subf %169, %172 : vector<8x8xf32>
    %174 = math.exp %173 : vector<8x8xf32>
    %cst_67 = arith.constant dense<0.000000e+00> : vector<8xf32>
    %175 = vector.multi_reduction <add>, %174, %cst_67 [1] : vector<8x8xf32> to vector<8xf32>
    %176 = vector.shape_cast %175 : vector<8xf32> to vector<8x1xf32>
    %177 = tpu.reciprocal %176 {approx = true} : vector<8x1xf32> -> vector<8x1xf32>
    %178 = vector.broadcast %177 : vector<8x1xf32> to vector<8x8xf32>
    %179 = arith.mulf %174, %178 : vector<8x8xf32>
    %180 = arith.truncf %179 : vector<8x8xf32> to vector<8x8xbf16>
    %181 = vector.extract_strided_slice %164 {offsets = [0, 0], sizes = [8, 8], strides = [1, 1]} : vector<8x32xbf16> to vector<8x8xbf16>
    %cst_68 = arith.constant dense<0.000000e+00> : vector<8x8xf32>
    %182 = tpu.matmul %180, %181, %cst_68 {dimension_numbers = #tpu.dot_dimension_numbers<[1], [0], [0], [1], [0, 0, 1, 1], [], []>} : vector<8x8xbf16>, vector<8x8xbf16>, vector<8x8xf32> -> vector<8x8xf32>
    %183 = arith.truncf %182 : vector<8x8xf32> to vector<8x8xbf16>
    %184 = vector.extract_strided_slice %165 {offsets = [0, 0], sizes = [8, 32], strides = [1, 1]} : vector<32x32xbf16> to vector<8x32xbf16>
    %cst_69 = arith.constant dense<0.000000e+00> : vector<8x32xf32>
    %185 = tpu.matmul %183, %184, %cst_69 {dimension_numbers = #tpu.dot_dimension_numbers<[1], [0], [0], [1], [0, 0, 1, 1], [], []>} : vector<8x8xbf16>, vector<8x32xbf16>, vector<8x32xf32> -> vector<8x32xf32>
    %186 = arith.addf %166, %185 : vector<8x32xf32>
    %187 = vector.extract_strided_slice %155 {offsets = [0, 8], sizes = [8, 8], strides = [1, 1]} : vector<8x32xbf16> to vector<8x8xbf16>
    %188 = vector.extract_strided_slice %162 {offsets = [0, 8], sizes = [8, 8], strides = [1, 1]} : vector<8x32xbf16> to vector<8x8xbf16>
    %cst_70 = arith.constant dense<0.000000e+00> : vector<8x8xf32>
    %189 = tpu.matmul %187, %188, %cst_70 {dimension_numbers = #tpu.dot_dimension_numbers<[1], [1], [0], [0], [0, 0, 1, 0], [], []>} : vector<8x8xbf16>, vector<8x8xbf16>, vector<8x8xf32> -> vector<8x8xf32>
    %cst_71 = arith.constant dense<0xFF800000> : vector<8xf32>
    %190 = vector.multi_reduction <maximumf>, %189, %cst_71 [1] : vector<8x8xf32> to vector<8xf32>
    %191 = vector.shape_cast %190 : vector<8xf32> to vector<8x1xf32>
    %192 = vector.broadcast %191 : vector<8x1xf32> to vector<8x8xf32>
    %193 = arith.subf %189, %192 : vector<8x8xf32>
    %194 = math.exp %193 : vector<8x8xf32>
    %cst_72 = arith.constant dense<0.000000e+00> : vector<8xf32>
    %195 = vector.multi_reduction <add>, %194, %cst_72 [1] : vector<8x8xf32> to vector<8xf32>
    %196 = vector.shape_cast %195 : vector<8xf32> to vector<8x1xf32>
    %197 = tpu.reciprocal %196 {approx = true} : vector<8x1xf32> -> vector<8x1xf32>
    %198 = vector.broadcast %197 : vector<8x1xf32> to vector<8x8xf32>
    %199 = arith.mulf %194, %198 : vector<8x8xf32>
    %200 = arith.truncf %199 : vector<8x8xf32> to vector<8x8xbf16>
    %201 = vector.extract_strided_slice %164 {offsets = [0, 8], sizes = [8, 8], strides = [1, 1]} : vector<8x32xbf16> to vector<8x8xbf16>
    %cst_73 = arith.constant dense<0.000000e+00> : vector<8x8xf32>
    %202 = tpu.matmul %200, %201, %cst_73 {dimension_numbers = #tpu.dot_dimension_numbers<[1], [0], [0], [1], [0, 0, 1, 1], [], []>} : vector<8x8xbf16>, vector<8x8xbf16>, vector<8x8xf32> -> vector<8x8xf32>
    %203 = arith.truncf %202 : vector<8x8xf32> to vector<8x8xbf16>
    %204 = vector.extract_strided_slice %165 {offsets = [8, 0], sizes = [8, 32], strides = [1, 1]} : vector<32x32xbf16> to vector<8x32xbf16>
    %cst_74 = arith.constant dense<0.000000e+00> : vector<8x32xf32>
    %205 = tpu.matmul %203, %204, %cst_74 {dimension_numbers = #tpu.dot_dimension_numbers<[1], [0], [0], [1], [0, 0, 1, 1], [], []>} : vector<8x8xbf16>, vector<8x32xbf16>, vector<8x32xf32> -> vector<8x32xf32>
    %206 = arith.addf %186, %205 : vector<8x32xf32>
    %207 = vector.extract_strided_slice %155 {offsets = [0, 16], sizes = [8, 8], strides = [1, 1]} : vector<8x32xbf16> to vector<8x8xbf16>
    %208 = vector.extract_strided_slice %162 {offsets = [0, 16], sizes = [8, 8], strides = [1, 1]} : vector<8x32xbf16> to vector<8x8xbf16>
    %cst_75 = arith.constant dense<0.000000e+00> : vector<8x8xf32>
    %209 = tpu.matmul %207, %208, %cst_75 {dimension_numbers = #tpu.dot_dimension_numbers<[1], [1], [0], [0], [0, 0, 1, 0], [], []>} : vector<8x8xbf16>, vector<8x8xbf16>, vector<8x8xf32> -> vector<8x8xf32>
    %cst_76 = arith.constant dense<0xFF800000> : vector<8xf32>
    %210 = vector.multi_reduction <maximumf>, %209, %cst_76 [1] : vector<8x8xf32> to vector<8xf32>
    %211 = vector.shape_cast %210 : vector<8xf32> to vector<8x1xf32>
    %212 = vector.broadcast %211 : vector<8x1xf32> to vector<8x8xf32>
    %213 = arith.subf %209, %212 : vector<8x8xf32>
    %214 = math.exp %213 : vector<8x8xf32>
    %cst_77 = arith.constant dense<0.000000e+00> : vector<8xf32>
    %215 = vector.multi_reduction <add>, %214, %cst_77 [1] : vector<8x8xf32> to vector<8xf32>
    %216 = vector.shape_cast %215 : vector<8xf32> to vector<8x1xf32>
    %217 = tpu.reciprocal %216 {approx = true} : vector<8x1xf32> -> vector<8x1xf32>
    %218 = vector.broadcast %217 : vector<8x1xf32> to vector<8x8xf32>
    %219 = arith.mulf %214, %218 : vector<8x8xf32>
    %220 = arith.truncf %219 : vector<8x8xf32> to vector<8x8xbf16>
    %221 = vector.extract_strided_slice %164 {offsets = [0, 16], sizes = [8, 8], strides = [1, 1]} : vector<8x32xbf16> to vector<8x8xbf16>
    %cst_78 = arith.constant dense<0.000000e+00> : vector<8x8xf32>
    %222 = tpu.matmul %220, %221, %cst_78 {dimension_numbers = #tpu.dot_dimension_numbers<[1], [0], [0], [1], [0, 0, 1, 1], [], []>} : vector<8x8xbf16>, vector<8x8xbf16>, vector<8x8xf32> -> vector<8x8xf32>
    %223 = arith.truncf %222 : vector<8x8xf32> to vector<8x8xbf16>
    %224 = vector.extract_strided_slice %165 {offsets = [16, 0], sizes = [8, 32], strides = [1, 1]} : vector<32x32xbf16> to vector<8x32xbf16>
    %cst_79 = arith.constant dense<0.000000e+00> : vector<8x32xf32>
    %225 = tpu.matmul %223, %224, %cst_79 {dimension_numbers = #tpu.dot_dimension_numbers<[1], [0], [0], [1], [0, 0, 1, 1], [], []>} : vector<8x8xbf16>, vector<8x32xbf16>, vector<8x32xf32> -> vector<8x32xf32>
    %226 = arith.addf %206, %225 : vector<8x32xf32>
    %227 = vector.extract_strided_slice %155 {offsets = [0, 24], sizes = [8, 8], strides = [1, 1]} : vector<8x32xbf16> to vector<8x8xbf16>
    %228 = vector.extract_strided_slice %162 {offsets = [0, 24], sizes = [8, 8], strides = [1, 1]} : vector<8x32xbf16> to vector<8x8xbf16>
    %cst_80 = arith.constant dense<0.000000e+00> : vector<8x8xf32>
    %229 = tpu.matmul %227, %228, %cst_80 {dimension_numbers = #tpu.dot_dimension_numbers<[1], [1], [0], [0], [0, 0, 1, 0], [], []>} : vector<8x8xbf16>, vector<8x8xbf16>, vector<8x8xf32> -> vector<8x8xf32>
    %cst_81 = arith.constant dense<0xFF800000> : vector<8xf32>
    %230 = vector.multi_reduction <maximumf>, %229, %cst_81 [1] : vector<8x8xf32> to vector<8xf32>
    %231 = vector.shape_cast %230 : vector<8xf32> to vector<8x1xf32>
    %232 = vector.broadcast %231 : vector<8x1xf32> to vector<8x8xf32>
    %233 = arith.subf %229, %232 : vector<8x8xf32>
    %234 = math.exp %233 : vector<8x8xf32>
    %cst_82 = arith.constant dense<0.000000e+00> : vector<8xf32>
    %235 = vector.multi_reduction <add>, %234, %cst_82 [1] : vector<8x8xf32> to vector<8xf32>
    %236 = vector.shape_cast %235 : vector<8xf32> to vector<8x1xf32>
    %237 = tpu.reciprocal %236 {approx = true} : vector<8x1xf32> -> vector<8x1xf32>
    %238 = vector.broadcast %237 : vector<8x1xf32> to vector<8x8xf32>
    %239 = arith.mulf %234, %238 : vector<8x8xf32>
    %240 = arith.truncf %239 : vector<8x8xf32> to vector<8x8xbf16>
    %241 = vector.extract_strided_slice %164 {offsets = [0, 24], sizes = [8, 8], strides = [1, 1]} : vector<8x32xbf16> to vector<8x8xbf16>
    %cst_83 = arith.constant dense<0.000000e+00> : vector<8x8xf32>
    %242 = tpu.matmul %240, %241, %cst_83 {dimension_numbers = #tpu.dot_dimension_numbers<[1], [0], [0], [1], [0, 0, 1, 1], [], []>} : vector<8x8xbf16>, vector<8x8xbf16>, vector<8x8xf32> -> vector<8x8xf32>
    %243 = arith.truncf %242 : vector<8x8xf32> to vector<8x8xbf16>
    %244 = vector.extract_strided_slice %165 {offsets = [24, 0], sizes = [8, 32], strides = [1, 1]} : vector<32x32xbf16> to vector<8x32xbf16>
    %cst_84 = arith.constant dense<0.000000e+00> : vector<8x32xf32>
    %245 = tpu.matmul %243, %244, %cst_84 {dimension_numbers = #tpu.dot_dimension_numbers<[1], [0], [0], [1], [0, 0, 1, 1], [], []>} : vector<8x8xbf16>, vector<8x32xbf16>, vector<8x32xf32> -> vector<8x32xf32>
    %246 = arith.addf %226, %245 : vector<8x32xf32>
    %247 = arith.addf %144, %246 : vector<8x32xf32>
    %c0_85 = arith.constant 0 : index
    %c0_86 = arith.constant 0 : index
    %248 = vector.load %arg15[%c0_85, %c0_86] : memref<1x32xf32, #tpu.memory_space<vmem>>, vector<1x32xf32>
    %249 = vector.broadcast %248 : vector<1x32xf32> to vector<8x32xf32>
    %250 = arith.addf %247, %249 : vector<8x32xf32>
    %c0_87 = arith.constant 0 : index
    %c0_88 = arith.constant 0 : index
    %251 = vector.load %arg16[%c0_87, %c0_88] : memref<1x32xf32, #tpu.memory_space<vmem>>, vector<1x32xf32>
    %c0_89 = arith.constant 0 : index
    %c0_90 = arith.constant 0 : index
    %252 = vector.load %arg17[%c0_89, %c0_90] : memref<1x32xf32, #tpu.memory_space<vmem>>, vector<1x32xf32>
    %cst_91 = arith.constant dense<0.000000e+00> : vector<8xf32>
    %253 = vector.multi_reduction <add>, %250, %cst_91 [1] : vector<8x32xf32> to vector<8xf32>
    %254 = vector.shape_cast %253 : vector<8xf32> to vector<8x1xf32>
    %cst_92 = arith.constant 3.200000e+01 : f32
    %255 = vector.broadcast %cst_92 : f32 to vector<8x1xf32>
    %256 = arith.divf %254, %255 : vector<8x1xf32>
    %257 = vector.broadcast %256 : vector<8x1xf32> to vector<8x32xf32>
    %258 = arith.subf %250, %257 : vector<8x32xf32>
    %259 = arith.mulf %258, %258 : vector<8x32xf32>
    %cst_93 = arith.constant dense<0.000000e+00> : vector<8xf32>
    %260 = vector.multi_reduction <add>, %259, %cst_93 [1] : vector<8x32xf32> to vector<8xf32>
    %261 = vector.shape_cast %260 : vector<8xf32> to vector<8x1xf32>
    %cst_94 = arith.constant 3.200000e+01 : f32
    %262 = vector.broadcast %cst_94 : f32 to vector<8x1xf32>
    %263 = arith.divf %261, %262 : vector<8x1xf32>
    %cst_95 = arith.constant 9.99999974E-6 : f32
    %264 = vector.broadcast %cst_95 : f32 to vector<8x1xf32>
    %265 = arith.addf %263, %264 : vector<8x1xf32>
    %266 = math.rsqrt %265 : vector<8x1xf32>
    %267 = vector.broadcast %266 : vector<8x1xf32> to vector<8x32xf32>
    %268 = arith.mulf %258, %267 : vector<8x32xf32>
    %269 = vector.broadcast %251 : vector<1x32xf32> to vector<8x32xf32>
    %270 = arith.mulf %268, %269 : vector<8x32xf32>
    %271 = vector.broadcast %252 : vector<1x32xf32> to vector<8x32xf32>
    %272 = arith.addf %270, %271 : vector<8x32xf32>
    %273 = arith.truncf %272 : vector<8x32xf32> to vector<8x32xbf16>
    %c0_96 = arith.constant 0 : index
    %c0_97 = arith.constant 0 : index
    %274 = vector.load %arg18[%c0_96, %c0_97] : memref<32x2048xbf16, #tpu.memory_space<vmem>>, vector<32x2048xbf16>
    %cst_98 = arith.constant dense<0.000000e+00> : vector<8x2048xf32>
    %275 = tpu.matmul %273, %274, %cst_98 {dimension_numbers = #tpu.dot_dimension_numbers<[1], [0], [0], [1], [0, 0, 1, 1], [], []>} : vector<8x32xbf16>, vector<32x2048xbf16>, vector<8x2048xf32> -> vector<8x2048xf32>
    %c0_99 = arith.constant 0 : index
    %c0_100 = arith.constant 0 : index
    %276 = vector.load %arg19[%c0_99, %c0_100] : memref<1x2048xf32, #tpu.memory_space<vmem>>, vector<1x2048xf32>
    %277 = vector.broadcast %276 : vector<1x2048xf32> to vector<8x2048xf32>
    %278 = arith.addf %275, %277 : vector<8x2048xf32>
    %cst_101 = arith.constant 0.000000e+00 : f32
    %279 = vector.broadcast %cst_101 : f32 to vector<8x2048xf32>
    %280 = arith.maximumf %278, %279 : vector<8x2048xf32>
    %281 = arith.truncf %280 : vector<8x2048xf32> to vector<8x2048xbf16>
    %c0_102 = arith.constant 0 : index
    %c0_103 = arith.constant 0 : index
    %282 = vector.load %arg20[%c0_102, %c0_103] : memref<2048x32xbf16, #tpu.memory_space<vmem>>, vector<2048x32xbf16>
    %cst_104 = arith.constant dense<0.000000e+00> : vector<8x32xf32>
    %283 = tpu.matmul %281, %282, %cst_104 {dimension_numbers = #tpu.dot_dimension_numbers<[1], [0], [0], [1], [0, 0, 1, 1], [], []>} : vector<8x2048xbf16>, vector<2048x32xbf16>, vector<8x32xf32> -> vector<8x32xf32>
    %c0_105 = arith.constant 0 : index
    %c0_106 = arith.constant 0 : index
    %284 = vector.load %arg21[%c0_105, %c0_106] : memref<1x32xf32, #tpu.memory_space<vmem>>, vector<1x32xf32>
    %285 = vector.broadcast %284 : vector<1x32xf32> to vector<8x32xf32>
    %286 = arith.addf %283, %285 : vector<8x32xf32>
    %287 = arith.addf %272, %286 : vector<8x32xf32>
    %c0_107 = arith.constant 0 : index
    %c0_108 = arith.constant 0 : index
    %288 = vector.load %arg22[%c0_107, %c0_108] : memref<1x32xf32, #tpu.memory_space<vmem>>, vector<1x32xf32>
    %c0_109 = arith.constant 0 : index
    %c0_110 = arith.constant 0 : index
    %289 = vector.load %arg23[%c0_109, %c0_110] : memref<1x32xf32, #tpu.memory_space<vmem>>, vector<1x32xf32>
    %cst_111 = arith.constant dense<0.000000e+00> : vector<8xf32>
    %290 = vector.multi_reduction <add>, %287, %cst_111 [1] : vector<8x32xf32> to vector<8xf32>
    %291 = vector.shape_cast %290 : vector<8xf32> to vector<8x1xf32>
    %cst_112 = arith.constant 3.200000e+01 : f32
    %292 = vector.broadcast %cst_112 : f32 to vector<8x1xf32>
    %293 = arith.divf %291, %292 : vector<8x1xf32>
    %294 = vector.broadcast %293 : vector<8x1xf32> to vector<8x32xf32>
    %295 = arith.subf %287, %294 : vector<8x32xf32>
    %296 = arith.mulf %295, %295 : vector<8x32xf32>
    %cst_113 = arith.constant dense<0.000000e+00> : vector<8xf32>
    %297 = vector.multi_reduction <add>, %296, %cst_113 [1] : vector<8x32xf32> to vector<8xf32>
    %298 = vector.shape_cast %297 : vector<8xf32> to vector<8x1xf32>
    %cst_114 = arith.constant 3.200000e+01 : f32
    %299 = vector.broadcast %cst_114 : f32 to vector<8x1xf32>
    %300 = arith.divf %298, %299 : vector<8x1xf32>
    %cst_115 = arith.constant 9.99999974E-6 : f32
    %301 = vector.broadcast %cst_115 : f32 to vector<8x1xf32>
    %302 = arith.addf %300, %301 : vector<8x1xf32>
    %303 = math.rsqrt %302 : vector<8x1xf32>
    %304 = vector.broadcast %303 : vector<8x1xf32> to vector<8x32xf32>
    %305 = arith.mulf %295, %304 : vector<8x32xf32>
    %306 = vector.broadcast %288 : vector<1x32xf32> to vector<8x32xf32>
    %307 = arith.mulf %305, %306 : vector<8x32xf32>
    %308 = vector.broadcast %289 : vector<1x32xf32> to vector<8x32xf32>
    %309 = arith.addf %307, %308 : vector<8x32xf32>
    %310 = arith.truncf %309 : vector<8x32xf32> to vector<8x32xbf16>
    %c0_116 = arith.constant 0 : index
    %c0_117 = arith.constant 0 : index
    %c0_118 = arith.constant 0 : index
    %311 = vector.load %arg24[%c0_116, %c0_117, %c0_118] : memref<1x8x32xbf16, #tpu.memory_space<vmem>>, vector<1x8x32xbf16>
    %312 = vector.shape_cast %311 : vector<1x8x32xbf16> to vector<8x32xbf16>
    %313 = vector.shape_cast %310 : vector<8x32xbf16> to vector<1x8x32xbf16>
    tpu.vector_store %arg24[%c0_116, %c0_117, %c0_118], %313 {strides = array<i32>} : memref<1x8x32xbf16, #tpu.memory_space<vmem>>, vector<1x8x32xbf16>,
    return
  }
  func.func @transform_0(%arg0: i32) -> (i32, i32, i32) {
    %c0_i32 = arith.constant 0 : i32
    %c0_i32_0 = arith.constant 0 : i32
    %c0_i32_1 = arith.constant 0 : i32
    return %arg0, %c0_i32, %c0_i32_0 : i32, i32, i32
  }
  func.func @transform_1(%arg0: i32) -> (i32, i32, i32) {
    %c0_i32 = arith.constant 0 : i32
    %c0_i32_0 = arith.constant 0 : i32
    %c0_i32_1 = arith.constant 0 : i32
    return %arg0, %c0_i32, %c0_i32_0 : i32, i32, i32
  }
  func.func @transform_2(%arg0: i32) -> (i32, i32, i32) {
    %c0_i32 = arith.constant 0 : i32
    %c0_i32_0 = arith.constant 0 : i32
    %c0_i32_1 = arith.constant 0 : i32
    return %arg0, %c0_i32, %c0_i32_0 : i32, i32, i32
  }
  func.func @transform_3(%arg0: i32) -> (i32, i32) {
    %c0_i32 = arith.constant 0 : i32
    %c0_i32_0 = arith.constant 0 : i32
    %c0_i32_1 = arith.constant 0 : i32
    return %c0_i32, %c0_i32_0 : i32, i32
  }
  func.func @transform_4(%arg0: i32) -> (i32, i32) {
    %c0_i32 = arith.constant 0 : i32
    %c0_i32_0 = arith.constant 0 : i32
    %c0_i32_1 = arith.constant 0 : i32
    return %c0_i32, %c0_i32_0 : i32, i32
  }
  func.func @transform_5(%arg0: i32) -> (i32, i32) {
    %c0_i32 = arith.constant 0 : i32
    %c0_i32_0 = arith.constant 0 : i32
    %c0_i32_1 = arith.constant 0 : i32
    return %c0_i32, %c0_i32_0 : i32, i32
  }
  func.func @transform_6(%arg0: i32) -> (i32, i32) {
    %c0_i32 = arith.constant 0 : i32
    %c0_i32_0 = arith.constant 0 : i32
    %c0_i32_1 = arith.constant 0 : i32
    return %c0_i32, %c0_i32_0 : i32, i32
  }
  func.func @transform_7(%arg0: i32) -> (i32, i32) {
    %c0_i32 = arith.constant 0 : i32
    %c0_i32_0 = arith.constant 0 : i32
    %c0_i32_1 = arith.constant 0 : i32
    return %c0_i32, %c0_i32_0 : i32, i32
  }
  func.func @transform_8(%arg0: i32) -> (i32, i32) {
    %c0_i32 = arith.constant 0 : i32
    %c0_i32_0 = arith.constant 0 : i32
    %c0_i32_1 = arith.constant 0 : i32
    return %c0_i32, %c0_i32_0 : i32, i32
  }
  func.func @transform_9(%arg0: i32) -> (i32, i32) {
    %c0_i32 = arith.constant 0 : i32
    %c0_i32_0 = arith.constant 0 : i32
    %c0_i32_1 = arith.constant 0 : i32
    return %c0_i32, %c0_i32_0 : i32, i32
  }
  func.func @transform_10(%arg0: i32) -> (i32, i32) {
    %c0_i32 = arith.constant 0 : i32
    %c0_i32_0 = arith.constant 0 : i32
    %c0_i32_1 = arith.constant 0 : i32
    return %c0_i32, %c0_i32_0 : i32, i32
  }
  func.func @transform_11(%arg0: i32) -> (i32, i32) {
    %c0_i32 = arith.constant 0 : i32
    %c0_i32_0 = arith.constant 0 : i32
    %c0_i32_1 = arith.constant 0 : i32
    return %c0_i32, %c0_i32_0 : i32, i32
  }
  func.func @transform_12(%arg0: i32) -> (i32, i32) {
    %c0_i32 = arith.constant 0 : i32
    %c0_i32_0 = arith.constant 0 : i32
    %c0_i32_1 = arith.constant 0 : i32
    return %c0_i32, %c0_i32_0 : i32, i32
  }
  func.func @transform_13(%arg0: i32) -> (i32, i32) {
    %c0_i32 = arith.constant 0 : i32
    %c0_i32_0 = arith.constant 0 : i32
    %c0_i32_1 = arith.constant 0 : i32
    return %c0_i32, %c0_i32_0 : i32, i32
  }
  func.func @transform_14(%arg0: i32) -> (i32, i32) {
    %c0_i32 = arith.constant 0 : i32
    %c0_i32_0 = arith.constant 0 : i32
    %c0_i32_1 = arith.constant 0 : i32
    return %c0_i32, %c0_i32_0 : i32, i32
  }
  func.func @transform_15(%arg0: i32) -> (i32, i32) {
    %c0_i32 = arith.constant 0 : i32
    %c0_i32_0 = arith.constant 0 : i32
    %c0_i32_1 = arith.constant 0 : i32
    return %c0_i32, %c0_i32_0 : i32, i32
  }
  func.func @transform_16(%arg0: i32) -> (i32, i32) {
    %c0_i32 = arith.constant 0 : i32
    %c0_i32_0 = arith.constant 0 : i32
    %c0_i32_1 = arith.constant 0 : i32
    return %c0_i32, %c0_i32_0 : i32, i32
  }
  func.func @transform_17(%arg0: i32) -> (i32, i32) {
    %c0_i32 = arith.constant 0 : i32
    %c0_i32_0 = arith.constant 0 : i32
    %c0_i32_1 = arith.constant 0 : i32
    return %c0_i32, %c0_i32_0 : i32, i32
  }
  func.func @transform_18(%arg0: i32) -> (i32, i32) {
    %c0_i32 = arith.constant 0 : i32
    %c0_i32_0 = arith.constant 0 : i32
    %c0_i32_1 = arith.constant 0 : i32
    return %c0_i32, %c0_i32_0 : i32, i32
  }
  func.func @transform_19(%arg0: i32) -> (i32, i32) {
    %c0_i32 = arith.constant 0 : i32
    %c0_i32_0 = arith.constant 0 : i32
    %c0_i32_1 = arith.constant 0 : i32
    return %c0_i32, %c0_i32_0 : i32, i32
  }
  func.func @transform_20(%arg0: i32) -> (i32, i32) {
    %c0_i32 = arith.constant 0 : i32
    %c0_i32_0 = arith.constant 0 : i32
    %c0_i32_1 = arith.constant 0 : i32
    return %c0_i32, %c0_i32_0 : i32, i32
  }
  func.func @transform_21(%arg0: i32) -> (i32, i32) {
    %c0_i32 = arith.constant 0 : i32
    %c0_i32_0 = arith.constant 0 : i32
    %c0_i32_1 = arith.constant 0 : i32
    return %c0_i32, %c0_i32_0 : i32, i32
  }
  func.func @transform_22(%arg0: i32) -> (i32, i32) {
    %c0_i32 = arith.constant 0 : i32
    %c0_i32_0 = arith.constant 0 : i32
    %c0_i32_1 = arith.constant 0 : i32
    return %c0_i32, %c0_i32_0 : i32, i32
  }
  func.func @transform_23(%arg0: i32) -> (i32, i32, i32) {
    %c0_i32 = arith.constant 0 : i32
    %c0_i32_0 = arith.constant 0 : i32
    %c0_i32_1 = arith.constant 0 : i32
    return %arg0, %c0_i32, %c0_i32_0 : i32, i32, i32
  }
}

module attributes {stable_mosaic.version = 11 : i64} {
  func.func @_final_ln_linear_kernel(%arg0: i32, %arg1: memref<1x8x32xbf16, #tpu.memory_space<vmem>>, %arg2: memref<1x32xf32, #tpu.memory_space<vmem>>, %arg3: memref<1x32xf32, #tpu.memory_space<vmem>>, %arg4: memref<32x128xbf16, #tpu.memory_space<vmem>>, %arg5: memref<1x128xf32, #tpu.memory_space<vmem>>, %arg6: memref<1x8x128xf32, #tpu.memory_space<vmem>>) attributes {dimension_semantics = [#tpu.dimension_semantics<parallel>], iteration_bounds = array<i64: 2>, scalar_prefetch = 0 : i64, scratch_operands = 0 : i64, tpu.core_type = #tpu.core_type<tc>, window_params = [{transform_indices = @transform_0, window_bounds = array<i64: 1, 8, 32>}, {pipeline_mode = #tpu.pipeline_mode<synchronous>, transform_indices = @transform_1, window_bounds = array<i64: 1, 32>}, {pipeline_mode = #tpu.pipeline_mode<synchronous>, transform_indices = @transform_2, window_bounds = array<i64: 1, 32>}, {pipeline_mode = #tpu.pipeline_mode<synchronous>, transform_indices = @transform_3, window_bounds = array<i64: 32, 128>}, {pipeline_mode = #tpu.pipeline_mode<synchronous>, transform_indices = @transform_4, window_bounds = array<i64: 1, 128>}, {transform_indices = @transform_5, window_bounds = array<i64: 1, 8, 128>}]} {
    %c0 = arith.constant 0 : index
    %c0_0 = arith.constant 0 : index
    %c0_1 = arith.constant 0 : index
    %0 = vector.load %arg1[%c0, %c0_0, %c0_1] : memref<1x8x32xbf16, #tpu.memory_space<vmem>>, vector<1x8x32xbf16>
    %1 = vector.shape_cast %0 : vector<1x8x32xbf16> to vector<8x32xbf16>
    %2 = arith.extf %1 : vector<8x32xbf16> to vector<8x32xf32>
    %c0_2 = arith.constant 0 : index
    %c0_3 = arith.constant 0 : index
    %3 = vector.load %arg2[%c0_2, %c0_3] : memref<1x32xf32, #tpu.memory_space<vmem>>, vector<1x32xf32>
    %c0_4 = arith.constant 0 : index
    %c0_5 = arith.constant 0 : index
    %4 = vector.load %arg3[%c0_4, %c0_5] : memref<1x32xf32, #tpu.memory_space<vmem>>, vector<1x32xf32>
    %cst = arith.constant dense<0.000000e+00> : vector<8xf32>
    %5 = vector.multi_reduction <add>, %2, %cst [1] : vector<8x32xf32> to vector<8xf32>
    %6 = vector.shape_cast %5 : vector<8xf32> to vector<8x1xf32>
    %cst_6 = arith.constant 3.200000e+01 : f32
    %7 = vector.broadcast %cst_6 : f32 to vector<8x1xf32>
    %8 = arith.divf %6, %7 : vector<8x1xf32>
    %9 = vector.broadcast %8 : vector<8x1xf32> to vector<8x32xf32>
    %10 = arith.subf %2, %9 : vector<8x32xf32>
    %11 = arith.mulf %10, %10 : vector<8x32xf32>
    %cst_7 = arith.constant dense<0.000000e+00> : vector<8xf32>
    %12 = vector.multi_reduction <add>, %11, %cst_7 [1] : vector<8x32xf32> to vector<8xf32>
    %13 = vector.shape_cast %12 : vector<8xf32> to vector<8x1xf32>
    %cst_8 = arith.constant 3.200000e+01 : f32
    %14 = vector.broadcast %cst_8 : f32 to vector<8x1xf32>
    %15 = arith.divf %13, %14 : vector<8x1xf32>
    %cst_9 = arith.constant 9.99999974E-6 : f32
    %16 = vector.broadcast %cst_9 : f32 to vector<8x1xf32>
    %17 = arith.addf %15, %16 : vector<8x1xf32>
    %18 = math.rsqrt %17 : vector<8x1xf32>
    %19 = vector.broadcast %18 : vector<8x1xf32> to vector<8x32xf32>
    %20 = arith.mulf %10, %19 : vector<8x32xf32>
    %21 = vector.broadcast %3 : vector<1x32xf32> to vector<8x32xf32>
    %22 = arith.mulf %20, %21 : vector<8x32xf32>
    %23 = vector.broadcast %4 : vector<1x32xf32> to vector<8x32xf32>
    %24 = arith.addf %22, %23 : vector<8x32xf32>
    %25 = arith.truncf %24 : vector<8x32xf32> to vector<8x32xbf16>
    %c0_10 = arith.constant 0 : index
    %c0_11 = arith.constant 0 : index
    %26 = vector.load %arg4[%c0_10, %c0_11] : memref<32x128xbf16, #tpu.memory_space<vmem>>, vector<32x128xbf16>
    %cst_12 = arith.constant dense<0.000000e+00> : vector<8x128xf32>
    %27 = tpu.matmul %25, %26, %cst_12 {dimension_numbers = #tpu.dot_dimension_numbers<[1], [0], [0], [1], [0, 0, 1, 1], [], []>} : vector<8x32xbf16>, vector<32x128xbf16>, vector<8x128xf32> -> vector<8x128xf32>
    %c0_13 = arith.constant 0 : index
    %c0_14 = arith.constant 0 : index
    %28 = vector.load %arg5[%c0_13, %c0_14] : memref<1x128xf32, #tpu.memory_space<vmem>>, vector<1x128xf32>
    %29 = vector.broadcast %28 : vector<1x128xf32> to vector<8x128xf32>
    %30 = arith.addf %27, %29 : vector<8x128xf32>
    %c0_15 = arith.constant 0 : index
    %c0_16 = arith.constant 0 : index
    %c0_17 = arith.constant 0 : index
    %31 = vector.load %arg6[%c0_15, %c0_16, %c0_17] : memref<1x8x128xf32, #tpu.memory_space<vmem>>, vector<1x8x128xf32>
    %32 = vector.shape_cast %31 : vector<1x8x128xf32> to vector<8x128xf32>
    %33 = vector.shape_cast %30 : vector<8x128xf32> to vector<1x8x128xf32>
    tpu.vector_store %arg6[%c0_15, %c0_16, %c0_17], %33 {strides = array<i32>} : memref<1x8x128xf32, #tpu.memory_space<vmem>>, vector<1x8x128xf32>,
    return
  }
  func.func @transform_0(%arg0: i32) -> (i32, i32, i32) {
    %c0_i32 = arith.constant 0 : i32
    %c0_i32_0 = arith.constant 0 : i32
    %c0_i32_1 = arith.constant 0 : i32
    return %arg0, %c0_i32, %c0_i32_0 : i32, i32, i32
  }
  func.func @transform_1(%arg0: i32) -> (i32, i32) {
    %c0_i32 = arith.constant 0 : i32
    %c0_i32_0 = arith.constant 0 : i32
    %c0_i32_1 = arith.constant 0 : i32
    return %c0_i32, %c0_i32_0 : i32, i32
  }
  func.func @transform_2(%arg0: i32) -> (i32, i32) {
    %c0_i32 = arith.constant 0 : i32
    %c0_i32_0 = arith.constant 0 : i32
    %c0_i32_1 = arith.constant 0 : i32
    return %c0_i32, %c0_i32_0 : i32, i32
  }
  func.func @transform_3(%arg0: i32) -> (i32, i32) {
    %c0_i32 = arith.constant 0 : i32
    %c0_i32_0 = arith.constant 0 : i32
    %c0_i32_1 = arith.constant 0 : i32
    return %c0_i32, %c0_i32_0 : i32, i32
  }
  func.func @transform_4(%arg0: i32) -> (i32, i32) {
    %c0_i32 = arith.constant 0 : i32
    %c0_i32_0 = arith.constant 0 : i32
    %c0_i32_1 = arith.constant 0 : i32
    return %c0_i32, %c0_i32_0 : i32, i32
  }
  func.func @transform_5(%arg0: i32) -> (i32, i32, i32) {
    %c0_i32 = arith.constant 0 : i32
    %c0_i32_0 = arith.constant 0 : i32
    %c0_i32_1 = arith.constant 0 : i32
    return %arg0, %c0_i32, %c0_i32_0 : i32, i32, i32
  }
}

</mosaic_0001>

<bundles_post_ra>
// kernel: transformer_forward.9
= control target key start
LH: loop header
LB: loop body
LE: loop exit
PB: predicated region body
PF: predicated region fallthrough
CT: control target
= control target key end

     0   :  { %10 = vsyncpa [#allocation3], 0  ;;  %s679_s0 = inlined_call_operand.vmem [shape: bf16[2,8,32], index: 0, kind: input, shape index: {}]   ;;  %s680_s1 = inlined_call_operand.vmem [shape: f32[1,32], index: 1, kind: input, shape index: {}]   ;;  %s681_s2 = inlined_call_operand.vmem [shape: f32[1,32], index: 2, kind: input, shape index: {}]   ;;  %s682_s3 = inlined_call_operand.vmem [shape: bf16[32,128], index: 3, kind: input, shape index: {}]   ;;  %s683_s4 = inlined_call_operand.vmem [shape: f32[1,128], index: 4, kind: input, shape index: {}]   ;;  %s684_s5 = inlined_call_operand.hbm [shape: f32[2,8,128], index: 5, kind: output, shape index: {}]  }
   0x1   :  { %12 = vsyncpa [#allocation3 + $0x1], 0  ;;  %s562_s18 = smov 0   ;;  %s564_s19 = smov 0  }
   0x2   :  { %s566_s20 = smov 0   ;;  %s568_s21 = smov 0  }
   0x3 LB: > { %s583_s22 = sadd.s32 4294967295, %s527_s21   ;;  %s395_s23 = sadd.s32 4294967294, %s527_s21   ;;  %s527_s21 = sphi %s568_s21, %s690_s21   ;;  %s523_s20 = sphi %s566_s20, %s689_s20   ;;  %s519_s19 = sphi %s564_s19, %s688_s19   ;;  %s515_s18 = sphi %s562_s18, %s687_s18  }
   0x4   : > { %s587_s24 = sadd.s32 1, %s527_s21   ;;  %s135_s25 = sadd.s32 1, %s523_s20 }
   0x5   : > { %s132_s26 = ssub.s32 %s527_s21, %s587_s24  ;;  %p145_p0 = scmp.ne.s32.totalorder %s523_s20, %s519_s19 }
   0x6   : > { %p133_p1 = scmp.eq.s32.totalorder %s132_s26, 0  ;;  %p146_p2 = scmp.eq.s32.totalorder %s583_s22, 1 }
   0x7   : > { %p151_p3 = scmp.ne.s32.totalorder %s519_s19, %s515_s18  ;;  %p152_p4 = scmp.eq.s32.totalorder %s395_s23, 1 }
   0x8   : > { %s598_s27 = scalar_select %p133_p1, %s523_s20, %s135_s25  }
   0x9   : > { %p600_p5 = por %p146_p2, %p145_p0  ;;  %p604_p6 = por %p152_p4, %p151_p3 }
   0xa   : > { %p398_p7 = scmp.ge.s32.totalorder %s527_s21, 1  ;;  %p189_p8 = scmp.lt.s32.totalorder %s527_s21, 3 }
   0xc   : > { %p190_p9 = pnand %p398_p7, %p189_p8 }
   0xd   : > { %p216_p10 = scmp.lt.s32.totalorder (!%p190_p9), %s583_s22, 1  ;;  %s213_s23 = sand.u32 (!%p190_p9), 1, %s519_s19  }
   0xe   : > { %193 = sbr.rel (%p190_p9) target bundleno = 545 (0x221), region = 40  ;;  %s399_s25 = sshll.u32 (!%p190_p9), %s213_s23, 3 }
   0xf   : > { %s215_s7 = scalar_lea.vmem (!%p190_p9), [#allocation2], %s399_s25  ;;  %s323_s12 = scalar_lea.sflag (!%p190_p9), [#allocation3], %s213_s23 }
  0x10   : > { %s336_s8 = sshll.u32 (!%p190_p9), %s215_s7, 4  ;;  %s640_s8 = int_to_ptr.vmem [resolvable:$true] %s336_s8 }
  0x11   : > { %s467_s13 = scalar_lea.vmem (!%p190_p9), %s640_s8, 128 }
  0x12   : > { %p468_p11 = scmp.ne.s32.totalorder (!%p190_p9), %s640_s8, %s467_s13 }
  0x13   : > { %s217_s30 = scalar_select %p216_p10, %s583_s22, 1  ;;  %vm225_vm0 = vcmask 261120   ;;  %v463_v8 = vld [vmem:[%s682_s3 + $0x8] sm:$0xff]   ;;  %v529_v9 = vmov 0.0   ;;  %vm530_vm1 = vmmov 0   ;;  %v464_v10 = vld [vmem:[%s682_s3] sm:$0xff]  }
  0x14   : > { %414 = vmatprep.subr.bf16.mxu0 %v529_v9  ;;  %418 = vmatprep.mubr.msk.bf16.mxu0 %vm530_vm1, %v529_v9  ;;  %v401_v15 = vld [vmem:[%s680_s1] ss:$0 sm:$0xff]  ;;  %p469_p12 = pnand %p468_p11, %p600_p5 }
  0x15   : > { %s400_s6 = sshll.u32 %s217_s30, 2  ;;  %415 = vmatpush3.bf16.msra.mxu0 %v463_v8  ;;  %v402_v17 = vld [vmem:[%s681_s2] ss:$0 sm:$0xff] }
  0x16   : > { %s219_s9 = scalar_lea.vmem %s679_s0, %s400_s6  ;;  %416 = vmatprep.subr.bf16.mxu0 %v529_v9  ;;  %v403_v21 = vld [vmem:[%s683_s4] ss:$0 sm:$0xff]  ;;  %s408_s6 = sshll.u32 %s583_s22, 7 }
  0x17   : > { %v221_v0 = vld [vmem:[%s219_s9] sm:$0xf]  ;;  %s638_s11 = scalar_lea.hbm %s684_s5, %s408_s6  ;;  %p470_p13 = pneg %p469_p12 }
  0x18   : > { %v222_v1 = vunpack.c.l.bf16 %v221_v0  ;;  %s531_s22 = smov [#allocation2]  }
  0x19   : > { %417 = vmatpush3.bf16.msra.mxu0 %v464_v10  ;;  %s471_s14 = sshll.u32 %s531_s22, 4  ;;  %s472_s14 = int_to_ptr.vmem [resolvable:$false] %s471_s14 }
  0x1a   : > { %v226_v2 = vsel %vm225_vm0, %v222_v1, 0.0  ;;  %s473_s15 = scalar_lea.vmem %s472_s14, 256  ;;  %p474_p0 = scmp.lt.s32.totalorder %s640_s8, %s472_s14 }
  0x1b   : > { %227 = vadd.xlane.f32.xlu0 %v226_v2  ;;  %p475_p1 = scmp.lt.s32.totalorder %s473_s15, %s467_s13 }
  0x1d   : > { %p476_p2 = por %p475_p1, %p474_p0 }
  0x1f   : > { %p477_p3 = pnand %p476_p2, %p470_p13 }
  0xa4   : > { %v228_v3 = vpop.xlane.xlu0 %227 }
  0xa5   : > { %v230_v4 = vmul.f32 0.03125, %v228_v3 }
  0xa7   : > { %v231_v5 = vsub.f32 %v222_v1, %v230_v4 }
  0xa9   : > { %v232_v6 = vmul.f32 %v231_v5, %v231_v5 }
  0xab   : > { %v233_v7 = vsel %vm225_vm0, %v232_v6, 0.0 }
  0xac   : > { %234 = vadd.xlane.f32.xlu0 %v233_v7 }
 0x135   : > { %v235_v11 = vpop.xlane.xlu0 %234 }
 0x136   : > { %v236_v12 = vmul.f32 0.03125, %v235_v11 }
 0x138   : > { %v237_v13 = vadd.f32 1e-05, %v236_v12 }
 0x13a   : > { %465 = vrsqrt.f32 %v237_v13 }
 0x147   : > { %v466_v14 = vpop.eup %465 }
 0x148   : > { %v239_v16 = vmul.f32 %v466_v14, %v231_v5 }
 0x14a   : > { %v246_v18 = vmul.f32 %v401_v15, %v239_v16 }
 0x14c   : > { %v253_v19 = vadd.f32 %v402_v17, %v246_v18 }
 0x14e   : > { %v254_v20 = vpack.c.bf16 %v253_v19, %v253_v19 }
 0x150   : > { %419 = vmatmul.mubr.msk.bf16.vlgmr.msra.gmra.mxu0 %vm225_vm0, %v254_v20 }
 0x210   : > { %v315_v22 = vpop.f32.mrf.mxu0 }
 0x211   : > { %v316_v23 = vadd.f32 %v403_v21, %v315_v22 }
 0x212   : > { %v420_v24 = vpop.f32.mrf.mxu0 }
 0x213   : > { %321 = vst [vmem:[%s215_s7] sm:$0xff] %v316_v23 }
 0x214   : > { %v318_v25 = vpop.f32.mrf.mxu0 }
 0x215   : > { %480 = shalt.err (!%p477_p3)
}
 0x216   : > { %s481_s16 = scalar_lea.hbm %s638_s11, 128  ;;  %s485_s25 = scalar_lea.hbm %s684_s5, 256 }
 0x217   : > { %p482_p4 = scmp.ne.s32.totalorder %s638_s11, %s481_s16  ;;  %p486_p9 = scmp.lt.s32.totalorder %s638_s11, %s684_s5 }
 0x218   : > { %p487_p10 = scmp.lt.s32.totalorder %s485_s25, %s481_s16 }
 0x219   : > { %p483_p7 = pnand %p482_p4, %p600_p5 }
 0x21a   : > { %p488_p11 = por %p487_p10, %p486_p9 }
 0x21b   : > { %p484_p8 = pneg %p483_p7 }
 0x21d   : > { %p489_p12 = pnand %p488_p11, %p484_p8 }
 0x21f   : > { %492 = shalt.err (!%p489_p12)
}
 0x220   : > { %422 = dma.vmem_to_hbm [thread:$0]  (%p600_p5), %s640_s8, 128, %s638_s11, %s323_s12   ;;  %v421_v26 = vpop.f32.mrf.mxu0 }
 0x221 PF: > { %p428_p13 = scmp.ge.s32.totalorder %s527_s21, 2  ;;  %s348_s6 = sand.u32 1, %s515_s18  }
 0x222   : > { %s349_s7 = scalar_lea.sflag [#allocation3], %s348_s6 }
 0x223   : > { %p425_p0 = pnand %p428_p13, %p604_p6 }
 0x225   : > { %p426_p1 = pneg %p425_p0 }
 0x227   : > { %510 = dma.done.wait (%p426_p1), %s349_s7, 128  }
 0x228   : > { %512 = vsyncadd (%p426_p1), %s349_s7, 4294967168  ;;  %p15_p2 = scmp.ge.s32.totalorder %s587_s24, 4   ;;  %s687_s18 = smov %s519_s19 }
 0x229   : > { %s688_s19 = smov %s523_s20  ;;  %s689_s20 = smov %s598_s27 }
 0x22a   : > { %s690_s21 = smov %s587_s24  ;;  %17 = sbr.rel (!%p15_p2) target bundleno = 3 (0x3), region = 75 }
 0x22f   :  { %354 = vsyncpa [#allocation3], 1 }
 0x230   :  { %356 = vsyncpa [#allocation3 + $0x1], 1 }

// kernel: transformer_forward.6
= control target key start
LH: loop header
LB: loop body
LE: loop exit
PB: predicated region body
PF: predicated region fallthrough
CT: control target
= control target key end

     0   :  { %s4167_s21 = smov 0   ;;  %s4950_s0 = inlined_call_operand.vmem [shape: bf16[2,8,32], index: 0, kind: input, shape index: {}]   ;;  %s4951_s1 = inlined_call_operand.vmem [shape: f32[2,1,8], index: 1, kind: input, shape index: {}]   ;;  %s4952_s2 = inlined_call_operand.vmem [shape: bf16[32,96], index: 2, kind: input, shape index: {}]   ;;  %s4953_s3 = inlined_call_operand.vmem [shape: f32[1,96], index: 3, kind: input, shape index: {}]   ;;  %s4954_s4 = inlined_call_operand.vmem [shape: bf16[32,32], index: 4, kind: input, shape index: {}]   ;;  %s4955_s5 = inlined_call_operand.vmem [shape: f32[1,32], index: 5, kind: input, shape index: {}]   ;;  %s4956_s6 = inlined_call_operand.vmem [shape: f32[1,32], index: 6, kind: input, shape index: {}]   ;;  %s4957_s7 = inlined_call_operand.vmem [shape: f32[1,32], index: 7, kind: input, shape index: {}]   ;;  %s4958_s8 = inlined_call_operand.vmem [shape: bf16[32,2048], index: 8, kind: input, shape index: {}]   ;;  %s4959_s9 = inlined_call_operand.vmem [shape: f32[1,2048], index: 9, kind: input, shape index: {}]   ;;  %s4960_s10 = inlined_call_operand.vmem [shape: bf16[2048,32], index: 10, kind: input, shape index: {}]   ;;  %s4961_s11 = inlined_call_operand.vmem [shape: f32[1,32], index: 11, kind: input, shape index: {}]   ;;  %s4962_s12 = inlined_call_operand.vmem [shape: f32[1,32], index: 12, kind: input, shape index: {}]   ;;  %s4963_s13 = inlined_call_operand.vmem [shape: f32[1,32], index: 13, kind: input, shape index: {}]   ;;  %s4964_s14 = inlined_call_operand.vmem [shape: f32[1,32], index: 14, kind: input, shape index: {}]   ;;  %s4965_s15 = inlined_call_operand.vmem [shape: f32[1,32], index: 15, kind: input, shape index: {}]   ;;  %s4966_s16 = inlined_call_operand.vmem [shape: bf16[2,8,32], index: 16, kind: output, shape index: {}]  }
   0x1   :  { %4967 = sst [smem:[#allocation2_spill]] %s4950_s0 }
   0x2 LB: > { %s3401_s22 = sadd.s32 4294967295, %s4066_s21   ;;  %p3405_p0 = scmp.ge.s32.totalorder %s4066_s21, 1  ;;  %s4066_s21 = sphi %s4167_s21, %s26_s21  }
   0x3   : > { %p469_p1 = scmp.lt.s32.totalorder %s4066_s21, 3 }
   0x5   : > { %p470_p2 = pnand %p3405_p0, %p469_p1 }
   0x6   : > { %p520_p3 = scmp.lt.s32.totalorder (!%p470_p2), %s3401_s22, 1  ;;  %s4968_s30 = sld [smem:[#allocation2_spill]] (!%p470_p2) }
   0x7   : > { %473 = sbr.rel (%p470_p2) target bundleno = 3911 (0xf47), region = 84  ;;  %s4070_s19 = smov (!%p470_p2), 96  }
   0x8   : > { %s4071_s20 = smov (!%p470_p2), 120   ;;  %s4072_s23 = smov (!%p470_p2), 88  }
   0x9   : > { %s4073_s28 = smov (!%p470_p2), 64   ;;  %s4074_s29 = smov (!%p470_p2), 56  }
   0xa   : > { %s4078_s24 = smov (!%p470_p2), 104   ;;  %s4079_s25 = smov (!%p470_p2), 48  }
   0xc   : > { %v3908_v0 = vld [vmem:[%s4952_s2 + $0x8] sm:$0xff]   ;;  %v4068_v1 = vmov 0.0   ;;  %v3909_v2 = vld [vmem:[%s4952_s2] sm:$0xff]   ;;  %vm4069_vm0 = vmmov 0   ;;  %s4970_s22 = smov (!%p520_p3, %s3401_s22), 1  ;;  %vm556_vm1 = vcmask 261120  }
   0xd   : > { %3806 = vmatprep.subr.bf16.mxu0 %v4068_v1  ;;  %3814 = vmatprep.subr.bf16.mxu1 %v4068_v1  ;;  %s3406_s27 = sshll.u32 %s4970_s22, 2  ;;  %v3408_v4 = vld [vmem:[%s4953_s3] ss:$0 sm:$0xff]  ;;  %vm617_vm2 = vcmask 64512   ;;  %s526_s26 = scalar_lea.vmem %s4951_s1, %s4970_s22  ;;  %vm681_vm3 = vcmask 1043456   ;;  %vm3337_vm4 = vcmask 257024  }
   0xe   : > { %3807 = vmatpush3.bf16.msra.mxu0 %v3908_v0  ;;  %3810 = vmatprep.mubr.msk.bf16.mxu0 %vm4069_vm0, %v4068_v1  ;;  %s523_s0 = scalar_lea.vmem %s4968_s30, %s3406_s27  ;;  %v4228_v18 = vld [vmem:[%s526_s26] ss:$0 sm:$0xff]  ;;  %s4075_s30 = smov 112   ;;  %v604_v55 = vld [vmem:[%s4954_s4 + $0x4] sm:$0xf] }
   0xf   : > { %3808 = vmatprep.subr.bf16.mxu0 %v4068_v1  ;;  %3816 = vmatprep.mubr.msk.bf16.mxu1 %vm4069_vm0, %v4068_v1  ;;  %v4197_v3 = vld [vmem:[%s523_s0] sm:$0xf]  ;;  %s4076_s0 = smov 80   ;;  %v842_v56 = vsel %vm681_vm3, %v604_v55, 0 }
  0x10   : > { %v603_v53 = vld [vmem:[%s4954_s4] sm:$0xf] }
  0x11   : > { %v888_v54 = vsel %vm681_vm3, %v603_v53, 0 }
  0x12   : > { %3809 = vmatpush3.bf16.msra.mxu0 %v3909_v2 }
  0x13   : > { %3820 = vmatprep.subr.bf16.mxu0 %v4068_v1 }
  0x15   : > { %3811 = vmatmul.mubr.msk.bf16.vlgmr.msra.gmra.mxu0 %vm556_vm1, %v4197_v3 }
  0x16   : > { %3822 = vmatprep.mubr.msk.bf16.mxu0 %vm4069_vm0, %v4068_v1 }
  0xd5   : > { %v594_v5 = vpop.f32.mrf.mxu0 }
  0xd6   : > { %v595_v6 = vadd.f32 %v3408_v4, %v594_v5 }
  0xd7   : > { %v3812_v7 = vpop.f32.mrf.mxu0 }
  0xd8   : > { %v600_v8 = vmul.f32 0.35355338, %v595_v6  ;;  %v4206_v9 = vpack.c.bf16 %v595_v6, %v595_v6 }
  0xd9   : > { %v597_v10 = vpop.f32.mrf.mxu0 }
  0xda   : > { %v4208_v11 = vpack.c.bf16 %v600_v8, %v600_v8  ;;  %615 = vrot.lane.b32.xlu0 %v4206_v9, %s4070_s19 }
  0xdb   : > { %v3813_v12 = vpop.f32.mrf.mxu0 }
  0xdc   : > { %727 = vrot.lane.b32.xlu1 %v4208_v11, %s4071_s20 }
  0xde   : > { %729 = vrot.lane.b32.xlu0 %v4206_v9, %s4072_s23  ;;  %s4077_s23 = smov 72  }
 0x14c   : > { %v616_v13 = vpop.permute.xlu0 %615 }
 0x14d   : > { %v622_v14 = vsel %vm617_vm2, %v616_v13, 0 }
 0x14e   : > { %3815 = vmatpush3.bf16.xpose.msra.mxu1 %v622_v14  ;;  %v728_v17 = vpop.permute.xlu1 %727 }
 0x14f   : > { %3826 = vmatprep.subr.bf16.mxu1 %v4068_v1 }
 0x150   : > { %v730_v15 = vpop.permute.xlu0 %729 }
 0x151   : > { %v735_v16 = vsel %vm617_vm2, %v730_v15, 0 }
 0x155   : > { %3817 = vmatmul.mubr.msk.bf16.vlgmr.msra.gmra.mxu1 %vm617_vm2, %v4208_v11 }
 0x156   : > { %3827 = vmatpush3.bf16.xpose.msra.mxu1 %v735_v16  ;;  %3828 = vmatprep.mubr.msk.bf16.mxu1 %vm4069_vm0, %v4068_v1 }
 0x157   : > { %3838 = vmatprep.subr.bf16.mxu1 %v4068_v1 }
 0x15d   : > { %3829 = vmatmul.mubr.msk.bf16.vlgmr.msra.gmra.mxu1 %vm617_vm2, %v728_v17 }
 0x15e   : > { %3840 = vmatprep.mubr.msk.bf16.mxu1 %vm4069_vm0, %v4068_v1  ;;  %3839 = vmatpush3.bf16.msra.mxu1 %v842_v56 }
 0x15f   : > { %3850 = vmatprep.subr.bf16.mxu1 %v4068_v1 }
 0x215   : > { %v658_v19 = vpop.f32.mrf.mxu1 }
 0x216   : > { %v659_v20 = vadd.f32 %v4228_v18, %v658_v19 }
 0x217   : > { %v3818_v21 = vpop.f32.mrf.mxu1 }
 0x218   : > { %v664_v22 = vsel %vm617_vm2, %v659_v20, -inf }
 0x219   : > { %665 = vmax.xlane.f32.xlu1 %v664_v22  ;;  %v661_v23 = vpop.f32.mrf.mxu1 }
 0x21b   : > { %v3819_v24 = vpop.f32.mrf.mxu1 }
 0x21d   : > { %v771_v25 = vpop.f32.mrf.mxu1 }
 0x21e   : > { %v772_v26 = vadd.f32 %v4228_v18, %v771_v25 }
 0x21f   : > { %v3830_v27 = vpop.f32.mrf.mxu1 }
 0x220   : > { %v777_v28 = vsel %vm617_vm2, %v772_v26, -inf }
 0x221   : > { %778 = vmax.xlane.f32.xlu0 %v777_v28  ;;  %v774_v29 = vpop.f32.mrf.mxu1 }
 0x223   : > { %v3831_v30 = vpop.f32.mrf.mxu1 }
 0x2a2   : > { %v666_v31 = vpop.xlane.xlu1 %665 }
 0x2a3   : > { %v667_v32 = vsub.f32 %v659_v20, %v666_v31 }
 0x2a5   : > { %v668_v33 = vmul.f32 1.442695, %v667_v32 }
 0x2a7   : > { %4038 = vpow2.f32 %v668_v33 }
 0x2aa   : > { %v779_v34 = vpop.xlane.xlu0 %778 }
 0x2ab   : > { %v780_v35 = vsub.f32 %v772_v26, %v779_v34 }
 0x2ad   : > { %v781_v36 = vmul.f32 1.442695, %v780_v35 }
 0x2af   : > { %4040 = vpow2.f32 %v781_v36 }
 0x2b4   : > { %v4039_v37 = vpop.eup %4038 }
 0x2b5   : > { %v670_v38 = vsel %vm617_vm2, %v4039_v37, 0.0 }
 0x2b6   : > { %671 = vadd.xlane.f32.xlu0 %v670_v38 }
 0x2bc   : > { %v4041_v39 = vpop.eup %4040 }
 0x2bd   : > { %v783_v40 = vsel %vm617_vm2, %v4041_v39, 0.0 }
 0x2be   : > { %784 = vadd.xlane.f32.xlu1 %v783_v40 }
 0x2cc   : > { %676 = vrot.lane.b32.xlu0 %v4206_v9, %s4073_s28 }
 0x2cf   : > { %789 = vrot.lane.b32.xlu1 %v4206_v9, %s4074_s29  ;;  %s4080_s29 = smov 40  }
 0x2d0   : > { %930 = vrot.lane.b32.xlu0 %v4208_v11, %s4075_s30 }
 0x2d3   : > { %932 = vrot.lane.b32.xlu1 %v4206_v9, %s4076_s0 }
 0x33f   : > { %v672_v41 = vpop.xlane.xlu0 %671 }
 0x340   : > { %4042 = vrcp.f32 %v672_v41 }
 0x343   : > { %v677_v42 = vpop.permute.xlu0 %676 }
 0x344   : > { %v683_v43 = vsel %vm681_vm3, %v677_v42, 0 }
 0x345   : > { %3821 = vmatpush3.bf16.msra.mxu0 %v683_v43 }
 0x346   : > { %3832 = vmatprep.subr.bf16.mxu0 %v4068_v1 }
 0x347   : > { %v785_v44 = vpop.xlane.xlu1 %784  ;;  %v931_v7 = vpop.permute.xlu0 %930 }
 0x348   : > { %4044 = vrcp.f32 %v785_v44 }
 0x34b   : > { %v790_v47 = vpop.permute.xlu1 %789 }
 0x34c   : > { %v795_v49 = vsel %vm681_vm3, %v790_v47, 0 }
 0x34d   : > { %v4043_v45 = vpop.eup %4042 }
 0x34e   : > { %v674_v46 = vmul.f32 %v4043_v45, %v4039_v37 }
 0x34f   : > { %v933_v62 = vpop.permute.xlu1 %932 }
 0x350   : > { %v675_v48 = vpack.c.bf16 %v674_v46, %v674_v46  ;;  %v938_v4 = vsel %vm617_vm2, %v933_v62, 0 }
 0x352   : > { %3823 = vmatmul.mubr.msk.bf16.vlgmr.msra.gmra.mxu0 %vm617_vm2, %v675_v48 }
 0x353   : > { %3833 = vmatpush3.bf16.msra.mxu0 %v795_v49  ;;  %3834 = vmatprep.mubr.msk.bf16.mxu0 %vm4069_vm0, %v4068_v1 }
 0x354   : > { %3844 = vmatprep.subr.bf16.mxu0 %v4068_v1 }
 0x355   : > { %v4045_v50 = vpop.eup %4044 }
 0x356   : > { %v787_v51 = vmul.f32 %v4045_v50, %v4041_v39  ;;  %v605_v39 = vld [vmem:[%s4954_s4 + $0x8] sm:$0xf] }
 0x357   : > { %v1045_v40 = vsel %vm681_vm3, %v605_v39, 0 }
 0x358   : > { %v788_v52 = vpack.c.bf16 %v787_v51, %v787_v51 }
 0x35a   : > { %3835 = vmatmul.mubr.msk.bf16.vlgmr.msra.gmra.mxu0 %vm617_vm2, %v788_v52 }
 0x35b   : > { %3846 = vmatprep.mubr.msk.bf16.mxu0 %vm4069_vm0, %v4068_v1  ;;  %3845 = vmatpush3.bf16.msra.mxu0 %v888_v54 }
 0x35c   : > { %3856 = vmatprep.subr.bf16.mxu0 %v4068_v1 }
 0x412   : > { %v719_v57 = vpop.f32.mrf.mxu0 }
 0x413   : > { %v725_v58 = vpack.c.bf16 %v719_v57, %v719_v57 }
 0x414   : > { %v3824_v59 = vpop.f32.mrf.mxu0 }
 0x415   : > { %3847 = vmatmul.mubr.msk.bf16.vlgmr.msra.gmra.mxu0 %vm617_vm2, %v725_v58 }
 0x416   : > { %v722_v60 = vpop.f32.mrf.mxu0  ;;  %3858 = vmatprep.mubr.msk.bf16.mxu0 %vm4069_vm0, %v4068_v1 }
 0x418   : > { %v3825_v61 = vpop.f32.mrf.mxu0 }
 0x41a   : > { %v831_v63 = vpop.f32.mrf.mxu0 }
 0x41b   : > { %v837_v0 = vpack.c.bf16 %v831_v63, %v831_v63 }
 0x41c   : > { %v3836_v2 = vpop.f32.mrf.mxu0 }
 0x41d   : > { %3841 = vmatmul.mubr.msk.bf16.vlgmr.msra.gmra.mxu1 %vm617_vm2, %v837_v0 }
 0x41e   : > { %3851 = vmatpush3.bf16.xpose.msra.mxu1 %v938_v4  ;;  %v834_v5 = vpop.f32.mrf.mxu0  ;;  %3852 = vmatprep.mubr.msk.bf16.mxu1 %vm4069_vm0, %v4068_v1 }
 0x41f   : > { %3862 = vmatprep.subr.bf16.mxu1 %v4068_v1 }
 0x420   : > { %v3837_v6 = vpop.f32.mrf.mxu0 }
 0x425   : > { %3853 = vmatmul.mubr.msk.bf16.vlgmr.msra.gmra.mxu1 %vm617_vm2, %v931_v7 }
 0x426   : > { %3864 = vmatprep.mubr.msk.bf16.mxu1 %vm4069_vm0, %v4068_v1  ;;  %3863 = vmatpush3.bf16.msra.mxu1 %v1045_v40 }
 0x427   : > { %3874 = vmatprep.subr.bf16.mxu1 %v4068_v1 }
 0x4d5   : > { %v924_v8 = vpop.f32.mrf.mxu0 }
 0x4d7   : > { %v3848_v10 = vpop.f32.mrf.mxu0 }
 0x4d9   : > { %v927_v12 = vpop.f32.mrf.mxu0 }
 0x4da   : > { %v1246_v12 = vunpack.c.l.bf16 %v4197_v3 }
 0x4db   : > { %v3849_v13 = vpop.f32.mrf.mxu0 }
 0x4dd   : > { %v878_v14 = vpop.f32.mrf.mxu1 }
 0x4de   : > { %v4271_v15 = vadd.f32 %v924_v8, %v878_v14 }
 0x4df   : > { %v3842_v16 = vpop.f32.mrf.mxu1 }
 0x4e0   : > { %v3425_v16 = vld [vmem:[%s4955_s5] ss:$0 sm:$0xff] }
 0x4e1   : > { %v881_v17 = vpop.f32.mrf.mxu1 }
 0x4e3   : > { %v3843_v19 = vpop.f32.mrf.mxu1 }
 0x4e5   : > { %v974_v20 = vpop.f32.mrf.mxu1 }
 0x4e6   : > { %v975_v21 = vadd.f32 %v4228_v18, %v974_v20 }
 0x4e7   : > { %v3854_v22 = vpop.f32.mrf.mxu1 }
 0x4e8   : > { %v980_v23 = vsel %vm617_vm2, %v975_v21, -inf }
 0x4e9   : > { %981 = vmax.xlane.f32.xlu1 %v980_v23  ;;  %v977_v24 = vpop.f32.mrf.mxu1 }
 0x4eb   : > { %v3855_v25 = vpop.f32.mrf.mxu1 }
 0x4fa   : > { %1090 = vrot.lane.b32.xlu1 %v4206_v9, %s4077_s23 }
 0x4fe   : > { %1088 = vrot.lane.b32.xlu1 %v4208_v11, %s4078_s24 }
 0x572   : > { %v982_v26 = vpop.xlane.xlu1 %981 }
 0x573   : > { %v983_v27 = vsub.f32 %v975_v21, %v982_v26 }
 0x575   : > { %v984_v28 = vmul.f32 1.442695, %v983_v27  ;;  %v1303_v27 = vld [vmem:[%s4958_s8 + $0x80] sm:$0xff] }
 0x576   : > { %v1091_v35 = vpop.permute.xlu1 %1090 }
 0x577   : > { %4046 = vpow2.f32 %v984_v28  ;;  %v1096_v37 = vsel %vm617_vm2, %v1091_v35, 0  ;;  %v1311_v28 = vld [vmem:[%s4958_s8 + $0xc0] sm:$0xff] }
 0x578   : > { %v1295_v35 = vld [vmem:[%s4958_s8 + $0x40] sm:$0xff] }
 0x57a   : > { %v1089_v38 = vpop.permute.xlu1 %1088 }
 0x584   : > { %v4047_v29 = vpop.eup %4046 }
 0x585   : > { %v986_v30 = vsel %vm617_vm2, %v4047_v29, 0.0 }
 0x586   : > { %987 = vadd.xlane.f32.xlu0 %v986_v30  ;;  %v3445_v30 = vcombine.high %v1303_v27, %v1311_v28 }
 0x59c   : > { %992 = vrot.lane.b32.xlu0 %v4206_v9, %s4079_s25  ;;  %s530_s25 = scalar_lea.vmem %s4966_s16, %s3406_s27 }
 0x60f   : > { %v988_v31 = vpop.xlane.xlu0 %987 }
 0x610   : > { %4048 = vrcp.f32 %v988_v31  ;;  %v1312_v31 = vld [vmem:[%s4958_s8 + $0xc8] sm:$0xff] }
 0x613   : > { %v993_v32 = vpop.permute.xlu0 %992 }
 0x614   : > { %v998_v33 = vsel %vm681_vm3, %v993_v32, 0  ;;  %v3444_v32 = vcombine.low %v1303_v27, %v1311_v28  ;;  %v1293_v28 = vld [vmem:[%s4958_s8 + $0x30] sm:$0xff] }
 0x615   : > { %3857 = vmatpush3.bf16.msra.mxu0 %v998_v33 }
 0x616   : > { %3868 = vmatprep.subr.bf16.mxu0 %v4068_v1 }
 0x61d   : > { %v4049_v11 = vpop.eup %4048 }
 0x61e   : > { %v990_v34 = vmul.f32 %v4049_v11, %v4047_v29  ;;  %v1304_v29 = vld [vmem:[%s4958_s8 + $0x88] sm:$0xff] }
 0x61f   : > { %v3446_v33 = vcombine.low %v1304_v29, %v1312_v31  ;;  %v3447_v11 = vcombine.high %v1304_v29, %v1312_v31  ;;  %v1301_v29 = vld [vmem:[%s4958_s8 + $0x70] sm:$0xff]  ;;  %v1302_v31 = vld [vmem:[%s4958_s8 + $0x78] sm:$0xff] }
 0x620   : > { %v991_v36 = vpack.c.bf16 %v990_v34, %v990_v34  ;;  %v1287_v34 = vld [vmem:[%s4958_s8] sm:$0xff] }
 0x621   : > { %v3428_v39 = vcombine.low %v1287_v34, %v1295_v35 }
 0x622   : > { %3859 = vmatmul.mubr.msk.bf16.vlgmr.msra.gmra.mxu0 %vm617_vm2, %v991_v36  ;;  %v1288_v36 = vld [vmem:[%s4958_s8 + $0x8] sm:$0xff] }
 0x623   : > { %3869 = vmatpush3.bf16.xpose.msra.mxu0 %v1096_v37  ;;  %3870 = vmatprep.mubr.msk.bf16.mxu0 %vm4069_vm0, %v4068_v1  ;;  %v3429_v37 = vcombine.high %v1287_v34, %v1295_v35  ;;  %v3440_v35 = vcombine.low %v1293_v28, %v1301_v29 }
 0x624   : > { %3880 = vmatprep.subr.bf16.mxu0 %v4068_v1 }
 0x62a   : > { %3871 = vmatmul.mubr.msk.bf16.vlgmr.msra.gmra.mxu0 %vm617_vm2, %v1089_v38  ;;  %v1296_v38 = vld [vmem:[%s4958_s8 + $0x48] sm:$0xff] }
 0x62b   : > { %3882 = vmatprep.mubr.msk.bf16.mxu0 %vm4069_vm0, %v4068_v1  ;;  %v3430_v40 = vcombine.low %v1288_v36, %v1296_v38 }
 0x6e2   : > { %v1034_v41 = vpop.f32.mrf.mxu0 }
 0x6e3   : > { %v1040_v42 = vpack.c.bf16 %v1034_v41, %v1034_v41  ;;  %v3431_v41 = vcombine.high %v1288_v36, %v1296_v38  ;;  %v3911_v38 = vld [vmem:[%s4960_s10 + $0xf8] sm:$0xff]  }
 0x6e4   : > { %v3860_v43 = vpop.f32.mrf.mxu0 }
 0x6e5   : > { %3865 = vmatmul.mubr.msk.bf16.vlgmr.msra.gmra.mxu1 %vm617_vm2, %v1040_v42  ;;  %v1305_v42 = vld [vmem:[%s4958_s8 + $0x90] sm:$0xff] }
 0x6e6   : > { %v1037_v44 = vpop.f32.mrf.mxu0  ;;  %3876 = vmatprep.mubr.msk.bf16.mxu1 %vm4069_vm0, %v4068_v1  ;;  %v1313_v43 = vld [vmem:[%s4958_s8 + $0xd0] sm:$0xff] }
 0x6e7   : > { %v1306_v44 = vld [vmem:[%s4958_s8 + $0x98] sm:$0xff] }
 0x6e8   : > { %v3861_v45 = vpop.f32.mrf.mxu0 }
 0x6e9   : > { %v4081_v45 = vmov 0  }
 0x6ea   : > { %v1132_v46 = vpop.f32.mrf.mxu0 }
 0x6eb   : > { %v1133_v47 = vadd.f32 %v4228_v18, %v1132_v46  ;;  %v3449_v46 = vcombine.high %v1305_v42, %v1313_v43 }
 0x6ec   : > { %v3872_v48 = vpop.f32.mrf.mxu0 }
 0x6ed   : > { %v1138_v49 = vsel %vm617_vm2, %v1133_v47, -inf  ;;  %v3448_v48 = vcombine.low %v1305_v42, %v1313_v43  ;;  %v3915_v42 = vld [vmem:[%s4960_s10 + $0xf0] sm:$0xff]  }
 0x6ee   : > { %1139 = vmax.xlane.f32.xlu0 %v1138_v49  ;;  %v1135_v50 = vpop.f32.mrf.mxu0  ;;  %v3916_v43 = vld [vmem:[%s4960_s10 + $0x30] sm:$0xff]  }
 0x6f0   : > { %v3873_v51 = vpop.f32.mrf.mxu0 }
 0x704   : > { %1150 = vrot.lane.b32.xlu0 %v4206_v9, %s4080_s29  ;;  %v606_v9 = vld [vmem:[%s4954_s4 + $0xc] sm:$0xf] }
 0x705   : > { %v1203_v60 = vsel %vm681_vm3, %v606_v9, 0  ;;  %v1298_v9 = vld [vmem:[%s4958_s8 + $0x58] sm:$0xff] }
 0x706   : > { %3881 = vmatpush3.bf16.msra.mxu0 %v1203_v60 }
 0x707   : > { %1619 = vmatprep.subr.bf16.mxu0 %v3447_v11  ;;  %v3441_v11 = vcombine.high %v1293_v28, %v1301_v29 }
 0x777   : > { %v1140_v52 = vpop.xlane.xlu0 %1139 }
 0x778   : > { %v1141_v53 = vsub.f32 %v1133_v47, %v1140_v52  ;;  %v1314_v47 = vld [vmem:[%s4958_s8 + $0xd8] sm:$0xff] }
 0x779   : > { %v3450_v49 = vcombine.low %v1306_v44, %v1314_v47  ;;  %v3451_v50 = vcombine.high %v1306_v44, %v1314_v47  ;;  %v3917_v44 = vld [vmem:[%s4960_s10 + $0xb0] sm:$0xff]   ;;  %v3920_v47 = vld [vmem:[%s4960_s10 + $0x28] sm:$0xff]  }
 0x77a   : > { %v1142_v54 = vmul.f32 1.442695, %v1141_v53 }
 0x77b   : > { %v1151_v55 = vpop.permute.xlu0 %1150 }
 0x77c   : > { %4050 = vpow2.f32 %v1142_v54  ;;  %v1156_v1 = vsel %vm681_vm3, %v1151_v55, 0  ;;  %v3426_v55 = vld [vmem:[%s4956_s6] ss:$0 sm:$0xff] }
 0x77d   : > { %3875 = vmatpush3.bf16.msra.mxu1 %v1156_v1 }
 0x77e   : > { %1578 = vmatprep.subr.bf16.mxu1 %v3445_v30  ;;  %v1294_v30 = vld [vmem:[%s4958_s8 + $0x38] sm:$0xff] }
 0x77f   : > { %v3443_v34 = vcombine.high %v1294_v30, %v1302_v31  ;;  %v3442_v36 = vcombine.low %v1294_v30, %v1302_v31 }
 0x789   : > { %v4051_v56 = vpop.eup %4050 }
 0x78a   : > { %v1144_v18 = vsel %vm617_vm2, %v4051_v56, 0.0 }
 0x78b   : > { %1145 = vadd.xlane.f32.xlu1 %v1144_v18 }
 0x7a5   : > { %v1081_v57 = vpop.f32.mrf.mxu1 }
 0x7a6   : > { %v1087_v58 = vadd.f32 %v1081_v57, %v4271_v15  ;;  %v1289_v57 = vld [vmem:[%s4958_s8 + $0x10] sm:$0xff] }
 0x7a7   : > { %v3866_v59 = vpop.f32.mrf.mxu1 }
 0x7a8   : > { %v1290_v59 = vld [vmem:[%s4958_s8 + $0x18] sm:$0xff] }
 0x7a9   : > { %v1084_v61 = vpop.f32.mrf.mxu1 }
 0x7ab   : > { %v3867_v62 = vpop.f32.mrf.mxu1 }
 0x814   : > { %v1146_v63 = vpop.xlane.xlu1 %1145 }
 0x815   : > { %4052 = vrcp.f32 %v1146_v63  ;;  %v3435_v63 = vcombine.high %v1290_v59, %v1298_v9 }
 0x822   : > { %v4053_v0 = vpop.eup %4052 }
 0x823   : > { %v1148_v2 = vmul.f32 %v4053_v0, %v4051_v56  ;;  %v3427_v56 = vld [vmem:[%s4957_s7] ss:$0 sm:$0xff] }
 0x824   : > { %v1307_v0 = vld [vmem:[%s4958_s8 + $0xa0] sm:$0xff] }
 0x825   : > { %v1149_v4 = vpack.c.bf16 %v1148_v2, %v1148_v2  ;;  %v1315_v2 = vld [vmem:[%s4958_s8 + $0xe0] sm:$0xff] }
 0x827   : > { %3877 = vmatmul.mubr.msk.bf16.vlgmr.msra.gmra.mxu1 %vm617_vm2, %v1149_v4  ;;  %v1308_v4 = vld [vmem:[%s4958_s8 + $0xa8] sm:$0xff] }
 0x828   : > { %1579 = vmatpush1.bf16.msra.mxu1 %v3444_v32  ;;  %1598 = vmatprep.mubr.bf16.mxu1 %v4081_v45 }
 0x829   : > { %1580 = vmatprep.subr.bf16.mxu1 %v3429_v37  ;;  %v3910_v37 = vld [vmem:[%s4960_s10 + $0x78] sm:$0xff]  }
 0x82c   : > { %1581 = vmatpush1.bf16.msra.mxu1 %v3428_v39  ;;  %v3912_v39 = vld [vmem:[%s4960_s10 + $0x38] sm:$0xff]  }
 0x82d   : > { %1660 = vmatprep.subr.bf16.mxu1 %v3449_v46  ;;  %v3919_v46 = vld [vmem:[%s4960_s10 + $0xe8] sm:$0xff]  }
 0x8e7   : > { %v1192_v5 = vpop.f32.mrf.mxu1 }
 0x8e8   : > { %v1198_v6 = vpack.c.bf16 %v1192_v5, %v1192_v5  ;;  %v1316_v5 = vld [vmem:[%s4958_s8 + $0xe8] sm:$0xff] }
 0x8e9   : > { %v3878_v7 = vpop.f32.mrf.mxu1 }
 0x8ea   : > { %3883 = vmatmul.mubr.msk.bf16.vlgmr.msra.gmra.mxu0 %vm617_vm2, %v1198_v6  ;;  %v3434_v7 = vcombine.low %v1290_v59, %v1298_v9  ;;  %v3934_v59 = vld [vmem:[%s4960_s10 + $0x48] sm:$0xff]  }
 0x8eb   : > { %v1195_v8 = vpop.f32.mrf.mxu1  ;;  %1620 = vmatpush1.bf16.msra.mxu0 %v3446_v33  ;;  %1639 = vmatprep.mubr.bf16.mxu0 %v4081_v45  ;;  %v3935_v9 = vld [vmem:[%s4960_s10 + $0xc8] sm:$0xff]  }
 0x8ec   : > { %1621 = vmatprep.subr.bf16.mxu0 %v3431_v41  ;;  %v3453_v8 = vcombine.high %v1307_v0, %v1315_v2  ;;  %v3914_v41 = vld [vmem:[%s4960_s10 + $0x70] sm:$0xff]  }
 0x8ed   : > { %v3879_v10 = vpop.f32.mrf.mxu1 }
 0x8ee   : > { %v3455_v10 = vcombine.high %v1308_v4, %v1316_v5 }
 0x8ef   : > { %1622 = vmatpush1.bf16.msra.mxu0 %v3430_v40  ;;  %v3913_v40 = vld [vmem:[%s4960_s10 + $0xb8] sm:$0xff]  }
 0x8f0   : > { %1701 = vmatprep.subr.bf16.mxu0 %v3451_v50  ;;  %v3923_v50 = vld [vmem:[%s4960_s10 + $0xe0] sm:$0xff]  }
 0x9aa   : > { %v1239_v13 = vpop.f32.mrf.mxu0 }
 0x9ab   : > { %v1245_v14 = vadd.f32 %v1239_v13, %v1087_v58  ;;  %v1297_v58 = vld [vmem:[%s4958_s8 + $0x50] sm:$0xff]  ;;  %v1299_v13 = vld [vmem:[%s4958_s8 + $0x60] sm:$0xff] }
 0x9ac   : > { %v3884_v15 = vpop.f32.mrf.mxu0  ;;  %v3433_v62 = vcombine.high %v1289_v57, %v1297_v58  ;;  %v3432_v6 = vcombine.low %v1289_v57, %v1297_v58  ;;  %v3932_v57 = vld [vmem:[%s4960_s10 + $0x10] sm:$0xff]  }
 0x9ad   : > { %v1247_v17 = vadd.f32 %v1246_v12, %v1245_v14  ;;  %v1291_v12 = vld [vmem:[%s4958_s8 + $0x20] sm:$0xff]  ;;  %v1292_v14 = vld [vmem:[%s4958_s8 + $0x28] sm:$0xff]  ;;  %v3933_v58 = vld [vmem:[%s4960_s10 + $0x90] sm:$0xff]  }
 0x9ae   : > { %v1242_v19 = vpop.f32.mrf.mxu0  ;;  %v1300_v15 = vld [vmem:[%s4958_s8 + $0x68] sm:$0xff] }
 0x9af   : > { %v1255_v20 = vadd.f32 %v3425_v16, %v1247_v17  ;;  %v3452_v16 = vcombine.low %v1307_v0, %v1315_v2  ;;  %v3454_v17 = vcombine.low %v1308_v4, %v1316_v5  ;;  %v3437_v19 = vcombine.high %v1291_v12, %v1299_v13  ;;  %v3939_v0 = vld [vmem:[%s4960_s10 + $0xc0] sm:$0xff]   ;;  %v3942_v5 = vld [vmem:[%s4960_s10 + $0x178] sm:$0xff]  }
 0x9b0   : > { %v3885_v21 = vpop.f32.mrf.mxu0  ;;  %v3940_v2 = vld [vmem:[%s4960_s10] sm:$0xff]  }
 0x9b1   : > { %v1258_v22 = vsel %vm556_vm1, %v1255_v20, 0.0  ;;  %v1309_v21 = vld [vmem:[%s4958_s8 + $0xb0] sm:$0xff]  ;;  %v3941_v4 = vld [vmem:[%s4960_s10 + $0x80] sm:$0xff]  }
 0x9b2   : > { %1259 = vadd.xlane.f32.xlu1 %v1258_v22  ;;  %v1317_v22 = vld [vmem:[%s4958_s8 + $0xf0] sm:$0xff] }
 0x9b3   : > { %v3456_v32 = vcombine.low %v1309_v21, %v1317_v22 }
 0xa3b   : > { %v1260_v23 = vpop.xlane.xlu1 %1259 }
 0xa3c   : > { %v1262_v24 = vmul.f32 0.03125, %v1260_v23  ;;  %v1310_v23 = vld [vmem:[%s4958_s8 + $0xb8] sm:$0xff] }
 0xa3e   : > { %v1263_v25 = vsub.f32 %v1255_v20, %v1262_v24  ;;  %v3439_v20 = vcombine.high %v1292_v14, %v1300_v15  ;;  %v1318_v24 = vld [vmem:[%s4958_s8 + $0xf8] sm:$0xff] }
 0xa3f   : > { %v3459_v27 = vcombine.high %v1310_v23, %v1318_v24  ;;  %v3458_v33 = vcombine.low %v1310_v23, %v1318_v24 }
 0xa40   : > { %v1264_v26 = vmul.f32 %v1263_v25, %v1263_v25 }
 0xa42   : > { %v1265_v3 = vsel %vm556_vm1, %v1264_v26, 0.0  ;;  %v3438_v26 = vcombine.low %v1292_v14, %v1300_v15 }
 0xa43   : > { %1266 = vadd.xlane.f32.xlu1 %v1265_v3  ;;  %v3457_v3 = vcombine.high %v1309_v21, %v1317_v22 }
 0xacc   : > { %v1267_v51 = vpop.xlane.xlu1 %1266 }
 0xacd   : > { %v1268_v52 = vmul.f32 0.03125, %v1267_v51  ;;  %v3924_v51 = vld [vmem:[%s4960_s10 + $0x20] sm:$0xff]  }
 0xacf   : > { %v1269_v53 = vadd.f32 1e-05, %v1268_v52  ;;  %v3925_v52 = vld [vmem:[%s4960_s10 + $0xa0] sm:$0xff]  }
 0xad1   : > { %4054 = vrsqrt.f32 %v1269_v53  ;;  %v3926_v53 = vld [vmem:[%s4960_s10 + $0x58] sm:$0xff]  }
 0xade   : > { %v4055_v54 = vpop.eup %4054 }
 0xadf   : > { %v1271_v1 = vmul.f32 %v4055_v54, %v1263_v25  ;;  %v3436_v25 = vcombine.low %v1291_v12, %v1299_v13  ;;  %v3927_v54 = vld [vmem:[%s4960_s10 + $0xd8] sm:$0xff]   ;;  %v4555_v12 = vld [vmem:[%s4959_s9 + $0x8] sm:$0xff] }
 0xae1   : > { %v1278_v18 = vmul.f32 %v3426_v55, %v1271_v1  ;;  %v3928_v55 = vld [vmem:[%s4960_s10 + $0x18] sm:$0xff]  }
 0xae2   : > { %v3929_v1 = vld [vmem:[%s4960_s10 + $0x98] sm:$0xff]  }
 0xae3   : > { %v4371_v60 = vadd.f32 %v3427_v56, %v1278_v18  ;;  %v3930_v56 = vld [vmem:[%s4960_s10 + $0x50] sm:$0xff]  }
 0xae4   : > { %v3931_v18 = vld [vmem:[%s4960_s10 + $0xd0] sm:$0xff]  }
 0xae5   : > { %v4375_v61 = vpack.c.bf16 %v4371_v60, %v4371_v60 }
 0xae7   : > { %3460 = vmatmul.mubr.msk.bf16.vlgmr.msra.gmra.mxu1 %vm556_vm1, %v4375_v61  ;;  %3461 = vmatmul.mubr.msk.bf16.vlgmr.msra.gmra.mxu0 %vm556_vm1, %v4375_v61 }
 0xae8   : > { %1661 = vmatpush1.bf16.msra.mxu1 %v3448_v48  ;;  %1702 = vmatpush1.bf16.msra.mxu0 %v3450_v49  ;;  %v3921_v48 = vld [vmem:[%s4960_s10 + $0xa8] sm:$0xff]   ;;  %v3922_v49 = vld [vmem:[%s4960_s10 + $0x60] sm:$0xff]  }
 0xae9   : > { %1662 = vmatprep.subr.bf16.mxu1 %v3433_v62  ;;  %1703 = vmatprep.subr.bf16.mxu0 %v3435_v63  ;;  %v3937_v62 = vld [vmem:[%s4960_s10 + $0x88] sm:$0xff]   ;;  %v3938_v63 = vld [vmem:[%s4960_s10 + $0x40] sm:$0xff]  }
 0xaea   : > { %1680 = vmatprep.mubr.bf16.mxu1 %v4081_v45  ;;  %1721 = vmatprep.mubr.bf16.mxu0 %v4081_v45 }
 0xaec   : > { %1663 = vmatpush1.bf16.msra.mxu1 %v3432_v6  ;;  %1704 = vmatpush1.bf16.msra.mxu0 %v3434_v7  ;;  %v3943_v6 = vld [vmem:[%s4960_s10 + $0x1f8] sm:$0xff]   ;;  %v1323_v7 = vlaneseq }
 0xaed   : > { %1742 = vmatprep.subr.bf16.mxu1 %v3453_v8  ;;  %1783 = vmatprep.subr.bf16.mxu0 %v3455_v10 }
 0xaee   : > { %v4549_v8 = vshrl.u32 %v1323_v7, 7 }
 0xaef   : > { %3462 = vmatmul.mubr.msk.bf16.vlgmr.msra.gmra.mxu1 %vm556_vm1, %v4375_v61  ;;  %3463 = vmatmul.mubr.msk.bf16.vlgmr.msra.gmra.mxu0 %vm556_vm1, %v4375_v61 }
 0xaf0   : > { %1743 = vmatpush1.bf16.msra.mxu1 %v3452_v16  ;;  %1784 = vmatpush1.bf16.msra.mxu0 %v3454_v17  ;;  %v1349_v10 = vsub.s32 6, %v4549_v8  ;;  %v1325_v14 = vsub.s32 0, %v4549_v8  ;;  %v1333_v15 = vsub.s32 2, %v4549_v8  ;;  %v4567_v16 = vld [vmem:[%s4959_s9] sm:$0xff]  ;;  %v1329_v17 = vsub.s32 1, %v4549_v8 }
 0xaf1   : > { %1744 = vmatprep.subr.bf16.mxu1 %v3437_v19  ;;  %1785 = vmatprep.subr.bf16.mxu0 %v3439_v20  ;;  %v1337_v19 = vsub.s32 3, %v4549_v8  ;;  %v1345_v31 = vsub.s32 5, %v4549_v8 }
 0xaf2   : > { %1762 = vmatprep.mubr.bf16.mxu1 %v4081_v45  ;;  %1803 = vmatprep.mubr.bf16.mxu0 %v4081_v45  ;;  %v4560_v13 = vrot.slane %v4555_v12, %v1349_v10  ;;  %v1326_v20 = vrot.slane %v4567_v16, %v1325_v14  ;;  %v1334_v21 = vrot.slane %v4567_v16, %v1333_v15 }
 0xaf3   : > { %v1330_v22 = vrot.slane %v4567_v16, %v1329_v17  ;;  %v1338_v23 = vrot.slane %v4567_v16, %v1337_v19 }
 0xaf4   : > { %1745 = vmatpush1.bf16.msra.mxu1 %v3436_v25  ;;  %1786 = vmatpush1.bf16.msra.mxu0 %v3438_v26 }
 0xaf5   : > { %1824 = vmatprep.subr.bf16.mxu1 %v3457_v3  ;;  %1865 = vmatprep.subr.bf16.mxu0 %v3459_v27 }
 0xaf7   : > { %3464 = vmatmul.mubr.msk.bf16.vlgmr.msra.gmra.mxu1 %vm556_vm1, %v4375_v61  ;;  %3465 = vmatmul.mubr.msk.bf16.vlgmr.msra.gmra.mxu0 %vm556_vm1, %v4375_v61 }
 0xaf8   : > { %1825 = vmatpush1.bf16.msra.mxu1 %v3456_v32  ;;  %1866 = vmatpush1.bf16.msra.mxu0 %v3458_v33  ;;  %v1353_v32 = vsub.s32 7, %v4549_v8 }
 0xaf9   : > { %1826 = vmatprep.subr.bf16.mxu1 %v3441_v11  ;;  %1867 = vmatprep.subr.bf16.mxu0 %v3443_v34 }
 0xafa   : > { %1844 = vmatprep.mubr.bf16.mxu1 %v4081_v45  ;;  %1885 = vmatprep.mubr.bf16.mxu0 %v4081_v45  ;;  %v3918_v45 = vld [vmem:[%s4960_s10 + $0x68] sm:$0xff]  }
 0xafc   : > { %1827 = vmatpush1.bf16.msra.mxu1 %v3440_v35  ;;  %1868 = vmatpush1.bf16.msra.mxu0 %v3442_v36 }
 0xafd   : > { %3630 = vmatprep.subr.bf16.mxu1 %v3910_v37  ;;  %3652 = vmatprep.subr.bf16.mxu0 %v3911_v38 }
 0xaff   : > { %3466 = vmatmul.mubr.msk.bf16.vlgmr.msra.gmra.mxu1 %vm556_vm1, %v4375_v61  ;;  %3467 = vmatmul.mubr.msk.bf16.vlgmr.msra.gmra.mxu0 %vm556_vm1, %v4375_v61  ;;  %v3936_v61 = vld [vmem:[%s4960_s10 + $0x8] sm:$0xff]  }
 0xb00   : > { %3631 = vmatpush3.bf16.msra.mxu1 %v3912_v39  ;;  %3653 = vmatpush3.bf16.msra.mxu0 %v3913_v40 }
 0xb01   : > { %3632 = vmatprep.subr.bf16.mxu1 %v3914_v41  ;;  %3654 = vmatprep.subr.bf16.mxu0 %v3915_v42  ;;  %v1346_v42 = vrot.slane %v4567_v16, %v1345_v31 }
 0xb04   : > { %3633 = vmatpush3.bf16.msra.mxu1 %v3916_v43  ;;  %3655 = vmatpush3.bf16.msra.mxu0 %v3917_v44  ;;  %v1354_v43 = vrot.slane %v4567_v16, %v1353_v32  ;;  %v3944_v44 = vld [vmem:[%s4960_s10 + $0x138] sm:$0xff]  }
 0xb05   : > { %3634 = vmatprep.subr.bf16.mxu1 %v3918_v45  ;;  %3656 = vmatprep.subr.bf16.mxu0 %v3919_v46  ;;  %v3945_v45 = vld [vmem:[%s4960_s10 + $0x1b8] sm:$0xff]  }
 0xb08   : > { %3635 = vmatpush3.bf16.msra.mxu1 %v3920_v47  ;;  %3657 = vmatpush3.bf16.msra.mxu0 %v3921_v48 }
 0xb09   : > { %3636 = vmatprep.subr.bf16.mxu1 %v3922_v49  ;;  %3658 = vmatprep.subr.bf16.mxu0 %v3923_v50  ;;  %v3946_v50 = vld [vmem:[%s4960_s10 + $0x170] sm:$0xff]  }
 0xb0c   : > { %3637 = vmatpush3.bf16.msra.mxu1 %v3924_v51  ;;  %3659 = vmatpush3.bf16.msra.mxu0 %v3925_v52  ;;  %v3947_v51 = vld [vmem:[%s4960_s10 + $0x1f0] sm:$0xff]  }
 0xb0d   : > { %3638 = vmatprep.subr.bf16.mxu1 %v3926_v53  ;;  %3660 = vmatprep.subr.bf16.mxu0 %v3927_v54 }
 0xb10   : > { %3639 = vmatpush3.bf16.msra.mxu1 %v3928_v55  ;;  %3661 = vmatpush3.bf16.msra.mxu0 %v3929_v1  ;;  %v3948_v1 = vld [vmem:[%s4960_s10 + $0x130] sm:$0xff]  }
 0xb11   : > { %3640 = vmatprep.subr.bf16.mxu1 %v3930_v56  ;;  %3662 = vmatprep.subr.bf16.mxu0 %v3931_v18  ;;  %v3949_v56 = vld [vmem:[%s4960_s10 + $0x1b0] sm:$0xff]  }
 0xb14   : > { %3641 = vmatpush3.bf16.msra.mxu1 %v3932_v57  ;;  %3663 = vmatpush3.bf16.msra.mxu0 %v3933_v58  ;;  %v3950_v58 = vld [vmem:[%s4960_s10 + $0x168] sm:$0xff]  }
 0xb15   : > { %3642 = vmatprep.subr.bf16.mxu1 %v3934_v59  ;;  %3664 = vmatprep.subr.bf16.mxu0 %v3935_v9  ;;  %v3951_v59 = vld [vmem:[%s4960_s10 + $0x1e8] sm:$0xff]  }
 0xb18   : > { %3643 = vmatpush3.bf16.msra.mxu1 %v3936_v61  ;;  %3665 = vmatpush3.bf16.msra.mxu0 %v3937_v62 }
 0xb19   : > { %3644 = vmatprep.subr.bf16.mxu1 %v3938_v63  ;;  %3666 = vmatprep.subr.bf16.mxu0 %v3939_v0 }
 0xb1c   : > { %3645 = vmatpush3.bf16.msra.mxu1 %v3940_v2  ;;  %3667 = vmatpush3.bf16.msra.mxu0 %v3941_v4  ;;  %v3952_v4 = vld [vmem:[%s4960_s10 + $0x128] sm:$0xff]  }
 0xb1d   : > { %3674 = vmatprep.subr.bf16.mxu1 %v3942_v5  ;;  %3696 = vmatprep.subr.bf16.mxu0 %v3943_v6  ;;  %v3953_v5 = vld [vmem:[%s4960_s10 + $0x1a8] sm:$0xff]  }
 0xba7   : > { %v1600_v24 = vpop.f32.mrf.mxu1  ;;  %v1641_v25 = vpop.f32.mrf.mxu0 }
 0xba8   : > { %v1601_v26 = vadd.f32 %v1600_v24, %v1326_v20  ;;  %v1642_v3 = vadd.f32 %v1641_v25, %v1334_v21  ;;  %v3954_v20 = vld [vmem:[%s4960_s10 + $0x160] sm:$0xff]   ;;  %v1341_v24 = vsub.s32 4, %v4549_v8 }
 0xba9   : > { %v1602_v27 = vpop.f32.mrf.mxu1  ;;  %v1643_v28 = vpop.f32.mrf.mxu0  ;;  %v3955_v21 = vld [vmem:[%s4960_s10 + $0x1e0] sm:$0xff]  }
 0xbaa   : > { %v1603_v29 = vadd.f32 %v1602_v27, %v1330_v22  ;;  %v1644_v30 = vadd.f32 %v1643_v28, %v1338_v23  ;;  %v1894_v33 = vmax.f32 %v1601_v26, 0.0  ;;  %v1896_v11 = vmax.f32 %v1642_v3, 0.0  ;;  %v3956_v25 = vld [vmem:[%s4960_s10 + $0x120] sm:$0xff]   ;;  %v3958_v28 = vld [vmem:[%s4960_s10 + $0x158] sm:$0xff]  }
 0xbab   : > { %v1604_v34 = vpop.f32.mrf.mxu1  ;;  %v1645_v35 = vpop.f32.mrf.mxu0  ;;  %v3957_v26 = vld [vmem:[%s4960_s10 + $0x1a0] sm:$0xff]  }
 0xbac   : > { %v1895_v36 = vmax.f32 %v1603_v29, 0.0  ;;  %v1897_v37 = vmax.f32 %v1644_v30, 0.0  ;;  %v1910_v46 = vpack.c.bf16 %v1894_v33, %v1894_v33  ;;  %v1912_v47 = vpack.c.bf16 %v1896_v11, %v1896_v11  ;;  %v3959_v29 = vld [vmem:[%s4960_s10 + $0x1d8] sm:$0xff]  }
 0xbad   : > { %v1605_v38 = vpop.f32.mrf.mxu1  ;;  %v1646_v39 = vpop.f32.mrf.mxu0  ;;  %v1374_v30 = vrot.slane %v4555_v12, %v1341_v24  ;;  %v3960_v34 = vld [vmem:[%s4960_s10 + $0x118] sm:$0xff]  }
 0xbae   : > { %v1911_v40 = vpack.c.bf16 %v1895_v36, %v1895_v36  ;;  %v1913_v41 = vpack.c.bf16 %v1897_v37, %v1897_v37  ;;  %v3961_v35 = vld [vmem:[%s4960_s10 + $0x198] sm:$0xff]   ;;  %v3962_v38 = vld [vmem:[%s4960_s10 + $0x150] sm:$0xff]  }
 0xbaf   : > { %v4597_v48 = vpop.f32.mrf.mxu1  ;;  %v4599_v49 = vpop.f32.mrf.mxu0  ;;  %v3963_v39 = vld [vmem:[%s4960_s10 + $0x1d0] sm:$0xff]  }
 0xbb0   : > { %2989 = vmatprep.mubr.bf16.mxu1 %v1911_v40  ;;  %3029 = vmatprep.mubr.bf16.mxu0 %v1913_v41 }
 0xbb1   : > { %v1684_v52 = vpop.f32.mrf.mxu1  ;;  %v1725_v53 = vpop.f32.mrf.mxu0  ;;  %2990 = vmatmul.mubr.bf16.vlgmr.msra.gmra.mxu1 %v1910_v46  ;;  %3030 = vmatmul.mubr.bf16.vlgmr.msra.gmra.mxu0 %v1912_v47  ;;  %v1342_v46 = vrot.slane %v4567_v16, %v1341_v24 }
 0xbb2   : > { %v1685_v54 = vadd.f32 %v1684_v52, %v1346_v42  ;;  %v1726_v55 = vadd.f32 %v1725_v53, %v1354_v43  ;;  %3675 = vmatpush3.bf16.msra.mxu1 %v3944_v44  ;;  %3697 = vmatpush3.bf16.msra.mxu0 %v3945_v45  ;;  %v3964_v44 = vld [vmem:[%s4960_s10 + $0x110] sm:$0xff]   ;;  %v3967_v52 = vld [vmem:[%s4960_s10 + $0x1c8] sm:$0xff]   ;;  %v1362_v53 = vrot.slane %v4555_v12, %v1329_v17 }
 0xbb3   : > { %v1686_v18 = vpop.f32.mrf.mxu1  ;;  %v1727_v57 = vpop.f32.mrf.mxu0  ;;  %3676 = vmatprep.subr.bf16.mxu1 %v3946_v50  ;;  %3698 = vmatprep.subr.bf16.mxu0 %v3947_v51  ;;  %v3965_v45 = vld [vmem:[%s4960_s10 + $0x190] sm:$0xff]   ;;  %v3966_v51 = vld [vmem:[%s4960_s10 + $0x148] sm:$0xff]  }
 0xbb4   : > { %v1899_v9 = vmax.f32 %v1685_v54, 0.0  ;;  %v1901_v61 = vmax.f32 %v1726_v55, 0.0  ;;  %v3968_v55 = vld [vmem:[%s4960_s10 + $0x108] sm:$0xff]   ;;  %v3971_v18 = vld [vmem:[%s4960_s10 + $0x1c0] sm:$0xff]  }
 0xbb5   : > { %v1687_v62 = vpop.f32.mrf.mxu1  ;;  %v1728_v63 = vpop.f32.mrf.mxu0 }
 0xbb6   : > { %v1915_v0 = vpack.c.bf16 %v1899_v9, %v1899_v9  ;;  %v1917_v2 = vpack.c.bf16 %v1901_v61, %v1901_v61  ;;  %3677 = vmatpush3.bf16.msra.mxu1 %v3948_v1  ;;  %3699 = vmatpush3.bf16.msra.mxu0 %v3949_v56  ;;  %v3969_v1 = vld [vmem:[%s4960_s10 + $0x188] sm:$0xff]   ;;  %v1683_v56 = vadd.f32 %v4597_v48, %v1342_v46  ;;  %v3972_v48 = vld [vmem:[%s4960_s10 + $0x100] sm:$0xff]   ;;  %v3974_v61 = vld [vmem:[%s4960_s10 + $0x278] sm:$0xff]  }
 0xbb7   : > { %v4625_v6 = vpop.f32.mrf.mxu1  ;;  %v4627_v7 = vpop.f32.mrf.mxu0  ;;  %3678 = vmatprep.subr.bf16.mxu1 %v3950_v58  ;;  %3700 = vmatprep.subr.bf16.mxu0 %v3951_v59  ;;  %v3975_v62 = vld [vmem:[%s4960_s10 + $0x2f8] sm:$0xff]   ;;  %v1358_v46 = vrot.slane %v4555_v12, %v1325_v14  ;;  %v1378_v14 = vrot.slane %v4555_v12, %v1345_v31  ;;  %v4002_v31 = vld [vmem:[%s4960_s10 + $0x240] sm:$0xff]  }
 0xbb8   : > { %3069 = vmatprep.mubr.bf16.mxu1 %v1915_v0  ;;  %3109 = vmatprep.mubr.bf16.mxu0 %v1917_v2  ;;  %v1898_v59 = vmax.f32 %v1683_v56, 0.0  ;;  %v3976_v2 = vld [vmem:[%s4960_s10 + $0x238] sm:$0xff]  }
 0xbb9   : > { %v1766_v22 = vpop.f32.mrf.mxu1  ;;  %v1807_v23 = vpop.f32.mrf.mxu0 }
 0xbba   : > { %3679 = vmatpush3.bf16.msra.mxu1 %v3952_v4  ;;  %3701 = vmatpush3.bf16.msra.mxu0 %v3953_v5  ;;  %v1767_v57 = vadd.f32 %v1766_v22, %v1362_v53  ;;  %v1914_v4 = vpack.c.bf16 %v1898_v59, %v1898_v59  ;;  %v3978_v22 = vld [vmem:[%s4960_s10 + $0x270] sm:$0xff]   ;;  %v4000_v53 = vld [vmem:[%s4960_s10 + $0x208] sm:$0xff]  }
 0xbbb   : > { %v1768_v3 = vpop.f32.mrf.mxu1  ;;  %v1809_v27 = vpop.f32.mrf.mxu0  ;;  %3680 = vmatprep.subr.bf16.mxu1 %v3954_v20  ;;  %3702 = vmatprep.subr.bf16.mxu0 %v3955_v21  ;;  %v3977_v20 = vld [vmem:[%s4960_s10 + $0x2b8] sm:$0xff]  }
 0xbbc   : > { %v1903_v63 = vmax.f32 %v1767_v57, 0.0  ;;  %v3982_v3 = vld [vmem:[%s4960_s10 + $0x268] sm:$0xff]  }
 0xbbd   : > { %v1769_v33 = vpop.f32.mrf.mxu1  ;;  %v1810_v11 = vpop.f32.mrf.mxu0  ;;  %v3983_v27 = vld [vmem:[%s4960_s10 + $0x2e8] sm:$0xff]  }
 0xbbe   : > { %3681 = vmatpush3.bf16.msra.mxu1 %v3956_v25  ;;  %3703 = vmatpush3.bf16.msra.mxu0 %v3957_v26  ;;  %v1919_v21 = vpack.c.bf16 %v1903_v63, %v1903_v63  ;;  %v3980_v25 = vld [vmem:[%s4960_s10 + $0x230] sm:$0xff]   ;;  %v3987_v33 = vld [vmem:[%s4960_s10 + $0x2e0] sm:$0xff]   ;;  %v4015_v63 = vld [vmem:[%s4960_s10 + $0x3e8] sm:$0xff]  }
 0xbbf   : > { %v1846_v36 = vpop.f32.mrf.mxu1  ;;  %v1887_v37 = vpop.f32.mrf.mxu0  ;;  %3682 = vmatprep.subr.bf16.mxu1 %v3958_v28  ;;  %3704 = vmatprep.subr.bf16.mxu0 %v3959_v29  ;;  %v3981_v26 = vld [vmem:[%s4960_s10 + $0x2b0] sm:$0xff]   ;;  %v3984_v28 = vld [vmem:[%s4960_s10 + $0x228] sm:$0xff]   ;;  %v3988_v11 = vld [vmem:[%s4960_s10 + $0x220] sm:$0xff]  }
 0xbc0   : > { %v4661_v40 = vadd.f32 %v1846_v36, %v1374_v30  ;;  %v4664_v41 = vadd.f32 %v1887_v37, %v4560_v13  ;;  %v1350_v13 = vrot.slane %v4567_v16, %v1349_v10  ;;  %v1370_v10 = vrot.slane %v4555_v12, %v1337_v19  ;;  %v3970_v19 = vld [vmem:[%s4960_s10 + $0x140] sm:$0xff]   ;;  %v3985_v29 = vld [vmem:[%s4960_s10 + $0x2a8] sm:$0xff]   ;;  %v3991_v36 = vld [vmem:[%s4960_s10 + $0x2d8] sm:$0xff]  }
 0xbc1   : > { %v4666_v42 = vpop.f32.mrf.mxu1  ;;  %v4668_v43 = vpop.f32.mrf.mxu0  ;;  %v3986_v30 = vld [vmem:[%s4960_s10 + $0x260] sm:$0xff]   ;;  %v3992_v37 = vld [vmem:[%s4960_s10 + $0x218] sm:$0xff]  }
 0xbc2   : > { %3683 = vmatpush3.bf16.msra.mxu1 %v3960_v34  ;;  %3705 = vmatpush3.bf16.msra.mxu0 %v3961_v35  ;;  %v1724_v17 = vadd.f32 %v4599_v49, %v1350_v13  ;;  %v1808_v58 = vadd.f32 %v1807_v23, %v1370_v10  ;;  %v3973_v49 = vld [vmem:[%s4960_s10 + $0x180] sm:$0xff]   ;;  %v3979_v23 = vld [vmem:[%s4960_s10 + $0x2f0] sm:$0xff]   ;;  %v3990_v35 = vld [vmem:[%s4960_s10 + $0x258] sm:$0xff]  }
 0xbc3   : > { %v1850_v47 = vpop.f32.mrf.mxu1  ;;  %v1891_v50 = vpop.f32.mrf.mxu0  ;;  %3684 = vmatprep.subr.bf16.mxu1 %v3962_v38  ;;  %3706 = vmatprep.subr.bf16.mxu0 %v3963_v39  ;;  %v3989_v34 = vld [vmem:[%s4960_s10 + $0x2a0] sm:$0xff]   ;;  %v3993_v38 = vld [vmem:[%s4960_s10 + $0x298] sm:$0xff]   ;;  %v3994_v39 = vld [vmem:[%s4960_s10 + $0x250] sm:$0xff]  }
 0xbc4   : > { %v1900_v9 = vmax.f32 %v1724_v17, 0.0  ;;  %v1905_v0 = vmax.f32 %v1808_v58, 0.0  ;;  %v3997_v13 = vld [vmem:[%s4960_s10 + $0x290] sm:$0xff]   ;;  %v3998_v47 = vld [vmem:[%s4960_s10 + $0x248] sm:$0xff]   ;;  %v1366_v50 = vrot.slane %v4555_v12, %v1333_v15  ;;  %v1765_v15 = vadd.f32 %v4625_v6, %v1358_v46  ;;  %v4008_v17 = vld [vmem:[%s4960_s10 + $0x338] sm:$0xff]  }
 0xbc5   : > { %v1851_v16 = vpop.f32.mrf.mxu1  ;;  %v1892_v54 = vpop.f32.mrf.mxu0  ;;  %v4001_v10 = vld [vmem:[%s4960_s10 + $0x288] sm:$0xff]   ;;  %v4010_v58 = vld [vmem:[%s4960_s10 + $0x370] sm:$0xff]  }
 0xbc6   : > { %3685 = vmatpush3.bf16.msra.mxu1 %v3964_v44  ;;  %3707 = vmatpush3.bf16.msra.mxu0 %v3965_v45  ;;  %v1916_v5 = vpack.c.bf16 %v1900_v9, %v1900_v9  ;;  %v1921_v24 = vpack.c.bf16 %v1905_v0, %v1905_v0  ;;  %v3995_v44 = vld [vmem:[%s4960_s10 + $0x2d0] sm:$0xff]   ;;  %v1806_v8 = vadd.f32 %v4627_v7, %v1366_v50  ;;  %v4004_v16 = vld [vmem:[%s4960_s10 + $0x200] sm:$0xff]   ;;  %v1902_v54 = vmax.f32 %v1765_v15, 0.0  ;;  %v4016_v0 = vld [vmem:[%s4960_s10 + $0x328] sm:$0xff]  }
 0xbc7   : > { %3686 = vmatprep.subr.bf16.mxu1 %v3966_v51  ;;  %3708 = vmatprep.subr.bf16.mxu0 %v3967_v52  ;;  %v3996_v45 = vld [vmem:[%s4960_s10 + $0x210] sm:$0xff]   ;;  %v3999_v51 = vld [vmem:[%s4960_s10 + $0x2c8] sm:$0xff]   ;;  %v1386_v52 = vrot.slane %v4555_v12, %v1353_v32  ;;  %v4003_v12 = vld [vmem:[%s4960_s10 + $0x2c0] sm:$0xff]   ;;  %v1849_v32 = vadd.f32 %v4666_v42, %v1378_v14 }
 0xbc8   : > { %v4005_v7 = vld [vmem:[%s4960_s10 + $0x280] sm:$0xff]   ;;  %v4007_v42 = vld [vmem:[%s4960_s10 + $0x3f8] sm:$0xff]   ;;  %v4012_v9 = vld [vmem:[%s4960_s10 + $0x330] sm:$0xff]  }
 0xbc9   : > { %v1890_v6 = vadd.f32 %v4668_v43, %v1386_v52  ;;  %v1907_v43 = vmax.f32 %v1849_v32, 0.0 }
 0xbca   : > { %3687 = vmatpush3.bf16.msra.mxu1 %v3968_v55  ;;  %3709 = vmatpush3.bf16.msra.mxu0 %v3969_v1  ;;  %v4006_v55 = vld [vmem:[%s4960_s10 + $0x378] sm:$0xff]   ;;  %v1904_v1 = vmax.f32 %v1806_v8, 0.0 }
 0xbcb   : > { %3688 = vmatprep.subr.bf16.mxu1 %v3970_v19  ;;  %3710 = vmatprep.subr.bf16.mxu0 %v3971_v18  ;;  %v1909_v56 = vmax.f32 %v1890_v6, 0.0  ;;  %v1918_v19 = vpack.c.bf16 %v1902_v54, %v1902_v54  ;;  %v4009_v18 = vld [vmem:[%s4960_s10 + $0x3b8] sm:$0xff]  }
 0xbcc   : > { %v1920_v57 = vpack.c.bf16 %v1904_v1, %v1904_v1 }
 0xbcd   : > { %v1925_v59 = vpack.c.bf16 %v1909_v56, %v1909_v56 }
 0xbce   : > { %3689 = vmatpush3.bf16.msra.mxu1 %v3972_v48  ;;  %3711 = vmatpush3.bf16.msra.mxu0 %v3973_v49  ;;  %v1923_v48 = vpack.c.bf16 %v1907_v43, %v1907_v43  ;;  %v4011_v49 = vld [vmem:[%s4960_s10 + $0x3f0] sm:$0xff]  }
 0xbcf   : > { %3718 = vmatprep.subr.bf16.mxu1 %v3974_v61  ;;  %3740 = vmatprep.subr.bf16.mxu0 %v3975_v62  ;;  %v4013_v61 = vld [vmem:[%s4960_s10 + $0x3b0] sm:$0xff]   ;;  %v4014_v62 = vld [vmem:[%s4960_s10 + $0x368] sm:$0xff]  }
 0xbd1   : > { %3070 = vmatmul.mubr.bf16.vlgmr.msra.gmra.mxu1 %v1914_v4  ;;  %3110 = vmatmul.mubr.bf16.vlgmr.msra.gmra.mxu0 %v1916_v5  ;;  %v4018_v4 = vld [vmem:[%s4960_s10 + $0x360] sm:$0xff]  }
 0xbd2   : > { %3719 = vmatpush3.bf16.msra.mxu1 %v3976_v2  ;;  %3149 = vmatprep.mubr.bf16.mxu1 %v1919_v21  ;;  %v4017_v2 = vld [vmem:[%s4960_s10 + $0x3a8] sm:$0xff]   ;;  %v4019_v5 = vld [vmem:[%s4960_s10 + $0x3e0] sm:$0xff]  }
 0xbd3   : > { %3741 = vmatpush3.bf16.msra.mxu0 %v3977_v20  ;;  %3189 = vmatprep.mubr.bf16.mxu0 %v1921_v24  ;;  %v4020_v20 = vld [vmem:[%s4960_s10 + $0x320] sm:$0xff]   ;;  %v4024_v24 = vld [vmem:[%s4960_s10 + $0x318] sm:$0xff]  }
 0xbd4   : > { %3720 = vmatprep.subr.bf16.mxu1 %v3978_v22  ;;  %3742 = vmatprep.subr.bf16.mxu0 %v3979_v23  ;;  %v4021_v21 = vld [vmem:[%s4960_s10 + $0x3a0] sm:$0xff]   ;;  %v4022_v22 = vld [vmem:[%s4960_s10 + $0x358] sm:$0xff]  }
 0xbd5   : > { %v4023_v23 = vld [vmem:[%s4960_s10 + $0x3d8] sm:$0xff]  }
 0xbd6   : > { %3721 = vmatpush3.bf16.msra.mxu1 %v3980_v25  ;;  %v4025_v25 = vld [vmem:[%s4960_s10 + $0x398] sm:$0xff]  }
 0xbd7   : > { %3743 = vmatpush3.bf16.msra.mxu0 %v3981_v26  ;;  %3722 = vmatprep.subr.bf16.mxu1 %v3982_v3  ;;  %v4026_v26 = vld [vmem:[%s4960_s10 + $0x350] sm:$0xff]  }
 0xbd8   : > { %3744 = vmatprep.subr.bf16.mxu0 %v3983_v27  ;;  %v4027_v3 = vld [vmem:[%s4960_s10 + $0x3d0] sm:$0xff]  }
 0xbd9   : > { %v4028_v27 = vld [vmem:[%s4960_s10 + $0x310] sm:$0xff]  }
 0xbda   : > { %3723 = vmatpush3.bf16.msra.mxu1 %v3984_v28  ;;  %v4029_v28 = vld [vmem:[%s4960_s10 + $0x390] sm:$0xff]  }
 0xbdb   : > { %3745 = vmatpush3.bf16.msra.mxu0 %v3985_v29  ;;  %3724 = vmatprep.subr.bf16.mxu1 %v3986_v30  ;;  %v4030_v29 = vld [vmem:[%s4960_s10 + $0x348] sm:$0xff]  }
 0xbdc   : > { %3746 = vmatprep.subr.bf16.mxu0 %v3987_v33  ;;  %v4031_v30 = vld [vmem:[%s4960_s10 + $0x3c8] sm:$0xff]  }
 0xbdd   : > { %v4032_v33 = vld [vmem:[%s4960_s10 + $0x308] sm:$0xff]  }
 0xbde   : > { %3725 = vmatpush3.bf16.msra.mxu1 %v3988_v11  ;;  %v4033_v11 = vld [vmem:[%s4960_s10 + $0x388] sm:$0xff]  }
 0xbdf   : > { %3747 = vmatpush3.bf16.msra.mxu0 %v3989_v34  ;;  %3726 = vmatprep.subr.bf16.mxu1 %v3990_v35  ;;  %v4034_v34 = vld [vmem:[%s4960_s10 + $0x340] sm:$0xff]  }
 0xbe0   : > { %3748 = vmatprep.subr.bf16.mxu0 %v3991_v36  ;;  %v4035_v35 = vld [vmem:[%s4960_s10 + $0x3c0] sm:$0xff]  }
 0xbe1   : > { %v4036_v36 = vld [vmem:[%s4960_s10 + $0x300] sm:$0xff]  }
 0xbe2   : > { %3727 = vmatpush3.bf16.msra.mxu1 %v3992_v37  ;;  %v1906_v37 = vmax.f32 %v4661_v40, 0.0  ;;  %v3468_v40 = vld [vmem:[%s4961_s11] ss:$0 sm:$0xff] }
 0xbe3   : > { %3749 = vmatpush3.bf16.msra.mxu0 %v3993_v38  ;;  %3728 = vmatprep.subr.bf16.mxu1 %v3994_v39  ;;  %v4037_v38 = vld [vmem:[%s4960_s10 + $0x380] sm:$0xff]   ;;  %v1908_v39 = vmax.f32 %v4664_v41, 0.0 }
 0xbe4   : > { %3750 = vmatprep.subr.bf16.mxu0 %v3995_v44  ;;  %v1922_v44 = vpack.c.bf16 %v1906_v37, %v1906_v37 }
 0xbe6   : > { %3729 = vmatpush3.bf16.msra.mxu1 %v3996_v45  ;;  %v1924_v45 = vpack.c.bf16 %v1908_v39, %v1908_v39  ;;  %v3597_v39 = vld [vmem:[%s4962_s12] ss:$0 sm:$0xff] }
 0xbe7   : > { %3751 = vmatpush3.bf16.msra.mxu0 %v3997_v13  ;;  %3730 = vmatprep.subr.bf16.mxu1 %v3998_v47 }
 0xbe8   : > { %3752 = vmatprep.subr.bf16.mxu0 %v3999_v51 }
 0xbea   : > { %3731 = vmatpush3.bf16.msra.mxu1 %v4000_v53 }
 0xbeb   : > { %3753 = vmatpush3.bf16.msra.mxu0 %v4001_v10  ;;  %3732 = vmatprep.subr.bf16.mxu1 %v4002_v31 }
 0xbec   : > { %3754 = vmatprep.subr.bf16.mxu0 %v4003_v12 }
 0xbee   : > { %3733 = vmatpush3.bf16.msra.mxu1 %v4004_v16 }
 0xbef   : > { %3755 = vmatpush3.bf16.msra.mxu0 %v4005_v7  ;;  %3762 = vmatprep.subr.bf16.mxu1 %v4006_v55 }
 0xbf0   : > { %3784 = vmatprep.subr.bf16.mxu0 %v4007_v42 }
 0xbf1   : > { %3150 = vmatmul.mubr.bf16.vlgmr.msra.gmra.mxu1 %v1918_v19 }
 0xbf2   : > { %3190 = vmatmul.mubr.bf16.vlgmr.msra.gmra.mxu0 %v1920_v57  ;;  %3763 = vmatpush3.bf16.msra.mxu1 %v4008_v17 }
 0xbf3   : > { %3229 = vmatprep.mubr.bf16.mxu1 %v1923_v48  ;;  %3785 = vmatpush3.bf16.msra.mxu0 %v4009_v18 }
 0xbf4   : > { %3269 = vmatprep.mubr.bf16.mxu0 %v1925_v59  ;;  %3764 = vmatprep.subr.bf16.mxu1 %v4010_v58 }
 0xbf5   : > { %3786 = vmatprep.subr.bf16.mxu0 %v4011_v49 }
 0xbf6   : > { %3765 = vmatpush3.bf16.msra.mxu1 %v4012_v9 }
 0xbf7   : > { %3787 = vmatpush3.bf16.msra.mxu0 %v4013_v61  ;;  %3766 = vmatprep.subr.bf16.mxu1 %v4014_v62 }
 0xbf8   : > { %3788 = vmatprep.subr.bf16.mxu0 %v4015_v63 }
 0xbfa   : > { %3767 = vmatpush3.bf16.msra.mxu1 %v4016_v0 }
 0xbfb   : > { %3789 = vmatpush3.bf16.msra.mxu0 %v4017_v2  ;;  %3768 = vmatprep.subr.bf16.mxu1 %v4018_v4 }
 0xbfc   : > { %3790 = vmatprep.subr.bf16.mxu0 %v4019_v5 }
 0xbfe   : > { %3769 = vmatpush3.bf16.msra.mxu1 %v4020_v20 }
 0xbff   : > { %3791 = vmatpush3.bf16.msra.mxu0 %v4021_v21  ;;  %3770 = vmatprep.subr.bf16.mxu1 %v4022_v22 }
 0xc00   : > { %3792 = vmatprep.subr.bf16.mxu0 %v4023_v23 }
 0xc02   : > { %3771 = vmatpush3.bf16.msra.mxu1 %v4024_v24 }
 0xc03   : > { %3793 = vmatpush3.bf16.msra.mxu0 %v4025_v25  ;;  %3772 = vmatprep.subr.bf16.mxu1 %v4026_v26 }
 0xc04   : > { %3794 = vmatprep.subr.bf16.mxu0 %v4027_v3 }
 0xc06   : > { %3773 = vmatpush3.bf16.msra.mxu1 %v4028_v27 }
 0xc07   : > { %3795 = vmatpush3.bf16.msra.mxu0 %v4029_v28  ;;  %3774 = vmatprep.subr.bf16.mxu1 %v4030_v29 }
 0xc08   : > { %3796 = vmatprep.subr.bf16.mxu0 %v4031_v30 }
 0xc0a   : > { %3775 = vmatpush3.bf16.msra.mxu1 %v4032_v33 }
 0xc0b   : > { %3797 = vmatpush3.bf16.msra.mxu0 %v4033_v11  ;;  %3776 = vmatprep.subr.bf16.mxu1 %v4034_v34 }
 0xc0c   : > { %3798 = vmatprep.subr.bf16.mxu0 %v4035_v35 }
 0xc0e   : > { %3777 = vmatpush3.bf16.msra.mxu1 %v4036_v36 }
 0xc0f   : > { %3799 = vmatpush3.bf16.msra.mxu0 %v4037_v38 }
 0xc11   : > { %3230 = vmatmul.mubr.bf16.vlgmr.msra.gmra.mxu1 %v1922_v44  ;;  %v3598_v44 = vld [vmem:[%s4963_s13] ss:$0 sm:$0xff] }
 0xc12   : > { %3270 = vmatmul.mubr.bf16.vlgmr.msra.gmra.mxu0 %v1924_v45 }
 0xc71   : > { %v3646_v46 = vpop.f32.mrf.mxu1  ;;  %v3668_v13 = vpop.f32.mrf.mxu0 }
 0xc73   : > { %v3647_v47 = vpop.f32.mrf.mxu1  ;;  %v3669_v50 = vpop.f32.mrf.mxu0 }
 0xc74   : > { %v3648_v51 = vadd.f32 %v3647_v47, %v3646_v46  ;;  %v3670_v14 = vadd.f32 %v3669_v50, %v3668_v13 }
 0xc75   : > { %v3649_v52 = vpop.f32.mrf.mxu1  ;;  %v3671_v53 = vpop.f32.mrf.mxu0 }
 0xc76   : > { %v2992_v41 = vadd.f32 %v3648_v51, %v3468_v40 }
 0xc77   : > { %v3650_v15 = vpop.f32.mrf.mxu1  ;;  %v3672_v10 = vpop.f32.mrf.mxu0 }
 0xc78   : > { %v3032_v31 = vadd.f32 %v3670_v14, %v2992_v41  ;;  %v3599_v10 = vld [vmem:[%s4964_s14] ss:$0 sm:$0xff] }
 0xc91   : > { %v3690_v8 = vpop.f32.mrf.mxu1  ;;  %v3712_v12 = vpop.f32.mrf.mxu0 }
 0xc93   : > { %v3691_v32 = vpop.f32.mrf.mxu1  ;;  %v3713_v6 = vpop.f32.mrf.mxu0 }
 0xc94   : > { %v3692_v58 = vadd.f32 %v3691_v32, %v3690_v8  ;;  %v3714_v49 = vadd.f32 %v3713_v6, %v3712_v12  ;;  %v3600_v8 = vld [vmem:[%s4965_s15] ss:$0 sm:$0xff] }
 0xc95   : > { %v3693_v16 = vpop.f32.mrf.mxu1  ;;  %v3715_v54 = vpop.f32.mrf.mxu0 }
 0xc96   : > { %v3072_v48 = vadd.f32 %v3692_v58, %v3032_v31 }
 0xc97   : > { %v3694_v7 = vpop.f32.mrf.mxu1  ;;  %v3716_v55 = vpop.f32.mrf.mxu0 }
 0xc98   : > { %v3112_v9 = vadd.f32 %v3714_v49, %v3072_v48 }
 0xcb1   : > { %v3734_v1 = vpop.f32.mrf.mxu1 }
 0xcb2   : > { %v3756_v42 = vpop.f32.mrf.mxu0 }
 0xcb3   : > { %v3735_v43 = vpop.f32.mrf.mxu1 }
 0xcb4   : > { %v3757_v56 = vpop.f32.mrf.mxu0  ;;  %v3736_v59 = vadd.f32 %v3735_v43, %v3734_v1 }
 0xcb5   : > { %v3737_v17 = vpop.f32.mrf.mxu1  ;;  %v3758_v63 = vadd.f32 %v3757_v56, %v3756_v42 }
 0xcb6   : > { %v3759_v19 = vpop.f32.mrf.mxu0  ;;  %v3152_v61 = vadd.f32 %v3736_v59, %v3112_v9 }
 0xcb7   : > { %v3738_v18 = vpop.f32.mrf.mxu1 }
 0xcb8   : > { %v3760_v57 = vpop.f32.mrf.mxu0  ;;  %v3192_v4 = vadd.f32 %v3758_v63, %v3152_v61 }
 0xcd1   : > { %v3778_v62 = vpop.f32.mrf.mxu1 }
 0xcd2   : > { %v3800_v0 = vpop.f32.mrf.mxu0 }
 0xcd3   : > { %v3779_v2 = vpop.f32.mrf.mxu1 }
 0xcd4   : > { %v3780_v5 = vadd.f32 %v3779_v2, %v3778_v62  ;;  %v3801_v20 = vpop.f32.mrf.mxu0 }
 0xcd5   : > { %v3781_v21 = vpop.f32.mrf.mxu1  ;;  %v3802_v23 = vadd.f32 %v3801_v20, %v3800_v0 }
 0xcd6   : > { %v3232_v22 = vadd.f32 %v3780_v5, %v3192_v4  ;;  %v3803_v24 = vpop.f32.mrf.mxu0 }
 0xcd7   : > { %v3782_v25 = vpop.f32.mrf.mxu1 }
 0xcd8   : > { %v3272_v26 = vadd.f32 %v3802_v23, %v3232_v22  ;;  %v3804_v3 = vpop.f32.mrf.mxu0 }
 0xcda   : > { %v3277_v27 = vadd.f32 %v3272_v26, %v4371_v60 }
 0xcdc   : > { %v3280_v28 = vsel %vm556_vm1, %v3277_v27, 0.0 }
 0xcdd   : > { %3281 = vadd.xlane.f32.xlu1 %v3280_v28 }
 0xd66   : > { %v3282_v29 = vpop.xlane.xlu1 %3281 }
 0xd67   : > { %v3283_v30 = vmul.f32 0.03125, %v3282_v29 }
 0xd69   : > { %v3284_v33 = vsub.f32 %v3277_v27, %v3283_v30 }
 0xd6b   : > { %v3285_v11 = vmul.f32 %v3284_v33, %v3284_v33 }
 0xd6d   : > { %v3286_v34 = vsel %vm556_vm1, %v3285_v11, 0.0 }
 0xd6e   : > { %3287 = vadd.xlane.f32.xlu1 %v3286_v34 }
 0xdf7   : > { %v3288_v35 = vpop.xlane.xlu1 %3287 }
 0xdf8   : > { %v3289_v36 = vmul.f32 0.03125, %v3288_v35 }
 0xdfa   : > { %v3290_v37 = vadd.f32 1e-05, %v3289_v36 }
 0xdfc   : > { %4056 = vrsqrt.f32 %v3290_v37 }
 0xe09   : > { %v4057_v38 = vpop.eup %4056 }
 0xe0a   : > { %v3292_v60 = vmul.f32 %v4057_v38, %v3284_v33 }
 0xe0c   : > { %v3299_v45 = vmul.f32 %v3597_v39, %v3292_v60 }
 0xe0e   : > { %v3306_v46 = vadd.f32 %v3598_v44, %v3299_v45 }
 0xe10   : > { %v3309_v13 = vsel %vm556_vm1, %v3306_v46, 0.0 }
 0xe11   : > { %3310 = vadd.xlane.f32.xlu1 %v3309_v13 }
 0xe9a   : > { %v3311_v40 = vpop.xlane.xlu1 %3310 }
 0xe9b   : > { %v3312_v47 = vmul.f32 0.03125, %v3311_v40 }
 0xe9d   : > { %v3313_v50 = vsub.f32 %v3306_v46, %v3312_v47 }
 0xe9f   : > { %v3314_v51 = vmul.f32 %v3313_v50, %v3313_v50 }
 0xea1   : > { %v3315_v14 = vsel %vm556_vm1, %v3314_v51, 0.0 }
 0xea2   : > { %3316 = vadd.xlane.f32.xlu0 %v3315_v14 }
 0xf2b   : > { %v3317_v52 = vpop.xlane.xlu0 %3316 }
 0xf2c   : > { %v3318_v53 = vmul.f32 0.03125, %v3317_v52 }
 0xf2e   : > { %v3319_v41 = vadd.f32 1e-05, %v3318_v53 }
 0xf30   : > { %4058 = vrsqrt.f32 %v3319_v41 }
 0xf3d   : > { %v4059_v15 = vpop.eup %4058 }
 0xf3e   : > { %v3321_v31 = vmul.f32 %v4059_v15, %v3313_v50 }
 0xf40   : > { %v3328_v12 = vmul.f32 %v3599_v10, %v3321_v31 }
 0xf42   : > { %v3335_v32 = vadd.f32 %v3600_v8, %v3328_v12 }
 0xf44   : > { %v3336_v6 = vpack.c.bf16 %v3335_v32, %v3335_v32 }
 0xf46   : > { %3338 = vst.msk [vmem:[%s530_s25] sm:$0xf] %vm3337_vm4, %v3336_v6 }
 0xf47 PF: > { %s26_s21 = sadd.s32 1, %s4066_s21  }
 0xf48   : > { %p23_p4 = scmp.ge.s32.totalorder %s26_s21, 4  }
 0xf4a   :  { %25 = sbr.rel (!%p23_p4) target bundleno = 2 (0x2), region = 117 }

// kernel: transformer_forward.5
= control target key start
LH: loop header
LB: loop body
LE: loop exit
PB: predicated region body
PF: predicated region fallthrough
CT: control target
= control target key end

     0   :  { %s4070_s29 = smov 0   ;;  %s4845_s0 = inlined_call_operand.vmem [shape: bf16[2,8,32], index: 0, kind: input, shape index: {}]   ;;  %s4846_s1 = inlined_call_operand.vmem [shape: f32[2,1,8], index: 1, kind: input, shape index: {}]   ;;  %s4847_s2 = inlined_call_operand.vmem [shape: bf16[32,96], index: 2, kind: input, shape index: {}]   ;;  %s4848_s3 = inlined_call_operand.vmem [shape: f32[1,96], index: 3, kind: input, shape index: {}]   ;;  %s4849_s4 = inlined_call_operand.vmem [shape: bf16[32,32], index: 4, kind: input, shape index: {}]   ;;  %s4850_s5 = inlined_call_operand.vmem [shape: f32[1,32], index: 5, kind: input, shape index: {}]   ;;  %s4851_s6 = inlined_call_operand.vmem [shape: f32[1,32], index: 6, kind: input, shape index: {}]   ;;  %s4852_s7 = inlined_call_operand.vmem [shape: f32[1,32], index: 7, kind: input, shape index: {}]   ;;  %s4853_s8 = inlined_call_operand.vmem [shape: bf16[32,2048], index: 8, kind: input, shape index: {}]   ;;  %s4854_s9 = inlined_call_operand.vmem [shape: f32[1,2048], index: 9, kind: input, shape index: {}]   ;;  %s4855_s10 = inlined_call_operand.vmem [shape: bf16[2048,32], index: 10, kind: input, shape index: {}]   ;;  %s4856_s11 = inlined_call_operand.vmem [shape: f32[1,32], index: 11, kind: input, shape index: {}]   ;;  %s4857_s12 = inlined_call_operand.vmem [shape: f32[1,32], index: 12, kind: input, shape index: {}]   ;;  %s4858_s13 = inlined_call_operand.vmem [shape: f32[1,32], index: 13, kind: input, shape index: {}]   ;;  %s4859_s14 = inlined_call_operand.vmem [shape: bf16[2,8,32], index: 14, kind: output, shape index: {}]  }
   0x1 LB: > { %s3318_s30 = sadd.s32 4294967295, %s3979_s29   ;;  %p3322_p0 = scmp.ge.s32.totalorder %s3979_s29, 1  ;;  %s3979_s29 = sphi %s4070_s29, %s24_s29  }
   0x2   : > { %p419_p1 = scmp.lt.s32.totalorder %s3979_s29, 3 }
   0x4   : > { %p420_p2 = pnand %p3322_p0, %p419_p1 }
   0x5   : > { %p466_p3 = scmp.lt.s32.totalorder (!%p420_p2), %s3318_s30, 1  ;;  %s3983_s25 = smov (!%p420_p2), 96  }
   0x6   : > { %423 = sbr.rel (%p420_p2) target bundleno = 3602 (0xe12), region = 76  ;;  %s3984_s26 = smov (!%p420_p2), 120  }
   0x7   : > { %s3985_s27 = smov (!%p420_p2), 88   ;;  %s3986_s17 = smov (!%p420_p2), 64  }
   0x8   : > { %s3987_s18 = smov (!%p420_p2), 56   ;;  %s3988_s20 = smov (!%p420_p2), 112  }
   0x9   : > { %s3989_s21 = smov (!%p420_p2), 80   ;;  %s3992_s28 = smov (!%p420_p2), 48  }
   0xb   : > { %v3823_v0 = vld [vmem:[%s4847_s2 + $0x8] sm:$0xff]   ;;  %v3981_v1 = vmov 0.0   ;;  %v3824_v2 = vld [vmem:[%s4847_s2] sm:$0xff]   ;;  %vm3982_vm0 = vmmov 0   ;;  %s4861_s30 = smov (!%p466_p3, %s3318_s30), 1  ;;  %vm502_vm1 = vcmask 261120  }
   0xc   : > { %3721 = vmatprep.subr.bf16.mxu0 %v3981_v1  ;;  %3729 = vmatprep.subr.bf16.mxu1 %v3981_v1  ;;  %s3323_s19 = sshll.u32 %s4861_s30, 2  ;;  %v3325_v4 = vld [vmem:[%s4848_s3] ss:$0 sm:$0xff]  ;;  %vm563_vm2 = vcmask 64512   ;;  %s472_s16 = scalar_lea.vmem %s4846_s1, %s4861_s30  ;;  %vm627_vm3 = vcmask 1043456   ;;  %vm3254_vm4 = vcmask 257024  }
   0xd   : > { %3722 = vmatpush3.bf16.msra.mxu0 %v3823_v0  ;;  %3725 = vmatprep.mubr.msk.bf16.mxu0 %vm3982_vm0, %v3981_v1  ;;  %s469_s22 = scalar_lea.vmem %s4845_s0, %s3323_s19  ;;  %v4131_v18 = vld [vmem:[%s472_s16] ss:$0 sm:$0xff]  ;;  %v550_v55 = vld [vmem:[%s4849_s4 + $0x4] sm:$0xf] }
   0xe   : > { %3723 = vmatprep.subr.bf16.mxu0 %v3981_v1  ;;  %3731 = vmatprep.mubr.msk.bf16.mxu1 %vm3982_vm0, %v3981_v1  ;;  %v4100_v3 = vld [vmem:[%s469_s22] sm:$0xf]  ;;  %v788_v56 = vsel %vm627_vm3, %v550_v55, 0 }
   0xf   : > { %v549_v53 = vld [vmem:[%s4849_s4] sm:$0xf] }
  0x10   : > { %v834_v54 = vsel %vm627_vm3, %v549_v53, 0 }
  0x11   : > { %3724 = vmatpush3.bf16.msra.mxu0 %v3824_v2 }
  0x12   : > { %3735 = vmatprep.subr.bf16.mxu0 %v3981_v1 }
  0x14   : > { %3726 = vmatmul.mubr.msk.bf16.vlgmr.msra.gmra.mxu0 %vm502_vm1, %v4100_v3 }
  0x15   : > { %3737 = vmatprep.mubr.msk.bf16.mxu0 %vm3982_vm0, %v3981_v1 }
  0xd4   : > { %v540_v5 = vpop.f32.mrf.mxu0 }
  0xd5   : > { %v541_v6 = vadd.f32 %v3325_v4, %v540_v5 }
  0xd6   : > { %v3727_v7 = vpop.f32.mrf.mxu0 }
  0xd7   : > { %v546_v8 = vmul.f32 0.35355338, %v541_v6  ;;  %v4109_v9 = vpack.c.bf16 %v541_v6, %v541_v6 }
  0xd8   : > { %v543_v10 = vpop.f32.mrf.mxu0 }
  0xd9   : > { %v4111_v11 = vpack.c.bf16 %v546_v8, %v546_v8  ;;  %561 = vrot.lane.b32.xlu0 %v4109_v9, %s3983_s25 }
  0xda   : > { %v3728_v12 = vpop.f32.mrf.mxu0 }
  0xdb   : > { %673 = vrot.lane.b32.xlu1 %v4111_v11, %s3984_s26  ;;  %s3990_s26 = smov 72  }
  0xdd   : > { %675 = vrot.lane.b32.xlu0 %v4109_v9, %s3985_s27  ;;  %s3991_s27 = smov 104  }
 0x14b   : > { %v562_v13 = vpop.permute.xlu0 %561 }
 0x14c   : > { %v568_v14 = vsel %vm563_vm2, %v562_v13, 0 }
 0x14d   : > { %3730 = vmatpush3.bf16.xpose.msra.mxu1 %v568_v14  ;;  %v674_v17 = vpop.permute.xlu1 %673 }
 0x14e   : > { %3741 = vmatprep.subr.bf16.mxu1 %v3981_v1 }
 0x14f   : > { %v676_v15 = vpop.permute.xlu0 %675 }
 0x150   : > { %v681_v16 = vsel %vm563_vm2, %v676_v15, 0 }
 0x154   : > { %3732 = vmatmul.mubr.msk.bf16.vlgmr.msra.gmra.mxu1 %vm563_vm2, %v4111_v11 }
 0x155   : > { %3742 = vmatpush3.bf16.xpose.msra.mxu1 %v681_v16  ;;  %3743 = vmatprep.mubr.msk.bf16.mxu1 %vm3982_vm0, %v3981_v1 }
 0x156   : > { %3753 = vmatprep.subr.bf16.mxu1 %v3981_v1 }
 0x15c   : > { %3744 = vmatmul.mubr.msk.bf16.vlgmr.msra.gmra.mxu1 %vm563_vm2, %v674_v17 }
 0x15d   : > { %3755 = vmatprep.mubr.msk.bf16.mxu1 %vm3982_vm0, %v3981_v1  ;;  %3754 = vmatpush3.bf16.msra.mxu1 %v788_v56 }
 0x15e   : > { %3765 = vmatprep.subr.bf16.mxu1 %v3981_v1 }
 0x214   : > { %v604_v19 = vpop.f32.mrf.mxu1 }
 0x215   : > { %v605_v20 = vadd.f32 %v4131_v18, %v604_v19 }
 0x216   : > { %v3733_v21 = vpop.f32.mrf.mxu1 }
 0x217   : > { %v610_v22 = vsel %vm563_vm2, %v605_v20, -inf }
 0x218   : > { %611 = vmax.xlane.f32.xlu1 %v610_v22  ;;  %v607_v23 = vpop.f32.mrf.mxu1 }
 0x21a   : > { %v3734_v24 = vpop.f32.mrf.mxu1 }
 0x21c   : > { %v717_v25 = vpop.f32.mrf.mxu1 }
 0x21d   : > { %v718_v26 = vadd.f32 %v4131_v18, %v717_v25 }
 0x21e   : > { %v3745_v27 = vpop.f32.mrf.mxu1 }
 0x21f   : > { %v723_v28 = vsel %vm563_vm2, %v718_v26, -inf }
 0x220   : > { %724 = vmax.xlane.f32.xlu0 %v723_v28  ;;  %v720_v29 = vpop.f32.mrf.mxu1 }
 0x222   : > { %v3746_v30 = vpop.f32.mrf.mxu1 }
 0x2a1   : > { %v612_v31 = vpop.xlane.xlu1 %611 }
 0x2a2   : > { %v613_v32 = vsub.f32 %v605_v20, %v612_v31 }
 0x2a4   : > { %v614_v33 = vmul.f32 1.442695, %v613_v32 }
 0x2a6   : > { %3953 = vpow2.f32 %v614_v33 }
 0x2a9   : > { %v725_v34 = vpop.xlane.xlu0 %724 }
 0x2aa   : > { %v726_v35 = vsub.f32 %v718_v26, %v725_v34 }
 0x2ac   : > { %v727_v36 = vmul.f32 1.442695, %v726_v35 }
 0x2ae   : > { %3955 = vpow2.f32 %v727_v36 }
 0x2b3   : > { %v3954_v37 = vpop.eup %3953 }
 0x2b4   : > { %v616_v38 = vsel %vm563_vm2, %v3954_v37, 0.0 }
 0x2b5   : > { %617 = vadd.xlane.f32.xlu0 %v616_v38 }
 0x2bb   : > { %v3956_v39 = vpop.eup %3955 }
 0x2bc   : > { %v729_v40 = vsel %vm563_vm2, %v3956_v39, 0.0 }
 0x2bd   : > { %730 = vadd.xlane.f32.xlu1 %v729_v40 }
 0x2cb   : > { %622 = vrot.lane.b32.xlu0 %v4109_v9, %s3986_s17  ;;  %s3993_s17 = smov 40  }
 0x2ce   : > { %735 = vrot.lane.b32.xlu1 %v4109_v9, %s3987_s18 }
 0x2cf   : > { %876 = vrot.lane.b32.xlu0 %v4111_v11, %s3988_s20 }
 0x2d2   : > { %878 = vrot.lane.b32.xlu1 %v4109_v9, %s3989_s21  ;;  %s476_s21 = scalar_lea.vmem %s4859_s14, %s3323_s19 }
 0x33e   : > { %v618_v41 = vpop.xlane.xlu0 %617 }
 0x33f   : > { %3957 = vrcp.f32 %v618_v41 }
 0x342   : > { %v623_v42 = vpop.permute.xlu0 %622 }
 0x343   : > { %v629_v43 = vsel %vm627_vm3, %v623_v42, 0 }
 0x344   : > { %3736 = vmatpush3.bf16.msra.mxu0 %v629_v43 }
 0x345   : > { %3747 = vmatprep.subr.bf16.mxu0 %v3981_v1 }
 0x346   : > { %v731_v44 = vpop.xlane.xlu1 %730  ;;  %v877_v7 = vpop.permute.xlu0 %876 }
 0x347   : > { %3959 = vrcp.f32 %v731_v44 }
 0x34a   : > { %v736_v47 = vpop.permute.xlu1 %735 }
 0x34b   : > { %v741_v49 = vsel %vm627_vm3, %v736_v47, 0 }
 0x34c   : > { %v3958_v45 = vpop.eup %3957 }
 0x34d   : > { %v620_v46 = vmul.f32 %v3958_v45, %v3954_v37 }
 0x34e   : > { %v879_v62 = vpop.permute.xlu1 %878 }
 0x34f   : > { %v621_v48 = vpack.c.bf16 %v620_v46, %v620_v46  ;;  %v884_v4 = vsel %vm563_vm2, %v879_v62, 0 }
 0x351   : > { %3738 = vmatmul.mubr.msk.bf16.vlgmr.msra.gmra.mxu0 %vm563_vm2, %v621_v48 }
 0x352   : > { %3748 = vmatpush3.bf16.msra.mxu0 %v741_v49  ;;  %3749 = vmatprep.mubr.msk.bf16.mxu0 %vm3982_vm0, %v3981_v1 }
 0x353   : > { %3759 = vmatprep.subr.bf16.mxu0 %v3981_v1 }
 0x354   : > { %v3960_v50 = vpop.eup %3959 }
 0x355   : > { %v733_v51 = vmul.f32 %v3960_v50, %v3956_v39  ;;  %v551_v39 = vld [vmem:[%s4849_s4 + $0x8] sm:$0xf] }
 0x356   : > { %v991_v40 = vsel %vm627_vm3, %v551_v39, 0 }
 0x357   : > { %v734_v52 = vpack.c.bf16 %v733_v51, %v733_v51 }
 0x359   : > { %3750 = vmatmul.mubr.msk.bf16.vlgmr.msra.gmra.mxu0 %vm563_vm2, %v734_v52 }
 0x35a   : > { %3761 = vmatprep.mubr.msk.bf16.mxu0 %vm3982_vm0, %v3981_v1  ;;  %3760 = vmatpush3.bf16.msra.mxu0 %v834_v54 }
 0x35b   : > { %3771 = vmatprep.subr.bf16.mxu0 %v3981_v1 }
 0x411   : > { %v665_v57 = vpop.f32.mrf.mxu0 }
 0x412   : > { %v671_v58 = vpack.c.bf16 %v665_v57, %v665_v57 }
 0x413   : > { %v3739_v59 = vpop.f32.mrf.mxu0 }
 0x414   : > { %3762 = vmatmul.mubr.msk.bf16.vlgmr.msra.gmra.mxu0 %vm563_vm2, %v671_v58 }
 0x415   : > { %v668_v60 = vpop.f32.mrf.mxu0  ;;  %3773 = vmatprep.mubr.msk.bf16.mxu0 %vm3982_vm0, %v3981_v1 }
 0x417   : > { %v3740_v61 = vpop.f32.mrf.mxu0 }
 0x419   : > { %v777_v63 = vpop.f32.mrf.mxu0 }
 0x41a   : > { %v783_v0 = vpack.c.bf16 %v777_v63, %v777_v63 }
 0x41b   : > { %v3751_v2 = vpop.f32.mrf.mxu0 }
 0x41c   : > { %3756 = vmatmul.mubr.msk.bf16.vlgmr.msra.gmra.mxu1 %vm563_vm2, %v783_v0 }
 0x41d   : > { %3766 = vmatpush3.bf16.xpose.msra.mxu1 %v884_v4  ;;  %v780_v5 = vpop.f32.mrf.mxu0  ;;  %3767 = vmatprep.mubr.msk.bf16.mxu1 %vm3982_vm0, %v3981_v1 }
 0x41e   : > { %3777 = vmatprep.subr.bf16.mxu1 %v3981_v1 }
 0x41f   : > { %v3752_v6 = vpop.f32.mrf.mxu0 }
 0x424   : > { %3768 = vmatmul.mubr.msk.bf16.vlgmr.msra.gmra.mxu1 %vm563_vm2, %v877_v7 }
 0x425   : > { %3779 = vmatprep.mubr.msk.bf16.mxu1 %vm3982_vm0, %v3981_v1  ;;  %3778 = vmatpush3.bf16.msra.mxu1 %v991_v40 }
 0x426   : > { %3789 = vmatprep.subr.bf16.mxu1 %v3981_v1 }
 0x4d4   : > { %v870_v8 = vpop.f32.mrf.mxu0 }
 0x4d6   : > { %v3763_v10 = vpop.f32.mrf.mxu0 }
 0x4d8   : > { %v873_v12 = vpop.f32.mrf.mxu0 }
 0x4d9   : > { %v1192_v12 = vunpack.c.l.bf16 %v4100_v3 }
 0x4da   : > { %v3764_v13 = vpop.f32.mrf.mxu0 }
 0x4dc   : > { %v824_v14 = vpop.f32.mrf.mxu1 }
 0x4dd   : > { %v4174_v15 = vadd.f32 %v870_v8, %v824_v14 }
 0x4de   : > { %v3757_v16 = vpop.f32.mrf.mxu1 }
 0x4df   : > { %v3342_v16 = vld [vmem:[%s4850_s5] ss:$0 sm:$0xff] }
 0x4e0   : > { %v827_v17 = vpop.f32.mrf.mxu1 }
 0x4e2   : > { %v3758_v19 = vpop.f32.mrf.mxu1 }
 0x4e4   : > { %v920_v20 = vpop.f32.mrf.mxu1 }
 0x4e5   : > { %v921_v21 = vadd.f32 %v4131_v18, %v920_v20 }
 0x4e6   : > { %v3769_v22 = vpop.f32.mrf.mxu1 }
 0x4e7   : > { %v926_v23 = vsel %vm563_vm2, %v921_v21, -inf }
 0x4e8   : > { %927 = vmax.xlane.f32.xlu1 %v926_v23  ;;  %v923_v24 = vpop.f32.mrf.mxu1 }
 0x4ea   : > { %v3770_v25 = vpop.f32.mrf.mxu1 }
 0x4f9   : > { %1036 = vrot.lane.b32.xlu1 %v4109_v9, %s3990_s26 }
 0x4fd   : > { %1034 = vrot.lane.b32.xlu1 %v4111_v11, %s3991_s27 }
 0x571   : > { %v928_v26 = vpop.xlane.xlu1 %927 }
 0x572   : > { %v929_v27 = vsub.f32 %v921_v21, %v928_v26 }
 0x574   : > { %v930_v28 = vmul.f32 1.442695, %v929_v27  ;;  %v1249_v27 = vld [vmem:[%s4853_s8 + $0x80] sm:$0xff] }
 0x575   : > { %v1037_v35 = vpop.permute.xlu1 %1036 }
 0x576   : > { %3961 = vpow2.f32 %v930_v28  ;;  %v1042_v37 = vsel %vm563_vm2, %v1037_v35, 0  ;;  %v1257_v28 = vld [vmem:[%s4853_s8 + $0xc0] sm:$0xff] }
 0x577   : > { %v1241_v35 = vld [vmem:[%s4853_s8 + $0x40] sm:$0xff] }
 0x579   : > { %v1035_v38 = vpop.permute.xlu1 %1034 }
 0x583   : > { %v3962_v29 = vpop.eup %3961 }
 0x584   : > { %v932_v30 = vsel %vm563_vm2, %v3962_v29, 0.0 }
 0x585   : > { %933 = vadd.xlane.f32.xlu0 %v932_v30  ;;  %v3362_v30 = vcombine.high %v1249_v27, %v1257_v28 }
 0x59b   : > { %938 = vrot.lane.b32.xlu0 %v4109_v9, %s3992_s28 }
 0x60e   : > { %v934_v31 = vpop.xlane.xlu0 %933 }
 0x60f   : > { %3963 = vrcp.f32 %v934_v31  ;;  %v1258_v31 = vld [vmem:[%s4853_s8 + $0xc8] sm:$0xff] }
 0x612   : > { %v939_v32 = vpop.permute.xlu0 %938 }
 0x613   : > { %v944_v33 = vsel %vm627_vm3, %v939_v32, 0  ;;  %v3361_v32 = vcombine.low %v1249_v27, %v1257_v28  ;;  %v1239_v28 = vld [vmem:[%s4853_s8 + $0x30] sm:$0xff] }
 0x614   : > { %3772 = vmatpush3.bf16.msra.mxu0 %v944_v33 }
 0x615   : > { %3783 = vmatprep.subr.bf16.mxu0 %v3981_v1 }
 0x61c   : > { %v3964_v11 = vpop.eup %3963 }
 0x61d   : > { %v936_v34 = vmul.f32 %v3964_v11, %v3962_v29  ;;  %v1250_v29 = vld [vmem:[%s4853_s8 + $0x88] sm:$0xff] }
 0x61e   : > { %v3363_v33 = vcombine.low %v1250_v29, %v1258_v31  ;;  %v3364_v11 = vcombine.high %v1250_v29, %v1258_v31  ;;  %v1247_v29 = vld [vmem:[%s4853_s8 + $0x70] sm:$0xff]  ;;  %v1248_v31 = vld [vmem:[%s4853_s8 + $0x78] sm:$0xff] }
 0x61f   : > { %v937_v36 = vpack.c.bf16 %v936_v34, %v936_v34  ;;  %v1233_v34 = vld [vmem:[%s4853_s8] sm:$0xff] }
 0x620   : > { %v3345_v39 = vcombine.low %v1233_v34, %v1241_v35 }
 0x621   : > { %3774 = vmatmul.mubr.msk.bf16.vlgmr.msra.gmra.mxu0 %vm563_vm2, %v937_v36  ;;  %v1234_v36 = vld [vmem:[%s4853_s8 + $0x8] sm:$0xff] }
 0x622   : > { %3784 = vmatpush3.bf16.xpose.msra.mxu0 %v1042_v37  ;;  %3785 = vmatprep.mubr.msk.bf16.mxu0 %vm3982_vm0, %v3981_v1  ;;  %v3346_v37 = vcombine.high %v1233_v34, %v1241_v35  ;;  %v3357_v35 = vcombine.low %v1239_v28, %v1247_v29 }
 0x623   : > { %3795 = vmatprep.subr.bf16.mxu0 %v3981_v1 }
 0x629   : > { %3786 = vmatmul.mubr.msk.bf16.vlgmr.msra.gmra.mxu0 %vm563_vm2, %v1035_v38  ;;  %v1242_v38 = vld [vmem:[%s4853_s8 + $0x48] sm:$0xff] }
 0x62a   : > { %3797 = vmatprep.mubr.msk.bf16.mxu0 %vm3982_vm0, %v3981_v1  ;;  %v3347_v40 = vcombine.low %v1234_v36, %v1242_v38 }
 0x6e1   : > { %v980_v41 = vpop.f32.mrf.mxu0 }
 0x6e2   : > { %v986_v42 = vpack.c.bf16 %v980_v41, %v980_v41  ;;  %v3348_v41 = vcombine.high %v1234_v36, %v1242_v38  ;;  %v3826_v38 = vld [vmem:[%s4855_s10 + $0xf8] sm:$0xff]  }
 0x6e3   : > { %v3775_v43 = vpop.f32.mrf.mxu0 }
 0x6e4   : > { %3780 = vmatmul.mubr.msk.bf16.vlgmr.msra.gmra.mxu1 %vm563_vm2, %v986_v42  ;;  %v1251_v42 = vld [vmem:[%s4853_s8 + $0x90] sm:$0xff] }
 0x6e5   : > { %v983_v44 = vpop.f32.mrf.mxu0  ;;  %3791 = vmatprep.mubr.msk.bf16.mxu1 %vm3982_vm0, %v3981_v1  ;;  %v1259_v43 = vld [vmem:[%s4853_s8 + $0xd0] sm:$0xff] }
 0x6e6   : > { %v1252_v44 = vld [vmem:[%s4853_s8 + $0x98] sm:$0xff] }
 0x6e7   : > { %v3776_v45 = vpop.f32.mrf.mxu0 }
 0x6e8   : > { %v3994_v45 = vmov 0  }
 0x6e9   : > { %v1078_v46 = vpop.f32.mrf.mxu0 }
 0x6ea   : > { %v1079_v47 = vadd.f32 %v4131_v18, %v1078_v46  ;;  %v3366_v46 = vcombine.high %v1251_v42, %v1259_v43 }
 0x6eb   : > { %v3787_v48 = vpop.f32.mrf.mxu0 }
 0x6ec   : > { %v1084_v49 = vsel %vm563_vm2, %v1079_v47, -inf  ;;  %v3365_v48 = vcombine.low %v1251_v42, %v1259_v43  ;;  %v3830_v42 = vld [vmem:[%s4855_s10 + $0xf0] sm:$0xff]  }
 0x6ed   : > { %1085 = vmax.xlane.f32.xlu0 %v1084_v49  ;;  %v1081_v50 = vpop.f32.mrf.mxu0  ;;  %v3831_v43 = vld [vmem:[%s4855_s10 + $0x30] sm:$0xff]  }
 0x6ef   : > { %v3788_v51 = vpop.f32.mrf.mxu0 }
 0x703   : > { %1096 = vrot.lane.b32.xlu0 %v4109_v9, %s3993_s17  ;;  %v552_v9 = vld [vmem:[%s4849_s4 + $0xc] sm:$0xf] }
 0x704   : > { %v1149_v60 = vsel %vm627_vm3, %v552_v9, 0  ;;  %v1244_v9 = vld [vmem:[%s4853_s8 + $0x58] sm:$0xff] }
 0x705   : > { %3796 = vmatpush3.bf16.msra.mxu0 %v1149_v60 }
 0x706   : > { %1565 = vmatprep.subr.bf16.mxu0 %v3364_v11  ;;  %v3358_v11 = vcombine.high %v1239_v28, %v1247_v29 }
 0x776   : > { %v1086_v52 = vpop.xlane.xlu0 %1085 }
 0x777   : > { %v1087_v53 = vsub.f32 %v1079_v47, %v1086_v52  ;;  %v1260_v47 = vld [vmem:[%s4853_s8 + $0xd8] sm:$0xff] }
 0x778   : > { %v3367_v49 = vcombine.low %v1252_v44, %v1260_v47  ;;  %v3368_v50 = vcombine.high %v1252_v44, %v1260_v47  ;;  %v3832_v44 = vld [vmem:[%s4855_s10 + $0xb0] sm:$0xff]   ;;  %v3835_v47 = vld [vmem:[%s4855_s10 + $0x28] sm:$0xff]  }
 0x779   : > { %v1088_v54 = vmul.f32 1.442695, %v1087_v53 }
 0x77a   : > { %v1097_v55 = vpop.permute.xlu0 %1096 }
 0x77b   : > { %3965 = vpow2.f32 %v1088_v54  ;;  %v1102_v1 = vsel %vm627_vm3, %v1097_v55, 0  ;;  %v3343_v55 = vld [vmem:[%s4851_s6] ss:$0 sm:$0xff] }
 0x77c   : > { %3790 = vmatpush3.bf16.msra.mxu1 %v1102_v1 }
 0x77d   : > { %1524 = vmatprep.subr.bf16.mxu1 %v3362_v30  ;;  %v1240_v30 = vld [vmem:[%s4853_s8 + $0x38] sm:$0xff] }
 0x77e   : > { %v3360_v34 = vcombine.high %v1240_v30, %v1248_v31  ;;  %v3359_v36 = vcombine.low %v1240_v30, %v1248_v31 }
 0x788   : > { %v3966_v56 = vpop.eup %3965 }
 0x789   : > { %v1090_v18 = vsel %vm563_vm2, %v3966_v56, 0.0 }
 0x78a   : > { %1091 = vadd.xlane.f32.xlu1 %v1090_v18 }
 0x7a4   : > { %v1027_v57 = vpop.f32.mrf.mxu1 }
 0x7a5   : > { %v1033_v58 = vadd.f32 %v1027_v57, %v4174_v15  ;;  %v1235_v57 = vld [vmem:[%s4853_s8 + $0x10] sm:$0xff] }
 0x7a6   : > { %v3781_v59 = vpop.f32.mrf.mxu1 }
 0x7a7   : > { %v1236_v59 = vld [vmem:[%s4853_s8 + $0x18] sm:$0xff] }
 0x7a8   : > { %v1030_v61 = vpop.f32.mrf.mxu1 }
 0x7aa   : > { %v3782_v62 = vpop.f32.mrf.mxu1 }
 0x813   : > { %v1092_v63 = vpop.xlane.xlu1 %1091 }
 0x814   : > { %3967 = vrcp.f32 %v1092_v63  ;;  %v3352_v63 = vcombine.high %v1236_v59, %v1244_v9 }
 0x821   : > { %v3968_v0 = vpop.eup %3967 }
 0x822   : > { %v1094_v2 = vmul.f32 %v3968_v0, %v3966_v56  ;;  %v3344_v56 = vld [vmem:[%s4852_s7] ss:$0 sm:$0xff] }
 0x823   : > { %v1253_v0 = vld [vmem:[%s4853_s8 + $0xa0] sm:$0xff] }
 0x824   : > { %v1095_v4 = vpack.c.bf16 %v1094_v2, %v1094_v2  ;;  %v1261_v2 = vld [vmem:[%s4853_s8 + $0xe0] sm:$0xff] }
 0x826   : > { %3792 = vmatmul.mubr.msk.bf16.vlgmr.msra.gmra.mxu1 %vm563_vm2, %v1095_v4  ;;  %v1254_v4 = vld [vmem:[%s4853_s8 + $0xa8] sm:$0xff] }
 0x827   : > { %1525 = vmatpush1.bf16.msra.mxu1 %v3361_v32  ;;  %1544 = vmatprep.mubr.bf16.mxu1 %v3994_v45 }
 0x828   : > { %1526 = vmatprep.subr.bf16.mxu1 %v3346_v37  ;;  %v3825_v37 = vld [vmem:[%s4855_s10 + $0x78] sm:$0xff]  }
 0x82b   : > { %1527 = vmatpush1.bf16.msra.mxu1 %v3345_v39  ;;  %v3827_v39 = vld [vmem:[%s4855_s10 + $0x38] sm:$0xff]  }
 0x82c   : > { %1606 = vmatprep.subr.bf16.mxu1 %v3366_v46  ;;  %v3834_v46 = vld [vmem:[%s4855_s10 + $0xe8] sm:$0xff]  }
 0x8e6   : > { %v1138_v5 = vpop.f32.mrf.mxu1 }
 0x8e7   : > { %v1144_v6 = vpack.c.bf16 %v1138_v5, %v1138_v5  ;;  %v1262_v5 = vld [vmem:[%s4853_s8 + $0xe8] sm:$0xff] }
 0x8e8   : > { %v3793_v7 = vpop.f32.mrf.mxu1 }
 0x8e9   : > { %3798 = vmatmul.mubr.msk.bf16.vlgmr.msra.gmra.mxu0 %vm563_vm2, %v1144_v6  ;;  %v3351_v7 = vcombine.low %v1236_v59, %v1244_v9  ;;  %v3849_v59 = vld [vmem:[%s4855_s10 + $0x48] sm:$0xff]  }
 0x8ea   : > { %v1141_v8 = vpop.f32.mrf.mxu1  ;;  %1566 = vmatpush1.bf16.msra.mxu0 %v3363_v33  ;;  %1585 = vmatprep.mubr.bf16.mxu0 %v3994_v45  ;;  %v3850_v9 = vld [vmem:[%s4855_s10 + $0xc8] sm:$0xff]  }
 0x8eb   : > { %1567 = vmatprep.subr.bf16.mxu0 %v3348_v41  ;;  %v3370_v8 = vcombine.high %v1253_v0, %v1261_v2  ;;  %v3829_v41 = vld [vmem:[%s4855_s10 + $0x70] sm:$0xff]  }
 0x8ec   : > { %v3794_v10 = vpop.f32.mrf.mxu1 }
 0x8ed   : > { %v3372_v10 = vcombine.high %v1254_v4, %v1262_v5 }
 0x8ee   : > { %1568 = vmatpush1.bf16.msra.mxu0 %v3347_v40  ;;  %v3828_v40 = vld [vmem:[%s4855_s10 + $0xb8] sm:$0xff]  }
 0x8ef   : > { %1647 = vmatprep.subr.bf16.mxu0 %v3368_v50  ;;  %v3838_v50 = vld [vmem:[%s4855_s10 + $0xe0] sm:$0xff]  }
 0x9a9   : > { %v1185_v13 = vpop.f32.mrf.mxu0 }
 0x9aa   : > { %v1191_v14 = vadd.f32 %v1185_v13, %v1033_v58  ;;  %v1243_v58 = vld [vmem:[%s4853_s8 + $0x50] sm:$0xff]  ;;  %v1245_v13 = vld [vmem:[%s4853_s8 + $0x60] sm:$0xff] }
 0x9ab   : > { %v3799_v15 = vpop.f32.mrf.mxu0  ;;  %v3350_v62 = vcombine.high %v1235_v57, %v1243_v58  ;;  %v3349_v6 = vcombine.low %v1235_v57, %v1243_v58  ;;  %v3847_v57 = vld [vmem:[%s4855_s10 + $0x10] sm:$0xff]  }
 0x9ac   : > { %v1193_v17 = vadd.f32 %v1192_v12, %v1191_v14  ;;  %v1237_v12 = vld [vmem:[%s4853_s8 + $0x20] sm:$0xff]  ;;  %v1238_v14 = vld [vmem:[%s4853_s8 + $0x28] sm:$0xff]  ;;  %v3848_v58 = vld [vmem:[%s4855_s10 + $0x90] sm:$0xff]  }
 0x9ad   : > { %v1188_v19 = vpop.f32.mrf.mxu0  ;;  %v1246_v15 = vld [vmem:[%s4853_s8 + $0x68] sm:$0xff] }
 0x9ae   : > { %v1201_v20 = vadd.f32 %v3342_v16, %v1193_v17  ;;  %v3369_v16 = vcombine.low %v1253_v0, %v1261_v2  ;;  %v3371_v17 = vcombine.low %v1254_v4, %v1262_v5  ;;  %v3354_v19 = vcombine.high %v1237_v12, %v1245_v13  ;;  %v3854_v0 = vld [vmem:[%s4855_s10 + $0xc0] sm:$0xff]   ;;  %v3857_v5 = vld [vmem:[%s4855_s10 + $0x178] sm:$0xff]  }
 0x9af   : > { %v3800_v21 = vpop.f32.mrf.mxu0  ;;  %v3855_v2 = vld [vmem:[%s4855_s10] sm:$0xff]  }
 0x9b0   : > { %v1204_v22 = vsel %vm502_vm1, %v1201_v20, 0.0  ;;  %v1255_v21 = vld [vmem:[%s4853_s8 + $0xb0] sm:$0xff]  ;;  %v3856_v4 = vld [vmem:[%s4855_s10 + $0x80] sm:$0xff]  }
 0x9b1   : > { %1205 = vadd.xlane.f32.xlu1 %v1204_v22  ;;  %v1263_v22 = vld [vmem:[%s4853_s8 + $0xf0] sm:$0xff] }
 0x9b2   : > { %v3373_v32 = vcombine.low %v1255_v21, %v1263_v22 }
 0xa3a   : > { %v1206_v23 = vpop.xlane.xlu1 %1205 }
 0xa3b   : > { %v1208_v24 = vmul.f32 0.03125, %v1206_v23  ;;  %v1256_v23 = vld [vmem:[%s4853_s8 + $0xb8] sm:$0xff] }
 0xa3d   : > { %v1209_v25 = vsub.f32 %v1201_v20, %v1208_v24  ;;  %v3356_v20 = vcombine.high %v1238_v14, %v1246_v15  ;;  %v1264_v24 = vld [vmem:[%s4853_s8 + $0xf8] sm:$0xff] }
 0xa3e   : > { %v3376_v27 = vcombine.high %v1256_v23, %v1264_v24  ;;  %v3375_v33 = vcombine.low %v1256_v23, %v1264_v24 }
 0xa3f   : > { %v1210_v26 = vmul.f32 %v1209_v25, %v1209_v25 }
 0xa41   : > { %v1211_v3 = vsel %vm502_vm1, %v1210_v26, 0.0  ;;  %v3355_v26 = vcombine.low %v1238_v14, %v1246_v15 }
 0xa42   : > { %1212 = vadd.xlane.f32.xlu1 %v1211_v3  ;;  %v3374_v3 = vcombine.high %v1255_v21, %v1263_v22 }
 0xacb   : > { %v1213_v51 = vpop.xlane.xlu1 %1212 }
 0xacc   : > { %v1214_v52 = vmul.f32 0.03125, %v1213_v51  ;;  %v3839_v51 = vld [vmem:[%s4855_s10 + $0x20] sm:$0xff]  }
 0xace   : > { %v1215_v53 = vadd.f32 1e-05, %v1214_v52  ;;  %v3840_v52 = vld [vmem:[%s4855_s10 + $0xa0] sm:$0xff]  }
 0xad0   : > { %3969 = vrsqrt.f32 %v1215_v53  ;;  %v3841_v53 = vld [vmem:[%s4855_s10 + $0x58] sm:$0xff]  }
 0xadd   : > { %v3970_v54 = vpop.eup %3969 }
 0xade   : > { %v1217_v1 = vmul.f32 %v3970_v54, %v1209_v25  ;;  %v3353_v25 = vcombine.low %v1237_v12, %v1245_v13  ;;  %v3842_v54 = vld [vmem:[%s4855_s10 + $0xd8] sm:$0xff]   ;;  %v4458_v12 = vld [vmem:[%s4854_s9 + $0x8] sm:$0xff] }
 0xae0   : > { %v1224_v18 = vmul.f32 %v3343_v55, %v1217_v1  ;;  %v3843_v55 = vld [vmem:[%s4855_s10 + $0x18] sm:$0xff]  }
 0xae1   : > { %v3844_v1 = vld [vmem:[%s4855_s10 + $0x98] sm:$0xff]  }
 0xae2   : > { %v4274_v60 = vadd.f32 %v3344_v56, %v1224_v18  ;;  %v3845_v56 = vld [vmem:[%s4855_s10 + $0x50] sm:$0xff]  }
 0xae3   : > { %v3846_v18 = vld [vmem:[%s4855_s10 + $0xd0] sm:$0xff]  }
 0xae4   : > { %v4278_v61 = vpack.c.bf16 %v4274_v60, %v4274_v60 }
 0xae6   : > { %3377 = vmatmul.mubr.msk.bf16.vlgmr.msra.gmra.mxu1 %vm502_vm1, %v4278_v61  ;;  %3378 = vmatmul.mubr.msk.bf16.vlgmr.msra.gmra.mxu0 %vm502_vm1, %v4278_v61 }
 0xae7   : > { %1607 = vmatpush1.bf16.msra.mxu1 %v3365_v48  ;;  %1648 = vmatpush1.bf16.msra.mxu0 %v3367_v49  ;;  %v3836_v48 = vld [vmem:[%s4855_s10 + $0xa8] sm:$0xff]   ;;  %v3837_v49 = vld [vmem:[%s4855_s10 + $0x60] sm:$0xff]  }
 0xae8   : > { %1608 = vmatprep.subr.bf16.mxu1 %v3350_v62  ;;  %1649 = vmatprep.subr.bf16.mxu0 %v3352_v63  ;;  %v3852_v62 = vld [vmem:[%s4855_s10 + $0x88] sm:$0xff]   ;;  %v3853_v63 = vld [vmem:[%s4855_s10 + $0x40] sm:$0xff]  }
 0xae9   : > { %1626 = vmatprep.mubr.bf16.mxu1 %v3994_v45  ;;  %1667 = vmatprep.mubr.bf16.mxu0 %v3994_v45 }
 0xaeb   : > { %1609 = vmatpush1.bf16.msra.mxu1 %v3349_v6  ;;  %1650 = vmatpush1.bf16.msra.mxu0 %v3351_v7  ;;  %v3858_v6 = vld [vmem:[%s4855_s10 + $0x1f8] sm:$0xff]   ;;  %v1269_v7 = vlaneseq }
 0xaec   : > { %1688 = vmatprep.subr.bf16.mxu1 %v3370_v8  ;;  %1729 = vmatprep.subr.bf16.mxu0 %v3372_v10 }
 0xaed   : > { %v4452_v8 = vshrl.u32 %v1269_v7, 7 }
 0xaee   : > { %3379 = vmatmul.mubr.msk.bf16.vlgmr.msra.gmra.mxu1 %vm502_vm1, %v4278_v61  ;;  %3380 = vmatmul.mubr.msk.bf16.vlgmr.msra.gmra.mxu0 %vm502_vm1, %v4278_v61 }
 0xaef   : > { %1689 = vmatpush1.bf16.msra.mxu1 %v3369_v16  ;;  %1730 = vmatpush1.bf16.msra.mxu0 %v3371_v17  ;;  %v1295_v10 = vsub.s32 6, %v4452_v8  ;;  %v1271_v14 = vsub.s32 0, %v4452_v8  ;;  %v1279_v15 = vsub.s32 2, %v4452_v8  ;;  %v4470_v16 = vld [vmem:[%s4854_s9] sm:$0xff]  ;;  %v1275_v17 = vsub.s32 1, %v4452_v8 }
 0xaf0   : > { %1690 = vmatprep.subr.bf16.mxu1 %v3354_v19  ;;  %1731 = vmatprep.subr.bf16.mxu0 %v3356_v20  ;;  %v1283_v19 = vsub.s32 3, %v4452_v8  ;;  %v1291_v31 = vsub.s32 5, %v4452_v8 }
 0xaf1   : > { %1708 = vmatprep.mubr.bf16.mxu1 %v3994_v45  ;;  %1749 = vmatprep.mubr.bf16.mxu0 %v3994_v45  ;;  %v4463_v13 = vrot.slane %v4458_v12, %v1295_v10  ;;  %v1272_v20 = vrot.slane %v4470_v16, %v1271_v14  ;;  %v1280_v21 = vrot.slane %v4470_v16, %v1279_v15 }
 0xaf2   : > { %v1276_v22 = vrot.slane %v4470_v16, %v1275_v17  ;;  %v1284_v23 = vrot.slane %v4470_v16, %v1283_v19 }
 0xaf3   : > { %1691 = vmatpush1.bf16.msra.mxu1 %v3353_v25  ;;  %1732 = vmatpush1.bf16.msra.mxu0 %v3355_v26 }
 0xaf4   : > { %1770 = vmatprep.subr.bf16.mxu1 %v3374_v3  ;;  %1811 = vmatprep.subr.bf16.mxu0 %v3376_v27 }
 0xaf6   : > { %3381 = vmatmul.mubr.msk.bf16.vlgmr.msra.gmra.mxu1 %vm502_vm1, %v4278_v61  ;;  %3382 = vmatmul.mubr.msk.bf16.vlgmr.msra.gmra.mxu0 %vm502_vm1, %v4278_v61 }
 0xaf7   : > { %1771 = vmatpush1.bf16.msra.mxu1 %v3373_v32  ;;  %1812 = vmatpush1.bf16.msra.mxu0 %v3375_v33  ;;  %v1299_v32 = vsub.s32 7, %v4452_v8 }
 0xaf8   : > { %1772 = vmatprep.subr.bf16.mxu1 %v3358_v11  ;;  %1813 = vmatprep.subr.bf16.mxu0 %v3360_v34 }
 0xaf9   : > { %1790 = vmatprep.mubr.bf16.mxu1 %v3994_v45  ;;  %1831 = vmatprep.mubr.bf16.mxu0 %v3994_v45  ;;  %v3833_v45 = vld [vmem:[%s4855_s10 + $0x68] sm:$0xff]  }
 0xafb   : > { %1773 = vmatpush1.bf16.msra.mxu1 %v3357_v35  ;;  %1814 = vmatpush1.bf16.msra.mxu0 %v3359_v36 }
 0xafc   : > { %3545 = vmatprep.subr.bf16.mxu1 %v3825_v37  ;;  %3567 = vmatprep.subr.bf16.mxu0 %v3826_v38 }
 0xafe   : > { %3383 = vmatmul.mubr.msk.bf16.vlgmr.msra.gmra.mxu1 %vm502_vm1, %v4278_v61  ;;  %3384 = vmatmul.mubr.msk.bf16.vlgmr.msra.gmra.mxu0 %vm502_vm1, %v4278_v61  ;;  %v3851_v61 = vld [vmem:[%s4855_s10 + $0x8] sm:$0xff]  }
 0xaff   : > { %3546 = vmatpush3.bf16.msra.mxu1 %v3827_v39  ;;  %3568 = vmatpush3.bf16.msra.mxu0 %v3828_v40 }
 0xb00   : > { %3547 = vmatprep.subr.bf16.mxu1 %v3829_v41  ;;  %3569 = vmatprep.subr.bf16.mxu0 %v3830_v42  ;;  %v1292_v42 = vrot.slane %v4470_v16, %v1291_v31 }
 0xb03   : > { %3548 = vmatpush3.bf16.msra.mxu1 %v3831_v43  ;;  %3570 = vmatpush3.bf16.msra.mxu0 %v3832_v44  ;;  %v1300_v43 = vrot.slane %v4470_v16, %v1299_v32  ;;  %v3859_v44 = vld [vmem:[%s4855_s10 + $0x138] sm:$0xff]  }
 0xb04   : > { %3549 = vmatprep.subr.bf16.mxu1 %v3833_v45  ;;  %3571 = vmatprep.subr.bf16.mxu0 %v3834_v46  ;;  %v3860_v45 = vld [vmem:[%s4855_s10 + $0x1b8] sm:$0xff]  }
 0xb07   : > { %3550 = vmatpush3.bf16.msra.mxu1 %v3835_v47  ;;  %3572 = vmatpush3.bf16.msra.mxu0 %v3836_v48 }
 0xb08   : > { %3551 = vmatprep.subr.bf16.mxu1 %v3837_v49  ;;  %3573 = vmatprep.subr.bf16.mxu0 %v3838_v50  ;;  %v3861_v50 = vld [vmem:[%s4855_s10 + $0x170] sm:$0xff]  }
 0xb0b   : > { %3552 = vmatpush3.bf16.msra.mxu1 %v3839_v51  ;;  %3574 = vmatpush3.bf16.msra.mxu0 %v3840_v52  ;;  %v3862_v51 = vld [vmem:[%s4855_s10 + $0x1f0] sm:$0xff]  }
 0xb0c   : > { %3553 = vmatprep.subr.bf16.mxu1 %v3841_v53  ;;  %3575 = vmatprep.subr.bf16.mxu0 %v3842_v54 }
 0xb0f   : > { %3554 = vmatpush3.bf16.msra.mxu1 %v3843_v55  ;;  %3576 = vmatpush3.bf16.msra.mxu0 %v3844_v1  ;;  %v3863_v1 = vld [vmem:[%s4855_s10 + $0x130] sm:$0xff]  }
 0xb10   : > { %3555 = vmatprep.subr.bf16.mxu1 %v3845_v56  ;;  %3577 = vmatprep.subr.bf16.mxu0 %v3846_v18  ;;  %v3864_v56 = vld [vmem:[%s4855_s10 + $0x1b0] sm:$0xff]  }
 0xb13   : > { %3556 = vmatpush3.bf16.msra.mxu1 %v3847_v57  ;;  %3578 = vmatpush3.bf16.msra.mxu0 %v3848_v58  ;;  %v3865_v58 = vld [vmem:[%s4855_s10 + $0x168] sm:$0xff]  }
 0xb14   : > { %3557 = vmatprep.subr.bf16.mxu1 %v3849_v59  ;;  %3579 = vmatprep.subr.bf16.mxu0 %v3850_v9  ;;  %v3866_v59 = vld [vmem:[%s4855_s10 + $0x1e8] sm:$0xff]  }
 0xb17   : > { %3558 = vmatpush3.bf16.msra.mxu1 %v3851_v61  ;;  %3580 = vmatpush3.bf16.msra.mxu0 %v3852_v62 }
 0xb18   : > { %3559 = vmatprep.subr.bf16.mxu1 %v3853_v63  ;;  %3581 = vmatprep.subr.bf16.mxu0 %v3854_v0 }
 0xb1b   : > { %3560 = vmatpush3.bf16.msra.mxu1 %v3855_v2  ;;  %3582 = vmatpush3.bf16.msra.mxu0 %v3856_v4  ;;  %v3867_v4 = vld [vmem:[%s4855_s10 + $0x128] sm:$0xff]  }
 0xb1c   : > { %3589 = vmatprep.subr.bf16.mxu1 %v3857_v5  ;;  %3611 = vmatprep.subr.bf16.mxu0 %v3858_v6  ;;  %v3868_v5 = vld [vmem:[%s4855_s10 + $0x1a8] sm:$0xff]  }
 0xba6   : > { %v1546_v24 = vpop.f32.mrf.mxu1  ;;  %v1587_v25 = vpop.f32.mrf.mxu0 }
 0xba7   : > { %v1547_v26 = vadd.f32 %v1546_v24, %v1272_v20  ;;  %v1588_v3 = vadd.f32 %v1587_v25, %v1280_v21  ;;  %v3869_v20 = vld [vmem:[%s4855_s10 + $0x160] sm:$0xff]   ;;  %v1287_v24 = vsub.s32 4, %v4452_v8 }
 0xba8   : > { %v1548_v27 = vpop.f32.mrf.mxu1  ;;  %v1589_v28 = vpop.f32.mrf.mxu0  ;;  %v3870_v21 = vld [vmem:[%s4855_s10 + $0x1e0] sm:$0xff]  }
 0xba9   : > { %v1549_v29 = vadd.f32 %v1548_v27, %v1276_v22  ;;  %v1590_v30 = vadd.f32 %v1589_v28, %v1284_v23  ;;  %v1840_v33 = vmax.f32 %v1547_v26, 0.0  ;;  %v1842_v11 = vmax.f32 %v1588_v3, 0.0  ;;  %v3871_v25 = vld [vmem:[%s4855_s10 + $0x120] sm:$0xff]   ;;  %v3873_v28 = vld [vmem:[%s4855_s10 + $0x158] sm:$0xff]  }
 0xbaa   : > { %v1550_v34 = vpop.f32.mrf.mxu1  ;;  %v1591_v35 = vpop.f32.mrf.mxu0  ;;  %v3872_v26 = vld [vmem:[%s4855_s10 + $0x1a0] sm:$0xff]  }
 0xbab   : > { %v1841_v36 = vmax.f32 %v1549_v29, 0.0  ;;  %v1843_v37 = vmax.f32 %v1590_v30, 0.0  ;;  %v1856_v46 = vpack.c.bf16 %v1840_v33, %v1840_v33  ;;  %v1858_v47 = vpack.c.bf16 %v1842_v11, %v1842_v11  ;;  %v3874_v29 = vld [vmem:[%s4855_s10 + $0x1d8] sm:$0xff]  }
 0xbac   : > { %v1551_v38 = vpop.f32.mrf.mxu1  ;;  %v1592_v39 = vpop.f32.mrf.mxu0  ;;  %v1320_v30 = vrot.slane %v4458_v12, %v1287_v24  ;;  %v3875_v34 = vld [vmem:[%s4855_s10 + $0x118] sm:$0xff]  }
 0xbad   : > { %v1857_v40 = vpack.c.bf16 %v1841_v36, %v1841_v36  ;;  %v1859_v41 = vpack.c.bf16 %v1843_v37, %v1843_v37  ;;  %v3876_v35 = vld [vmem:[%s4855_s10 + $0x198] sm:$0xff]   ;;  %v3877_v38 = vld [vmem:[%s4855_s10 + $0x150] sm:$0xff]  }
 0xbae   : > { %v4500_v48 = vpop.f32.mrf.mxu1  ;;  %v4502_v49 = vpop.f32.mrf.mxu0  ;;  %v3878_v39 = vld [vmem:[%s4855_s10 + $0x1d0] sm:$0xff]  }
 0xbaf   : > { %2935 = vmatprep.mubr.bf16.mxu1 %v1857_v40  ;;  %2975 = vmatprep.mubr.bf16.mxu0 %v1859_v41 }
 0xbb0   : > { %v1630_v52 = vpop.f32.mrf.mxu1  ;;  %v1671_v53 = vpop.f32.mrf.mxu0  ;;  %2936 = vmatmul.mubr.bf16.vlgmr.msra.gmra.mxu1 %v1856_v46  ;;  %2976 = vmatmul.mubr.bf16.vlgmr.msra.gmra.mxu0 %v1858_v47  ;;  %v1288_v46 = vrot.slane %v4470_v16, %v1287_v24 }
 0xbb1   : > { %v1631_v54 = vadd.f32 %v1630_v52, %v1292_v42  ;;  %v1672_v55 = vadd.f32 %v1671_v53, %v1300_v43  ;;  %3590 = vmatpush3.bf16.msra.mxu1 %v3859_v44  ;;  %3612 = vmatpush3.bf16.msra.mxu0 %v3860_v45  ;;  %v3879_v44 = vld [vmem:[%s4855_s10 + $0x110] sm:$0xff]   ;;  %v3882_v52 = vld [vmem:[%s4855_s10 + $0x1c8] sm:$0xff]   ;;  %v1308_v53 = vrot.slane %v4458_v12, %v1275_v17 }
 0xbb2   : > { %v1632_v18 = vpop.f32.mrf.mxu1  ;;  %v1673_v57 = vpop.f32.mrf.mxu0  ;;  %3591 = vmatprep.subr.bf16.mxu1 %v3861_v50  ;;  %3613 = vmatprep.subr.bf16.mxu0 %v3862_v51  ;;  %v3880_v45 = vld [vmem:[%s4855_s10 + $0x190] sm:$0xff]   ;;  %v3881_v51 = vld [vmem:[%s4855_s10 + $0x148] sm:$0xff]  }
 0xbb3   : > { %v1845_v9 = vmax.f32 %v1631_v54, 0.0  ;;  %v1847_v61 = vmax.f32 %v1672_v55, 0.0  ;;  %v3883_v55 = vld [vmem:[%s4855_s10 + $0x108] sm:$0xff]   ;;  %v3886_v18 = vld [vmem:[%s4855_s10 + $0x1c0] sm:$0xff]  }
 0xbb4   : > { %v1633_v62 = vpop.f32.mrf.mxu1  ;;  %v1674_v63 = vpop.f32.mrf.mxu0 }
 0xbb5   : > { %v1861_v0 = vpack.c.bf16 %v1845_v9, %v1845_v9  ;;  %v1863_v2 = vpack.c.bf16 %v1847_v61, %v1847_v61  ;;  %3592 = vmatpush3.bf16.msra.mxu1 %v3863_v1  ;;  %3614 = vmatpush3.bf16.msra.mxu0 %v3864_v56  ;;  %v3884_v1 = vld [vmem:[%s4855_s10 + $0x188] sm:$0xff]   ;;  %v1629_v56 = vadd.f32 %v4500_v48, %v1288_v46  ;;  %v3887_v48 = vld [vmem:[%s4855_s10 + $0x100] sm:$0xff]   ;;  %v3889_v61 = vld [vmem:[%s4855_s10 + $0x278] sm:$0xff]  }
 0xbb6   : > { %v4528_v6 = vpop.f32.mrf.mxu1  ;;  %v4530_v7 = vpop.f32.mrf.mxu0  ;;  %3593 = vmatprep.subr.bf16.mxu1 %v3865_v58  ;;  %3615 = vmatprep.subr.bf16.mxu0 %v3866_v59  ;;  %v3890_v62 = vld [vmem:[%s4855_s10 + $0x2f8] sm:$0xff]   ;;  %v1304_v46 = vrot.slane %v4458_v12, %v1271_v14  ;;  %v1324_v14 = vrot.slane %v4458_v12, %v1291_v31  ;;  %v3917_v31 = vld [vmem:[%s4855_s10 + $0x240] sm:$0xff]  }
 0xbb7   : > { %3015 = vmatprep.mubr.bf16.mxu1 %v1861_v0  ;;  %3055 = vmatprep.mubr.bf16.mxu0 %v1863_v2  ;;  %v1844_v59 = vmax.f32 %v1629_v56, 0.0  ;;  %v3891_v2 = vld [vmem:[%s4855_s10 + $0x238] sm:$0xff]  }
 0xbb8   : > { %v1712_v22 = vpop.f32.mrf.mxu1  ;;  %v1753_v23 = vpop.f32.mrf.mxu0 }
 0xbb9   : > { %3594 = vmatpush3.bf16.msra.mxu1 %v3867_v4  ;;  %3616 = vmatpush3.bf16.msra.mxu0 %v3868_v5  ;;  %v1713_v57 = vadd.f32 %v1712_v22, %v1308_v53  ;;  %v1860_v4 = vpack.c.bf16 %v1844_v59, %v1844_v59  ;;  %v3893_v22 = vld [vmem:[%s4855_s10 + $0x270] sm:$0xff]   ;;  %v3915_v53 = vld [vmem:[%s4855_s10 + $0x208] sm:$0xff]  }
 0xbba   : > { %v1714_v3 = vpop.f32.mrf.mxu1  ;;  %v1755_v27 = vpop.f32.mrf.mxu0  ;;  %3595 = vmatprep.subr.bf16.mxu1 %v3869_v20  ;;  %3617 = vmatprep.subr.bf16.mxu0 %v3870_v21  ;;  %v3892_v20 = vld [vmem:[%s4855_s10 + $0x2b8] sm:$0xff]  }
 0xbbb   : > { %v1849_v63 = vmax.f32 %v1713_v57, 0.0  ;;  %v3897_v3 = vld [vmem:[%s4855_s10 + $0x268] sm:$0xff]  }
 0xbbc   : > { %v1715_v33 = vpop.f32.mrf.mxu1  ;;  %v1756_v11 = vpop.f32.mrf.mxu0  ;;  %v3898_v27 = vld [vmem:[%s4855_s10 + $0x2e8] sm:$0xff]  }
 0xbbd   : > { %3596 = vmatpush3.bf16.msra.mxu1 %v3871_v25  ;;  %3618 = vmatpush3.bf16.msra.mxu0 %v3872_v26  ;;  %v1865_v21 = vpack.c.bf16 %v1849_v63, %v1849_v63  ;;  %v3895_v25 = vld [vmem:[%s4855_s10 + $0x230] sm:$0xff]   ;;  %v3902_v33 = vld [vmem:[%s4855_s10 + $0x2e0] sm:$0xff]   ;;  %v3930_v63 = vld [vmem:[%s4855_s10 + $0x3e8] sm:$0xff]  }
 0xbbe   : > { %v1792_v36 = vpop.f32.mrf.mxu1  ;;  %v1833_v37 = vpop.f32.mrf.mxu0  ;;  %3597 = vmatprep.subr.bf16.mxu1 %v3873_v28  ;;  %3619 = vmatprep.subr.bf16.mxu0 %v3874_v29  ;;  %v3896_v26 = vld [vmem:[%s4855_s10 + $0x2b0] sm:$0xff]   ;;  %v3899_v28 = vld [vmem:[%s4855_s10 + $0x228] sm:$0xff]   ;;  %v3903_v11 = vld [vmem:[%s4855_s10 + $0x220] sm:$0xff]  }
 0xbbf   : > { %v4564_v40 = vadd.f32 %v1792_v36, %v1320_v30  ;;  %v4567_v41 = vadd.f32 %v1833_v37, %v4463_v13  ;;  %v1296_v13 = vrot.slane %v4470_v16, %v1295_v10  ;;  %v1316_v10 = vrot.slane %v4458_v12, %v1283_v19  ;;  %v3885_v19 = vld [vmem:[%s4855_s10 + $0x140] sm:$0xff]   ;;  %v3900_v29 = vld [vmem:[%s4855_s10 + $0x2a8] sm:$0xff]   ;;  %v3906_v36 = vld [vmem:[%s4855_s10 + $0x2d8] sm:$0xff]  }
 0xbc0   : > { %v4569_v42 = vpop.f32.mrf.mxu1  ;;  %v4571_v43 = vpop.f32.mrf.mxu0  ;;  %v3901_v30 = vld [vmem:[%s4855_s10 + $0x260] sm:$0xff]   ;;  %v3907_v37 = vld [vmem:[%s4855_s10 + $0x218] sm:$0xff]  }
 0xbc1   : > { %3598 = vmatpush3.bf16.msra.mxu1 %v3875_v34  ;;  %3620 = vmatpush3.bf16.msra.mxu0 %v3876_v35  ;;  %v1670_v17 = vadd.f32 %v4502_v49, %v1296_v13  ;;  %v1754_v58 = vadd.f32 %v1753_v23, %v1316_v10  ;;  %v3888_v49 = vld [vmem:[%s4855_s10 + $0x180] sm:$0xff]   ;;  %v3894_v23 = vld [vmem:[%s4855_s10 + $0x2f0] sm:$0xff]   ;;  %v3905_v35 = vld [vmem:[%s4855_s10 + $0x258] sm:$0xff]  }
 0xbc2   : > { %v1796_v47 = vpop.f32.mrf.mxu1  ;;  %v1837_v50 = vpop.f32.mrf.mxu0  ;;  %3599 = vmatprep.subr.bf16.mxu1 %v3877_v38  ;;  %3621 = vmatprep.subr.bf16.mxu0 %v3878_v39  ;;  %v3904_v34 = vld [vmem:[%s4855_s10 + $0x2a0] sm:$0xff]   ;;  %v3908_v38 = vld [vmem:[%s4855_s10 + $0x298] sm:$0xff]   ;;  %v3909_v39 = vld [vmem:[%s4855_s10 + $0x250] sm:$0xff]  }
 0xbc3   : > { %v1846_v9 = vmax.f32 %v1670_v17, 0.0  ;;  %v1851_v0 = vmax.f32 %v1754_v58, 0.0  ;;  %v3912_v13 = vld [vmem:[%s4855_s10 + $0x290] sm:$0xff]   ;;  %v3913_v47 = vld [vmem:[%s4855_s10 + $0x248] sm:$0xff]   ;;  %v1312_v50 = vrot.slane %v4458_v12, %v1279_v15  ;;  %v1711_v15 = vadd.f32 %v4528_v6, %v1304_v46  ;;  %v3923_v17 = vld [vmem:[%s4855_s10 + $0x338] sm:$0xff]  }
 0xbc4   : > { %v1797_v16 = vpop.f32.mrf.mxu1  ;;  %v1838_v54 = vpop.f32.mrf.mxu0  ;;  %v3916_v10 = vld [vmem:[%s4855_s10 + $0x288] sm:$0xff]   ;;  %v3925_v58 = vld [vmem:[%s4855_s10 + $0x370] sm:$0xff]  }
 0xbc5   : > { %3600 = vmatpush3.bf16.msra.mxu1 %v3879_v44  ;;  %3622 = vmatpush3.bf16.msra.mxu0 %v3880_v45  ;;  %v1862_v5 = vpack.c.bf16 %v1846_v9, %v1846_v9  ;;  %v1867_v24 = vpack.c.bf16 %v1851_v0, %v1851_v0  ;;  %v3910_v44 = vld [vmem:[%s4855_s10 + $0x2d0] sm:$0xff]   ;;  %v1752_v8 = vadd.f32 %v4530_v7, %v1312_v50  ;;  %v3919_v16 = vld [vmem:[%s4855_s10 + $0x200] sm:$0xff]   ;;  %v1848_v54 = vmax.f32 %v1711_v15, 0.0  ;;  %v3931_v0 = vld [vmem:[%s4855_s10 + $0x328] sm:$0xff]  }
 0xbc6   : > { %3601 = vmatprep.subr.bf16.mxu1 %v3881_v51  ;;  %3623 = vmatprep.subr.bf16.mxu0 %v3882_v52  ;;  %v3911_v45 = vld [vmem:[%s4855_s10 + $0x210] sm:$0xff]   ;;  %v3914_v51 = vld [vmem:[%s4855_s10 + $0x2c8] sm:$0xff]   ;;  %v1332_v52 = vrot.slane %v4458_v12, %v1299_v32  ;;  %v3918_v12 = vld [vmem:[%s4855_s10 + $0x2c0] sm:$0xff]   ;;  %v1795_v32 = vadd.f32 %v4569_v42, %v1324_v14 }
 0xbc7   : > { %v3920_v7 = vld [vmem:[%s4855_s10 + $0x280] sm:$0xff]   ;;  %v3922_v42 = vld [vmem:[%s4855_s10 + $0x3f8] sm:$0xff]   ;;  %v3927_v9 = vld [vmem:[%s4855_s10 + $0x330] sm:$0xff]  }
 0xbc8   : > { %v1836_v6 = vadd.f32 %v4571_v43, %v1332_v52  ;;  %v1853_v43 = vmax.f32 %v1795_v32, 0.0 }
 0xbc9   : > { %3602 = vmatpush3.bf16.msra.mxu1 %v3883_v55  ;;  %3624 = vmatpush3.bf16.msra.mxu0 %v3884_v1  ;;  %v3921_v55 = vld [vmem:[%s4855_s10 + $0x378] sm:$0xff]   ;;  %v1850_v1 = vmax.f32 %v1752_v8, 0.0 }
 0xbca   : > { %3603 = vmatprep.subr.bf16.mxu1 %v3885_v19  ;;  %3625 = vmatprep.subr.bf16.mxu0 %v3886_v18  ;;  %v1855_v56 = vmax.f32 %v1836_v6, 0.0  ;;  %v1864_v19 = vpack.c.bf16 %v1848_v54, %v1848_v54  ;;  %v3924_v18 = vld [vmem:[%s4855_s10 + $0x3b8] sm:$0xff]  }
 0xbcb   : > { %v1866_v57 = vpack.c.bf16 %v1850_v1, %v1850_v1 }
 0xbcc   : > { %v1871_v59 = vpack.c.bf16 %v1855_v56, %v1855_v56 }
 0xbcd   : > { %3604 = vmatpush3.bf16.msra.mxu1 %v3887_v48  ;;  %3626 = vmatpush3.bf16.msra.mxu0 %v3888_v49  ;;  %v1869_v48 = vpack.c.bf16 %v1853_v43, %v1853_v43  ;;  %v3926_v49 = vld [vmem:[%s4855_s10 + $0x3f0] sm:$0xff]  }
 0xbce   : > { %3633 = vmatprep.subr.bf16.mxu1 %v3889_v61  ;;  %3655 = vmatprep.subr.bf16.mxu0 %v3890_v62  ;;  %v3928_v61 = vld [vmem:[%s4855_s10 + $0x3b0] sm:$0xff]   ;;  %v3929_v62 = vld [vmem:[%s4855_s10 + $0x368] sm:$0xff]  }
 0xbd0   : > { %3016 = vmatmul.mubr.bf16.vlgmr.msra.gmra.mxu1 %v1860_v4  ;;  %3056 = vmatmul.mubr.bf16.vlgmr.msra.gmra.mxu0 %v1862_v5  ;;  %v3933_v4 = vld [vmem:[%s4855_s10 + $0x360] sm:$0xff]  }
 0xbd1   : > { %3634 = vmatpush3.bf16.msra.mxu1 %v3891_v2  ;;  %3095 = vmatprep.mubr.bf16.mxu1 %v1865_v21  ;;  %v3932_v2 = vld [vmem:[%s4855_s10 + $0x3a8] sm:$0xff]   ;;  %v3934_v5 = vld [vmem:[%s4855_s10 + $0x3e0] sm:$0xff]  }
 0xbd2   : > { %3656 = vmatpush3.bf16.msra.mxu0 %v3892_v20  ;;  %3135 = vmatprep.mubr.bf16.mxu0 %v1867_v24  ;;  %v3935_v20 = vld [vmem:[%s4855_s10 + $0x320] sm:$0xff]   ;;  %v3939_v24 = vld [vmem:[%s4855_s10 + $0x318] sm:$0xff]  }
 0xbd3   : > { %3635 = vmatprep.subr.bf16.mxu1 %v3893_v22  ;;  %3657 = vmatprep.subr.bf16.mxu0 %v3894_v23  ;;  %v3936_v21 = vld [vmem:[%s4855_s10 + $0x3a0] sm:$0xff]   ;;  %v3937_v22 = vld [vmem:[%s4855_s10 + $0x358] sm:$0xff]  }
 0xbd4   : > { %v3938_v23 = vld [vmem:[%s4855_s10 + $0x3d8] sm:$0xff]  }
 0xbd5   : > { %3636 = vmatpush3.bf16.msra.mxu1 %v3895_v25  ;;  %v3940_v25 = vld [vmem:[%s4855_s10 + $0x398] sm:$0xff]  }
 0xbd6   : > { %3658 = vmatpush3.bf16.msra.mxu0 %v3896_v26  ;;  %3637 = vmatprep.subr.bf16.mxu1 %v3897_v3  ;;  %v3941_v26 = vld [vmem:[%s4855_s10 + $0x350] sm:$0xff]  }
 0xbd7   : > { %3659 = vmatprep.subr.bf16.mxu0 %v3898_v27  ;;  %v3942_v3 = vld [vmem:[%s4855_s10 + $0x3d0] sm:$0xff]  }
 0xbd8   : > { %v3943_v27 = vld [vmem:[%s4855_s10 + $0x310] sm:$0xff]  }
 0xbd9   : > { %3638 = vmatpush3.bf16.msra.mxu1 %v3899_v28  ;;  %v3944_v28 = vld [vmem:[%s4855_s10 + $0x390] sm:$0xff]  }
 0xbda   : > { %3660 = vmatpush3.bf16.msra.mxu0 %v3900_v29  ;;  %3639 = vmatprep.subr.bf16.mxu1 %v3901_v30  ;;  %v3945_v29 = vld [vmem:[%s4855_s10 + $0x348] sm:$0xff]  }
 0xbdb   : > { %3661 = vmatprep.subr.bf16.mxu0 %v3902_v33  ;;  %v3946_v30 = vld [vmem:[%s4855_s10 + $0x3c8] sm:$0xff]  }
 0xbdc   : > { %v3947_v33 = vld [vmem:[%s4855_s10 + $0x308] sm:$0xff]  }
 0xbdd   : > { %3640 = vmatpush3.bf16.msra.mxu1 %v3903_v11  ;;  %v3948_v11 = vld [vmem:[%s4855_s10 + $0x388] sm:$0xff]  }
 0xbde   : > { %3662 = vmatpush3.bf16.msra.mxu0 %v3904_v34  ;;  %3641 = vmatprep.subr.bf16.mxu1 %v3905_v35  ;;  %v3949_v34 = vld [vmem:[%s4855_s10 + $0x340] sm:$0xff]  }
 0xbdf   : > { %3663 = vmatprep.subr.bf16.mxu0 %v3906_v36  ;;  %v3950_v35 = vld [vmem:[%s4855_s10 + $0x3c0] sm:$0xff]  }
 0xbe0   : > { %v3951_v36 = vld [vmem:[%s4855_s10 + $0x300] sm:$0xff]  }
 0xbe1   : > { %3642 = vmatpush3.bf16.msra.mxu1 %v3907_v37  ;;  %v1852_v37 = vmax.f32 %v4564_v40, 0.0  ;;  %v3385_v40 = vld [vmem:[%s4856_s11] ss:$0 sm:$0xff] }
 0xbe2   : > { %3664 = vmatpush3.bf16.msra.mxu0 %v3908_v38  ;;  %3643 = vmatprep.subr.bf16.mxu1 %v3909_v39  ;;  %v3952_v38 = vld [vmem:[%s4855_s10 + $0x380] sm:$0xff]   ;;  %v1854_v39 = vmax.f32 %v4567_v41, 0.0 }
 0xbe3   : > { %3665 = vmatprep.subr.bf16.mxu0 %v3910_v44  ;;  %v1868_v44 = vpack.c.bf16 %v1852_v37, %v1852_v37 }
 0xbe5   : > { %3644 = vmatpush3.bf16.msra.mxu1 %v3911_v45  ;;  %v1870_v45 = vpack.c.bf16 %v1854_v39, %v1854_v39 }
 0xbe6   : > { %3666 = vmatpush3.bf16.msra.mxu0 %v3912_v13  ;;  %3645 = vmatprep.subr.bf16.mxu1 %v3913_v47 }
 0xbe7   : > { %3667 = vmatprep.subr.bf16.mxu0 %v3914_v51 }
 0xbe9   : > { %3646 = vmatpush3.bf16.msra.mxu1 %v3915_v53 }
 0xbea   : > { %3668 = vmatpush3.bf16.msra.mxu0 %v3916_v10  ;;  %3647 = vmatprep.subr.bf16.mxu1 %v3917_v31 }
 0xbeb   : > { %3669 = vmatprep.subr.bf16.mxu0 %v3918_v12 }
 0xbed   : > { %3648 = vmatpush3.bf16.msra.mxu1 %v3919_v16 }
 0xbee   : > { %3670 = vmatpush3.bf16.msra.mxu0 %v3920_v7  ;;  %3677 = vmatprep.subr.bf16.mxu1 %v3921_v55 }
 0xbef   : > { %3699 = vmatprep.subr.bf16.mxu0 %v3922_v42 }
 0xbf0   : > { %3096 = vmatmul.mubr.bf16.vlgmr.msra.gmra.mxu1 %v1864_v19 }
 0xbf1   : > { %3136 = vmatmul.mubr.bf16.vlgmr.msra.gmra.mxu0 %v1866_v57  ;;  %3678 = vmatpush3.bf16.msra.mxu1 %v3923_v17 }
 0xbf2   : > { %3175 = vmatprep.mubr.bf16.mxu1 %v1869_v48  ;;  %3700 = vmatpush3.bf16.msra.mxu0 %v3924_v18 }
 0xbf3   : > { %3215 = vmatprep.mubr.bf16.mxu0 %v1871_v59  ;;  %3679 = vmatprep.subr.bf16.mxu1 %v3925_v58 }
 0xbf4   : > { %3701 = vmatprep.subr.bf16.mxu0 %v3926_v49 }
 0xbf5   : > { %3680 = vmatpush3.bf16.msra.mxu1 %v3927_v9 }
 0xbf6   : > { %3702 = vmatpush3.bf16.msra.mxu0 %v3928_v61  ;;  %3681 = vmatprep.subr.bf16.mxu1 %v3929_v62 }
 0xbf7   : > { %3703 = vmatprep.subr.bf16.mxu0 %v3930_v63 }
 0xbf9   : > { %3682 = vmatpush3.bf16.msra.mxu1 %v3931_v0 }
 0xbfa   : > { %3704 = vmatpush3.bf16.msra.mxu0 %v3932_v2  ;;  %3683 = vmatprep.subr.bf16.mxu1 %v3933_v4 }
 0xbfb   : > { %3705 = vmatprep.subr.bf16.mxu0 %v3934_v5 }
 0xbfd   : > { %3684 = vmatpush3.bf16.msra.mxu1 %v3935_v20 }
 0xbfe   : > { %3706 = vmatpush3.bf16.msra.mxu0 %v3936_v21  ;;  %3685 = vmatprep.subr.bf16.mxu1 %v3937_v22 }
 0xbff   : > { %3707 = vmatprep.subr.bf16.mxu0 %v3938_v23 }
 0xc01   : > { %3686 = vmatpush3.bf16.msra.mxu1 %v3939_v24 }
 0xc02   : > { %3708 = vmatpush3.bf16.msra.mxu0 %v3940_v25  ;;  %3687 = vmatprep.subr.bf16.mxu1 %v3941_v26 }
 0xc03   : > { %3709 = vmatprep.subr.bf16.mxu0 %v3942_v3 }
 0xc05   : > { %3688 = vmatpush3.bf16.msra.mxu1 %v3943_v27 }
 0xc06   : > { %3710 = vmatpush3.bf16.msra.mxu0 %v3944_v28  ;;  %3689 = vmatprep.subr.bf16.mxu1 %v3945_v29 }
 0xc07   : > { %3711 = vmatprep.subr.bf16.mxu0 %v3946_v30 }
 0xc09   : > { %3690 = vmatpush3.bf16.msra.mxu1 %v3947_v33 }
 0xc0a   : > { %3712 = vmatpush3.bf16.msra.mxu0 %v3948_v11  ;;  %3691 = vmatprep.subr.bf16.mxu1 %v3949_v34 }
 0xc0b   : > { %3713 = vmatprep.subr.bf16.mxu0 %v3950_v35 }
 0xc0d   : > { %3692 = vmatpush3.bf16.msra.mxu1 %v3951_v36 }
 0xc0e   : > { %3714 = vmatpush3.bf16.msra.mxu0 %v3952_v38 }
 0xc10   : > { %3176 = vmatmul.mubr.bf16.vlgmr.msra.gmra.mxu1 %v1868_v44  ;;  %v3515_v44 = vld [vmem:[%s4858_s13] ss:$0 sm:$0xff] }
 0xc11   : > { %3216 = vmatmul.mubr.bf16.vlgmr.msra.gmra.mxu0 %v1870_v45 }
 0xc70   : > { %v3561_v46 = vpop.f32.mrf.mxu1  ;;  %v3583_v13 = vpop.f32.mrf.mxu0 }
 0xc72   : > { %v3562_v47 = vpop.f32.mrf.mxu1  ;;  %v3584_v50 = vpop.f32.mrf.mxu0 }
 0xc73   : > { %v3563_v51 = vadd.f32 %v3562_v47, %v3561_v46  ;;  %v3585_v14 = vadd.f32 %v3584_v50, %v3583_v13 }
 0xc74   : > { %v3564_v52 = vpop.f32.mrf.mxu1  ;;  %v3586_v53 = vpop.f32.mrf.mxu0 }
 0xc75   : > { %v2938_v41 = vadd.f32 %v3563_v51, %v3385_v40 }
 0xc76   : > { %v3565_v15 = vpop.f32.mrf.mxu1  ;;  %v3587_v10 = vpop.f32.mrf.mxu0 }
 0xc77   : > { %v2978_v31 = vadd.f32 %v3585_v14, %v2938_v41 }
 0xc90   : > { %v3605_v8 = vpop.f32.mrf.mxu1  ;;  %v3627_v12 = vpop.f32.mrf.mxu0 }
 0xc92   : > { %v3606_v32 = vpop.f32.mrf.mxu1  ;;  %v3628_v6 = vpop.f32.mrf.mxu0 }
 0xc93   : > { %v3607_v58 = vadd.f32 %v3606_v32, %v3605_v8  ;;  %v3629_v49 = vadd.f32 %v3628_v6, %v3627_v12 }
 0xc94   : > { %v3608_v16 = vpop.f32.mrf.mxu1  ;;  %v3630_v54 = vpop.f32.mrf.mxu0 }
 0xc95   : > { %v3018_v48 = vadd.f32 %v3607_v58, %v2978_v31 }
 0xc96   : > { %v3609_v7 = vpop.f32.mrf.mxu1  ;;  %v3631_v55 = vpop.f32.mrf.mxu0 }
 0xc97   : > { %v3058_v9 = vadd.f32 %v3629_v49, %v3018_v48 }
 0xcb0   : > { %v3649_v1 = vpop.f32.mrf.mxu1 }
 0xcb1   : > { %v3671_v42 = vpop.f32.mrf.mxu0 }
 0xcb2   : > { %v3650_v43 = vpop.f32.mrf.mxu1 }
 0xcb3   : > { %v3672_v56 = vpop.f32.mrf.mxu0  ;;  %v3651_v59 = vadd.f32 %v3650_v43, %v3649_v1 }
 0xcb4   : > { %v3652_v17 = vpop.f32.mrf.mxu1  ;;  %v3673_v63 = vadd.f32 %v3672_v56, %v3671_v42 }
 0xcb5   : > { %v3674_v19 = vpop.f32.mrf.mxu0  ;;  %v3098_v61 = vadd.f32 %v3651_v59, %v3058_v9 }
 0xcb6   : > { %v3653_v18 = vpop.f32.mrf.mxu1 }
 0xcb7   : > { %v3675_v57 = vpop.f32.mrf.mxu0  ;;  %v3138_v4 = vadd.f32 %v3673_v63, %v3098_v61 }
 0xcd0   : > { %v3693_v62 = vpop.f32.mrf.mxu1 }
 0xcd1   : > { %v3715_v0 = vpop.f32.mrf.mxu0 }
 0xcd2   : > { %v3694_v2 = vpop.f32.mrf.mxu1 }
 0xcd3   : > { %v3695_v5 = vadd.f32 %v3694_v2, %v3693_v62  ;;  %v3716_v20 = vpop.f32.mrf.mxu0 }
 0xcd4   : > { %v3696_v21 = vpop.f32.mrf.mxu1  ;;  %v3717_v23 = vadd.f32 %v3716_v20, %v3715_v0 }
 0xcd5   : > { %v3178_v22 = vadd.f32 %v3695_v5, %v3138_v4  ;;  %v3718_v24 = vpop.f32.mrf.mxu0 }
 0xcd6   : > { %v3697_v25 = vpop.f32.mrf.mxu1 }
 0xcd7   : > { %v3218_v26 = vadd.f32 %v3717_v23, %v3178_v22  ;;  %v3719_v3 = vpop.f32.mrf.mxu0 }
 0xcd9   : > { %v3223_v27 = vadd.f32 %v3218_v26, %v4274_v60  ;;  %v3514_v60 = vld [vmem:[%s4857_s12] ss:$0 sm:$0xff] }
 0xcdb   : > { %v3226_v28 = vsel %vm502_vm1, %v3223_v27, 0.0 }
 0xcdc   : > { %3227 = vadd.xlane.f32.xlu1 %v3226_v28 }
 0xd65   : > { %v3228_v29 = vpop.xlane.xlu1 %3227 }
 0xd66   : > { %v3229_v30 = vmul.f32 0.03125, %v3228_v29 }
 0xd68   : > { %v3230_v33 = vsub.f32 %v3223_v27, %v3229_v30 }
 0xd6a   : > { %v3231_v11 = vmul.f32 %v3230_v33, %v3230_v33 }
 0xd6c   : > { %v3232_v34 = vsel %vm502_vm1, %v3231_v11, 0.0 }
 0xd6d   : > { %3233 = vadd.xlane.f32.xlu1 %v3232_v34 }
 0xdf6   : > { %v3234_v35 = vpop.xlane.xlu1 %3233 }
 0xdf7   : > { %v3235_v36 = vmul.f32 0.03125, %v3234_v35 }
 0xdf9   : > { %v3236_v37 = vadd.f32 1e-05, %v3235_v36 }
 0xdfb   : > { %3971 = vrsqrt.f32 %v3236_v37 }
 0xe08   : > { %v3972_v38 = vpop.eup %3971 }
 0xe09   : > { %v3238_v39 = vmul.f32 %v3972_v38, %v3230_v33 }
 0xe0b   : > { %v3245_v45 = vmul.f32 %v3514_v60, %v3238_v39 }
 0xe0d   : > { %v3252_v46 = vadd.f32 %v3515_v44, %v3245_v45 }
 0xe0f   : > { %v3253_v13 = vpack.c.bf16 %v3252_v46, %v3252_v46 }
 0xe11   : > { %3255 = vst.msk [vmem:[%s476_s21] sm:$0xf] %vm3254_vm4, %v3253_v13 }
 0xe12 PF: > { %s24_s29 = sadd.s32 1, %s3979_s29  }
 0xe13   : > { %p21_p4 = scmp.ge.s32.totalorder %s24_s29, 4  }
 0xe15   :  { %23 = sbr.rel (!%p21_p4) target bundleno = 1 (0x1), region = 109 }

// kernel: transformer_forward.7
= control target key start
LH: loop header
LB: loop body
LE: loop exit
PB: predicated region body
PF: predicated region fallthrough
CT: control target
= control target key end

     0   :  { %s6322_s0 = inlined_call_operand.vmem [shape: bf16[2,8,32], index: 0, kind: input, shape index: {}]   ;;  %s6323_s1 = inlined_call_operand.vmem [shape: bf16[2,8,32], index: 1, kind: input, shape index: {}]   ;;  %s6324_s2 = inlined_call_operand.vmem [shape: f32[2,1,8], index: 2, kind: input, shape index: {}]   ;;  %s6325_s3 = inlined_call_operand.vmem [shape: bf16[32,96], index: 3, kind: input, shape index: {}]   ;;  %s6326_s4 = inlined_call_operand.vmem [shape: f32[1,96], index: 4, kind: input, shape index: {}]   ;;  %s6327_s5 = inlined_call_operand.vmem [shape: bf16[32,32], index: 5, kind: input, shape index: {}]   ;;  %s6328_s6 = inlined_call_operand.vmem [shape: f32[1,32], index: 6, kind: input, shape index: {}]   ;;  %s6329_s7 = inlined_call_operand.vmem [shape: f32[1,32], index: 7, kind: input, shape index: {}]   ;;  %s6330_s8 = inlined_call_operand.vmem [shape: f32[1,32], index: 8, kind: input, shape index: {}]   ;;  %s6331_s9 = inlined_call_operand.vmem [shape: bf16[32,32], index: 9, kind: input, shape index: {}]   ;;  %s6332_s10 = inlined_call_operand.vmem [shape: f32[1,32], index: 10, kind: input, shape index: {}]   ;;  %s6333_s11 = inlined_call_operand.vmem [shape: bf16[32,64], index: 11, kind: input, shape index: {}]   ;;  %s6334_s12 = inlined_call_operand.vmem [shape: f32[1,64], index: 12, kind: input, shape index: {}]   ;;  %s6335_s13 = inlined_call_operand.vmem [shape: bf16[32,32], index: 13, kind: input, shape index: {}]   ;;  %s6336_s14 = inlined_call_operand.vmem [shape: f32[1,32], index: 14, kind: input, shape index: {}]   ;;  %s6337_s15 = inlined_call_operand.vmem [shape: f32[1,32], index: 15, kind: input, shape index: {}]   ;;  %s6338_s16 = inlined_call_operand.vmem [shape: f32[1,32], index: 16, kind: input, shape index: {}]   ;;  %s6339_s17 = inlined_call_operand.vmem [shape: bf16[32,2048], index: 17, kind: input, shape index: {}]   ;;  %s6340_s18 = inlined_call_operand.vmem [shape: f32[1,2048], index: 18, kind: input, shape index: {}]   ;;  %s6341_s19 = inlined_call_operand.vmem [shape: bf16[2048,32], index: 19, kind: input, shape index: {}]   ;;  %s6342_s20 = inlined_call_operand.vmem [shape: f32[1,32], index: 20, kind: input, shape index: {}]   ;;  %s6343_s21 = inlined_call_operand.vmem [shape: f32[1,32], index: 21, kind: input, shape index: {}]   ;;  %s6344_s22 = inlined_call_operand.vmem [shape: f32[1,32], index: 22, kind: input, shape index: {}]   ;;  %s6345_s23 = inlined_call_operand.vmem [shape: bf16[2,8,32], index: 23, kind: output, shape index: {}]  }
   0x1   :  { %6353 = sst [smem:[#allocation2_spill]] %s6322_s0 }
   0x2   :  { %6354 = sst [smem:[#allocation3_spill]] %s6323_s1 }
   0x3   :  { %6355 = sst [smem:[#allocation4_spill]] %s6324_s2 }
   0x4   :  { %6356 = sst [smem:[#allocation5_spill]] %s6325_s3 }
   0x5   :  { %6357 = sst [smem:[#allocation6_spill]] %s6326_s4  ;;  %s5367_s4 = smov 0  }
   0x6   :  { %6358 = sst [smem:[#allocation7_spill]] %s6327_s5 }
   0x7   :  { %6359 = sst [smem:[#allocation8_spill]] %s6328_s6 }
   0x8   :  { %6360 = sst [smem:[#allocation9_spill]] %s6329_s7 }
   0x9 LB: > { %s4406_s30 = sadd.s32 4294967295, %s5231_s4   ;;  %p4410_p0 = scmp.ge.s32.totalorder %s5231_s4, 1  ;;  %s5231_s4 = sphi %s5367_s4, %s33_s4  }
   0xa   : > { %p653_p1 = scmp.lt.s32.totalorder %s5231_s4, 3 }
   0xc   : > { %p654_p2 = pnand %p4410_p0, %p653_p1 }
   0xd   : > { %s6361_s5 = sld [smem:[#allocation5_spill]] (!%p654_p2)  ;;  %p722_p3 = scmp.lt.s32.totalorder (!%p654_p2), %s4406_s30, 1 }
   0xe   : > { %657 = sbr.rel (%p654_p2) target bundleno = 6363 (0x18db), region = 112  ;;  %s6362_s7 = sld [smem:[#allocation2_spill]] (!%p654_p2) }
   0xf   : > { %s6363_s0 = sld [smem:[#allocation6_spill]] (!%p654_p2)  ;;  %s6352_s24 = smov (!%p654_p2), 96  }
  0x10   : > { %s5236_s25 = smov (!%p654_p2), 120   ;;  %s5237_s1 = smov (!%p654_p2), 88  }
  0x11   : > { %s6364_s27 = sld [smem:[#allocation4_spill]] (!%p654_p2)  ;;  %s5240_s29 = smov (!%p654_p2), 112  }
  0x12   : > { %s6349_s3 = smov (!%p654_p2), 80   ;;  %s6365_s6 = sld [smem:[#allocation7_spill]] (!%p654_p2) }
  0x13   : > { %v5053_v0 = vld [vmem:[%s6361_s5 + $0x8] sm:$0xff]   ;;  %v5233_v1 = vmov 0.0   ;;  %v5054_v2 = vld [vmem:[%s6361_s5] sm:$0xff]   ;;  %vm5234_vm0 = vmmov 0   ;;  %s6374_s30 = smov (!%p722_p3, %s4406_s30), 1  ;;  %vm762_vm1 = vcmask 261120   ;;  %v814_v18 = vlaneseq }
  0x14   : > { %4863 = vmatprep.subr.bf16.mxu0 %v5233_v1  ;;  %4871 = vmatprep.subr.bf16.mxu1 %v5233_v1  ;;  %s5391_s2 = sshll.u32 %s6374_s30, 2  ;;  %vm828_vm2 = vcmask 64512   ;;  %vm893_vm4 = vcmask 1043456   ;;  %vm4330_vm5 = vcmask 257024  }
  0x15   : > { %4864 = vmatpush3.bf16.msra.mxu0 %v5053_v0  ;;  %4867 = vmatprep.mubr.msk.bf16.mxu0 %vm5234_vm0, %v5233_v1  ;;  %s725_s28 = scalar_lea.vmem %s6362_s7, %s5391_s2  ;;  %v4414_v4 = vld [vmem:[%s6363_s0] ss:$0 sm:$0xff]  ;;  %v5432_v19 = vshrl.u32 %v814_v18, 7  ;;  %v5434_v20 = vand.u32 127, %v814_v18  ;;  %s5244_s0 = smov 48  }
  0x16   : > { %4865 = vmatprep.subr.bf16.mxu0 %v5233_v1  ;;  %4873 = vmatprep.mubr.msk.bf16.mxu1 %vm5234_vm0, %v5233_v1  ;;  %v5398_v3 = vld [vmem:[%s725_s28] sm:$0xf]  ;;  %s5239_s28 = smov 56  }
  0x17   : > { %s732_s7 = scalar_lea.vmem %s6364_s27, %s6374_s30  ;;  %vm818_vm3 = vcmp.gt.s32.totalorder %v5434_v20, %v5432_v19  ;;  %s5238_s30 = smov 64  }
  0x18   : > { %v5436_v21 = vld [vmem:[%s732_s7] ss:$0 sm:$0xff]  ;;  %v810_v60 = vld [vmem:[%s6365_s6 + $0x4] sm:$0xf]  ;;  %s5245_s7 = smov 40  }
  0x19   : > { %4866 = vmatpush3.bf16.msra.mxu0 %v5054_v2  ;;  %v809_v58 = vld [vmem:[%s6365_s6] sm:$0xf]  ;;  %v1055_v61 = vsel %vm893_vm4, %v810_v60, 0 }
  0x1a   : > { %4877 = vmatprep.subr.bf16.mxu0 %v5233_v1  ;;  %v1101_v59 = vsel %vm893_vm4, %v809_v58, 0 }
  0x1c   : > { %4868 = vmatmul.mubr.msk.bf16.vlgmr.msra.gmra.mxu0 %vm762_vm1, %v5398_v3 }
  0x1d   : > { %4879 = vmatprep.mubr.msk.bf16.mxu0 %vm5234_vm0, %v5233_v1 }
  0xdc   : > { %v800_v5 = vpop.f32.mrf.mxu0 }
  0xdd   : > { %v801_v6 = vadd.f32 %v4414_v4, %v800_v5 }
  0xde   : > { %v4869_v7 = vpop.f32.mrf.mxu0 }
  0xdf   : > { %v806_v8 = vmul.f32 0.35355338, %v801_v6  ;;  %v5407_v9 = vpack.c.bf16 %v801_v6, %v801_v6 }
  0xe0   : > { %v803_v10 = vpop.f32.mrf.mxu0 }
  0xe1   : > { %v5409_v11 = vpack.c.bf16 %v806_v8, %v806_v8  ;;  %826 = vrot.lane.b32.xlu0 %v5407_v9, %s6352_s24 }
  0xe2   : > { %v4870_v12 = vpop.f32.mrf.mxu0 }
  0xe3   : > { %939 = vrot.lane.b32.xlu1 %v5409_v11, %s5236_s25 }
  0xe5   : > { %941 = vrot.lane.b32.xlu0 %v5407_v9, %s5237_s1 }
 0x153   : > { %v827_v13 = vpop.permute.xlu0 %826 }
 0x154   : > { %v833_v14 = vsel %vm828_vm2, %v827_v13, 0 }
 0x155   : > { %4872 = vmatpush3.bf16.xpose.msra.mxu1 %v833_v14  ;;  %v940_v17 = vpop.permute.xlu1 %939 }
 0x156   : > { %4883 = vmatprep.subr.bf16.mxu1 %v5233_v1 }
 0x157   : > { %v942_v15 = vpop.permute.xlu0 %941 }
 0x158   : > { %v947_v16 = vsel %vm828_vm2, %v942_v15, 0 }
 0x15c   : > { %4874 = vmatmul.mubr.msk.bf16.vlgmr.msra.gmra.mxu1 %vm828_vm2, %v5409_v11 }
 0x15d   : > { %4884 = vmatpush3.bf16.xpose.msra.mxu1 %v947_v16  ;;  %4885 = vmatprep.mubr.msk.bf16.mxu1 %vm5234_vm0, %v5233_v1 }
 0x15e   : > { %4895 = vmatprep.subr.bf16.mxu1 %v5233_v1 }
 0x164   : > { %4886 = vmatmul.mubr.msk.bf16.vlgmr.msra.gmra.mxu1 %vm828_vm2, %v940_v17 }
 0x165   : > { %4897 = vmatprep.mubr.msk.bf16.mxu1 %vm5234_vm0, %v5233_v1  ;;  %4896 = vmatpush3.bf16.msra.mxu1 %v1055_v61 }
 0x166   : > { %4907 = vmatprep.subr.bf16.mxu1 %v5233_v1 }
 0x21c   : > { %v869_v22 = vpop.f32.mrf.mxu1 }
 0x21d   : > { %v870_v23 = vadd.f32 %v5436_v21, %v869_v22 }
 0x21e   : > { %v4875_v24 = vpop.f32.mrf.mxu1 }
 0x21f   : > { %v875_v25 = vsel %vm818_vm3, -1e+09, %v870_v23 }
 0x220   : > { %v872_v26 = vpop.f32.mrf.mxu1  ;;  %v876_v27 = vsel %vm828_vm2, %v875_v25, -inf }
 0x221   : > { %877 = vmax.xlane.f32.xlu1 %v876_v27 }
 0x222   : > { %v4876_v28 = vpop.f32.mrf.mxu1 }
 0x224   : > { %v983_v29 = vpop.f32.mrf.mxu1 }
 0x225   : > { %v984_v30 = vadd.f32 %v5436_v21, %v983_v29 }
 0x226   : > { %v4887_v31 = vpop.f32.mrf.mxu1 }
 0x227   : > { %v989_v32 = vsel %vm818_vm3, -1e+09, %v984_v30 }
 0x228   : > { %v986_v33 = vpop.f32.mrf.mxu1  ;;  %v990_v34 = vsel %vm828_vm2, %v989_v32, -inf }
 0x229   : > { %991 = vmax.xlane.f32.xlu0 %v990_v34 }
 0x22a   : > { %v4888_v35 = vpop.f32.mrf.mxu1 }
 0x2aa   : > { %v878_v36 = vpop.xlane.xlu1 %877 }
 0x2ab   : > { %v879_v37 = vsub.f32 %v875_v25, %v878_v36 }
 0x2ad   : > { %v880_v38 = vmul.f32 1.442695, %v879_v37 }
 0x2af   : > { %5187 = vpow2.f32 %v880_v38 }
 0x2b2   : > { %v992_v39 = vpop.xlane.xlu0 %991 }
 0x2b3   : > { %v993_v40 = vsub.f32 %v989_v32, %v992_v39 }
 0x2b5   : > { %v994_v41 = vmul.f32 1.442695, %v993_v40 }
 0x2b7   : > { %5189 = vpow2.f32 %v994_v41 }
 0x2bc   : > { %v5188_v42 = vpop.eup %5187 }
 0x2bd   : > { %v882_v43 = vsel %vm828_vm2, %v5188_v42, 0.0 }
 0x2be   : > { %883 = vadd.xlane.f32.xlu0 %v882_v43 }
 0x2c4   : > { %v5190_v44 = vpop.eup %5189 }
 0x2c5   : > { %v996_v45 = vsel %vm828_vm2, %v5190_v44, 0.0 }
 0x2c6   : > { %997 = vadd.xlane.f32.xlu1 %v996_v45 }
 0x2d4   : > { %888 = vrot.lane.b32.xlu0 %v5407_v9, %s5238_s30  ;;  %s6348_s30 = smov 72  }
 0x2d7   : > { %1002 = vrot.lane.b32.xlu1 %v5407_v9, %s5239_s28  ;;  %s6350_s28 = smov 104  }
 0x2d8   : > { %1143 = vrot.lane.b32.xlu0 %v5409_v11, %s5240_s29 }
 0x2db   : > { %1145 = vrot.lane.b32.xlu1 %v5407_v9, %s6349_s3 }
 0x347   : > { %v884_v46 = vpop.xlane.xlu0 %883 }
 0x348   : > { %5191 = vrcp.f32 %v884_v46 }
 0x34b   : > { %v889_v47 = vpop.permute.xlu0 %888 }
 0x34c   : > { %v895_v48 = vsel %vm893_vm4, %v889_v47, 0  ;;  %v811_v47 = vld [vmem:[%s6365_s6 + $0x8] sm:$0xf] }
 0x34d   : > { %4878 = vmatpush3.bf16.msra.mxu0 %v895_v48  ;;  %v1259_v48 = vsel %vm893_vm4, %v811_v47, 0 }
 0x34e   : > { %4889 = vmatprep.subr.bf16.mxu0 %v5233_v1 }
 0x34f   : > { %v998_v49 = vpop.xlane.xlu1 %997  ;;  %v1144_v14 = vpop.permute.xlu0 %1143 }
 0x350   : > { %5193 = vrcp.f32 %v998_v49 }
 0x353   : > { %v1003_v52 = vpop.permute.xlu1 %1002 }
 0x354   : > { %v1008_v54 = vsel %vm893_vm4, %v1003_v52, 0 }
 0x355   : > { %v5192_v50 = vpop.eup %5191 }
 0x356   : > { %v886_v51 = vmul.f32 %v5192_v50, %v5188_v42 }
 0x357   : > { %v1146_v5 = vpop.permute.xlu1 %1145 }
 0x358   : > { %v887_v53 = vpack.c.bf16 %v886_v51, %v886_v51  ;;  %v1151_v10 = vsel %vm828_vm2, %v1146_v5, 0 }
 0x35a   : > { %4880 = vmatmul.mubr.msk.bf16.vlgmr.msra.gmra.mxu0 %vm828_vm2, %v887_v53 }
 0x35b   : > { %4890 = vmatpush3.bf16.msra.mxu0 %v1008_v54  ;;  %4891 = vmatprep.mubr.msk.bf16.mxu0 %vm5234_vm0, %v5233_v1 }
 0x35c   : > { %4901 = vmatprep.subr.bf16.mxu0 %v5233_v1 }
 0x35d   : > { %v5194_v55 = vpop.eup %5193 }
 0x35e   : > { %v1000_v56 = vmul.f32 %v5194_v55, %v5190_v44 }
 0x360   : > { %v1001_v57 = vpack.c.bf16 %v1000_v56, %v1000_v56 }
 0x362   : > { %4892 = vmatmul.mubr.msk.bf16.vlgmr.msra.gmra.mxu0 %vm828_vm2, %v1001_v57 }
 0x363   : > { %4903 = vmatprep.mubr.msk.bf16.mxu0 %vm5234_vm0, %v5233_v1  ;;  %4902 = vmatpush3.bf16.msra.mxu0 %v1101_v59 }
 0x364   : > { %4913 = vmatprep.subr.bf16.mxu0 %v5233_v1 }
 0x41a   : > { %v931_v62 = vpop.f32.mrf.mxu0 }
 0x41b   : > { %v937_v63 = vpack.c.bf16 %v931_v62, %v931_v62 }
 0x41c   : > { %v4881_v0 = vpop.f32.mrf.mxu0 }
 0x41d   : > { %4904 = vmatmul.mubr.msk.bf16.vlgmr.msra.gmra.mxu0 %vm828_vm2, %v937_v63 }
 0x41e   : > { %v934_v2 = vpop.f32.mrf.mxu0  ;;  %4915 = vmatprep.mubr.msk.bf16.mxu0 %vm5234_vm0, %v5233_v1 }
 0x420   : > { %v4882_v4 = vpop.f32.mrf.mxu0 }
 0x422   : > { %v1044_v6 = vpop.f32.mrf.mxu0 }
 0x423   : > { %v1050_v7 = vpack.c.bf16 %v1044_v6, %v1044_v6 }
 0x424   : > { %v4893_v8 = vpop.f32.mrf.mxu0 }
 0x425   : > { %4898 = vmatmul.mubr.msk.bf16.vlgmr.msra.gmra.mxu1 %vm828_vm2, %v1050_v7 }
 0x426   : > { %4908 = vmatpush3.bf16.xpose.msra.mxu1 %v1151_v10  ;;  %v1047_v12 = vpop.f32.mrf.mxu0  ;;  %4909 = vmatprep.mubr.msk.bf16.mxu1 %vm5234_vm0, %v5233_v1 }
 0x427   : > { %4919 = vmatprep.subr.bf16.mxu1 %v5233_v1 }
 0x428   : > { %v4894_v13 = vpop.f32.mrf.mxu0 }
 0x42d   : > { %4910 = vmatmul.mubr.msk.bf16.vlgmr.msra.gmra.mxu1 %vm828_vm2, %v1144_v14 }
 0x42e   : > { %4921 = vmatprep.mubr.msk.bf16.mxu1 %vm5234_vm0, %v5233_v1  ;;  %4920 = vmatpush3.bf16.msra.mxu1 %v1259_v48  ;;  %v4433_v48 = vld [vmem:[%s6330_s8] ss:$0 sm:$0xff] }
 0x42f   : > { %4931 = vmatprep.subr.bf16.mxu1 %v5233_v1 }
 0x4dd   : > { %v1137_v15 = vpop.f32.mrf.mxu0 }
 0x4df   : > { %v4905_v16 = vpop.f32.mrf.mxu0 }
 0x4e1   : > { %v1140_v17 = vpop.f32.mrf.mxu0 }
 0x4e3   : > { %v4906_v18 = vpop.f32.mrf.mxu0 }
 0x4e5   : > { %v1091_v22 = vpop.f32.mrf.mxu1 }
 0x4e6   : > { %v5489_v23 = vadd.f32 %v1137_v15, %v1091_v22 }
 0x4e7   : > { %v4899_v24 = vpop.f32.mrf.mxu1 }
 0x4e8   : > { %v1461_v24 = vunpack.c.l.bf16 %v5398_v3 }
 0x4e9   : > { %v1094_v25 = vpop.f32.mrf.mxu1 }
 0x4eb   : > { %v4900_v26 = vpop.f32.mrf.mxu1 }
 0x4ed   : > { %v1187_v27 = vpop.f32.mrf.mxu1 }
 0x4ee   : > { %v1188_v28 = vadd.f32 %v5436_v21, %v1187_v27 }
 0x4ef   : > { %v4911_v29 = vpop.f32.mrf.mxu1 }
 0x4f0   : > { %v1193_v30 = vsel %vm818_vm3, -1e+09, %v1188_v28 }
 0x4f1   : > { %v1190_v31 = vpop.f32.mrf.mxu1  ;;  %v1194_v32 = vsel %vm828_vm2, %v1193_v30, -inf }
 0x4f2   : > { %1195 = vmax.xlane.f32.xlu1 %v1194_v32 }
 0x4f3   : > { %v4912_v33 = vpop.f32.mrf.mxu1 }
 0x503   : > { %1304 = vrot.lane.b32.xlu1 %v5407_v9, %s6348_s30  ;;  %s6371_s30 = smov 80  }
 0x507   : > { %1302 = vrot.lane.b32.xlu1 %v5409_v11, %s6350_s28  ;;  %s6367_s28 = sld [smem:[#allocation3_spill]] }
 0x50d   : > { %s729_s24 = scalar_lea.vmem %s6367_s28, %s5391_s2  ;;  %s6368_s28 = sld [smem:[#allocation9_spill]] }
 0x57b   : > { %v1196_v34 = vpop.xlane.xlu1 %1195 }
 0x57c   : > { %v1197_v35 = vsub.f32 %v1193_v30, %v1196_v34 }
 0x57e   : > { %v1198_v36 = vmul.f32 1.442695, %v1197_v35 }
 0x57f   : > { %v1305_v43 = vpop.permute.xlu1 %1304 }
 0x580   : > { %5195 = vpow2.f32 %v1198_v36  ;;  %v1310_v45 = vsel %vm828_vm2, %v1305_v43, 0 }
 0x583   : > { %v1303_v46 = vpop.permute.xlu1 %1302 }
 0x58d   : > { %v5196_v37 = vpop.eup %5195 }
 0x58e   : > { %v1200_v38 = vsel %vm828_vm2, %v5196_v37, 0.0 }
 0x58f   : > { %1201 = vadd.xlane.f32.xlu0 %v1200_v38  ;;  %v5055_v38 = vld [vmem:[%s6333_s11 + $0x8] sm:$0xff]  }
 0x5a5   : > { %1206 = vrot.lane.b32.xlu0 %v5407_v9, %s5244_s0  ;;  %s6366_s0 = sld [smem:[#allocation8_spill]] }
 0x5ab   : > { %v4431_v28 = vld [vmem:[%s6366_s0] ss:$0 sm:$0xff]  ;;  %s6370_s0 = smov 104  }
 0x618   : > { %v1202_v39 = vpop.xlane.xlu0 %1201 }
 0x619   : > { %5197 = vrcp.f32 %v1202_v39  ;;  %v5056_v39 = vld [vmem:[%s6333_s11] sm:$0xff]  }
 0x61c   : > { %v1207_v40 = vpop.permute.xlu0 %1206 }
 0x61d   : > { %v1212_v41 = vsel %vm893_vm4, %v1207_v40, 0  ;;  %v1501_v40 = vld [vmem:[%s729_s24] sm:$0xf] }
 0x61e   : > { %4914 = vmatpush3.bf16.msra.mxu0 %v1212_v41  ;;  %v5057_v41 = vld [vmem:[%s6331_s9 + $0x8] sm:$0xff]  }
 0x61f   : > { %4925 = vmatprep.subr.bf16.mxu0 %v5233_v1 }
 0x626   : > { %v5198_v11 = vpop.eup %5197 }
 0x627   : > { %v1204_v42 = vmul.f32 %v5198_v11, %v5196_v37  ;;  %v5058_v11 = vld [vmem:[%s6331_s9] sm:$0xff]  }
 0x629   : > { %v1205_v44 = vpack.c.bf16 %v1204_v42, %v1204_v42 }
 0x62b   : > { %4916 = vmatmul.mubr.msk.bf16.vlgmr.msra.gmra.mxu0 %vm828_vm2, %v1205_v44 }
 0x62c   : > { %4926 = vmatpush3.bf16.xpose.msra.mxu0 %v1310_v45  ;;  %4927 = vmatprep.mubr.msk.bf16.mxu0 %vm5234_vm0, %v5233_v1 }
 0x62d   : > { %4937 = vmatprep.subr.bf16.mxu0 %v5233_v1 }
 0x633   : > { %4928 = vmatmul.mubr.msk.bf16.vlgmr.msra.gmra.mxu0 %vm828_vm2, %v1303_v46  ;;  %v4432_v46 = vld [vmem:[%s6368_s28] ss:$0 sm:$0xff] }
 0x634   : > { %4939 = vmatprep.mubr.msk.bf16.mxu0 %vm5234_vm0, %v5233_v1 }
 0x6eb   : > { %v1248_v49 = vpop.f32.mrf.mxu0 }
 0x6ec   : > { %v1254_v50 = vpack.c.bf16 %v1248_v49, %v1248_v49 }
 0x6ed   : > { %v4917_v51 = vpop.f32.mrf.mxu0 }
 0x6ee   : > { %4922 = vmatmul.mubr.msk.bf16.vlgmr.msra.gmra.mxu1 %vm828_vm2, %v1254_v50 }
 0x6ef   : > { %v1251_v52 = vpop.f32.mrf.mxu0  ;;  %4933 = vmatprep.mubr.msk.bf16.mxu1 %vm5234_vm0, %v5233_v1 }
 0x6f0   : > { %v4438_v52 = vld [vmem:[%s6334_s12] ss:$0 sm:$0xff] }
 0x6f1   : > { %v4918_v53 = vpop.f32.mrf.mxu0 }
 0x6f3   : > { %v1346_v54 = vpop.f32.mrf.mxu0 }
 0x6f4   : > { %v1347_v55 = vadd.f32 %v5436_v21, %v1346_v54 }
 0x6f5   : > { %v4929_v56 = vpop.f32.mrf.mxu0 }
 0x6f6   : > { %v1352_v57 = vsel %vm818_vm3, -1e+09, %v1347_v55 }
 0x6f7   : > { %v1349_v58 = vpop.f32.mrf.mxu0  ;;  %v1353_v59 = vsel %vm828_vm2, %v1352_v57, -inf }
 0x6f8   : > { %1354 = vmax.xlane.f32.xlu0 %v1353_v59 }
 0x6f9   : > { %v4930_v60 = vpop.f32.mrf.mxu0 }
 0x6fa   : > { %v4434_v60 = vld [vmem:[%s6332_s10] ss:$0 sm:$0xff] }
 0x70e   : > { %1365 = vrot.lane.b32.xlu0 %v5407_v9, %s5245_s7  ;;  %v812_v9 = vld [vmem:[%s6365_s6 + $0xc] sm:$0xf]  ;;  %s6372_s7 = smov 72  }
 0x70f   : > { %v1418_v8 = vsel %vm893_vm4, %v812_v9, 0 }
 0x710   : > { %4938 = vmatpush3.bf16.msra.mxu0 %v1418_v8 }
 0x711   : > { %4951 = vmatprep.subr.bf16.mxu0 %v5233_v1 }
 0x781   : > { %v1355_v61 = vpop.xlane.xlu0 %1354 }
 0x782   : > { %v1356_v62 = vsub.f32 %v1352_v57, %v1355_v61 }
 0x784   : > { %v1357_v63 = vmul.f32 1.442695, %v1356_v62 }
 0x785   : > { %v1366_v0 = vpop.permute.xlu0 %1365 }
 0x786   : > { %5199 = vpow2.f32 %v1357_v63  ;;  %v1371_v21 = vsel %vm893_vm4, %v1366_v0, 0 }
 0x787   : > { %4932 = vmatpush3.bf16.msra.mxu1 %v1371_v21 }
 0x788   : > { %4943 = vmatprep.subr.bf16.mxu1 %v5233_v1 }
 0x793   : > { %v5200_v20 = vpop.eup %5199 }
 0x794   : > { %v1359_v2 = vsel %vm828_vm2, %v5200_v20, 0.0 }
 0x795   : > { %1360 = vadd.xlane.f32.xlu1 %v1359_v2 }
 0x7ae   : > { %v1295_v4 = vpop.f32.mrf.mxu1 }
 0x7af   : > { %v1301_v5 = vadd.f32 %v1295_v4, %v5489_v23 }
 0x7b0   : > { %v4923_v6 = vpop.f32.mrf.mxu1 }
 0x7b2   : > { %v1298_v7 = vpop.f32.mrf.mxu1 }
 0x7b4   : > { %v4924_v10 = vpop.f32.mrf.mxu1 }
 0x81e   : > { %v1361_v12 = vpop.xlane.xlu1 %1360 }
 0x81f   : > { %5201 = vrcp.f32 %v1361_v12 }
 0x82c   : > { %v5202_v13 = vpop.eup %5201 }
 0x82d   : > { %v1363_v14 = vmul.f32 %v5202_v13, %v5200_v20 }
 0x82f   : > { %v1364_v15 = vpack.c.bf16 %v1363_v14, %v1363_v14 }
 0x831   : > { %4934 = vmatmul.mubr.msk.bf16.vlgmr.msra.gmra.mxu1 %vm828_vm2, %v1364_v15 }
 0x832   : > { %4947 = vmatprep.mubr.msk.bf16.mxu1 %vm5234_vm0, %v5233_v1  ;;  %4944 = vmatpush3.bf16.msra.mxu1 %v5057_v41 }
 0x833   : > { %4945 = vmatprep.subr.bf16.mxu1 %v5233_v1 }
 0x836   : > { %4946 = vmatpush3.bf16.msra.mxu1 %v5058_v11  ;;  %v1638_v11 = vld [vmem:[%s6335_s13] sm:$0xf] }
 0x837   : > { %4959 = vmatprep.subr.bf16.mxu1 %v5233_v1 }
 0x8f1   : > { %v1407_v16 = vpop.f32.mrf.mxu1 }
 0x8f2   : > { %v1413_v17 = vpack.c.bf16 %v1407_v16, %v1407_v16 }
 0x8f3   : > { %v4935_v18 = vpop.f32.mrf.mxu1 }
 0x8f4   : > { %4940 = vmatmul.mubr.msk.bf16.vlgmr.msra.gmra.mxu0 %vm828_vm2, %v1413_v17 }
 0x8f5   : > { %v1410_v22 = vpop.f32.mrf.mxu1  ;;  %4955 = vmatprep.mubr.msk.bf16.mxu0 %vm5234_vm0, %v5233_v1  ;;  %4952 = vmatpush3.bf16.msra.mxu0 %v5055_v38 }
 0x8f6   : > { %4953 = vmatprep.subr.bf16.mxu0 %v5233_v1 }
 0x8f7   : > { %v4936_v23 = vpop.f32.mrf.mxu1 }
 0x8f9   : > { %4954 = vmatpush3.bf16.msra.mxu0 %v5056_v39 }
 0x8fa   : > { %4965 = vmatprep.subr.bf16.mxu0 %v5233_v1 }
 0x8fc   : > { %4956 = vmatmul.mubr.msk.bf16.vlgmr.msra.gmra.mxu0 %vm762_vm1, %v1501_v40 }
 0x8fd   : > { %4967 = vmatprep.mubr.msk.bf16.mxu0 %vm5234_vm0, %v5233_v1 }
 0x9b4   : > { %v1454_v25 = vpop.f32.mrf.mxu0 }
 0x9b5   : > { %v1460_v26 = vadd.f32 %v1454_v25, %v1301_v5 }
 0x9b6   : > { %v4941_v27 = vpop.f32.mrf.mxu0 }
 0x9b7   : > { %v1462_v29 = vadd.f32 %v1461_v24, %v1460_v26 }
 0x9b8   : > { %v1457_v30 = vpop.f32.mrf.mxu0 }
 0x9b9   : > { %v1470_v31 = vadd.f32 %v4431_v28, %v1462_v29 }
 0x9ba   : > { %v4942_v32 = vpop.f32.mrf.mxu0 }
 0x9bb   : > { %v1473_v33 = vsel %vm762_vm1, %v1470_v31, 0.0 }
 0x9bc   : > { %1474 = vadd.xlane.f32.xlu1 %v1473_v33  ;;  %v1631_v53 = vpop.f32.mrf.mxu0 }
 0x9bd   : > { %v1632_v54 = vadd.f32 %v4438_v52, %v1631_v53 }
 0x9be   : > { %v4957_v55 = vpop.f32.mrf.mxu0 }
 0x9bf   : > { %v5586_v56 = vpack.c.bf16 %v1632_v54, %v1632_v54 }
 0x9c0   : > { %v1634_v57 = vpop.f32.mrf.mxu0 }
 0x9c1   : > { %v1646_v59 = vsel %vm828_vm2, %v5586_v56, 0 }
 0x9c2   : > { %v4958_v58 = vpop.f32.mrf.mxu0 }
 0xa45   : > { %v1475_v34 = vpop.xlane.xlu1 %1474 }
 0xa46   : > { %v1477_v35 = vmul.f32 0.03125, %v1475_v34 }
 0xa48   : > { %v1478_v36 = vsub.f32 %v1470_v31, %v1477_v35 }
 0xa4a   : > { %v1479_v37 = vmul.f32 %v1478_v36, %v1478_v36 }
 0xa4c   : > { %v1480_v3 = vsel %vm762_vm1, %v1479_v37, 0.0 }
 0xa4d   : > { %1481 = vadd.xlane.f32.xlu1 %v1480_v3 }
 0xa5e   : > { %1753 = vrot.lane.b32.xlu1 %v5586_v56, %s5236_s25 }
 0xad6   : > { %v1482_v42 = vpop.xlane.xlu1 %1481 }
 0xad7   : > { %v1483_v43 = vmul.f32 0.03125, %v1482_v42  ;;  %v1912_v42 = vsel %vm893_vm4, %v1638_v11, 0 }
 0xad9   : > { %v1484_v44 = vadd.f32 1e-05, %v1483_v43  ;;  %v1639_v43 = vld [vmem:[%s6335_s13 + $0x4] sm:$0xf] }
 0xada   : > { %v1754_v0 = vpop.permute.xlu1 %1753 }
 0xadb   : > { %5203 = vrsqrt.f32 %v1484_v44  ;;  %v1759_v4 = vsel %vm828_vm2, %v1754_v0, 0  ;;  %v1866_v44 = vsel %vm893_vm4, %v1639_v43, 0 }
 0xae8   : > { %v5204_v45 = vpop.eup %5203 }
 0xae9   : > { %v1486_v47 = vmul.f32 %v5204_v45, %v1478_v36 }
 0xaeb   : > { %v1493_v49 = vmul.f32 %v4432_v46, %v1486_v47 }
 0xaed   : > { %v5576_v50 = vadd.f32 %v4433_v48, %v1493_v49 }
 0xaef   : > { %v1502_v51 = vpack.c.bf16 %v5576_v50, %v5576_v50 }
 0xaf1   : > { %4948 = vmatmul.mubr.msk.bf16.vlgmr.msra.gmra.mxu1 %vm762_vm1, %v1502_v51 }
 0xaf2   : > { %4961 = vmatprep.mubr.msk.bf16.mxu1 %vm5234_vm0, %v5233_v1  ;;  %4960 = vmatpush3.bf16.xpose.msra.mxu1 %v1646_v59 }
 0xaf3   : > { %4971 = vmatprep.subr.bf16.mxu1 %v5233_v1 }
 0xbb1   : > { %v1563_v61 = vpop.f32.mrf.mxu1 }
 0xbb2   : > { %v1564_v62 = vadd.f32 %v4434_v60, %v1563_v61 }
 0xbb3   : > { %v4949_v63 = vpop.f32.mrf.mxu1 }
 0xbb4   : > { %v1569_v21 = vmul.f32 0.35355338, %v1564_v62 }
 0xbb5   : > { %v1566_v20 = vpop.f32.mrf.mxu1 }
 0xbb6   : > { %v5596_v2 = vpack.c.bf16 %v1569_v21, %v1569_v21 }
 0xbb7   : > { %v4950_v5 = vpop.f32.mrf.mxu1 }
 0xbb8   : > { %1751 = vrot.lane.b32.xlu0 %v5596_v2, %s5236_s25  ;;  %4962 = vmatmul.mubr.msk.bf16.vlgmr.msra.gmra.mxu1 %vm828_vm2, %v5596_v2  ;;  %s6369_s25 = smov 96  }
 0xbb9   : > { %4972 = vmatpush3.bf16.xpose.msra.mxu1 %v1759_v4  ;;  %4973 = vmatprep.mubr.msk.bf16.mxu1 %vm5234_vm0, %v5233_v1 }
 0xbba   : > { %4983 = vmatprep.subr.bf16.mxu1 %v5233_v1 }
 0xc2a   : > { %v1752_v6 = vpop.permute.xlu0 %1751 }
 0xc2b   : > { %4974 = vmatmul.mubr.msk.bf16.vlgmr.msra.gmra.mxu1 %vm828_vm2, %v1752_v6 }
 0xc2c   : > { %4985 = vmatprep.mubr.msk.bf16.mxu1 %vm5234_vm0, %v5233_v1  ;;  %4984 = vmatpush3.bf16.msra.mxu1 %v1866_v44 }
 0xc2d   : > { %4995 = vmatprep.subr.bf16.mxu1 %v5233_v1 }
 0xc78   : > { %v1682_v9 = vpop.f32.mrf.mxu1 }
 0xc79   : > { %v1688_v7 = vsel %vm828_vm2, %v1682_v9, -inf }
 0xc7a   : > { %1689 = vmax.xlane.f32.xlu0 %v1688_v7  ;;  %v4963_v8 = vpop.f32.mrf.mxu1 }
 0xc7c   : > { %v1685_v10 = vpop.f32.mrf.mxu1 }
 0xc7e   : > { %v4964_v12 = vpop.f32.mrf.mxu1 }
 0xceb   : > { %v1795_v13 = vpop.f32.mrf.mxu1 }
 0xcec   : > { %v1801_v14 = vsel %vm828_vm2, %v1795_v13, -inf }
 0xced   : > { %1802 = vmax.xlane.f32.xlu1 %v1801_v14  ;;  %v4975_v15 = vpop.f32.mrf.mxu1 }
 0xcef   : > { %v1798_v16 = vpop.f32.mrf.mxu1 }
 0xcf1   : > { %v4976_v17 = vpop.f32.mrf.mxu1 }
 0xcfe   : > { %1813 = vrot.lane.b32.xlu1 %v5586_v56, %s5237_s1 }
 0xd02   : > { %1956 = vrot.lane.b32.xlu1 %v5586_v56, %s5240_s29 }
 0xd03   : > { %v1690_v18 = vpop.xlane.xlu0 %1689 }
 0xd04   : > { %v1691_v22 = vsub.f32 %v1682_v9, %v1690_v18 }
 0xd06   : > { %v1692_v23 = vmul.f32 1.442695, %v1691_v22 }
 0xd08   : > { %5205 = vpow2.f32 %v1692_v23 }
 0xd15   : > { %v5206_v24 = vpop.eup %5205 }
 0xd16   : > { %v1694_v25 = vsel %vm828_vm2, %v5206_v24, 0.0 }
 0xd17   : > { %1695 = vadd.xlane.f32.xlu0 %v1694_v25 }
 0xd76   : > { %v1803_v26 = vpop.xlane.xlu1 %1802 }
 0xd77   : > { %v1804_v27 = vsub.f32 %v1795_v13, %v1803_v26 }
 0xd79   : > { %v1805_v28 = vmul.f32 1.442695, %v1804_v27 }
 0xd7a   : > { %v1814_v37 = vpop.permute.xlu1 %1813 }
 0xd7b   : > { %5207 = vpow2.f32 %v1805_v28  ;;  %v1819_v38 = vsel %vm893_vm4, %v1814_v37, 0  ;;  %v1640_v28 = vld [vmem:[%s6335_s13 + $0x8] sm:$0xf] }
 0xd7e   : > { %v1957_v51 = vpop.permute.xlu1 %1956 }
 0xd7f   : > { %v1962_v55 = vsel %vm828_vm2, %v1957_v51, 0 }
 0xd88   : > { %v5208_v29 = vpop.eup %5207 }
 0xd89   : > { %v1807_v30 = vsel %vm828_vm2, %v5208_v29, 0.0 }
 0xd8a   : > { %1808 = vadd.xlane.f32.xlu0 %v1807_v30 }
 0xda0   : > { %1701 = vrot.lane.b32.xlu0 %v5586_v56, %s6369_s25  ;;  %v1696_v31 = vpop.xlane.xlu0 %1695 }
 0xda1   : > { %5209 = vrcp.f32 %v1696_v31 }
 0xda4   : > { %1954 = vrot.lane.b32.xlu0 %v5596_v2, %s5240_s29 }
 0xdae   : > { %v5210_v32 = vpop.eup %5209 }
 0xdaf   : > { %v1698_v34 = vmul.f32 %v5210_v32, %v5206_v24 }
 0xdb1   : > { %v1699_v3 = vpack.c.bf16 %v1698_v34, %v1698_v34 }
 0xe13   : > { %v1809_v33 = vpop.xlane.xlu0 %1808 }
 0xe14   : > { %5211 = vrcp.f32 %v1809_v33 }
 0xe17   : > { %v1702_v35 = vpop.permute.xlu0 %1701 }
 0xe18   : > { %v1707_v36 = vsel %vm893_vm4, %v1702_v35, 0 }
 0xe19   : > { %4966 = vmatpush3.bf16.msra.mxu0 %v1707_v36 }
 0xe1a   : > { %4977 = vmatprep.subr.bf16.mxu0 %v5233_v1 }
 0xe1b   : > { %v1955_v59 = vpop.permute.xlu0 %1954 }
 0xe1c   : > { %4968 = vmatmul.mubr.msk.bf16.vlgmr.msra.gmra.mxu0 %vm828_vm2, %v1699_v3 }
 0xe1d   : > { %4978 = vmatpush3.bf16.msra.mxu0 %v1819_v38  ;;  %4979 = vmatprep.mubr.msk.bf16.mxu0 %vm5234_vm0, %v5233_v1 }
 0xe1e   : > { %4989 = vmatprep.subr.bf16.mxu0 %v5233_v1 }
 0xe21   : > { %v5212_v39 = vpop.eup %5211 }
 0xe22   : > { %v1811_v40 = vmul.f32 %v5212_v39, %v5208_v29  ;;  %v2069_v29 = vsel %vm893_vm4, %v1640_v28, 0 }
 0xe24   : > { %v1812_v41 = vpack.c.bf16 %v1811_v40, %v1811_v40 }
 0xe26   : > { %4980 = vmatmul.mubr.msk.bf16.vlgmr.msra.gmra.mxu0 %vm828_vm2, %v1812_v41 }
 0xe27   : > { %4991 = vmatprep.mubr.msk.bf16.mxu0 %vm5234_vm0, %v5233_v1  ;;  %4990 = vmatpush3.bf16.msra.mxu0 %v1912_v42 }
 0xe28   : > { %5001 = vmatprep.subr.bf16.mxu0 %v5233_v1 }
 0xedc   : > { %v1743_v45 = vpop.f32.mrf.mxu0 }
 0xedd   : > { %v1749_v46 = vpack.c.bf16 %v1743_v45, %v1743_v45  ;;  %v1641_v45 = vld [vmem:[%s6335_s13 + $0xc] sm:$0xf] }
 0xede   : > { %v4969_v47 = vpop.f32.mrf.mxu0 }
 0xedf   : > { %4992 = vmatmul.mubr.msk.bf16.vlgmr.msra.gmra.mxu0 %vm828_vm2, %v1749_v46 }
 0xee0   : > { %v1746_v48 = vpop.f32.mrf.mxu0  ;;  %5003 = vmatprep.mubr.msk.bf16.mxu0 %vm5234_vm0, %v5233_v1 }
 0xee2   : > { %v4970_v49 = vpop.f32.mrf.mxu0 }
 0xee6   : > { %v1855_v52 = vpop.f32.mrf.mxu0 }
 0xee7   : > { %v1861_v53 = vpack.c.bf16 %v1855_v52, %v1855_v52 }
 0xee8   : > { %v4981_v54 = vpop.f32.mrf.mxu0 }
 0xee9   : > { %4986 = vmatmul.mubr.msk.bf16.vlgmr.msra.gmra.mxu1 %vm828_vm2, %v1861_v53 }
 0xeea   : > { %4996 = vmatpush3.bf16.xpose.msra.mxu1 %v1962_v55  ;;  %v1858_v57 = vpop.f32.mrf.mxu0  ;;  %4997 = vmatprep.mubr.msk.bf16.mxu1 %vm5234_vm0, %v5233_v1 }
 0xeeb   : > { %5007 = vmatprep.subr.bf16.mxu1 %v5233_v1 }
 0xeec   : > { %v4982_v58 = vpop.f32.mrf.mxu0 }
 0xef1   : > { %4998 = vmatmul.mubr.msk.bf16.vlgmr.msra.gmra.mxu1 %vm828_vm2, %v1955_v59 }
 0xef2   : > { %5009 = vmatprep.mubr.msk.bf16.mxu1 %vm5234_vm0, %v5233_v1  ;;  %5008 = vmatpush3.bf16.msra.mxu1 %v2069_v29 }
 0xef3   : > { %5019 = vmatprep.subr.bf16.mxu1 %v5233_v1 }
 0xf9f   : > { %v1948_v60 = vpop.f32.mrf.mxu0 }
 0xfa1   : > { %v4993_v61 = vpop.f32.mrf.mxu0 }
 0xfa3   : > { %v1951_v62 = vpop.f32.mrf.mxu0 }
 0xfa5   : > { %v4994_v63 = vpop.f32.mrf.mxu0 }
 0xfa9   : > { %v1902_v0 = vpop.f32.mrf.mxu1 }
 0xfaa   : > { %v5652_v21 = vadd.f32 %v1948_v60, %v1902_v0  ;;  %v4454_v0 = vld [vmem:[%s6336_s14] ss:$0 sm:$0xff] }
 0xfab   : > { %v4987_v20 = vpop.f32.mrf.mxu1 }
 0xfad   : > { %v1905_v4 = vpop.f32.mrf.mxu1 }
 0xfaf   : > { %v4988_v5 = vpop.f32.mrf.mxu1 }
 0xfb1   : > { %v1998_v6 = vpop.f32.mrf.mxu1 }
 0xfb2   : > { %v2004_v9 = vsel %vm828_vm2, %v1998_v6, -inf }
 0xfb3   : > { %2005 = vmax.xlane.f32.xlu1 %v2004_v9  ;;  %v4999_v7 = vpop.f32.mrf.mxu1 }
 0xfb5   : > { %v2001_v8 = vpop.f32.mrf.mxu1 }
 0xfb7   : > { %v5000_v10 = vpop.f32.mrf.mxu1 }
 0xfc4   : > { %2114 = vrot.lane.b32.xlu1 %v5586_v56, %s6370_s0 }
 0xfc8   : > { %2112 = vrot.lane.b32.xlu1 %v5596_v2, %s6370_s0 }
0x103c   : > { %v2006_v12 = vpop.xlane.xlu1 %2005 }
0x103d   : > { %v2007_v13 = vsub.f32 %v1998_v6, %v2006_v12 }
0x103f   : > { %v2008_v14 = vmul.f32 1.442695, %v2007_v13  ;;  %v2325_v13 = vld [vmem:[%s6339_s17 + $0x80] sm:$0xff] }
0x1040   : > { %v2115_v24 = vpop.permute.xlu1 %2114 }
0x1041   : > { %5213 = vpow2.f32 %v2008_v14  ;;  %v2120_v26 = vsel %vm828_vm2, %v2115_v24, 0  ;;  %v2326_v14 = vld [vmem:[%s6339_s17 + $0x88] sm:$0xff] }
0x1042   : > { %v2310_v24 = vld [vmem:[%s6339_s17 + $0x8] sm:$0xff] }
0x1044   : > { %v2113_v27 = vpop.permute.xlu1 %2112 }
0x104e   : > { %v5214_v15 = vpop.eup %5213 }
0x104f   : > { %v2010_v16 = vsel %vm828_vm2, %v5214_v15, 0.0 }
0x1050   : > { %2011 = vadd.xlane.f32.xlu0 %v2010_v16  ;;  %v2334_v16 = vld [vmem:[%s6339_s17 + $0xc8] sm:$0xff] }
0x1066   : > { %2016 = vrot.lane.b32.xlu0 %v5586_v56, %s6371_s30 }
0x10d9   : > { %v2012_v17 = vpop.xlane.xlu0 %2011 }
0x10da   : > { %5215 = vrcp.f32 %v2012_v17 }
0x10dd   : > { %v2017_v18 = vpop.permute.xlu0 %2016 }
0x10de   : > { %v2022_v22 = vsel %vm893_vm4, %v2017_v18, 0  ;;  %v4475_v18 = vcombine.low %v2326_v14, %v2334_v16 }
0x10df   : > { %5002 = vmatpush3.bf16.msra.mxu0 %v2022_v22  ;;  %v4476_v22 = vcombine.high %v2326_v14, %v2334_v16  ;;  %v2315_v14 = vld [vmem:[%s6339_s17 + $0x30] sm:$0xff]  ;;  %v2316_v16 = vld [vmem:[%s6339_s17 + $0x38] sm:$0xff] }
0x10e0   : > { %5013 = vmatprep.subr.bf16.mxu0 %v5233_v1 }
0x10e7   : > { %v5216_v2 = vpop.eup %5215 }
0x10e8   : > { %v2014_v23 = vmul.f32 %v5216_v2, %v5214_v15  ;;  %v2309_v2 = vld [vmem:[%s6339_s17] sm:$0xff] }
0x10ea   : > { %v2015_v25 = vpack.c.bf16 %v2014_v23, %v2014_v23  ;;  %v2317_v23 = vld [vmem:[%s6339_s17 + $0x40] sm:$0xff] }
0x10ec   : > { %5004 = vmatmul.mubr.msk.bf16.vlgmr.msra.gmra.mxu0 %vm828_vm2, %v2015_v25  ;;  %v4458_v25 = vcombine.high %v2309_v2, %v2317_v23 }
0x10ed   : > { %5014 = vmatpush3.bf16.xpose.msra.mxu0 %v2120_v26  ;;  %5015 = vmatprep.mubr.msk.bf16.mxu0 %vm5234_vm0, %v5233_v1  ;;  %v2318_v26 = vld [vmem:[%s6339_s17 + $0x48] sm:$0xff] }
0x10ee   : > { %5025 = vmatprep.subr.bf16.mxu0 %v5233_v1  ;;  %v4459_v28 = vcombine.low %v2310_v24, %v2318_v26  ;;  %v4460_v29 = vcombine.high %v2310_v24, %v2318_v26  ;;  %v5059_v26 = vld [vmem:[%s6341_s19 + $0x78] sm:$0xff]  }
0x10f4   : > { %5016 = vmatmul.mubr.msk.bf16.vlgmr.msra.gmra.mxu0 %vm828_vm2, %v2113_v27  ;;  %v4457_v27 = vcombine.low %v2309_v2, %v2317_v23 }
0x10f5   : > { %5027 = vmatprep.mubr.msk.bf16.mxu0 %vm5234_vm0, %v5233_v1 }
0x11ac   : > { %v2058_v30 = vpop.f32.mrf.mxu0 }
0x11ad   : > { %v2064_v31 = vpack.c.bf16 %v2058_v30, %v2058_v30  ;;  %v2327_v30 = vld [vmem:[%s6339_s17 + $0x90] sm:$0xff] }
0x11ae   : > { %v5005_v32 = vpop.f32.mrf.mxu0 }
0x11af   : > { %5010 = vmatmul.mubr.msk.bf16.vlgmr.msra.gmra.mxu1 %vm828_vm2, %v2064_v31  ;;  %v2335_v31 = vld [vmem:[%s6339_s17 + $0xd0] sm:$0xff]  ;;  %v2328_v32 = vld [vmem:[%s6339_s17 + $0x98] sm:$0xff] }
0x11b0   : > { %v2061_v33 = vpop.f32.mrf.mxu0  ;;  %5021 = vmatprep.mubr.msk.bf16.mxu1 %vm5234_vm0, %v5233_v1 }
0x11b1   : > { %v5246_v33 = vmov 0  }
0x11b2   : > { %v5006_v34 = vpop.f32.mrf.mxu0 }
0x11b3   : > { %v4478_v34 = vcombine.high %v2327_v30, %v2335_v31 }
0x11b4   : > { %v2156_v35 = vpop.f32.mrf.mxu0 }
0x11b5   : > { %v2162_v36 = vsel %vm828_vm2, %v2156_v35, -inf }
0x11b6   : > { %2163 = vmax.xlane.f32.xlu0 %v2162_v36  ;;  %v5017_v37 = vpop.f32.mrf.mxu0  ;;  %v4477_v36 = vcombine.low %v2327_v30, %v2335_v31  ;;  %v5063_v30 = vld [vmem:[%s6341_s19 + $0x70] sm:$0xff]  }
0x11b7   : > { %v5064_v31 = vld [vmem:[%s6341_s19 + $0xf0] sm:$0xff]  }
0x11b8   : > { %v2159_v3 = vpop.f32.mrf.mxu0 }
0x11ba   : > { %v5018_v38 = vpop.f32.mrf.mxu0 }
0x11cc   : > { %2174 = vrot.lane.b32.xlu0 %v5586_v56, %s6372_s7  ;;  %v2227_v56 = vsel %vm893_vm4, %v1641_v45, 0  ;;  %v2319_v45 = vld [vmem:[%s6339_s17 + $0x50] sm:$0xff]  ;;  %s736_s7 = scalar_lea.vmem %s6345_s23, %s5391_s2 }
0x11cd   : > { %5026 = vmatpush3.bf16.msra.mxu0 %v2227_v56  ;;  %v2320_v56 = vld [vmem:[%s6339_s17 + $0x58] sm:$0xff] }
0x11ce   : > { %2641 = vmatprep.subr.bf16.mxu0 %v4476_v22 }
0x123f   : > { %v2164_v39 = vpop.xlane.xlu0 %2163 }
0x1240   : > { %v2165_v40 = vsub.f32 %v2156_v35, %v2164_v39  ;;  %v2336_v35 = vld [vmem:[%s6339_s17 + $0xd8] sm:$0xff] }
0x1241   : > { %v4479_v37 = vcombine.low %v2328_v32, %v2336_v35  ;;  %v4480_v3 = vcombine.high %v2328_v32, %v2336_v35  ;;  %v5065_v32 = vld [vmem:[%s6341_s19 + $0x30] sm:$0xff]   ;;  %v5068_v35 = vld [vmem:[%s6341_s19 + $0xe8] sm:$0xff]  }
0x1242   : > { %v2166_v41 = vmul.f32 1.442695, %v2165_v40 }
0x1243   : > { %v2175_v11 = vpop.permute.xlu0 %2174 }
0x1244   : > { %5217 = vpow2.f32 %v2166_v41  ;;  %v2180_v42 = vsel %vm893_vm4, %v2175_v11, 0  ;;  %v4455_v11 = vld [vmem:[%s6337_s15] ss:$0 sm:$0xff] }
0x1245   : > { %5020 = vmatpush3.bf16.msra.mxu1 %v2180_v42 }
0x1251   : > { %v5218_v1 = vpop.eup %5217 }
0x1252   : > { %v2168_v43 = vsel %vm828_vm2, %v5218_v1, 0.0 }
0x1253   : > { %2169 = vadd.xlane.f32.xlu1 %v2168_v43 }
0x126f   : > { %v2105_v44 = vpop.f32.mrf.mxu1 }
0x1270   : > { %v2111_v46 = vadd.f32 %v2105_v44, %v5652_v21  ;;  %v2311_v44 = vld [vmem:[%s6339_s17 + $0x10] sm:$0xff] }
0x1271   : > { %v5011_v47 = vpop.f32.mrf.mxu1 }
0x1273   : > { %v2108_v48 = vpop.f32.mrf.mxu1 }
0x1275   : > { %v5012_v49 = vpop.f32.mrf.mxu1 }
0x1276   : > { %v4462_v49 = vcombine.high %v2311_v44, %v2319_v45 }
0x12dc   : > { %v2170_v51 = vpop.xlane.xlu1 %2169 }
0x12dd   : > { %5219 = vrcp.f32 %v2170_v51 }
0x12ea   : > { %v5220_v52 = vpop.eup %5219 }
0x12eb   : > { %v2172_v53 = vmul.f32 %v5220_v52, %v5218_v1  ;;  %v4456_v1 = vld [vmem:[%s6338_s16] ss:$0 sm:$0xff] }
0x12ec   : > { %v2329_v52 = vld [vmem:[%s6339_s17 + $0xa0] sm:$0xff] }
0x12ed   : > { %v2173_v54 = vpack.c.bf16 %v2172_v53, %v2172_v53  ;;  %v2337_v53 = vld [vmem:[%s6339_s17 + $0xe0] sm:$0xff] }
0x12ef   : > { %5022 = vmatmul.mubr.msk.bf16.vlgmr.msra.gmra.mxu1 %vm828_vm2, %v2173_v54  ;;  %v2330_v54 = vld [vmem:[%s6339_s17 + $0xa8] sm:$0xff] }
0x12f0   : > { %2620 = vmatprep.mubr.bf16.mxu1 %v5246_v33 }
0x13af   : > { %v2216_v55 = vpop.f32.mrf.mxu1 }
0x13b0   : > { %v2222_v57 = vpack.c.bf16 %v2216_v55, %v2216_v55  ;;  %v2338_v55 = vld [vmem:[%s6339_s17 + $0xe8] sm:$0xff] }
0x13b1   : > { %v5023_v58 = vpop.f32.mrf.mxu1 }
0x13b2   : > { %5028 = vmatmul.mubr.msk.bf16.vlgmr.msra.gmra.mxu0 %vm828_vm2, %v2222_v57  ;;  %v4461_v57 = vcombine.low %v2311_v44, %v2319_v45  ;;  %v5080_v44 = vld [vmem:[%s6341_s19 + $0xd0] sm:$0xff]  }
0x13b3   : > { %v2219_v59 = vpop.f32.mrf.mxu1  ;;  %2642 = vmatpush1.bf16.msra.mxu0 %v4475_v18  ;;  %2661 = vmatprep.mubr.bf16.mxu0 %v5246_v33  ;;  %v5081_v45 = vld [vmem:[%s6341_s19 + $0x10] sm:$0xff]  }
0x13b4   : > { %2643 = vmatprep.subr.bf16.mxu0 %v4460_v29  ;;  %v4482_v59 = vcombine.high %v2329_v52, %v2337_v53  ;;  %v5062_v29 = vld [vmem:[%s6341_s19 + $0xb8] sm:$0xff]  }
0x13b5   : > { %v5024_v60 = vpop.f32.mrf.mxu1 }
0x13b6   : > { %v4484_v60 = vcombine.high %v2330_v54, %v2338_v55 }
0x13b7   : > { %2644 = vmatpush1.bf16.msra.mxu0 %v4459_v28  ;;  %v5061_v28 = vld [vmem:[%s6341_s19 + $0x38] sm:$0xff]  }
0x13b8   : > { %2723 = vmatprep.subr.bf16.mxu0 %v4480_v3  ;;  %v5071_v3 = vld [vmem:[%s6341_s19 + $0x60] sm:$0xff]  }
0x1472   : > { %v2263_v61 = vpop.f32.mrf.mxu0 }
0x1473   : > { %v2269_v62 = vadd.f32 %v2263_v61, %v2111_v46  ;;  %v2312_v46 = vld [vmem:[%s6339_s17 + $0x18] sm:$0xff]  ;;  %v2313_v61 = vld [vmem:[%s6339_s17 + $0x20] sm:$0xff] }
0x1474   : > { %v5029_v63 = vpop.f32.mrf.mxu0  ;;  %v4464_v51 = vcombine.high %v2312_v46, %v2320_v56  ;;  %v4463_v58 = vcombine.low %v2312_v46, %v2320_v56  ;;  %v5082_v46 = vld [vmem:[%s6341_s19 + $0x90] sm:$0xff]   ;;  %v5083_v56 = vld [vmem:[%s6341_s19 + $0x48] sm:$0xff]  }
0x1475   : > { %v2270_v21 = vadd.f32 %v2269_v62, %v5576_v50  ;;  %v2333_v50 = vld [vmem:[%s6339_s17 + $0xc0] sm:$0xff]  ;;  %v2314_v63 = vld [vmem:[%s6339_s17 + $0x28] sm:$0xff] }
0x1476   : > { %v2266_v20 = vpop.f32.mrf.mxu0  ;;  %v4474_v15 = vcombine.high %v2325_v13, %v2333_v50  ;;  %v4473_v17 = vcombine.low %v2325_v13, %v2333_v50  ;;  %v2321_v62 = vld [vmem:[%s6339_s17 + $0x60] sm:$0xff] }
0x1477   : > { %v2278_v4 = vadd.f32 %v4454_v0, %v2270_v21  ;;  %v2322_v0 = vld [vmem:[%s6339_s17 + $0x68] sm:$0xff]  ;;  %v4481_v21 = vcombine.low %v2329_v52, %v2337_v53  ;;  %v4483_v20 = vcombine.low %v2330_v54, %v2338_v55  ;;  %v5087_v52 = vld [vmem:[%s6341_s19 + $0x40] sm:$0xff]  }
0x1478   : > { %v5030_v5 = vpop.f32.mrf.mxu0  ;;  %2600 = vmatprep.subr.bf16.mxu1 %v4474_v15  ;;  %v2323_v15 = vld [vmem:[%s6339_s17 + $0x70] sm:$0xff]  ;;  %v5088_v53 = vld [vmem:[%s6341_s19 + $0xc0] sm:$0xff]  }
0x1479   : > { %v2281_v6 = vsel %vm762_vm1, %v2278_v4, 0.0  ;;  %2601 = vmatpush1.bf16.msra.mxu1 %v4473_v17  ;;  %v4468_v5 = vcombine.high %v2314_v63, %v2322_v0  ;;  %v2324_v17 = vld [vmem:[%s6339_s17 + $0x78] sm:$0xff]  ;;  %v4470_v2 = vcombine.high %v2315_v14, %v2323_v15  ;;  %v4469_v24 = vcombine.low %v2315_v14, %v2323_v15  ;;  %v5089_v54 = vld [vmem:[%s6341_s19] sm:$0xff]  }
0x147a   : > { %2282 = vadd.xlane.f32.xlu1 %v2281_v6  ;;  %2602 = vmatprep.subr.bf16.mxu1 %v4458_v25  ;;  %v2331_v6 = vld [vmem:[%s6339_s17 + $0xb0] sm:$0xff]  ;;  %v4472_v23 = vcombine.high %v2316_v16, %v2324_v17  ;;  %v4471_v25 = vcombine.low %v2316_v16, %v2324_v17  ;;  %v5090_v55 = vld [vmem:[%s6341_s19 + $0x80] sm:$0xff]   ;;  %v2367_v16 = vsub.s32 5, %v5432_v19  ;;  %v2375_v17 = vsub.s32 7, %v5432_v19 }
0x147d   : > { %2603 = vmatpush1.bf16.msra.mxu1 %v4457_v27  ;;  %v5060_v27 = vld [vmem:[%s6341_s19 + $0xf8] sm:$0xff]  }
0x147e   : > { %2682 = vmatprep.subr.bf16.mxu1 %v4478_v34  ;;  %v5067_v34 = vld [vmem:[%s6341_s19 + $0x68] sm:$0xff]  }
0x1503   : > { %v2283_v9 = vpop.xlane.xlu1 %2282 }
0x1504   : > { %v2284_v7 = vmul.f32 0.03125, %v2283_v9  ;;  %v2339_v9 = vld [vmem:[%s6339_s17 + $0xf0] sm:$0xff] }
0x1505   : > { %v4486_v13 = vcombine.high %v2331_v6, %v2339_v9  ;;  %v4485_v18 = vcombine.low %v2331_v6, %v2339_v9 }
0x1506   : > { %v2285_v8 = vsub.f32 %v2278_v4, %v2284_v7  ;;  %v4466_v4 = vcombine.high %v2313_v61, %v2321_v62  ;;  %v2332_v7 = vld [vmem:[%s6339_s17 + $0xb8] sm:$0xff] }
0x1508   : > { %v2286_v10 = vmul.f32 %v2285_v8, %v2285_v8 }
0x150a   : > { %v2287_v12 = vsel %vm762_vm1, %v2286_v10, 0.0  ;;  %v4465_v10 = vcombine.low %v2313_v61, %v2321_v62  ;;  %v2347_v62 = vsub.s32 0, %v5432_v19 }
0x150b   : > { %2288 = vadd.xlane.f32.xlu1 %v2287_v12  ;;  %v4467_v12 = vcombine.low %v2314_v63, %v2322_v0  ;;  %v2355_v63 = vsub.s32 2, %v5432_v19  ;;  %v5948_v0 = vld [vmem:[%s6340_s18] sm:$0xff] }
0x1594   : > { %v2289_v38 = vpop.xlane.xlu1 %2288 }
0x1595   : > { %v2290_v39 = vmul.f32 0.03125, %v2289_v38  ;;  %v5072_v38 = vld [vmem:[%s6341_s19 + $0xe0] sm:$0xff]  }
0x1597   : > { %v2291_v40 = vadd.f32 1e-05, %v2290_v39  ;;  %v5073_v39 = vld [vmem:[%s6341_s19 + $0x20] sm:$0xff]  }
0x1599   : > { %5221 = vrsqrt.f32 %v2291_v40  ;;  %v5074_v40 = vld [vmem:[%s6341_s19 + $0xa0] sm:$0xff]  }
0x15a6   : > { %v5222_v41 = vpop.eup %5221 }
0x15a7   : > { %v2293_v42 = vmul.f32 %v5222_v41, %v2285_v8  ;;  %v2340_v8 = vld [vmem:[%s6339_s17 + $0xf8] sm:$0xff] }
0x15a8   : > { %v4488_v50 = vcombine.high %v2332_v7, %v2340_v8  ;;  %v4487_v22 = vcombine.low %v2332_v7, %v2340_v8  ;;  %v5075_v41 = vld [vmem:[%s6341_s19 + $0x58] sm:$0xff]  }
0x15a9   : > { %v2300_v43 = vmul.f32 %v4455_v11, %v2293_v42  ;;  %v5076_v11 = vld [vmem:[%s6341_s19 + $0xd8] sm:$0xff]  }
0x15aa   : > { %v5077_v42 = vld [vmem:[%s6341_s19 + $0x18] sm:$0xff]  }
0x15ab   : > { %v5754_v47 = vadd.f32 %v4456_v1, %v2300_v43  ;;  %v5078_v1 = vld [vmem:[%s6341_s19 + $0x98] sm:$0xff]   ;;  %v5079_v43 = vld [vmem:[%s6341_s19 + $0x50] sm:$0xff]  }
0x15ad   : > { %v5758_v48 = vpack.c.bf16 %v5754_v47, %v5754_v47 }
0x15af   : > { %4489 = vmatmul.mubr.msk.bf16.vlgmr.msra.gmra.mxu1 %vm762_vm1, %v5758_v48  ;;  %4490 = vmatmul.mubr.msk.bf16.vlgmr.msra.gmra.mxu0 %vm762_vm1, %v5758_v48 }
0x15b0   : > { %2683 = vmatpush1.bf16.msra.mxu1 %v4477_v36  ;;  %2724 = vmatpush1.bf16.msra.mxu0 %v4479_v37  ;;  %v5069_v36 = vld [vmem:[%s6341_s19 + $0x28] sm:$0xff]  }
0x15b1   : > { %2684 = vmatprep.subr.bf16.mxu1 %v4462_v49  ;;  %2725 = vmatprep.subr.bf16.mxu0 %v4464_v51  ;;  %v5070_v37 = vld [vmem:[%s6341_s19 + $0xa8] sm:$0xff]  }
0x15b2   : > { %2702 = vmatprep.mubr.bf16.mxu1 %v5246_v33  ;;  %2743 = vmatprep.mubr.bf16.mxu0 %v5246_v33  ;;  %v5085_v49 = vld [vmem:[%s6341_s19 + $0x8] sm:$0xff]  }
0x15b3   : > { %v5086_v51 = vld [vmem:[%s6341_s19 + $0x88] sm:$0xff]  }
0x15b4   : > { %2685 = vmatpush1.bf16.msra.mxu1 %v4461_v57  ;;  %2726 = vmatpush1.bf16.msra.mxu0 %v4463_v58  ;;  %v5091_v57 = vld [vmem:[%s6341_s19 + $0x178] sm:$0xff]  }
0x15b5   : > { %2764 = vmatprep.subr.bf16.mxu1 %v4482_v59  ;;  %2805 = vmatprep.subr.bf16.mxu0 %v4484_v60  ;;  %v5092_v58 = vld [vmem:[%s6341_s19 + $0x1f8] sm:$0xff]   ;;  %v2371_v59 = vsub.s32 6, %v5432_v19  ;;  %v5936_v60 = vld [vmem:[%s6340_s18 + $0x8] sm:$0xff] }
0x15b7   : > { %4491 = vmatmul.mubr.msk.bf16.vlgmr.msra.gmra.mxu1 %vm762_vm1, %v5758_v48  ;;  %4492 = vmatmul.mubr.msk.bf16.vlgmr.msra.gmra.mxu0 %vm762_vm1, %v5758_v48  ;;  %v5941_v61 = vrot.slane %v5936_v60, %v2371_v59 }
0x15b8   : > { %2765 = vmatpush1.bf16.msra.mxu1 %v4481_v21  ;;  %2806 = vmatpush1.bf16.msra.mxu0 %v4483_v20  ;;  %v2351_v21 = vsub.s32 1, %v5432_v19  ;;  %v2359_v20 = vsub.s32 3, %v5432_v19 }
0x15b9   : > { %2766 = vmatprep.subr.bf16.mxu1 %v4466_v4  ;;  %2807 = vmatprep.subr.bf16.mxu0 %v4468_v5  ;;  %v2348_v4 = vrot.slane %v5948_v0, %v2347_v62  ;;  %v2356_v5 = vrot.slane %v5948_v0, %v2355_v63 }
0x15ba   : > { %2784 = vmatprep.mubr.bf16.mxu1 %v5246_v33  ;;  %2825 = vmatprep.mubr.bf16.mxu0 %v5246_v33  ;;  %v2352_v6 = vrot.slane %v5948_v0, %v2351_v21  ;;  %v2360_v9 = vrot.slane %v5948_v0, %v2359_v20 }
0x15bc   : > { %2767 = vmatpush1.bf16.msra.mxu1 %v4465_v10  ;;  %2808 = vmatpush1.bf16.msra.mxu0 %v4467_v12 }
0x15bd   : > { %2846 = vmatprep.subr.bf16.mxu1 %v4486_v13  ;;  %2887 = vmatprep.subr.bf16.mxu0 %v4488_v50 }
0x15bf   : > { %4493 = vmatmul.mubr.msk.bf16.vlgmr.msra.gmra.mxu1 %vm762_vm1, %v5758_v48  ;;  %4494 = vmatmul.mubr.msk.bf16.vlgmr.msra.gmra.mxu0 %vm762_vm1, %v5758_v48 }
0x15c0   : > { %2847 = vmatpush1.bf16.msra.mxu1 %v4485_v18  ;;  %2888 = vmatpush1.bf16.msra.mxu0 %v4487_v22 }
0x15c1   : > { %2848 = vmatprep.subr.bf16.mxu1 %v4470_v2  ;;  %2889 = vmatprep.subr.bf16.mxu0 %v4472_v23 }
0x15c2   : > { %2866 = vmatprep.mubr.bf16.mxu1 %v5246_v33  ;;  %2907 = vmatprep.mubr.bf16.mxu0 %v5246_v33  ;;  %v5066_v33 = vld [vmem:[%s6341_s19 + $0xb0] sm:$0xff]  }
0x15c4   : > { %2849 = vmatpush1.bf16.msra.mxu1 %v4469_v24  ;;  %2890 = vmatpush1.bf16.msra.mxu0 %v4471_v25 }
0x15c5   : > { %4687 = vmatprep.subr.bf16.mxu1 %v5059_v26  ;;  %4709 = vmatprep.subr.bf16.mxu0 %v5060_v27 }
0x15c7   : > { %4495 = vmatmul.mubr.msk.bf16.vlgmr.msra.gmra.mxu1 %vm762_vm1, %v5758_v48  ;;  %4496 = vmatmul.mubr.msk.bf16.vlgmr.msra.gmra.mxu0 %vm762_vm1, %v5758_v48  ;;  %v5084_v48 = vld [vmem:[%s6341_s19 + $0xc8] sm:$0xff]  }
0x15c8   : > { %4688 = vmatpush3.bf16.msra.mxu1 %v5061_v28  ;;  %4710 = vmatpush3.bf16.msra.mxu0 %v5062_v29 }
0x15c9   : > { %4689 = vmatprep.subr.bf16.mxu1 %v5063_v30  ;;  %4711 = vmatprep.subr.bf16.mxu0 %v5064_v31  ;;  %v2368_v30 = vrot.slane %v5948_v0, %v2367_v16  ;;  %v2376_v31 = vrot.slane %v5948_v0, %v2375_v17 }
0x15cc   : > { %4690 = vmatpush3.bf16.msra.mxu1 %v5065_v32  ;;  %4712 = vmatpush3.bf16.msra.mxu0 %v5066_v33  ;;  %v5093_v32 = vld [vmem:[%s6341_s19 + $0x138] sm:$0xff]  }
0x15cd   : > { %4691 = vmatprep.subr.bf16.mxu1 %v5067_v34  ;;  %4713 = vmatprep.subr.bf16.mxu0 %v5068_v35  ;;  %v5094_v33 = vld [vmem:[%s6341_s19 + $0x1b8] sm:$0xff]  }
0x15d0   : > { %4692 = vmatpush3.bf16.msra.mxu1 %v5069_v36  ;;  %4714 = vmatpush3.bf16.msra.mxu0 %v5070_v37 }
0x15d1   : > { %4693 = vmatprep.subr.bf16.mxu1 %v5071_v3  ;;  %4715 = vmatprep.subr.bf16.mxu0 %v5072_v38  ;;  %v5095_v3 = vld [vmem:[%s6341_s19 + $0x170] sm:$0xff]  }
0x15d2   : > { %v5096_v38 = vld [vmem:[%s6341_s19 + $0x1f0] sm:$0xff]  }
0x15d4   : > { %4694 = vmatpush3.bf16.msra.mxu1 %v5073_v39  ;;  %4716 = vmatpush3.bf16.msra.mxu0 %v5074_v40 }
0x15d5   : > { %4695 = vmatprep.subr.bf16.mxu1 %v5075_v41  ;;  %4717 = vmatprep.subr.bf16.mxu0 %v5076_v11 }
0x15d8   : > { %4696 = vmatpush3.bf16.msra.mxu1 %v5077_v42  ;;  %4718 = vmatpush3.bf16.msra.mxu0 %v5078_v1  ;;  %v5097_v42 = vld [vmem:[%s6341_s19 + $0x130] sm:$0xff]  }
0x15d9   : > { %4697 = vmatprep.subr.bf16.mxu1 %v5079_v43  ;;  %4719 = vmatprep.subr.bf16.mxu0 %v5080_v44  ;;  %v5098_v1 = vld [vmem:[%s6341_s19 + $0x1b0] sm:$0xff]  }
0x15dc   : > { %4698 = vmatpush3.bf16.msra.mxu1 %v5081_v45  ;;  %4720 = vmatpush3.bf16.msra.mxu0 %v5082_v46  ;;  %v5099_v45 = vld [vmem:[%s6341_s19 + $0x168] sm:$0xff]  }
0x15dd   : > { %4699 = vmatprep.subr.bf16.mxu1 %v5083_v56  ;;  %4721 = vmatprep.subr.bf16.mxu0 %v5084_v48  ;;  %v5100_v46 = vld [vmem:[%s6341_s19 + $0x1e8] sm:$0xff]  }
0x15e0   : > { %4700 = vmatpush3.bf16.msra.mxu1 %v5085_v49  ;;  %4722 = vmatpush3.bf16.msra.mxu0 %v5086_v51 }
0x15e1   : > { %4701 = vmatprep.subr.bf16.mxu1 %v5087_v52  ;;  %4723 = vmatprep.subr.bf16.mxu0 %v5088_v53 }
0x15e4   : > { %4702 = vmatpush3.bf16.msra.mxu1 %v5089_v54  ;;  %4724 = vmatpush3.bf16.msra.mxu0 %v5090_v55  ;;  %v5101_v54 = vld [vmem:[%s6341_s19 + $0x128] sm:$0xff]  }
0x15e5   : > { %4731 = vmatprep.subr.bf16.mxu1 %v5091_v57  ;;  %4753 = vmatprep.subr.bf16.mxu0 %v5092_v58  ;;  %v5102_v55 = vld [vmem:[%s6341_s19 + $0x1a8] sm:$0xff]  }
0x166f   : > { %v2622_v7 = vpop.f32.mrf.mxu1  ;;  %v2663_v8 = vpop.f32.mrf.mxu0 }
0x1670   : > { %v2623_v10 = vadd.f32 %v2622_v7, %v2348_v4  ;;  %v2664_v12 = vadd.f32 %v2663_v8, %v2356_v5  ;;  %v5103_v4 = vld [vmem:[%s6341_s19 + $0x160] sm:$0xff]   ;;  %v2363_v7 = vsub.s32 4, %v5432_v19 }
0x1671   : > { %v2624_v13 = vpop.f32.mrf.mxu1  ;;  %v2665_v50 = vpop.f32.mrf.mxu0  ;;  %v5104_v5 = vld [vmem:[%s6341_s19 + $0x1e0] sm:$0xff]  }
0x1672   : > { %v2625_v14 = vadd.f32 %v2624_v13, %v2352_v6  ;;  %v2666_v15 = vadd.f32 %v2665_v50, %v2360_v9  ;;  %v2916_v18 = vmax.f32 %v2623_v10, 0.0  ;;  %v2918_v22 = vmax.f32 %v2664_v12, 0.0  ;;  %v5105_v8 = vld [vmem:[%s6341_s19 + $0x120] sm:$0xff]   ;;  %v5107_v50 = vld [vmem:[%s6341_s19 + $0x158] sm:$0xff]  }
0x1673   : > { %v2626_v2 = vpop.f32.mrf.mxu1  ;;  %v2667_v23 = vpop.f32.mrf.mxu0  ;;  %v5106_v10 = vld [vmem:[%s6341_s19 + $0x1a0] sm:$0xff]  }
0x1674   : > { %v2917_v24 = vmax.f32 %v2625_v14, 0.0  ;;  %v2919_v25 = vmax.f32 %v2666_v15, 0.0  ;;  %v2932_v34 = vpack.c.bf16 %v2916_v18, %v2916_v18  ;;  %v2934_v35 = vpack.c.bf16 %v2918_v22, %v2918_v22  ;;  %v5108_v14 = vld [vmem:[%s6341_s19 + $0x1d8] sm:$0xff]  }
0x1675   : > { %v2627_v26 = vpop.f32.mrf.mxu1  ;;  %v2668_v27 = vpop.f32.mrf.mxu0  ;;  %v2396_v15 = vrot.slane %v5936_v60, %v2363_v7  ;;  %v5109_v2 = vld [vmem:[%s6341_s19 + $0x118] sm:$0xff]  }
0x1676   : > { %v2933_v28 = vpack.c.bf16 %v2917_v24, %v2917_v24  ;;  %v2935_v29 = vpack.c.bf16 %v2919_v25, %v2919_v25  ;;  %v5110_v23 = vld [vmem:[%s6341_s19 + $0x198] sm:$0xff]   ;;  %v5111_v26 = vld [vmem:[%s6341_s19 + $0x150] sm:$0xff]  }
0x1677   : > { %v5978_v36 = vpop.f32.mrf.mxu1  ;;  %v5980_v37 = vpop.f32.mrf.mxu0  ;;  %v5112_v27 = vld [vmem:[%s6341_s19 + $0x1d0] sm:$0xff]  }
0x1678   : > { %4011 = vmatprep.mubr.bf16.mxu1 %v2933_v28  ;;  %4051 = vmatprep.mubr.bf16.mxu0 %v2935_v29 }
0x1679   : > { %v2706_v39 = vpop.f32.mrf.mxu1  ;;  %v2747_v40 = vpop.f32.mrf.mxu0  ;;  %4012 = vmatmul.mubr.bf16.vlgmr.msra.gmra.mxu1 %v2932_v34  ;;  %4052 = vmatmul.mubr.bf16.vlgmr.msra.gmra.mxu0 %v2934_v35  ;;  %v2364_v34 = vrot.slane %v5948_v0, %v2363_v7 }
0x167a   : > { %v2707_v41 = vadd.f32 %v2706_v39, %v2368_v30  ;;  %v2748_v11 = vadd.f32 %v2747_v40, %v2376_v31  ;;  %4732 = vmatpush3.bf16.msra.mxu1 %v5093_v32  ;;  %4754 = vmatpush3.bf16.msra.mxu0 %v5094_v33  ;;  %v5113_v32 = vld [vmem:[%s6341_s19 + $0x110] sm:$0xff]   ;;  %v5116_v39 = vld [vmem:[%s6341_s19 + $0x1c8] sm:$0xff]   ;;  %v2384_v40 = vrot.slane %v5936_v60, %v2351_v21 }
0x167b   : > { %v2708_v43 = vpop.f32.mrf.mxu1  ;;  %v2749_v44 = vpop.f32.mrf.mxu0  ;;  %4733 = vmatprep.subr.bf16.mxu1 %v5095_v3  ;;  %4755 = vmatprep.subr.bf16.mxu0 %v5096_v38  ;;  %v5114_v33 = vld [vmem:[%s6341_s19 + $0x190] sm:$0xff]   ;;  %v5115_v38 = vld [vmem:[%s6341_s19 + $0x148] sm:$0xff]  }
0x167c   : > { %v2921_v56 = vmax.f32 %v2707_v41, 0.0  ;;  %v2923_v48 = vmax.f32 %v2748_v11, 0.0  ;;  %v5117_v11 = vld [vmem:[%s6341_s19 + $0x108] sm:$0xff]   ;;  %v5120_v43 = vld [vmem:[%s6341_s19 + $0x1c0] sm:$0xff]  }
0x167d   : > { %v2709_v49 = vpop.f32.mrf.mxu1  ;;  %v2750_v51 = vpop.f32.mrf.mxu0 }
0x167e   : > { %v2937_v52 = vpack.c.bf16 %v2921_v56, %v2921_v56  ;;  %v2939_v53 = vpack.c.bf16 %v2923_v48, %v2923_v48  ;;  %4734 = vmatpush3.bf16.msra.mxu1 %v5097_v42  ;;  %4756 = vmatpush3.bf16.msra.mxu0 %v5098_v1  ;;  %v5118_v42 = vld [vmem:[%s6341_s19 + $0x188] sm:$0xff]   ;;  %v2705_v1 = vadd.f32 %v5978_v36, %v2364_v34  ;;  %v5121_v36 = vld [vmem:[%s6341_s19 + $0x100] sm:$0xff]   ;;  %v5123_v48 = vld [vmem:[%s6341_s19 + $0x278] sm:$0xff]  }
0x167f   : > { %v6006_v57 = vpop.f32.mrf.mxu1  ;;  %v6008_v58 = vpop.f32.mrf.mxu0  ;;  %4735 = vmatprep.subr.bf16.mxu1 %v5099_v45  ;;  %4757 = vmatprep.subr.bf16.mxu0 %v5100_v46  ;;  %v5124_v49 = vld [vmem:[%s6341_s19 + $0x2f8] sm:$0xff]   ;;  %v2380_v34 = vrot.slane %v5936_v60, %v2347_v62  ;;  %v2400_v62 = vrot.slane %v5936_v60, %v2367_v16  ;;  %v5151_v16 = vld [vmem:[%s6341_s19 + $0x240] sm:$0xff]  }
0x1680   : > { %4091 = vmatprep.mubr.bf16.mxu1 %v2937_v52  ;;  %4131 = vmatprep.mubr.bf16.mxu0 %v2939_v53  ;;  %v2920_v46 = vmax.f32 %v2705_v1, 0.0  ;;  %v5125_v53 = vld [vmem:[%s6341_s19 + $0x238] sm:$0xff]  }
0x1681   : > { %v2788_v6 = vpop.f32.mrf.mxu1  ;;  %v2829_v9 = vpop.f32.mrf.mxu0 }
0x1682   : > { %4736 = vmatpush3.bf16.msra.mxu1 %v5101_v54  ;;  %4758 = vmatpush3.bf16.msra.mxu0 %v5102_v55  ;;  %v2789_v44 = vadd.f32 %v2788_v6, %v2384_v40  ;;  %v2936_v54 = vpack.c.bf16 %v2920_v46, %v2920_v46  ;;  %v5127_v6 = vld [vmem:[%s6341_s19 + $0x270] sm:$0xff]   ;;  %v5149_v40 = vld [vmem:[%s6341_s19 + $0x208] sm:$0xff]  }
0x1683   : > { %v2790_v12 = vpop.f32.mrf.mxu1  ;;  %v2831_v13 = vpop.f32.mrf.mxu0  ;;  %4737 = vmatprep.subr.bf16.mxu1 %v5103_v4  ;;  %4759 = vmatprep.subr.bf16.mxu0 %v5104_v5  ;;  %v5126_v4 = vld [vmem:[%s6341_s19 + $0x2b8] sm:$0xff]  }
0x1684   : > { %v2925_v51 = vmax.f32 %v2789_v44, 0.0  ;;  %v5131_v12 = vld [vmem:[%s6341_s19 + $0x268] sm:$0xff]  }
0x1685   : > { %v2791_v18 = vpop.f32.mrf.mxu1  ;;  %v2832_v22 = vpop.f32.mrf.mxu0  ;;  %v5132_v13 = vld [vmem:[%s6341_s19 + $0x2e8] sm:$0xff]  }
0x1686   : > { %4738 = vmatpush3.bf16.msra.mxu1 %v5105_v8  ;;  %4760 = vmatpush3.bf16.msra.mxu0 %v5106_v10  ;;  %v2941_v5 = vpack.c.bf16 %v2925_v51, %v2925_v51  ;;  %v5129_v8 = vld [vmem:[%s6341_s19 + $0x230] sm:$0xff]   ;;  %v5136_v18 = vld [vmem:[%s6341_s19 + $0x2e0] sm:$0xff]   ;;  %v5164_v51 = vld [vmem:[%s6341_s19 + $0x3e8] sm:$0xff]  }
0x1687   : > { %v2868_v24 = vpop.f32.mrf.mxu1  ;;  %v2909_v25 = vpop.f32.mrf.mxu0  ;;  %4739 = vmatprep.subr.bf16.mxu1 %v5107_v50  ;;  %4761 = vmatprep.subr.bf16.mxu0 %v5108_v14  ;;  %v5130_v10 = vld [vmem:[%s6341_s19 + $0x2b0] sm:$0xff]   ;;  %v5133_v50 = vld [vmem:[%s6341_s19 + $0x228] sm:$0xff]   ;;  %v5137_v22 = vld [vmem:[%s6341_s19 + $0x220] sm:$0xff]  }
0x1688   : > { %v6042_v28 = vadd.f32 %v2868_v24, %v2396_v15  ;;  %v6045_v29 = vadd.f32 %v2909_v25, %v5941_v61  ;;  %v2372_v61 = vrot.slane %v5948_v0, %v2371_v59  ;;  %v2392_v59 = vrot.slane %v5936_v60, %v2359_v20  ;;  %v5119_v20 = vld [vmem:[%s6341_s19 + $0x140] sm:$0xff]   ;;  %v5134_v14 = vld [vmem:[%s6341_s19 + $0x2a8] sm:$0xff]   ;;  %v5140_v24 = vld [vmem:[%s6341_s19 + $0x2d8] sm:$0xff]  }
0x1689   : > { %v6047_v30 = vpop.f32.mrf.mxu1  ;;  %v6049_v31 = vpop.f32.mrf.mxu0  ;;  %v5135_v15 = vld [vmem:[%s6341_s19 + $0x260] sm:$0xff]   ;;  %v5141_v25 = vld [vmem:[%s6341_s19 + $0x218] sm:$0xff]  }
0x168a   : > { %4740 = vmatpush3.bf16.msra.mxu1 %v5109_v2  ;;  %4762 = vmatpush3.bf16.msra.mxu0 %v5110_v23  ;;  %v2746_v21 = vadd.f32 %v5980_v37, %v2372_v61  ;;  %v2830_v45 = vadd.f32 %v2829_v9, %v2392_v59  ;;  %v5122_v37 = vld [vmem:[%s6341_s19 + $0x180] sm:$0xff]   ;;  %v5128_v9 = vld [vmem:[%s6341_s19 + $0x2f0] sm:$0xff]   ;;  %v5139_v23 = vld [vmem:[%s6341_s19 + $0x258] sm:$0xff]  }
0x168b   : > { %v2872_v35 = vpop.f32.mrf.mxu1  ;;  %v2913_v3 = vpop.f32.mrf.mxu0  ;;  %4741 = vmatprep.subr.bf16.mxu1 %v5111_v26  ;;  %4763 = vmatprep.subr.bf16.mxu0 %v5112_v27  ;;  %v5138_v2 = vld [vmem:[%s6341_s19 + $0x2a0] sm:$0xff]   ;;  %v5142_v26 = vld [vmem:[%s6341_s19 + $0x298] sm:$0xff]   ;;  %v5143_v27 = vld [vmem:[%s6341_s19 + $0x250] sm:$0xff]  }
0x168c   : > { %v2922_v56 = vmax.f32 %v2746_v21, 0.0  ;;  %v2927_v52 = vmax.f32 %v2830_v45, 0.0  ;;  %v5146_v61 = vld [vmem:[%s6341_s19 + $0x290] sm:$0xff]   ;;  %v5147_v35 = vld [vmem:[%s6341_s19 + $0x248] sm:$0xff]   ;;  %v2388_v3 = vrot.slane %v5936_v60, %v2355_v63  ;;  %v2787_v63 = vadd.f32 %v6006_v57, %v2380_v34  ;;  %v5157_v21 = vld [vmem:[%s6341_s19 + $0x338] sm:$0xff]  }
0x168d   : > { %v2873_v0 = vpop.f32.mrf.mxu1  ;;  %v2914_v41 = vpop.f32.mrf.mxu0  ;;  %v5150_v59 = vld [vmem:[%s6341_s19 + $0x288] sm:$0xff]   ;;  %v5159_v45 = vld [vmem:[%s6341_s19 + $0x370] sm:$0xff]  }
0x168e   : > { %4742 = vmatpush3.bf16.msra.mxu1 %v5113_v32  ;;  %4764 = vmatpush3.bf16.msra.mxu0 %v5114_v33  ;;  %v2938_v55 = vpack.c.bf16 %v2922_v56, %v2922_v56  ;;  %v2943_v7 = vpack.c.bf16 %v2927_v52, %v2927_v52  ;;  %v5144_v32 = vld [vmem:[%s6341_s19 + $0x2d0] sm:$0xff]   ;;  %v2828_v19 = vadd.f32 %v6008_v58, %v2388_v3  ;;  %v5153_v0 = vld [vmem:[%s6341_s19 + $0x200] sm:$0xff]   ;;  %v2924_v41 = vmax.f32 %v2787_v63, 0.0  ;;  %v5165_v52 = vld [vmem:[%s6341_s19 + $0x328] sm:$0xff]  }
0x168f   : > { %4743 = vmatprep.subr.bf16.mxu1 %v5115_v38  ;;  %4765 = vmatprep.subr.bf16.mxu0 %v5116_v39  ;;  %v5145_v33 = vld [vmem:[%s6341_s19 + $0x210] sm:$0xff]   ;;  %v5148_v38 = vld [vmem:[%s6341_s19 + $0x2c8] sm:$0xff]   ;;  %v2408_v39 = vrot.slane %v5936_v60, %v2375_v17  ;;  %v5152_v60 = vld [vmem:[%s6341_s19 + $0x2c0] sm:$0xff]   ;;  %v2871_v17 = vadd.f32 %v6047_v30, %v2400_v62 }
0x1690   : > { %v5154_v58 = vld [vmem:[%s6341_s19 + $0x280] sm:$0xff]   ;;  %v5156_v30 = vld [vmem:[%s6341_s19 + $0x3f8] sm:$0xff]   ;;  %v5161_v56 = vld [vmem:[%s6341_s19 + $0x330] sm:$0xff]  }
0x1691   : > { %v2912_v57 = vadd.f32 %v6049_v31, %v2408_v39  ;;  %v2929_v31 = vmax.f32 %v2871_v17, 0.0 }
0x1692   : > { %4744 = vmatpush3.bf16.msra.mxu1 %v5117_v11  ;;  %4766 = vmatpush3.bf16.msra.mxu0 %v5118_v42  ;;  %v5155_v11 = vld [vmem:[%s6341_s19 + $0x378] sm:$0xff]   ;;  %v2926_v42 = vmax.f32 %v2828_v19, 0.0 }
0x1693   : > { %4745 = vmatprep.subr.bf16.mxu1 %v5119_v20  ;;  %4767 = vmatprep.subr.bf16.mxu0 %v5120_v43  ;;  %v2931_v1 = vmax.f32 %v2912_v57, 0.0  ;;  %v2940_v20 = vpack.c.bf16 %v2924_v41, %v2924_v41  ;;  %v5158_v43 = vld [vmem:[%s6341_s19 + $0x3b8] sm:$0xff]  }
0x1694   : > { %v2942_v44 = vpack.c.bf16 %v2926_v42, %v2926_v42 }
0x1695   : > { %v2947_v46 = vpack.c.bf16 %v2931_v1, %v2931_v1 }
0x1696   : > { %4746 = vmatpush3.bf16.msra.mxu1 %v5121_v36  ;;  %4768 = vmatpush3.bf16.msra.mxu0 %v5122_v37  ;;  %v2945_v36 = vpack.c.bf16 %v2929_v31, %v2929_v31  ;;  %v5160_v37 = vld [vmem:[%s6341_s19 + $0x3f0] sm:$0xff]  }
0x1697   : > { %4775 = vmatprep.subr.bf16.mxu1 %v5123_v48  ;;  %4797 = vmatprep.subr.bf16.mxu0 %v5124_v49  ;;  %v5162_v48 = vld [vmem:[%s6341_s19 + $0x3b0] sm:$0xff]   ;;  %v5163_v49 = vld [vmem:[%s6341_s19 + $0x368] sm:$0xff]  }
0x1699   : > { %4092 = vmatmul.mubr.bf16.vlgmr.msra.gmra.mxu1 %v2936_v54  ;;  %4132 = vmatmul.mubr.bf16.vlgmr.msra.gmra.mxu0 %v2938_v55  ;;  %v5167_v54 = vld [vmem:[%s6341_s19 + $0x360] sm:$0xff]  }
0x169a   : > { %4776 = vmatpush3.bf16.msra.mxu1 %v5125_v53  ;;  %4171 = vmatprep.mubr.bf16.mxu1 %v2941_v5  ;;  %v5166_v53 = vld [vmem:[%s6341_s19 + $0x3a8] sm:$0xff]   ;;  %v5168_v55 = vld [vmem:[%s6341_s19 + $0x3e0] sm:$0xff]  }
0x169b   : > { %4798 = vmatpush3.bf16.msra.mxu0 %v5126_v4  ;;  %4211 = vmatprep.mubr.bf16.mxu0 %v2943_v7  ;;  %v5169_v4 = vld [vmem:[%s6341_s19 + $0x320] sm:$0xff]   ;;  %v5173_v7 = vld [vmem:[%s6341_s19 + $0x318] sm:$0xff]  }
0x169c   : > { %4777 = vmatprep.subr.bf16.mxu1 %v5127_v6  ;;  %4799 = vmatprep.subr.bf16.mxu0 %v5128_v9  ;;  %v5170_v5 = vld [vmem:[%s6341_s19 + $0x3a0] sm:$0xff]   ;;  %v5171_v6 = vld [vmem:[%s6341_s19 + $0x358] sm:$0xff]  }
0x169d   : > { %v5172_v9 = vld [vmem:[%s6341_s19 + $0x3d8] sm:$0xff]  }
0x169e   : > { %4778 = vmatpush3.bf16.msra.mxu1 %v5129_v8  ;;  %v5174_v8 = vld [vmem:[%s6341_s19 + $0x398] sm:$0xff]  }
0x169f   : > { %4800 = vmatpush3.bf16.msra.mxu0 %v5130_v10  ;;  %4779 = vmatprep.subr.bf16.mxu1 %v5131_v12  ;;  %v5175_v10 = vld [vmem:[%s6341_s19 + $0x350] sm:$0xff]  }
0x16a0   : > { %4801 = vmatprep.subr.bf16.mxu0 %v5132_v13  ;;  %v5176_v12 = vld [vmem:[%s6341_s19 + $0x3d0] sm:$0xff]  }
0x16a1   : > { %v5177_v13 = vld [vmem:[%s6341_s19 + $0x310] sm:$0xff]  }
0x16a2   : > { %4780 = vmatpush3.bf16.msra.mxu1 %v5133_v50  ;;  %v5178_v50 = vld [vmem:[%s6341_s19 + $0x390] sm:$0xff]  }
0x16a3   : > { %4802 = vmatpush3.bf16.msra.mxu0 %v5134_v14  ;;  %4781 = vmatprep.subr.bf16.mxu1 %v5135_v15  ;;  %v5179_v14 = vld [vmem:[%s6341_s19 + $0x348] sm:$0xff]  }
0x16a4   : > { %4803 = vmatprep.subr.bf16.mxu0 %v5136_v18  ;;  %v5180_v15 = vld [vmem:[%s6341_s19 + $0x3c8] sm:$0xff]  }
0x16a5   : > { %v5181_v18 = vld [vmem:[%s6341_s19 + $0x308] sm:$0xff]  }
0x16a6   : > { %4782 = vmatpush3.bf16.msra.mxu1 %v5137_v22  ;;  %v5182_v22 = vld [vmem:[%s6341_s19 + $0x388] sm:$0xff]  }
0x16a7   : > { %4804 = vmatpush3.bf16.msra.mxu0 %v5138_v2  ;;  %4783 = vmatprep.subr.bf16.mxu1 %v5139_v23  ;;  %v5183_v2 = vld [vmem:[%s6341_s19 + $0x340] sm:$0xff]  }
0x16a8   : > { %4805 = vmatprep.subr.bf16.mxu0 %v5140_v24  ;;  %v5184_v23 = vld [vmem:[%s6341_s19 + $0x3c0] sm:$0xff]  }
0x16a9   : > { %v5185_v24 = vld [vmem:[%s6341_s19 + $0x300] sm:$0xff]  }
0x16aa   : > { %4784 = vmatpush3.bf16.msra.mxu1 %v5141_v25  ;;  %v2928_v25 = vmax.f32 %v6042_v28, 0.0  ;;  %v4497_v28 = vld [vmem:[%s6342_s20] ss:$0 sm:$0xff] }
0x16ab   : > { %4806 = vmatpush3.bf16.msra.mxu0 %v5142_v26  ;;  %4785 = vmatprep.subr.bf16.mxu1 %v5143_v27  ;;  %v5186_v26 = vld [vmem:[%s6341_s19 + $0x380] sm:$0xff]   ;;  %v2930_v27 = vmax.f32 %v6045_v29, 0.0 }
0x16ac   : > { %4807 = vmatprep.subr.bf16.mxu0 %v5144_v32  ;;  %v2944_v32 = vpack.c.bf16 %v2928_v25, %v2928_v25 }
0x16ae   : > { %4786 = vmatpush3.bf16.msra.mxu1 %v5145_v33  ;;  %v2946_v33 = vpack.c.bf16 %v2930_v27, %v2930_v27 }
0x16af   : > { %4808 = vmatpush3.bf16.msra.mxu0 %v5146_v61  ;;  %4787 = vmatprep.subr.bf16.mxu1 %v5147_v35 }
0x16b0   : > { %4809 = vmatprep.subr.bf16.mxu0 %v5148_v38 }
0x16b2   : > { %4788 = vmatpush3.bf16.msra.mxu1 %v5149_v40 }
0x16b3   : > { %4810 = vmatpush3.bf16.msra.mxu0 %v5150_v59  ;;  %4789 = vmatprep.subr.bf16.mxu1 %v5151_v16 }
0x16b4   : > { %4811 = vmatprep.subr.bf16.mxu0 %v5152_v60 }
0x16b6   : > { %4790 = vmatpush3.bf16.msra.mxu1 %v5153_v0 }
0x16b7   : > { %4812 = vmatpush3.bf16.msra.mxu0 %v5154_v58  ;;  %4819 = vmatprep.subr.bf16.mxu1 %v5155_v11 }
0x16b8   : > { %4841 = vmatprep.subr.bf16.mxu0 %v5156_v30 }
0x16b9   : > { %4172 = vmatmul.mubr.bf16.vlgmr.msra.gmra.mxu1 %v2940_v20 }
0x16ba   : > { %4212 = vmatmul.mubr.bf16.vlgmr.msra.gmra.mxu0 %v2942_v44  ;;  %4820 = vmatpush3.bf16.msra.mxu1 %v5157_v21 }
0x16bb   : > { %4251 = vmatprep.mubr.bf16.mxu1 %v2945_v36  ;;  %4842 = vmatpush3.bf16.msra.mxu0 %v5158_v43 }
0x16bc   : > { %4291 = vmatprep.mubr.bf16.mxu0 %v2947_v46  ;;  %4821 = vmatprep.subr.bf16.mxu1 %v5159_v45 }
0x16bd   : > { %4843 = vmatprep.subr.bf16.mxu0 %v5160_v37 }
0x16be   : > { %4822 = vmatpush3.bf16.msra.mxu1 %v5161_v56 }
0x16bf   : > { %4844 = vmatpush3.bf16.msra.mxu0 %v5162_v48  ;;  %4823 = vmatprep.subr.bf16.mxu1 %v5163_v49 }
0x16c0   : > { %4845 = vmatprep.subr.bf16.mxu0 %v5164_v51 }
0x16c2   : > { %4824 = vmatpush3.bf16.msra.mxu1 %v5165_v52 }
0x16c3   : > { %4846 = vmatpush3.bf16.msra.mxu0 %v5166_v53  ;;  %4825 = vmatprep.subr.bf16.mxu1 %v5167_v54 }
0x16c4   : > { %4847 = vmatprep.subr.bf16.mxu0 %v5168_v55 }
0x16c6   : > { %4826 = vmatpush3.bf16.msra.mxu1 %v5169_v4 }
0x16c7   : > { %4848 = vmatpush3.bf16.msra.mxu0 %v5170_v5  ;;  %4827 = vmatprep.subr.bf16.mxu1 %v5171_v6 }
0x16c8   : > { %4849 = vmatprep.subr.bf16.mxu0 %v5172_v9 }
0x16ca   : > { %4828 = vmatpush3.bf16.msra.mxu1 %v5173_v7 }
0x16cb   : > { %4850 = vmatpush3.bf16.msra.mxu0 %v5174_v8  ;;  %4829 = vmatprep.subr.bf16.mxu1 %v5175_v10 }
0x16cc   : > { %4851 = vmatprep.subr.bf16.mxu0 %v5176_v12 }
0x16ce   : > { %4830 = vmatpush3.bf16.msra.mxu1 %v5177_v13 }
0x16cf   : > { %4852 = vmatpush3.bf16.msra.mxu0 %v5178_v50  ;;  %4831 = vmatprep.subr.bf16.mxu1 %v5179_v14 }
0x16d0   : > { %4853 = vmatprep.subr.bf16.mxu0 %v5180_v15 }
0x16d2   : > { %4832 = vmatpush3.bf16.msra.mxu1 %v5181_v18 }
0x16d3   : > { %4854 = vmatpush3.bf16.msra.mxu0 %v5182_v22  ;;  %4833 = vmatprep.subr.bf16.mxu1 %v5183_v2 }
0x16d4   : > { %4855 = vmatprep.subr.bf16.mxu0 %v5184_v23 }
0x16d6   : > { %4834 = vmatpush3.bf16.msra.mxu1 %v5185_v24 }
0x16d7   : > { %4856 = vmatpush3.bf16.msra.mxu0 %v5186_v26 }
0x16d9   : > { %4252 = vmatmul.mubr.bf16.vlgmr.msra.gmra.mxu1 %v2944_v32  ;;  %v4627_v32 = vld [vmem:[%s6344_s22] ss:$0 sm:$0xff] }
0x16da   : > { %4292 = vmatmul.mubr.bf16.vlgmr.msra.gmra.mxu0 %v2946_v33 }
0x1739   : > { %v4703_v34 = vpop.f32.mrf.mxu1  ;;  %v4725_v61 = vpop.f32.mrf.mxu0 }
0x173b   : > { %v4704_v35 = vpop.f32.mrf.mxu1  ;;  %v4726_v3 = vpop.f32.mrf.mxu0 }
0x173c   : > { %v4705_v38 = vadd.f32 %v4704_v35, %v4703_v34  ;;  %v4727_v62 = vadd.f32 %v4726_v3, %v4725_v61 }
0x173d   : > { %v4706_v39 = vpop.f32.mrf.mxu1  ;;  %v4728_v40 = vpop.f32.mrf.mxu0 }
0x173e   : > { %v4014_v29 = vadd.f32 %v4705_v38, %v4497_v28 }
0x173f   : > { %v4707_v63 = vpop.f32.mrf.mxu1  ;;  %v4729_v59 = vpop.f32.mrf.mxu0 }
0x1740   : > { %v4054_v16 = vadd.f32 %v4727_v62, %v4014_v29 }
0x1759   : > { %v4747_v19 = vpop.f32.mrf.mxu1  ;;  %v4769_v60 = vpop.f32.mrf.mxu0 }
0x175b   : > { %v4748_v17 = vpop.f32.mrf.mxu1  ;;  %v4770_v57 = vpop.f32.mrf.mxu0 }
0x175c   : > { %v4749_v45 = vadd.f32 %v4748_v17, %v4747_v19  ;;  %v4771_v37 = vadd.f32 %v4770_v57, %v4769_v60 }
0x175d   : > { %v4750_v0 = vpop.f32.mrf.mxu1  ;;  %v4772_v41 = vpop.f32.mrf.mxu0 }
0x175e   : > { %v4094_v36 = vadd.f32 %v4749_v45, %v4054_v16 }
0x175f   : > { %v4751_v58 = vpop.f32.mrf.mxu1  ;;  %v4773_v11 = vpop.f32.mrf.mxu0 }
0x1760   : > { %v4134_v56 = vadd.f32 %v4771_v37, %v4094_v36 }
0x1779   : > { %v4791_v42 = vpop.f32.mrf.mxu1 }
0x177a   : > { %v4813_v30 = vpop.f32.mrf.mxu0 }
0x177b   : > { %v4792_v31 = vpop.f32.mrf.mxu1 }
0x177c   : > { %v4814_v1 = vpop.f32.mrf.mxu0  ;;  %v4793_v46 = vadd.f32 %v4792_v31, %v4791_v42 }
0x177d   : > { %v4794_v21 = vpop.f32.mrf.mxu1  ;;  %v4815_v51 = vadd.f32 %v4814_v1, %v4813_v30 }
0x177e   : > { %v4816_v20 = vpop.f32.mrf.mxu0  ;;  %v4174_v48 = vadd.f32 %v4793_v46, %v4134_v56 }
0x177f   : > { %v4795_v43 = vpop.f32.mrf.mxu1 }
0x1780   : > { %v4817_v44 = vpop.f32.mrf.mxu0  ;;  %v4214_v54 = vadd.f32 %v4815_v51, %v4174_v48 }
0x1799   : > { %v4835_v49 = vpop.f32.mrf.mxu1 }
0x179a   : > { %v4857_v52 = vpop.f32.mrf.mxu0 }
0x179b   : > { %v4836_v53 = vpop.f32.mrf.mxu1 }
0x179c   : > { %v4837_v55 = vadd.f32 %v4836_v53, %v4835_v49  ;;  %v4858_v4 = vpop.f32.mrf.mxu0 }
0x179d   : > { %v4838_v5 = vpop.f32.mrf.mxu1  ;;  %v4859_v9 = vadd.f32 %v4858_v4, %v4857_v52 }
0x179e   : > { %v4254_v6 = vadd.f32 %v4837_v55, %v4214_v54  ;;  %v4860_v7 = vpop.f32.mrf.mxu0 }
0x179f   : > { %v4839_v8 = vpop.f32.mrf.mxu1 }
0x17a0   : > { %v4294_v10 = vadd.f32 %v4859_v9, %v4254_v6  ;;  %v4861_v12 = vpop.f32.mrf.mxu0 }
0x17a2   : > { %v4299_v13 = vadd.f32 %v4294_v10, %v5754_v47  ;;  %v4626_v47 = vld [vmem:[%s6343_s21] ss:$0 sm:$0xff] }
0x17a4   : > { %v4302_v50 = vsel %vm762_vm1, %v4299_v13, 0.0 }
0x17a5   : > { %4303 = vadd.xlane.f32.xlu1 %v4302_v50 }
0x182e   : > { %v4304_v14 = vpop.xlane.xlu1 %4303 }
0x182f   : > { %v4305_v15 = vmul.f32 0.03125, %v4304_v14 }
0x1831   : > { %v4306_v18 = vsub.f32 %v4299_v13, %v4305_v15 }
0x1833   : > { %v4307_v22 = vmul.f32 %v4306_v18, %v4306_v18 }
0x1835   : > { %v4308_v2 = vsel %vm762_vm1, %v4307_v22, 0.0 }
0x1836   : > { %4309 = vadd.xlane.f32.xlu1 %v4308_v2 }
0x18bf   : > { %v4310_v23 = vpop.xlane.xlu1 %4309 }
0x18c0   : > { %v4311_v24 = vmul.f32 0.03125, %v4310_v23 }
0x18c2   : > { %v4312_v25 = vadd.f32 1e-05, %v4311_v24 }
0x18c4   : > { %5223 = vrsqrt.f32 %v4312_v25 }
0x18d1   : > { %v5224_v26 = vpop.eup %5223 }
0x18d2   : > { %v4314_v27 = vmul.f32 %v5224_v26, %v4306_v18 }
0x18d4   : > { %v4321_v33 = vmul.f32 %v4626_v47, %v4314_v27 }
0x18d6   : > { %v4328_v34 = vadd.f32 %v4627_v32, %v4321_v33 }
0x18d8   : > { %v4329_v61 = vpack.c.bf16 %v4328_v34, %v4328_v34 }
0x18da   : > { %4331 = vst.msk [vmem:[%s736_s7] sm:$0xf] %vm4330_vm5, %v4329_v61 }
0x18db PF: > { %s33_s4 = sadd.s32 1, %s5231_s4  }
0x18dc   : > { %p30_p4 = scmp.ge.s32.totalorder %s33_s4, 4  }
0x18de   :  { %32 = sbr.rel (!%p30_p4) target bundleno = 9 (0x9), region = 148 }

</bundles_post_ra>
